<compile_context>
chip_gen: v7x
topology: tpu7x:2x2x1
jax: 0.10.0
libtpu: 0.0.40
codegen_flags: <defaults>
</compile_context>

<pallas_src>
import math

import jax
import jax.numpy as jnp
from jax.experimental import pallas as pl
from jax.experimental.pallas import tpu as pltpu

HEADS = 8
DIM = 64 // HEADS          # 8   head dim
EMB = DIM * 8              # 64  linear_0 in / linear_1 out features
HD = HEADS * DIM           # 64  heads packed along lanes (hidden)
HE = HEADS * EMB           # 512 heads packed along lanes (in/out)
DROP_P = 0.1
KEEP_P = 1.0 - DROP_P
SCALE = 1.0 / math.sqrt(DIM)


# ----------------------------------------------------------------------------
# Fused attention + per-head FFN kernel: one batch element per grid step.
# ----------------------------------------------------------------------------
def _fused_kernel(q_ref, k_ref, v_ref, mask_ref, dka_ref,
                  x_ref, dkf_ref, w0_ref, b0_ref, w1_ref, b1_ref,
                  o_ref, ctx_ref):
    # ---------------- attention (all heads batched) ----------------
    q = q_ref[...]                                   # [H, S, D] bf16
    k = k_ref[...]                                   # [H, S, D] bf16
    v = v_ref[...]                                   # [H, S, D] bf16

    s = jnp.einsum('hqd,hkd->hqk', q, k,
                   preferred_element_type=jnp.float32)          # [H, S, S] f32
    s = s * SCALE + mask_ref[...]                                # mask broadcast over heads
    s = s - jnp.max(s, axis=-1, keepdims=True)
    e = jnp.exp(s)
    p = e / jnp.sum(e, axis=-1, keepdims=True)                   # softmax (f32)
    p = p * dka_ref[...]                                         # dropout (pre-scaled keep mask)

    ctx = jnp.einsum('hqk,hkd->hqd', p.astype(jnp.bfloat16), v,
                     preferred_element_type=jnp.float32)         # [H, S, D] f32

    # pack heads along lanes -> [S, H*D] (matches the FFN hidden layout)
    for h in range(HEADS):
        ctx_ref[:, h * DIM:(h + 1) * DIM] = ctx[h]

    # ---------------- per-head FFN (heads packed along lanes) ----------------
    hid = jnp.dot(x_ref[...], w0_ref[...],
                  preferred_element_type=jnp.float32) + b0_ref[...]   # [S, H*D]
    hid = jnp.maximum(hid, 0.0)          # TODO(synk): F.activation undefined -> ReLU
    hid = hid * dkf_ref[...]             # dropout (pre-scaled keep mask)
    hid = hid + ctx_ref[...]             # x + context

    y = jnp.dot(hid, w1_ref[...],
                preferred_element_type=jnp.float32) + b1_ref[...]     # [S, H*E]
    o_ref[...] = jnp.maximum(y, 0.0).astype(o_ref.dtype)


def fused_forward(qh, kh, vh, mask2d, dka, x, dkf, w0blk, b0t, w1blk, b1t):
    B, H, S, D = qh.shape
    he = x.shape[-1]
    hd = dkf.shape[-1]
    return pl.pallas_call(
        _fused_kernel,
        out_shape=jax.ShapeDtypeStruct((B, S, he), jnp.float32),
        grid=(B,),
        in_specs=[
            pl.BlockSpec((None, H, S, D), lambda b: (b, 0, 0, 0)),   # q
            pl.BlockSpec((None, H, S, D), lambda b: (b, 0, 0, 0)),   # k
            pl.BlockSpec((None, H, S, D), lambda b: (b, 0, 0, 0)),   # v
            pl.BlockSpec((S, S),          lambda b: (0, 0)),         # attn mask
            pl.BlockSpec((None, H, S, S), lambda b: (b, 0, 0, 0)),   # attn dropout keep
            pl.BlockSpec((None, S, he),   lambda b: (b, 0, 0)),      # x (lane-dense)
            pl.BlockSpec((None, S, hd),   lambda b: (b, 0, 0)),      # ffn dropout keep
            pl.BlockSpec((he, hd),        lambda b: (0, 0)),         # W0 block-diag
            pl.BlockSpec((1, hd),         lambda b: (0, 0)),         # b0 tiled
            pl.BlockSpec((hd, he),        lambda b: (0, 0)),         # W1 block-diag
            pl.BlockSpec((1, he),         lambda b: (0, 0)),         # b1 tiled
        ],
        out_specs=pl.BlockSpec((None, S, he), lambda b: (b, 0, 0)),
        scratch_shapes=[pltpu.VMEM((S, hd), jnp.float32)],
        compiler_params=pltpu.CompilerParams(
            dimension_semantics=("parallel",)),
    )(qh, kh, vh, mask2d, dka, x, dkf, w0blk, b0t, w1blk, b1t)


# ----------------------------------------------------------------------------
# Wrapper: layout plumbing (head split, block-diagonal per-head linears,
# host-side dropout masks) done in plain JAX outside the kernel.
# ----------------------------------------------------------------------------
def model_forward(x, q, k, v, attn_mask, params, key):
    """x: [B,S,H*E]; q/k/v: [B,S,H*D]; attn_mask: [1,1,S,S]."""
    w0, b0, w1, b1 = params
    B, S, _ = q.shape

    def split_heads(t):  # [B,S,H*D] -> [B,H,S,D], bf16 MXU operands
        return t.reshape(B, S, HEADS, DIM).transpose(0, 2, 1, 3).astype(jnp.bfloat16)

    qh, kh, vh = split_heads(q), split_heads(k), split_heads(v)
    mask2d = attn_mask.reshape(S, S).astype(jnp.float32)

    # dropout keep-masks (training=True), pre-scaled by 1/keep_p
    ka, kf = jax.random.split(key)
    dka = jax.random.bernoulli(ka, KEEP_P, (B, HEADS, S, S)).astype(jnp.float32) / KEEP_P
    dkf = jax.random.bernoulli(kf, KEEP_P, (B, S, HD)).astype(jnp.float32) / KEEP_P

    # shared per-head linears -> block-diagonal so heads pack along lanes
    w0blk = jax.scipy.linalg.block_diag(*([w0] * HEADS)).astype(jnp.float32)   # [H*E, H*D]
    b0t = jnp.tile(b0.reshape(1, -1), (1, HEADS)).astype(jnp.float32)          # [1, H*D]
    w1blk = jax.scipy.linalg.block_diag(*([w1] * HEADS)).astype(jnp.float32)   # [H*D, H*E]
    b1t = jnp.tile(b1.reshape(1, -1), (1, HEADS)).astype(jnp.float32)          # [1, H*E]

    return fused_forward(qh, kh, vh, mask2d, dka, x.astype(jnp.float32),
                         dkf, w0blk, b0t, w1blk, b1t)


if __name__ == "__main__":
    B, S = 2, 128

    key = jax.random.PRNGKey(0)
    kq, kk, kv, km, kx, kw0, kb0, kw1, kb1, kd = jax.random.split(key, 10)

    q = jax.random.normal(kq, (B, S, HD), dtype=jnp.float32)
    k = jax.random.normal(kk, (B, S, HD), dtype=jnp.float32)
    v = jax.random.normal(kv, (B, S, HD), dtype=jnp.float32)
    attn_mask = jax.random.normal(km, (1, 1, S, S), dtype=jnp.float32)
    x = jax.random.normal(kx, (B, S, HE), dtype=jnp.float32)

    # deterministic parameter init (Linear stored as [in, out])
    w0 = jax.random.normal(kw0, (EMB, DIM), dtype=jnp.float32) / math.sqrt(EMB)
    b0 = jax.random.normal(kb0, (DIM,), dtype=jnp.float32) * 0.02
    w1 = jax.random.normal(kw1, (DIM, EMB), dtype=jnp.float32) / math.sqrt(DIM)
    b1 = jax.random.normal(kb1, (EMB,), dtype=jnp.float32) * 0.02

    out = model_forward(x, q, k, v, attn_mask, (w0, b0, w1, b1), kd)
    jax.block_until_ready(out)
    assert out.shape == (B, S, HE) and out.dtype == jnp.float32
    assert bool(jnp.all(jnp.isfinite(out)))
    print("KERNEL_OK")
</pallas_src>

<mosaic_0001>
module attributes {stable_mosaic.version = 11 : i64} {
  func.func @_fused_kernel(%arg0: i32, %arg1: memref<1x8x128x8xbf16, #tpu.memory_space<vmem>>, %arg2: memref<1x8x128x8xbf16, #tpu.memory_space<vmem>>, %arg3: memref<1x8x128x8xbf16, #tpu.memory_space<vmem>>, %arg4: memref<128x128xf32, #tpu.memory_space<vmem>>, %arg5: memref<1x8x128x128xf32, #tpu.memory_space<vmem>>, %arg6: memref<1x128x512xf32, #tpu.memory_space<vmem>>, %arg7: memref<1x128x64xf32, #tpu.memory_space<vmem>>, %arg8: memref<512x64xf32, #tpu.memory_space<vmem>>, %arg9: memref<1x64xf32, #tpu.memory_space<vmem>>, %arg10: memref<64x512xf32, #tpu.memory_space<vmem>>, %arg11: memref<1x512xf32, #tpu.memory_space<vmem>>, %arg12: memref<1x128x512xf32, #tpu.memory_space<vmem>>, %arg13: memref<128x64xf32, #tpu.memory_space<vmem>>) attributes {dimension_semantics = [#tpu.dimension_semantics<parallel>], iteration_bounds = array<i64: 2>, scalar_prefetch = 0 : i64, scratch_operands = 1 : i64, tpu.core_type = #tpu.core_type<tc>, window_params = [{transform_indices = @transform_0, window_bounds = array<i64: 1, 8, 128, 8>}, {transform_indices = @transform_1, window_bounds = array<i64: 1, 8, 128, 8>}, {transform_indices = @transform_2, window_bounds = array<i64: 1, 8, 128, 8>}, {pipeline_mode = #tpu.pipeline_mode<synchronous>, transform_indices = @transform_3, window_bounds = array<i64: 128, 128>}, {transform_indices = @transform_4, window_bounds = array<i64: 1, 8, 128, 128>}, {transform_indices = @transform_5, window_bounds = array<i64: 1, 128, 512>}, {transform_indices = @transform_6, window_bounds = array<i64: 1, 128, 64>}, {pipeline_mode = #tpu.pipeline_mode<synchronous>, transform_indices = @transform_7, window_bounds = array<i64: 512, 64>}, {pipeline_mode = #tpu.pipeline_mode<synchronous>, transform_indices = @transform_8, window_bounds = array<i64: 1, 64>}, {pipeline_mode = #tpu.pipeline_mode<synchronous>, transform_indices = @transform_9, window_bounds = array<i64: 64, 512>}, {pipeline_mode = #tpu.pipeline_mode<synchronous>, transform_indices = @transform_10, window_bounds = array<i64: 1, 512>}, {transform_indices = @transform_11, window_bounds = array<i64: 1, 128, 512>}]} {
    %c0 = arith.constant 0 : index
    %c0_0 = arith.constant 0 : index
    %c0_1 = arith.constant 0 : index
    %c0_2 = arith.constant 0 : index
    %0 = vector.load %arg1[%c0, %c0_0, %c0_1, %c0_2] : memref<1x8x128x8xbf16, #tpu.memory_space<vmem>>, vector<1x8x128x8xbf16>
    %1 = vector.shape_cast %0 : vector<1x8x128x8xbf16> to vector<8x128x8xbf16>
    %c0_3 = arith.constant 0 : index
    %c0_4 = arith.constant 0 : index
    %c0_5 = arith.constant 0 : index
    %c0_6 = arith.constant 0 : index
    %2 = vector.load %arg2[%c0_3, %c0_4, %c0_5, %c0_6] : memref<1x8x128x8xbf16, #tpu.memory_space<vmem>>, vector<1x8x128x8xbf16>
    %3 = vector.shape_cast %2 : vector<1x8x128x8xbf16> to vector<8x128x8xbf16>
    %c0_7 = arith.constant 0 : index
    %c0_8 = arith.constant 0 : index
    %c0_9 = arith.constant 0 : index
    %c0_10 = arith.constant 0 : index
    %4 = vector.load %arg3[%c0_7, %c0_8, %c0_9, %c0_10] : memref<1x8x128x8xbf16, #tpu.memory_space<vmem>>, vector<1x8x128x8xbf16>
    %5 = vector.shape_cast %4 : vector<1x8x128x8xbf16> to vector<8x128x8xbf16>
    "tpu.trace_start"() <{level = 10 : i32, message = "hqd,hkd->hqk"}> : () -> ()
    %cst = arith.constant dense<0.000000e+00> : vector<8x128x128xf32>
    %6 = tpu.matmul %1, %3, %cst {dimension_numbers = #tpu.dot_dimension_numbers<[2], [2], [1], [1], [0, 0, 0, 1, 1, 1], [0], [0]>} : vector<8x128x8xbf16>, vector<8x128x8xbf16>, vector<8x128x128xf32> -> vector<8x128x128xf32>
    "tpu.trace_stop"() : () -> ()
    %cst_11 = arith.constant 0.353553385 : f32
    %7 = vector.broadcast %cst_11 : f32 to vector<8x128x128xf32>
    %8 = arith.mulf %6, %7 : vector<8x128x128xf32>
    %c0_12 = arith.constant 0 : index
    %c0_13 = arith.constant 0 : index
    %9 = vector.load %arg4[%c0_12, %c0_13] : memref<128x128xf32, #tpu.memory_space<vmem>>, vector<128x128xf32>
    %10 = vector.shape_cast %9 : vector<128x128xf32> to vector<1x128x128xf32>
    %11 = vector.broadcast %10 : vector<1x128x128xf32> to vector<8x128x128xf32>
    %12 = arith.addf %8, %11 : vector<8x128x128xf32>
    %cst_14 = arith.constant dense<0xFF800000> : vector<8x128xf32>
    %13 = vector.multi_reduction <maximumf>, %12, %cst_14 [2] : vector<8x128x128xf32> to vector<8x128xf32>
    %14 = vector.shape_cast %13 : vector<8x128xf32> to vector<8x128x1xf32>
    %15 = vector.broadcast %14 : vector<8x128x1xf32> to vector<8x128x128xf32>
    %16 = arith.subf %12, %15 : vector<8x128x128xf32>
    %17 = math.exp %16 : vector<8x128x128xf32>
    %cst_15 = arith.constant dense<0.000000e+00> : vector<8x128xf32>
    %18 = vector.multi_reduction <add>, %17, %cst_15 [2] : vector<8x128x128xf32> to vector<8x128xf32>
    %19 = vector.shape_cast %18 : vector<8x128xf32> to vector<8x128x1xf32>
    %20 = vector.broadcast %19 : vector<8x128x1xf32> to vector<8x128x128xf32>
    %21 = arith.divf %17, %20 : vector<8x128x128xf32>
    %c0_16 = arith.constant 0 : index
    %c0_17 = arith.constant 0 : index
    %c0_18 = arith.constant 0 : index
    %c0_19 = arith.constant 0 : index
    %22 = vector.load %arg5[%c0_16, %c0_17, %c0_18, %c0_19] : memref<1x8x128x128xf32, #tpu.memory_space<vmem>>, vector<1x8x128x128xf32>
    %23 = vector.shape_cast %22 : vector<1x8x128x128xf32> to vector<8x128x128xf32>
    %24 = arith.mulf %21, %23 : vector<8x128x128xf32>
    %25 = arith.truncf %24 : vector<8x128x128xf32> to vector<8x128x128xbf16>
    "tpu.trace_start"() <{level = 10 : i32, message = "hqk,hkd->hqd"}> : () -> ()
    %cst_20 = arith.constant dense<0.000000e+00> : vector<8x128x8xf32>
    %26 = tpu.matmul %25, %5, %cst_20 {dimension_numbers = #tpu.dot_dimension_numbers<[2], [1], [1], [2], [0, 0, 0, 1, 1, 2], [0], [0]>} : vector<8x128x128xbf16>, vector<8x128x8xbf16>, vector<8x128x8xf32> -> vector<8x128x8xf32>
    "tpu.trace_stop"() : () -> ()
    %27 = vector.extract_strided_slice %26 {offsets = [0, 0, 0], sizes = [1, 128, 8], strides = [1, 1, 1]} : vector<8x128x8xf32> to vector<1x128x8xf32>
    %28 = vector.shape_cast %27 : vector<1x128x8xf32> to vector<128x8xf32>
    %c0_21 = arith.constant 0 : index
    %c0_22 = arith.constant 0 : index
    %29 = vector.load %arg13[%c0_21, %c0_22] : memref<128x64xf32, #tpu.memory_space<vmem>>, vector<128x8xf32>
    tpu.vector_store %arg13[%c0_21, %c0_22], %28 {strides = array<i32>} : memref<128x64xf32, #tpu.memory_space<vmem>>, vector<128x8xf32>,
    %30 = vector.extract_strided_slice %26 {offsets = [1, 0, 0], sizes = [1, 128, 8], strides = [1, 1, 1]} : vector<8x128x8xf32> to vector<1x128x8xf32>
    %31 = vector.shape_cast %30 : vector<1x128x8xf32> to vector<128x8xf32>
    %c0_23 = arith.constant 0 : index
    %c8 = arith.constant 8 : index
    %32 = vector.load %arg13[%c0_23, %c8] : memref<128x64xf32, #tpu.memory_space<vmem>>, vector<128x8xf32>
    tpu.vector_store %arg13[%c0_23, %c8], %31 {strides = array<i32>} : memref<128x64xf32, #tpu.memory_space<vmem>>, vector<128x8xf32>,
    %33 = vector.extract_strided_slice %26 {offsets = [2, 0, 0], sizes = [1, 128, 8], strides = [1, 1, 1]} : vector<8x128x8xf32> to vector<1x128x8xf32>
    %34 = vector.shape_cast %33 : vector<1x128x8xf32> to vector<128x8xf32>
    %c0_24 = arith.constant 0 : index
    %c16 = arith.constant 16 : index
    %35 = vector.load %arg13[%c0_24, %c16] : memref<128x64xf32, #tpu.memory_space<vmem>>, vector<128x8xf32>
    tpu.vector_store %arg13[%c0_24, %c16], %34 {strides = array<i32>} : memref<128x64xf32, #tpu.memory_space<vmem>>, vector<128x8xf32>,
    %36 = vector.extract_strided_slice %26 {offsets = [3, 0, 0], sizes = [1, 128, 8], strides = [1, 1, 1]} : vector<8x128x8xf32> to vector<1x128x8xf32>
    %37 = vector.shape_cast %36 : vector<1x128x8xf32> to vector<128x8xf32>
    %c0_25 = arith.constant 0 : index
    %c24 = arith.constant 24 : index
    %38 = vector.load %arg13[%c0_25, %c24] : memref<128x64xf32, #tpu.memory_space<vmem>>, vector<128x8xf32>
    tpu.vector_store %arg13[%c0_25, %c24], %37 {strides = array<i32>} : memref<128x64xf32, #tpu.memory_space<vmem>>, vector<128x8xf32>,
    %39 = vector.extract_strided_slice %26 {offsets = [4, 0, 0], sizes = [1, 128, 8], strides = [1, 1, 1]} : vector<8x128x8xf32> to vector<1x128x8xf32>
    %40 = vector.shape_cast %39 : vector<1x128x8xf32> to vector<128x8xf32>
    %c0_26 = arith.constant 0 : index
    %c32 = arith.constant 32 : index
    %41 = vector.load %arg13[%c0_26, %c32] : memref<128x64xf32, #tpu.memory_space<vmem>>, vector<128x8xf32>
    tpu.vector_store %arg13[%c0_26, %c32], %40 {strides = array<i32>} : memref<128x64xf32, #tpu.memory_space<vmem>>, vector<128x8xf32>,
    %42 = vector.extract_strided_slice %26 {offsets = [5, 0, 0], sizes = [1, 128, 8], strides = [1, 1, 1]} : vector<8x128x8xf32> to vector<1x128x8xf32>
    %43 = vector.shape_cast %42 : vector<1x128x8xf32> to vector<128x8xf32>
    %c0_27 = arith.constant 0 : index
    %c40 = arith.constant 40 : index
    %44 = vector.load %arg13[%c0_27, %c40] : memref<128x64xf32, #tpu.memory_space<vmem>>, vector<128x8xf32>
    tpu.vector_store %arg13[%c0_27, %c40], %43 {strides = array<i32>} : memref<128x64xf32, #tpu.memory_space<vmem>>, vector<128x8xf32>,
    %45 = vector.extract_strided_slice %26 {offsets = [6, 0, 0], sizes = [1, 128, 8], strides = [1, 1, 1]} : vector<8x128x8xf32> to vector<1x128x8xf32>
    %46 = vector.shape_cast %45 : vector<1x128x8xf32> to vector<128x8xf32>
    %c0_28 = arith.constant 0 : index
    %c48 = arith.constant 48 : index
    %47 = vector.load %arg13[%c0_28, %c48] : memref<128x64xf32, #tpu.memory_space<vmem>>, vector<128x8xf32>
    tpu.vector_store %arg13[%c0_28, %c48], %46 {strides = array<i32>} : memref<128x64xf32, #tpu.memory_space<vmem>>, vector<128x8xf32>,
    %48 = vector.extract_strided_slice %26 {offsets = [7, 0, 0], sizes = [1, 128, 8], strides = [1, 1, 1]} : vector<8x128x8xf32> to vector<1x128x8xf32>
    %49 = vector.shape_cast %48 : vector<1x128x8xf32> to vector<128x8xf32>
    %c0_29 = arith.constant 0 : index
    %c56 = arith.constant 56 : index
    %50 = vector.load %arg13[%c0_29, %c56] : memref<128x64xf32, #tpu.memory_space<vmem>>, vector<128x8xf32>
    tpu.vector_store %arg13[%c0_29, %c56], %49 {strides = array<i32>} : memref<128x64xf32, #tpu.memory_space<vmem>>, vector<128x8xf32>,
    %c0_30 = arith.constant 0 : index
    %c0_31 = arith.constant 0 : index
    %c0_32 = arith.constant 0 : index
    %51 = vector.load %arg6[%c0_30, %c0_31, %c0_32] : memref<1x128x512xf32, #tpu.memory_space<vmem>>, vector<1x128x512xf32>
    %52 = vector.shape_cast %51 : vector<1x128x512xf32> to vector<128x512xf32>
    %c0_33 = arith.constant 0 : index
    %c0_34 = arith.constant 0 : index
    %53 = vector.load %arg8[%c0_33, %c0_34] : memref<512x64xf32, #tpu.memory_space<vmem>>, vector<512x64xf32>
    %cst_35 = arith.constant dense<0.000000e+00> : vector<128x64xf32>
    %54 = tpu.matmul %52, %53, %cst_35 {dimension_numbers = #tpu.dot_dimension_numbers<[1], [0], [0], [1], [0, 0, 1, 1], [], []>} : vector<128x512xf32>, vector<512x64xf32>, vector<128x64xf32> -> vector<128x64xf32>
    %c0_36 = arith.constant 0 : index
    %c0_37 = arith.constant 0 : index
    %55 = vector.load %arg9[%c0_36, %c0_37] : memref<1x64xf32, #tpu.memory_space<vmem>>, vector<1x64xf32>
    %56 = vector.broadcast %55 : vector<1x64xf32> to vector<128x64xf32>
    %57 = arith.addf %54, %56 : vector<128x64xf32>
    %cst_38 = arith.constant 0.000000e+00 : f32
    %58 = vector.broadcast %cst_38 : f32 to vector<128x64xf32>
    %59 = arith.maximumf %57, %58 : vector<128x64xf32>
    %c0_39 = arith.constant 0 : index
    %c0_40 = arith.constant 0 : index
    %c0_41 = arith.constant 0 : index
    %60 = vector.load %arg7[%c0_39, %c0_40, %c0_41] : memref<1x128x64xf32, #tpu.memory_space<vmem>>, vector<1x128x64xf32>
    %61 = vector.shape_cast %60 : vector<1x128x64xf32> to vector<128x64xf32>
    %62 = arith.mulf %59, %61 : vector<128x64xf32>
    %c0_42 = arith.constant 0 : index
    %c0_43 = arith.constant 0 : index
    %63 = vector.load %arg13[%c0_42, %c0_43] : memref<128x64xf32, #tpu.memory_space<vmem>>, vector<128x64xf32>
    %64 = arith.addf %62, %63 : vector<128x64xf32>
    %c0_44 = arith.constant 0 : index
    %c0_45 = arith.constant 0 : index
    %65 = vector.load %arg10[%c0_44, %c0_45] : memref<64x512xf32, #tpu.memory_space<vmem>>, vector<64x512xf32>
    %cst_46 = arith.constant dense<0.000000e+00> : vector<128x512xf32>
    %66 = tpu.matmul %64, %65, %cst_46 {dimension_numbers = #tpu.dot_dimension_numbers<[1], [0], [0], [1], [0, 0, 1, 1], [], []>} : vector<128x64xf32>, vector<64x512xf32>, vector<128x512xf32> -> vector<128x512xf32>
    %c0_47 = arith.constant 0 : index
    %c0_48 = arith.constant 0 : index
    %67 = vector.load %arg11[%c0_47, %c0_48] : memref<1x512xf32, #tpu.memory_space<vmem>>, vector<1x512xf32>
    %68 = vector.broadcast %67 : vector<1x512xf32> to vector<128x512xf32>
    %69 = arith.addf %66, %68 : vector<128x512xf32>
    %cst_49 = arith.constant 0.000000e+00 : f32
    %70 = vector.broadcast %cst_49 : f32 to vector<128x512xf32>
    %71 = arith.maximumf %69, %70 : vector<128x512xf32>
    %c0_50 = arith.constant 0 : index
    %c0_51 = arith.constant 0 : index
    %c0_52 = arith.constant 0 : index
    %72 = vector.load %arg12[%c0_50, %c0_51, %c0_52] : memref<1x128x512xf32, #tpu.memory_space<vmem>>, vector<1x128x512xf32>
    %73 = vector.shape_cast %72 : vector<1x128x512xf32> to vector<128x512xf32>
    %74 = vector.shape_cast %71 : vector<128x512xf32> to vector<1x128x512xf32>
    tpu.vector_store %arg12[%c0_50, %c0_51, %c0_52], %74 {strides = array<i32>} : memref<1x128x512xf32, #tpu.memory_space<vmem>>, vector<1x128x512xf32>,
    return
  }
  func.func @transform_0(%arg0: i32) -> (i32, i32, i32, i32) {
    %c0_i32 = arith.constant 0 : i32
    %c0_i32_0 = arith.constant 0 : i32
    %c0_i32_1 = arith.constant 0 : i32
    %c0_i32_2 = arith.constant 0 : i32
    return %arg0, %c0_i32, %c0_i32_0, %c0_i32_1 : i32, i32, i32, i32
  }
  func.func @transform_1(%arg0: i32) -> (i32, i32, i32, i32) {
    %c0_i32 = arith.constant 0 : i32
    %c0_i32_0 = arith.constant 0 : i32
    %c0_i32_1 = arith.constant 0 : i32
    %c0_i32_2 = arith.constant 0 : i32
    return %arg0, %c0_i32, %c0_i32_0, %c0_i32_1 : i32, i32, i32, i32
  }
  func.func @transform_2(%arg0: i32) -> (i32, i32, i32, i32) {
    %c0_i32 = arith.constant 0 : i32
    %c0_i32_0 = arith.constant 0 : i32
    %c0_i32_1 = arith.constant 0 : i32
    %c0_i32_2 = arith.constant 0 : i32
    return %arg0, %c0_i32, %c0_i32_0, %c0_i32_1 : i32, i32, i32, i32
  }
  func.func @transform_3(%arg0: i32) -> (i32, i32) {
    %c0_i32 = arith.constant 0 : i32
    %c0_i32_0 = arith.constant 0 : i32
    %c0_i32_1 = arith.constant 0 : i32
    return %c0_i32, %c0_i32_0 : i32, i32
  }
  func.func @transform_4(%arg0: i32) -> (i32, i32, i32, i32) {
    %c0_i32 = arith.constant 0 : i32
    %c0_i32_0 = arith.constant 0 : i32
    %c0_i32_1 = arith.constant 0 : i32
    %c0_i32_2 = arith.constant 0 : i32
    return %arg0, %c0_i32, %c0_i32_0, %c0_i32_1 : i32, i32, i32, i32
  }
  func.func @transform_5(%arg0: i32) -> (i32, i32, i32) {
    %c0_i32 = arith.constant 0 : i32
    %c0_i32_0 = arith.constant 0 : i32
    %c0_i32_1 = arith.constant 0 : i32
    return %arg0, %c0_i32, %c0_i32_0 : i32, i32, i32
  }
  func.func @transform_6(%arg0: i32) -> (i32, i32, i32) {
    %c0_i32 = arith.constant 0 : i32
    %c0_i32_0 = arith.constant 0 : i32
    %c0_i32_1 = arith.constant 0 : i32
    return %arg0, %c0_i32, %c0_i32_0 : i32, i32, i32
  }
  func.func @transform_7(%arg0: i32) -> (i32, i32) {
    %c0_i32 = arith.constant 0 : i32
    %c0_i32_0 = arith.constant 0 : i32
    %c0_i32_1 = arith.constant 0 : i32
    return %c0_i32, %c0_i32_0 : i32, i32
  }
  func.func @transform_8(%arg0: i32) -> (i32, i32) {
    %c0_i32 = arith.constant 0 : i32
    %c0_i32_0 = arith.constant 0 : i32
    %c0_i32_1 = arith.constant 0 : i32
    return %c0_i32, %c0_i32_0 : i32, i32
  }
  func.func @transform_9(%arg0: i32) -> (i32, i32) {
    %c0_i32 = arith.constant 0 : i32
    %c0_i32_0 = arith.constant 0 : i32
    %c0_i32_1 = arith.constant 0 : i32
    return %c0_i32, %c0_i32_0 : i32, i32
  }
  func.func @transform_10(%arg0: i32) -> (i32, i32) {
    %c0_i32 = arith.constant 0 : i32
    %c0_i32_0 = arith.constant 0 : i32
    %c0_i32_1 = arith.constant 0 : i32
    return %c0_i32, %c0_i32_0 : i32, i32
  }
  func.func @transform_11(%arg0: i32) -> (i32, i32, i32) {
    %c0_i32 = arith.constant 0 : i32
    %c0_i32_0 = arith.constant 0 : i32
    %c0_i32_1 = arith.constant 0 : i32
    return %arg0, %c0_i32, %c0_i32_0 : i32, i32, i32
  }
}

</mosaic_0001>

<bundles_post_ra>
// kernel: tpu_custom_call.1
= control target key start
LH: loop header
LB: loop body
LE: loop exit
PB: predicated region body
PF: predicated region fallthrough
CT: control target
= control target key end

     0   :  { %s13010_s0 = inlined_call_operand.vmem [shape: bf16[2,8,128,8], index: 0, kind: input, shape index: {}]   ;;  %s13011_s1 = inlined_call_operand.vmem [shape: bf16[2,8,128,8], index: 1, kind: input, shape index: {}]   ;;  %s13012_s2 = inlined_call_operand.vmem [shape: bf16[2,8,128,8], index: 2, kind: input, shape index: {}]   ;;  %s13013_s3 = inlined_call_operand.vmem [shape: f32[128,128], index: 3, kind: input, shape index: {}]   ;;  %s13014_s4 = inlined_call_operand.vmem [shape: f32[2,8,128,128], index: 4, kind: input, shape index: {}]   ;;  %s13015_s5 = inlined_call_operand.vmem [shape: f32[2,128,512], index: 5, kind: input, shape index: {}]   ;;  %s13016_s6 = inlined_call_operand.vmem [shape: f32[2,128,64], index: 6, kind: input, shape index: {}]   ;;  %s13017_s7 = inlined_call_operand.vmem [shape: f32[512,64], index: 7, kind: input, shape index: {}]   ;;  %s13018_s8 = inlined_call_operand.vmem [shape: f32[1,64], index: 8, kind: input, shape index: {}]   ;;  %s13019_s9 = inlined_call_operand.vmem [shape: f32[64,512], index: 9, kind: input, shape index: {}]   ;;  %s13020_s10 = inlined_call_operand.vmem [shape: f32[1,512], index: 10, kind: input, shape index: {}]   ;;  %s13021_s11 = inlined_call_operand.hbm [shape: f32[2,128,512], index: 11, kind: output, shape index: {}]  }
   0x1   :  { %13228 = sst [smem:[#allocation134_spill]] %s13010_s0 }
   0x2   :  { %13229 = sst [smem:[#allocation135_spill]] %s13011_s1 }
   0x3   :  { %13230 = sst [smem:[#allocation136_spill]] %s13012_s2 }
   0x4   :  { %13231 = sst [smem:[#allocation137_spill]] %s13013_s3 }
   0x5   :  { %16 = vsyncpa [#allocation4], 0 }
   0x6   :  { %18 = vsyncpa [#allocation4 + $0x1], 0  ;;  %s9660_s17 = smov 0   ;;  %s9662_s18 = smov 0  }
   0x7   :  { %s9664_s19 = smov 0   ;;  %s9666_s20 = smov 0  }
   0x8 LB: > { %s9681_s21 = sadd.s32 4294967295, %s9588_s20   ;;  %s7352_s22 = sadd.s32 4294967294, %s9588_s20   ;;  %s9588_s20 = sphi %s9666_s20, %s13662_s20   ;;  %s9584_s19 = sphi %s9664_s19, %s13661_s19   ;;  %s9580_s18 = sphi %s9662_s18, %s13660_s18   ;;  %s9576_s17 = sphi %s9660_s17, %s13659_s17  }
   0x9   : > { %s9685_s23 = sadd.s32 1, %s9588_s20   ;;  %s292_s24 = sadd.s32 1, %s9584_s19 }
   0xa   : > { %s289_s25 = ssub.s32 %s9588_s20, %s9685_s23  ;;  %p302_p0 = scmp.ne.s32.totalorder %s9584_s19, %s9580_s18 }
   0xb   : > { %p290_p1 = scmp.eq.s32.totalorder %s289_s25, 0  ;;  %p303_p2 = scmp.eq.s32.totalorder %s9681_s21, 1 }
   0xc   : > { %p308_p3 = scmp.ne.s32.totalorder %s9580_s18, %s9576_s17  ;;  %p309_p4 = scmp.eq.s32.totalorder %s7352_s22, 1 }
   0xd   : > { %s9696_s26 = scalar_select %p290_p1, %s9584_s19, %s292_s24  }
   0xe   : > { %p9698_p5 = por %p303_p2, %p302_p0  ;;  %p9702_p6 = por %p309_p4, %p308_p3 }
   0xf   : > { %p7355_p7 = scmp.ge.s32.totalorder %s9588_s20, 1  ;;  %p390_p8 = scmp.lt.s32.totalorder %s9588_s20, 3 }
  0x11   : > { %p391_p9 = pnand %p7355_p7, %p390_p8 }
  0x13   : > { %394 = sbr.rel (%p391_p9) target bundleno = 1573 (0x625), region = 64 }
  0x1a   : > { %p455_p10 = scmp.lt.s32.totalorder %s9681_s21, 1  ;;  %s13234_s1 = sld [smem:[#allocation135_spill]]  ;;  %vm950_vm0 = vcmask 64512   ;;  %vm5655_vm1 = vcmask 130112   ;;  %vm5736_vm2 = vcmask 195712   ;;  %vm5817_vm3 = vcmask 261312  }
  0x1b   : > { %s13235_s0 = sld [smem:[#allocation134_spill]]  ;;  %s13236_s3 = sld [smem:[#allocation137_spill]]  ;;  %vm5898_vm4 = vcmask 326912   ;;  %vm5979_vm5 = vcmask 392512   ;;  %vm6060_vm6 = vcmask 458112   ;;  %vm6141_vm7 = vcmask 523712  }
  0x1c   : > { %s9710_s29 = scalar_select %p455_p10, %s9681_s21, 1  ;;  %vm6717_vm8 = vcmask 523264  }
  0x1d   : > { %s13318_s2 = sld [smem:[#allocation136_spill]]  ;;  %s13223_s24 = smov 8  }
  0x1e   : > { %s9713_s30 = sshll.u32 %s9710_s29, 9 }
  0x20   : > { %s9719_s14 = scalar_lea.vmem %s13234_s1, %s9713_s30  ;;  %s12259_s1 = scalar_lea.vmem %s13015_s5, %s9713_s30 }
  0x21   : > { %v8806_v0 = vld [vmem:[%s9719_s14] sm:$0xff]   ;;  %v8808_v3 = vld [vmem:[%s9719_s14 + $0x8] sm:$0xff]   ;;  %v8810_v7 = vld [vmem:[%s9719_s14 + $0x10] sm:$0xff]   ;;  %s9741_s22 = scalar_lea.vmem %s13235_s0, %s9713_s30  ;;  %s9595_s0 = smov 48  }
  0x22   : > { %v8807_v1 = vld [vmem:[%s9719_s14 + $0x40] sm:$0xff]   ;;  %8694 = vmatprep.subr.msk.bf16.mxu0 %vm950_vm0, %v8806_v0  ;;  %v976_v2 = vsel %vm950_vm0, %v8806_v0, 0  ;;  %v8809_v5 = vld [vmem:[%s9719_s14 + $0x48] sm:$0xff]   ;;  %v979_v6 = vsel %vm950_vm0, %v8808_v3, 0  ;;  %v8811_v9 = vld [vmem:[%s9719_s14 + $0x50] sm:$0xff]   ;;  %v982_v12 = vsel %vm950_vm0, %v8810_v7, 0 }
  0x23   : > { %8702 = vmatprep.subr.msk.bf16.mxu1 %vm950_vm0, %v8807_v1  ;;  %8087 = vmatpush3.bf16.xpose.msra.mxu0 %v976_v2  ;;  %v1201_v4 = vsel %vm950_vm0, %v8807_v1, 0  ;;  %v1204_v8 = vsel %vm950_vm0, %v8809_v5, 0  ;;  %v8812_v10 = vld [vmem:[%s9719_s14 + $0x18] sm:$0xff]   ;;  %v8822_v13 = vld [vmem:[%s9741_s22] sm:$0xff]   ;;  %v1207_v14 = vsel %vm950_vm0, %v8811_v9, 0  ;;  %v8816_v21 = vld [vmem:[%s9719_s14 + $0x28] sm:$0xff]   ;;  %s10655_s12 = scalar_lea.vmem %s13318_s2, %s9713_s30 }
  0x24   : > { %8119 = vmatpush3.bf16.xpose.msra.mxu1 %v1201_v4  ;;  %8695 = vmatprep.subr.msk.bf16.mxu0 %vm950_vm0, %v8808_v3  ;;  %v8813_v11 = vld [vmem:[%s9719_s14 + $0x58] sm:$0xff]   ;;  %v8823_v15 = vld [vmem:[%s9741_s22 + $0x40] sm:$0xff]   ;;  %v985_v16 = vsel %vm950_vm0, %v8812_v10, 0  ;;  %v8817_v23 = vld [vmem:[%s9719_s14 + $0x68] sm:$0xff]   ;;  %v991_v24 = vsel %vm950_vm0, %v8816_v21, 0  ;;  %s9591_s30 = smov 16  }
  0x25   : > { %8703 = vmatprep.subr.msk.bf16.mxu1 %vm950_vm0, %v8809_v5  ;;  %8102 = vmatprep.mubr.msk.bf16.mxu0 %vm950_vm0, %v8822_v13  ;;  %v8814_v17 = vld [vmem:[%s9719_s14 + $0x20] sm:$0xff]   ;;  %v1210_v18 = vsel %vm950_vm0, %v8813_v11, 0  ;;  %v8818_v25 = vld [vmem:[%s9719_s14 + $0x30] sm:$0xff]   ;;  %v1216_v26 = vsel %vm950_vm0, %v8817_v23, 0  ;;  %v8820_v29 = vld [vmem:[%s9719_s14 + $0x38] sm:$0xff]   ;;  %s13657_s2 = smov 24  }
  0x26   : > { %8134 = vmatprep.mubr.msk.bf16.mxu1 %vm950_vm0, %v8823_v15  ;;  %v8815_v19 = vld [vmem:[%s9719_s14 + $0x60] sm:$0xff]   ;;  %v988_v20 = vsel %vm950_vm0, %v8814_v17, 0  ;;  %v8819_v27 = vld [vmem:[%s9719_s14 + $0x70] sm:$0xff]   ;;  %v994_v28 = vsel %vm950_vm0, %v8818_v25, 0  ;;  %v8821_v31 = vld [vmem:[%s9719_s14 + $0x78] sm:$0xff]   ;;  %v997_v32 = vsel %vm950_vm0, %v8820_v29, 0 }
  0x27   : > { %v1213_v22 = vsel %vm950_vm0, %v8815_v19, 0  ;;  %v1219_v30 = vsel %vm950_vm0, %v8819_v27, 0  ;;  %v8826_v33 = vld [vmem:[%s9719_s14 + $0x80] sm:$0xff]   ;;  %v1222_v34 = vsel %vm950_vm0, %v8821_v31, 0  ;;  %v8824_v36 = vld [vmem:[%s9741_s22 + $0x8] sm:$0xff]   ;;  %v8830_v42 = vld [vmem:[%s9741_s22 + $0x10] sm:$0xff]  }
  0x28   : > { %v8827_v35 = vld [vmem:[%s9719_s14 + $0xc0] sm:$0xff]   ;;  %v8825_v37 = vld [vmem:[%s9741_s22 + $0x48] sm:$0xff]   ;;  %v1426_v39 = vsel %vm950_vm0, %v8826_v33, 0  ;;  %v8832_v43 = vld [vmem:[%s9741_s22 + $0x50] sm:$0xff]  }
  0x29   : > { %v8828_v38 = vld [vmem:[%s9719_s14 + $0x88] sm:$0xff]   ;;  %v1651_v41 = vsel %vm950_vm0, %v8827_v35, 0  ;;  %v8831_v44 = vld [vmem:[%s9741_s22 + $0x18] sm:$0xff]   ;;  %v8833_v45 = vld [vmem:[%s9719_s14 + $0x90] sm:$0xff]  }
  0x2a   : > { %v8829_v40 = vld [vmem:[%s9719_s14 + $0xc8] sm:$0xff]   ;;  %v8834_v46 = vld [vmem:[%s9741_s22 + $0x58] sm:$0xff]   ;;  %v1429_v47 = vsel %vm950_vm0, %v8828_v38, 0  ;;  %v8835_v48 = vld [vmem:[%s9719_s14 + $0xd0] sm:$0xff]   ;;  %v1432_v55 = vsel %vm950_vm0, %v8833_v45, 0 }
  0x2b   : > { %8089 = vmatpush3.bf16.xpose.msra.mxu0 %v979_v6  ;;  %v1654_v49 = vsel %vm950_vm0, %v8829_v40, 0  ;;  %v8838_v50 = vld [vmem:[%s9741_s22 + $0x20] sm:$0xff]   ;;  %v8836_v52 = vld [vmem:[%s9719_s14 + $0x98] sm:$0xff]   ;;  %v8839_v53 = vld [vmem:[%s9741_s22 + $0x28] sm:$0xff]   ;;  %v1657_v57 = vsel %vm950_vm0, %v8835_v48, 0 }
  0x2c   : > { %8121 = vmatpush3.bf16.xpose.msra.mxu1 %v1204_v8  ;;  %8696 = vmatprep.subr.msk.bf16.mxu0 %vm950_vm0, %v8810_v7  ;;  %v8840_v51 = vld [vmem:[%s9741_s22 + $0x60] sm:$0xff]   ;;  %v8842_v54 = vld [vmem:[%s9741_s22 + $0x68] sm:$0xff]   ;;  %v8837_v56 = vld [vmem:[%s9719_s14 + $0xd8] sm:$0xff]   ;;  %v1435_v63 = vsel %vm950_vm0, %v8836_v52, 0 }
  0x2d   : > { %8704 = vmatprep.subr.msk.bf16.mxu1 %vm950_vm0, %v8811_v9  ;;  %v8846_v58 = vld [vmem:[%s9741_s22 + $0x30] sm:$0xff]   ;;  %v8841_v60 = vld [vmem:[%s9719_s14 + $0xa0] sm:$0xff]   ;;  %v8847_v61 = vld [vmem:[%s9741_s22 + $0x38] sm:$0xff]   ;;  %v1660_v1 = vsel %vm950_vm0, %v8837_v56, 0 }
  0x2e   : > { %v8848_v59 = vld [vmem:[%s9741_s22 + $0x70] sm:$0xff]   ;;  %v8850_v62 = vld [vmem:[%s9741_s22 + $0x78] sm:$0xff]   ;;  %v8843_v0 = vld [vmem:[%s9719_s14 + $0xe0] sm:$0xff]   ;;  %v1438_v4 = vsel %vm950_vm0, %v8841_v60, 0 }
  0x2f   : > { %v8854_v2 = vld [vmem:[%s9741_s22 + $0x80] sm:$0xff]   ;;  %v8844_v5 = vld [vmem:[%s9719_s14 + $0xa8] sm:$0xff]   ;;  %v1663_v6 = vsel %vm950_vm0, %v8843_v0, 0  ;;  %v8849_v8 = vld [vmem:[%s9719_s14 + $0xb0] sm:$0xff]  }
  0x30   : > { %v8856_v3 = vld [vmem:[%s9741_s22 + $0xc0] sm:$0xff]   ;;  %v8845_v7 = vld [vmem:[%s9719_s14 + $0xe8] sm:$0xff]   ;;  %v8851_v9 = vld [vmem:[%s9719_s14 + $0xf0] sm:$0xff]  }
  0x31   : > { %v1669_v13 = vsel %vm950_vm0, %v8851_v9, 0  ;;  %v8853_v15 = vld [vmem:[%s9719_s14 + $0xf8] sm:$0xff]  }
  0x33   : > { %8091 = vmatpush3.bf16.xpose.msra.mxu0 %v982_v12  ;;  %v1444_v12 = vsel %vm950_vm0, %v8849_v8, 0 }
  0x34   : > { %8123 = vmatpush3.bf16.xpose.msra.mxu1 %v1207_v14  ;;  %8697 = vmatprep.subr.msk.bf16.mxu0 %vm950_vm0, %v8812_v10  ;;  %v1441_v10 = vsel %vm950_vm0, %v8844_v5, 0  ;;  %v8852_v14 = vld [vmem:[%s9719_s14 + $0xb8] sm:$0xff]  }
  0x35   : > { %8705 = vmatprep.subr.msk.bf16.mxu1 %vm950_vm0, %v8813_v11  ;;  %v1666_v11 = vsel %vm950_vm0, %v8845_v7, 0 }
  0x3b   : > { %8093 = vmatpush3.bf16.xpose.msra.mxu0 %v985_v16  ;;  %v1447_v16 = vsel %vm950_vm0, %v8852_v14, 0 }
  0x3c   : > { %8125 = vmatpush3.bf16.xpose.msra.mxu1 %v1210_v18  ;;  %8698 = vmatprep.subr.msk.bf16.mxu0 %vm950_vm0, %v8814_v17  ;;  %v8857_v17 = vld [vmem:[%s9719_s14 + $0x100] sm:$0xff]   ;;  %v1672_v18 = vsel %vm950_vm0, %v8853_v15, 0 }
  0x3d   : > { %8706 = vmatprep.subr.msk.bf16.mxu1 %vm950_vm0, %v8815_v19  ;;  %v8859_v19 = vld [vmem:[%s9719_s14 + $0x140] sm:$0xff]  }
  0x43   : > { %8095 = vmatpush3.bf16.xpose.msra.mxu0 %v988_v20  ;;  %v8855_v20 = vld [vmem:[%s9741_s22 + $0x88] sm:$0xff]  }
  0x44   : > { %8127 = vmatpush3.bf16.xpose.msra.mxu1 %v1213_v22  ;;  %8699 = vmatprep.subr.msk.bf16.mxu0 %vm950_vm0, %v8816_v21  ;;  %v8858_v21 = vld [vmem:[%s9741_s22 + $0xc8] sm:$0xff]   ;;  %v1876_v22 = vsel %vm950_vm0, %v8857_v17, 0 }
  0x45   : > { %8707 = vmatprep.subr.msk.bf16.mxu1 %vm950_vm0, %v8817_v23  ;;  %v8860_v23 = vld [vmem:[%s9719_s14 + $0x108] sm:$0xff]  }
  0x4b   : > { %8097 = vmatpush3.bf16.xpose.msra.mxu0 %v991_v24  ;;  %v2101_v24 = vsel %vm950_vm0, %v8859_v19, 0 }
  0x4c   : > { %8129 = vmatpush3.bf16.xpose.msra.mxu1 %v1216_v26  ;;  %8700 = vmatprep.subr.msk.bf16.mxu0 %vm950_vm0, %v8818_v25  ;;  %v8861_v25 = vld [vmem:[%s9719_s14 + $0x148] sm:$0xff]   ;;  %v8862_v26 = vld [vmem:[%s9741_s22 + $0x90] sm:$0xff]  }
  0x4d   : > { %8708 = vmatprep.subr.msk.bf16.mxu1 %vm950_vm0, %v8819_v27  ;;  %v8864_v27 = vld [vmem:[%s9741_s22 + $0xd0] sm:$0xff]  }
  0x53   : > { %8099 = vmatpush3.bf16.xpose.msra.mxu0 %v994_v28  ;;  %v8863_v28 = vld [vmem:[%s9741_s22 + $0x98] sm:$0xff]  }
  0x54   : > { %8131 = vmatpush3.bf16.xpose.msra.mxu1 %v1219_v30  ;;  %8701 = vmatprep.subr.msk.bf16.mxu0 %vm950_vm0, %v8820_v29  ;;  %v8866_v29 = vld [vmem:[%s9741_s22 + $0xd8] sm:$0xff]   ;;  %v1879_v30 = vsel %vm950_vm0, %v8860_v23, 0 }
  0x55   : > { %8709 = vmatprep.subr.msk.bf16.mxu1 %vm950_vm0, %v8821_v31  ;;  %v8865_v31 = vld [vmem:[%s9719_s14 + $0x110] sm:$0xff]  }
  0x5b   : > { %8101 = vmatpush3.bf16.xpose.msra.mxu0 %v997_v32  ;;  %v2104_v32 = vsel %vm950_vm0, %v8861_v25, 0 }
  0x5c   : > { %8133 = vmatpush3.bf16.xpose.msra.mxu1 %v1222_v34  ;;  %8710 = vmatprep.subr.msk.bf16.mxu0 %vm950_vm0, %v8826_v33  ;;  %v8867_v33 = vld [vmem:[%s9719_s14 + $0x150] sm:$0xff]   ;;  %v8870_v34 = vld [vmem:[%s9741_s22 + $0xa0] sm:$0xff]  }
  0x5d   : > { %8718 = vmatprep.subr.msk.bf16.mxu1 %vm950_vm0, %v8827_v35  ;;  %v8872_v35 = vld [vmem:[%s9741_s22 + $0xe0] sm:$0xff]  }
  0x62   : > { %8103 = vmatmul.mubr.msk.bf16.vlgmr.msra.gmra.mrb[0].mxu0 %vm950_vm0, %v8824_v36  ;;  %v8871_v36 = vld [vmem:[%s9741_s22 + $0xa8] sm:$0xff]  }
  0x63   : > { %8135 = vmatmul.mubr.msk.bf16.vlgmr.msra.gmra.mrb[0].mxu1 %vm950_vm0, %v8825_v37  ;;  %8151 = vmatpush3.bf16.xpose.msra.mxu0 %v1426_v39  ;;  %v8874_v37 = vld [vmem:[%s9741_s22 + $0xe8] sm:$0xff]   ;;  %v8868_v39 = vld [vmem:[%s9719_s14 + $0x118] sm:$0xff]  }
  0x64   : > { %8183 = vmatpush3.bf16.xpose.msra.mxu1 %v1651_v41  ;;  %8711 = vmatprep.subr.msk.bf16.mxu0 %vm950_vm0, %v8828_v38  ;;  %v1882_v38 = vsel %vm950_vm0, %v8865_v31, 0  ;;  %v8869_v41 = vld [vmem:[%s9719_s14 + $0x158] sm:$0xff]  }
  0x65   : > { %8719 = vmatprep.subr.msk.bf16.mxu1 %vm950_vm0, %v8829_v40  ;;  %8106 = vmatprep.mubr.msk.bf16.mxu0 %vm950_vm0, %v8830_v42  ;;  %v2107_v40 = vsel %vm950_vm0, %v8867_v33, 0  ;;  %v8878_v42 = vld [vmem:[%s9741_s22 + $0xb0] sm:$0xff]  }
  0x66   : > { %8138 = vmatprep.mubr.msk.bf16.mxu1 %vm950_vm0, %v8832_v43  ;;  %v8880_v43 = vld [vmem:[%s9741_s22 + $0xf0] sm:$0xff]  }
  0x6a   : > { %8107 = vmatmul.mubr.msk.bf16.gmra.mrb[4].mxu0 %vm950_vm0, %v8831_v44  ;;  %v8879_v44 = vld [vmem:[%s9741_s22 + $0xb8] sm:$0xff]  }
  0x6b   : > { %8153 = vmatpush3.bf16.xpose.msra.mxu0 %v1429_v47  ;;  %8139 = vmatmul.mubr.msk.bf16.gmra.mrb[4].mxu1 %vm950_vm0, %v8834_v46  ;;  %v1885_v46 = vsel %vm950_vm0, %v8868_v39, 0  ;;  %v8873_v47 = vld [vmem:[%s9719_s14 + $0x120] sm:$0xff]  }
  0x6c   : > { %8185 = vmatpush3.bf16.xpose.msra.mxu1 %v1654_v49  ;;  %8712 = vmatprep.subr.msk.bf16.mxu0 %vm950_vm0, %v8833_v45  ;;  %v8882_v45 = vld [vmem:[%s9741_s22 + $0xf8] sm:$0xff]   ;;  %v8875_v49 = vld [vmem:[%s9719_s14 + $0x160] sm:$0xff]  }
  0x6d   : > { %8720 = vmatprep.subr.msk.bf16.mxu1 %vm950_vm0, %v8835_v48  ;;  %8110 = vmatprep.mubr.msk.bf16.mxu0 %vm950_vm0, %v8838_v50  ;;  %v2110_v48 = vsel %vm950_vm0, %v8869_v41, 0  ;;  %v8886_v50 = vld [vmem:[%s9741_s22 + $0x100] sm:$0xff]  }
  0x6e   : > { %8142 = vmatprep.mubr.msk.bf16.mxu1 %vm950_vm0, %v8840_v51  ;;  %v8888_v51 = vld [vmem:[%s9741_s22 + $0x140] sm:$0xff]  }
  0x72   : > { %8111 = vmatmul.mubr.msk.bf16.gmra.mrb[8].mxu0 %vm950_vm0, %v8839_v53  ;;  %v8876_v53 = vld [vmem:[%s9719_s14 + $0x128] sm:$0xff]  }
  0x73   : > { %8155 = vmatpush3.bf16.xpose.msra.mxu0 %v1432_v55  ;;  %8143 = vmatmul.mubr.msk.bf16.gmra.mrb[8].mxu1 %vm950_vm0, %v8842_v54  ;;  %v2113_v54 = vsel %vm950_vm0, %v8875_v49, 0  ;;  %v8877_v55 = vld [vmem:[%s9719_s14 + $0x168] sm:$0xff]  }
  0x74   : > { %8187 = vmatpush3.bf16.xpose.msra.mxu1 %v1657_v57  ;;  %8713 = vmatprep.subr.msk.bf16.mxu0 %vm950_vm0, %v8836_v52  ;;  %v1888_v52 = vsel %vm950_vm0, %v8873_v47, 0  ;;  %v8881_v57 = vld [vmem:[%s9719_s14 + $0x130] sm:$0xff]  }
  0x75   : > { %8721 = vmatprep.subr.msk.bf16.mxu1 %vm950_vm0, %v8837_v56  ;;  %8114 = vmatprep.mubr.msk.bf16.mxu0 %vm950_vm0, %v8846_v58  ;;  %v1891_v56 = vsel %vm950_vm0, %v8876_v53, 0  ;;  %v2116_v58 = vsel %vm950_vm0, %v8877_v55, 0 }
  0x76   : > { %8146 = vmatprep.mubr.msk.bf16.mxu1 %vm950_vm0, %v8848_v59  ;;  %v8883_v59 = vld [vmem:[%s9719_s14 + $0x170] sm:$0xff]  }
  0x7a   : > { %8115 = vmatmul.mubr.msk.bf16.gmra.mrb[12].mxu0 %vm950_vm0, %v8847_v61  ;;  %v8884_v61 = vld [vmem:[%s9719_s14 + $0x138] sm:$0xff]  }
  0x7b   : > { %8157 = vmatpush3.bf16.xpose.msra.mxu0 %v1435_v63  ;;  %8147 = vmatmul.mubr.msk.bf16.gmra.mrb[12].mxu1 %vm950_vm0, %v8850_v62  ;;  %v2119_v62 = vsel %vm950_vm0, %v8883_v59, 0  ;;  %v8885_v63 = vld [vmem:[%s9719_s14 + $0x178] sm:$0xff]  }
  0x7c   : > { %8189 = vmatpush3.bf16.xpose.msra.mxu1 %v1660_v1  ;;  %8714 = vmatprep.subr.msk.bf16.mxu0 %vm950_vm0, %v8841_v60  ;;  %v1894_v60 = vsel %vm950_vm0, %v8881_v57, 0  ;;  %v8902_v1 = vld [vmem:[%s9719_s14 + $0x180] sm:$0xff]  }
  0x7d   : > { %8722 = vmatprep.subr.msk.bf16.mxu1 %vm950_vm0, %v8843_v0  ;;  %8166 = vmatprep.mubr.msk.bf16.mxu0 %vm950_vm0, %v8854_v2  ;;  %v1897_v0 = vsel %vm950_vm0, %v8884_v61, 0  ;;  %v2122_v2 = vsel %vm950_vm0, %v8885_v63, 0 }
  0x7e   : > { %8198 = vmatprep.mubr.msk.bf16.mxu1 %vm950_vm0, %v8856_v3  ;;  %v8903_v3 = vld [vmem:[%s9719_s14 + $0x1c0] sm:$0xff]  }
  0x83   : > { %8159 = vmatpush3.bf16.xpose.msra.mxu0 %v1438_v4  ;;  %v8887_v4 = vld [vmem:[%s9741_s22 + $0x108] sm:$0xff]  }
  0x84   : > { %8191 = vmatpush3.bf16.xpose.msra.mxu1 %v1663_v6  ;;  %8715 = vmatprep.subr.msk.bf16.mxu0 %vm950_vm0, %v8844_v5  ;;  %v8889_v5 = vld [vmem:[%s9741_s22 + $0x148] sm:$0xff]   ;;  %v8890_v6 = vld [vmem:[%s9741_s22 + $0x110] sm:$0xff]  }
  0x85   : > { %8723 = vmatprep.subr.msk.bf16.mxu1 %vm950_vm0, %v8845_v7  ;;  %v8892_v7 = vld [vmem:[%s9741_s22 + $0x150] sm:$0xff]  }
  0x8b   : > { %8161 = vmatpush3.bf16.xpose.msra.mxu0 %v1441_v10  ;;  %v2551_v10 = vsel %vm950_vm0, %v8903_v3, 0 }
  0x8c   : > { %8193 = vmatpush3.bf16.xpose.msra.mxu1 %v1666_v11  ;;  %8716 = vmatprep.subr.msk.bf16.mxu0 %vm950_vm0, %v8849_v8  ;;  %v2326_v8 = vsel %vm950_vm0, %v8902_v1, 0  ;;  %v8905_v11 = vld [vmem:[%s9719_s14 + $0x1c8] sm:$0xff]  }
  0x8d   : > { %8724 = vmatprep.subr.msk.bf16.mxu1 %vm950_vm0, %v8851_v9  ;;  %v8904_v9 = vld [vmem:[%s9719_s14 + $0x188] sm:$0xff]  }
  0x93   : > { %8163 = vmatpush3.bf16.xpose.msra.mxu0 %v1444_v12  ;;  %v8891_v12 = vld [vmem:[%s9741_s22 + $0x118] sm:$0xff]  }
  0x94   : > { %8195 = vmatpush3.bf16.xpose.msra.mxu1 %v1669_v13  ;;  %8717 = vmatprep.subr.msk.bf16.mxu0 %vm950_vm0, %v8852_v14  ;;  %v8893_v13 = vld [vmem:[%s9741_s22 + $0x158] sm:$0xff]   ;;  %v8894_v14 = vld [vmem:[%s9741_s22 + $0x120] sm:$0xff]  }
  0x95   : > { %8725 = vmatprep.subr.msk.bf16.mxu1 %vm950_vm0, %v8853_v15  ;;  %v8896_v15 = vld [vmem:[%s9741_s22 + $0x160] sm:$0xff]  }
  0x9b   : > { %8165 = vmatpush3.bf16.xpose.msra.mxu0 %v1447_v16  ;;  %v2329_v16 = vsel %vm950_vm0, %v8904_v9, 0 }
  0x9c   : > { %8197 = vmatpush3.bf16.xpose.msra.mxu1 %v1672_v18  ;;  %8726 = vmatprep.subr.msk.bf16.mxu0 %vm950_vm0, %v8857_v17  ;;  %v8906_v17 = vld [vmem:[%s9719_s14 + $0x190] sm:$0xff]   ;;  %v2554_v18 = vsel %vm950_vm0, %v8905_v11, 0 }
  0x9d   : > { %8734 = vmatprep.subr.msk.bf16.mxu1 %vm950_vm0, %v8859_v19  ;;  %v8907_v19 = vld [vmem:[%s9719_s14 + $0x1d0] sm:$0xff]  }
  0xa2   : > { %8167 = vmatmul.mubr.msk.bf16.vlgmr.msra.gmra.mrb[16].mxu0 %vm950_vm0, %v8855_v20  ;;  %v8895_v20 = vld [vmem:[%s9741_s22 + $0x128] sm:$0xff]  }
  0xa3   : > { %8199 = vmatmul.mubr.msk.bf16.vlgmr.msra.gmra.mrb[16].mxu1 %vm950_vm0, %v8858_v21  ;;  %8215 = vmatpush3.bf16.xpose.msra.mxu0 %v1876_v22  ;;  %v8897_v21 = vld [vmem:[%s9741_s22 + $0x168] sm:$0xff]   ;;  %v8898_v22 = vld [vmem:[%s9741_s22 + $0x130] sm:$0xff]  }
  0xa4   : > { %8247 = vmatpush3.bf16.xpose.msra.mxu1 %v2101_v24  ;;  %8727 = vmatprep.subr.msk.bf16.mxu0 %vm950_vm0, %v8860_v23  ;;  %v8900_v23 = vld [vmem:[%s9741_s22 + $0x170] sm:$0xff]   ;;  %v2332_v24 = vsel %vm950_vm0, %v8906_v17, 0 }
  0xa5   : > { %8735 = vmatprep.subr.msk.bf16.mxu1 %vm950_vm0, %v8861_v25  ;;  %8170 = vmatprep.mubr.msk.bf16.mxu0 %vm950_vm0, %v8862_v26  ;;  %v8908_v25 = vld [vmem:[%s9719_s14 + $0x198] sm:$0xff]   ;;  %v2557_v26 = vsel %vm950_vm0, %v8907_v19, 0 }
  0xa6   : > { %8202 = vmatprep.mubr.msk.bf16.mxu1 %vm950_vm0, %v8864_v27  ;;  %v8909_v27 = vld [vmem:[%s9719_s14 + $0x1d8] sm:$0xff]  }
  0xaa   : > { %8171 = vmatmul.mubr.msk.bf16.gmra.mrb[20].mxu0 %vm950_vm0, %v8863_v28  ;;  %v8899_v28 = vld [vmem:[%s9741_s22 + $0x138] sm:$0xff]  }
  0xab   : > { %8217 = vmatpush3.bf16.xpose.msra.mxu0 %v1879_v30  ;;  %8203 = vmatmul.mubr.msk.bf16.gmra.mrb[20].mxu1 %vm950_vm0, %v8866_v29  ;;  %v8901_v29 = vld [vmem:[%s9741_s22 + $0x178] sm:$0xff]   ;;  %v8918_v30 = vld [vmem:[%s9741_s22 + $0x180] sm:$0xff]  }
  0xac   : > { %8249 = vmatpush3.bf16.xpose.msra.mxu1 %v2104_v32  ;;  %8728 = vmatprep.subr.msk.bf16.mxu0 %vm950_vm0, %v8865_v31  ;;  %v8920_v31 = vld [vmem:[%s9741_s22 + $0x1c0] sm:$0xff]   ;;  %v2335_v32 = vsel %vm950_vm0, %v8908_v25, 0 }
  0xad   : > { %8736 = vmatprep.subr.msk.bf16.mxu1 %vm950_vm0, %v8867_v33  ;;  %8174 = vmatprep.mubr.msk.bf16.mxu0 %vm950_vm0, %v8870_v34  ;;  %v8910_v33 = vld [vmem:[%s9719_s14 + $0x1a0] sm:$0xff]   ;;  %v2560_v34 = vsel %vm950_vm0, %v8909_v27, 0 }
  0xae   : > { %8206 = vmatprep.mubr.msk.bf16.mxu1 %vm950_vm0, %v8872_v35  ;;  %v8911_v35 = vld [vmem:[%s9719_s14 + $0x1e0] sm:$0xff]  }
  0xb2   : > { %8175 = vmatmul.mubr.msk.bf16.gmra.mrb[24].mxu0 %vm950_vm0, %v8871_v36  ;;  %v2338_v36 = vsel %vm950_vm0, %v8910_v33, 0 }
  0xb3   : > { %8219 = vmatpush3.bf16.xpose.msra.mxu0 %v1882_v38  ;;  %8207 = vmatmul.mubr.msk.bf16.gmra.mrb[24].mxu1 %vm950_vm0, %v8874_v37  ;;  %v8912_v37 = vld [vmem:[%s9719_s14 + $0x1a8] sm:$0xff]   ;;  %v2563_v38 = vsel %vm950_vm0, %v8911_v35, 0 }
  0xb4   : > { %8251 = vmatpush3.bf16.xpose.msra.mxu1 %v2107_v40  ;;  %8729 = vmatprep.subr.msk.bf16.mxu0 %vm950_vm0, %v8868_v39  ;;  %v8913_v39 = vld [vmem:[%s9719_s14 + $0x1e8] sm:$0xff]   ;;  %v2341_v40 = vsel %vm950_vm0, %v8912_v37, 0 }
  0xb5   : > { %8737 = vmatprep.subr.msk.bf16.mxu1 %vm950_vm0, %v8869_v41  ;;  %8178 = vmatprep.mubr.msk.bf16.mxu0 %vm950_vm0, %v8878_v42  ;;  %v8914_v41 = vld [vmem:[%s9719_s14 + $0x1b0] sm:$0xff]   ;;  %v2566_v42 = vsel %vm950_vm0, %v8913_v39, 0 }
  0xb6   : > { %8210 = vmatprep.mubr.msk.bf16.mxu1 %vm950_vm0, %v8880_v43  ;;  %v8915_v43 = vld [vmem:[%s9719_s14 + $0x1f0] sm:$0xff]  }
  0xba   : > { %8179 = vmatmul.mubr.msk.bf16.gmra.mrb[28].mxu0 %vm950_vm0, %v8879_v44  ;;  %v2344_v44 = vsel %vm950_vm0, %v8914_v41, 0 }
  0xbb   : > { %8221 = vmatpush3.bf16.xpose.msra.mxu0 %v1885_v46  ;;  %8211 = vmatmul.mubr.msk.bf16.gmra.mrb[28].mxu1 %vm950_vm0, %v8882_v45  ;;  %v8916_v45 = vld [vmem:[%s9719_s14 + $0x1b8] sm:$0xff]   ;;  %v2569_v46 = vsel %vm950_vm0, %v8915_v43, 0 }
  0xbc   : > { %8253 = vmatpush3.bf16.xpose.msra.mxu1 %v2110_v48  ;;  %8730 = vmatprep.subr.msk.bf16.mxu0 %vm950_vm0, %v8873_v47  ;;  %v8917_v47 = vld [vmem:[%s9719_s14 + $0x1f8] sm:$0xff]   ;;  %v2347_v48 = vsel %vm950_vm0, %v8916_v45, 0  ;;  %s9594_s14 = smov 40  }
  0xbd   : > { %8738 = vmatprep.subr.msk.bf16.mxu1 %vm950_vm0, %v8875_v49  ;;  %8230 = vmatprep.mubr.msk.bf16.mxu0 %vm950_vm0, %v8886_v50  ;;  %v2572_v49 = vsel %vm950_vm0, %v8917_v47, 0  ;;  %v8919_v50 = vld [vmem:[%s9741_s22 + $0x188] sm:$0xff]  }
  0xbe   : > { %8262 = vmatprep.mubr.msk.bf16.mxu1 %vm950_vm0, %v8888_v51  ;;  %v8921_v51 = vld [vmem:[%s9741_s22 + $0x1c8] sm:$0xff]  }
  0xc3   : > { %8223 = vmatpush3.bf16.xpose.msra.mxu0 %v1888_v52  ;;  %v8922_v52 = vld [vmem:[%s9741_s22 + $0x190] sm:$0xff]  }
  0xc4   : > { %8255 = vmatpush3.bf16.xpose.msra.mxu1 %v2113_v54  ;;  %8731 = vmatprep.subr.msk.bf16.mxu0 %vm950_vm0, %v8876_v53  ;;  %v8924_v53 = vld [vmem:[%s9741_s22 + $0x1d0] sm:$0xff]   ;;  %v8923_v54 = vld [vmem:[%s9741_s22 + $0x198] sm:$0xff]  }
  0xc5   : > { %8739 = vmatprep.subr.msk.bf16.mxu1 %vm950_vm0, %v8877_v55  ;;  %v8925_v55 = vld [vmem:[%s9741_s22 + $0x1d8] sm:$0xff]  }
  0xcb   : > { %8225 = vmatpush3.bf16.xpose.msra.mxu0 %v1891_v56  ;;  %v8926_v56 = vld [vmem:[%s9741_s22 + $0x1a0] sm:$0xff]  }
  0xcc   : > { %8257 = vmatpush3.bf16.xpose.msra.mxu1 %v2116_v58  ;;  %8732 = vmatprep.subr.msk.bf16.mxu0 %vm950_vm0, %v8881_v57  ;;  %v8928_v57 = vld [vmem:[%s9741_s22 + $0x1e0] sm:$0xff]   ;;  %v8927_v58 = vld [vmem:[%s9741_s22 + $0x1a8] sm:$0xff]  }
  0xcd   : > { %8740 = vmatprep.subr.msk.bf16.mxu1 %vm950_vm0, %v8883_v59  ;;  %v8929_v59 = vld [vmem:[%s9741_s22 + $0x1e8] sm:$0xff]  }
  0xd3   : > { %8227 = vmatpush3.bf16.xpose.msra.mxu0 %v1894_v60  ;;  %v8930_v60 = vld [vmem:[%s9741_s22 + $0x1b0] sm:$0xff]  }
  0xd4   : > { %8259 = vmatpush3.bf16.xpose.msra.mxu1 %v2119_v62  ;;  %8733 = vmatprep.subr.msk.bf16.mxu0 %vm950_vm0, %v8884_v61  ;;  %v8932_v61 = vld [vmem:[%s9741_s22 + $0x1f0] sm:$0xff]  }
  0xd5   : > { %8741 = vmatprep.subr.msk.bf16.mxu1 %vm950_vm0, %v8885_v63  ;;  %v10045_v63 = vld [vmem:[%s13236_s3 + $0x10] sm:$0xff] }
  0xdb   : > { %8229 = vmatpush3.bf16.xpose.msra.mxu0 %v1897_v0 }
  0xdc   : > { %8261 = vmatpush3.bf16.xpose.msra.mxu1 %v2122_v2  ;;  %8742 = vmatprep.subr.msk.bf16.mxu0 %vm950_vm0, %v8902_v1 }
  0xdd   : > { %8750 = vmatprep.subr.msk.bf16.mxu1 %vm950_vm0, %v8903_v3 }
  0xe2   : > { %8231 = vmatmul.mubr.msk.bf16.vlgmr.msra.gmra.mrb[32].mxu0 %vm950_vm0, %v8887_v4 }
  0xe3   : > { %8263 = vmatmul.mubr.msk.bf16.vlgmr.msra.gmra.mrb[32].mxu1 %vm950_vm0, %v8889_v5  ;;  %8234 = vmatprep.mubr.msk.bf16.mxu0 %vm950_vm0, %v8890_v6  ;;  %v8931_v6 = vld [vmem:[%s9741_s22 + $0x1b8] sm:$0xff]  }
  0xe4   : > { %8266 = vmatprep.mubr.msk.bf16.mxu1 %vm950_vm0, %v8892_v7  ;;  %8279 = vmatpush3.bf16.xpose.msra.mxu0 %v2326_v8 }
  0xe5   : > { %8311 = vmatpush3.bf16.xpose.msra.mxu1 %v2551_v10  ;;  %8743 = vmatprep.subr.msk.bf16.mxu0 %vm950_vm0, %v8904_v9 }
  0xe6   : > { %8751 = vmatprep.subr.msk.bf16.mxu1 %vm950_vm0, %v8905_v11  ;;  %v8933_v11 = vld [vmem:[%s9741_s22 + $0x1f8] sm:$0xff]   ;;  %s7666_s22 = sshll.u32 %s9710_s29, 10 }
  0xe7   : > { %s11260_s13 = scalar_lea.vmem %s13014_s4, %s7666_s22  ;;  %s13634_s22 = smov 8  }
  0xea   : > { %8235 = vmatmul.mubr.msk.bf16.gmra.mrb[36].mxu0 %vm950_vm0, %v8891_v12 }
  0xeb   : > { %8267 = vmatmul.mubr.msk.bf16.gmra.mrb[36].mxu1 %vm950_vm0, %v8893_v13  ;;  %8238 = vmatprep.mubr.msk.bf16.mxu0 %vm950_vm0, %v8894_v14 }
  0xec   : > { %8270 = vmatprep.mubr.msk.bf16.mxu1 %vm950_vm0, %v8896_v15  ;;  %8281 = vmatpush3.bf16.xpose.msra.mxu0 %v2329_v16  ;;  %v10059_v15 = vld [vmem:[%s13236_s3 + $0x18] sm:$0xff]  ;;  %v10065_v16 = vld [vmem:[%s13236_s3] sm:$0xff] }
  0xed   : > { %8313 = vmatpush3.bf16.xpose.msra.mxu1 %v2554_v18  ;;  %8744 = vmatprep.subr.msk.bf16.mxu0 %vm950_vm0, %v8906_v17 }
  0xee   : > { %8752 = vmatprep.subr.msk.bf16.mxu1 %vm950_vm0, %v8907_v19 }
  0xf2   : > { %8239 = vmatmul.mubr.msk.bf16.gmra.mrb[40].mxu0 %vm950_vm0, %v8895_v20 }
  0xf3   : > { %8271 = vmatmul.mubr.msk.bf16.gmra.mrb[40].mxu1 %vm950_vm0, %v8897_v21  ;;  %8242 = vmatprep.mubr.msk.bf16.mxu0 %vm950_vm0, %v8898_v22 }
  0xf4   : > { %8274 = vmatprep.mubr.msk.bf16.mxu1 %vm950_vm0, %v8900_v23  ;;  %8283 = vmatpush3.bf16.xpose.msra.mxu0 %v2332_v24 }
  0xf5   : > { %8315 = vmatpush3.bf16.xpose.msra.mxu1 %v2557_v26  ;;  %8745 = vmatprep.subr.msk.bf16.mxu0 %vm950_vm0, %v8908_v25 }
  0xf6   : > { %8753 = vmatprep.subr.msk.bf16.mxu1 %vm950_vm0, %v8909_v27 }
  0xfa   : > { %8243 = vmatmul.mubr.msk.bf16.gmra.mrb[44].mxu0 %vm950_vm0, %v8899_v28 }
  0xfb   : > { %8275 = vmatmul.mubr.msk.bf16.gmra.mrb[44].mxu1 %vm950_vm0, %v8901_v29  ;;  %8294 = vmatprep.mubr.msk.bf16.mxu0 %vm950_vm0, %v8918_v30 }
  0xfc   : > { %8285 = vmatpush3.bf16.xpose.msra.mxu0 %v2335_v32  ;;  %8326 = vmatprep.mubr.msk.bf16.mxu1 %vm950_vm0, %v8920_v31  ;;  %v10087_v32 = vld [vmem:[%s13236_s3 + $0x8] sm:$0xff] }
  0xfd   : > { %8317 = vmatpush3.bf16.xpose.msra.mxu1 %v2560_v34  ;;  %8746 = vmatprep.subr.msk.bf16.mxu0 %vm950_vm0, %v8910_v33 }
  0xfe   : > { %8754 = vmatprep.subr.msk.bf16.mxu1 %vm950_vm0, %v8911_v35 }
 0x104   : > { %8287 = vmatpush3.bf16.xpose.msra.mxu0 %v2338_v36  ;;  %v10094_v36 = vld [vmem:[%s13236_s3 + $0x38] sm:$0xff] }
 0x105   : > { %8319 = vmatpush3.bf16.xpose.msra.mxu1 %v2563_v38  ;;  %8747 = vmatprep.subr.msk.bf16.mxu0 %vm950_vm0, %v8912_v37  ;;  %v10102_v38 = vld [vmem:[%s13236_s3 + $0x30] sm:$0xff] }
 0x106   : > { %8755 = vmatprep.subr.msk.bf16.mxu1 %vm950_vm0, %v8913_v39 }
 0x10c   : > { %8289 = vmatpush3.bf16.xpose.msra.mxu0 %v2341_v40 }
 0x10d   : > { %8321 = vmatpush3.bf16.xpose.msra.mxu1 %v2566_v42  ;;  %8748 = vmatprep.subr.msk.bf16.mxu0 %vm950_vm0, %v8914_v41 }
 0x10e   : > { %8756 = vmatprep.subr.msk.bf16.mxu1 %vm950_vm0, %v8915_v43 }
 0x114   : > { %8291 = vmatpush3.bf16.xpose.msra.mxu0 %v2344_v44 }
 0x115   : > { %8323 = vmatpush3.bf16.xpose.msra.mxu1 %v2569_v46  ;;  %8749 = vmatprep.subr.msk.bf16.mxu0 %vm950_vm0, %v8916_v45 }
 0x116   : > { %8757 = vmatprep.subr.msk.bf16.mxu1 %vm950_vm0, %v8917_v47 }
 0x11c   : > { %8293 = vmatpush3.bf16.xpose.msra.mxu0 %v2347_v48 }
 0x11d   : > { %8325 = vmatpush3.bf16.xpose.msra.mxu1 %v2572_v49 }
 0x123   : > { %8295 = vmatmul.mubr.msk.bf16.vlgmr.msra.gmra.mrb[48].mxu0 %vm950_vm0, %v8919_v50 }
 0x124   : > { %8327 = vmatmul.mubr.msk.bf16.vlgmr.msra.gmra.mrb[48].mxu1 %vm950_vm0, %v8921_v51  ;;  %8298 = vmatprep.mubr.msk.bf16.mxu0 %vm950_vm0, %v8922_v52 }
 0x125   : > { %8330 = vmatprep.mubr.msk.bf16.mxu1 %vm950_vm0, %v8924_v53 }
 0x12b   : > { %8299 = vmatmul.mubr.msk.bf16.gmra.mrb[52].mxu0 %vm950_vm0, %v8923_v54 }
 0x12c   : > { %8331 = vmatmul.mubr.msk.bf16.gmra.mrb[52].mxu1 %vm950_vm0, %v8925_v55  ;;  %8302 = vmatprep.mubr.msk.bf16.mxu0 %vm950_vm0, %v8926_v56  ;;  %v10126_v56 = vld [vmem:[%s13236_s3 + $0x28] sm:$0xff] }
 0x12d   : > { %8334 = vmatprep.mubr.msk.bf16.mxu1 %vm950_vm0, %v8928_v57 }
 0x133   : > { %8303 = vmatmul.mubr.msk.bf16.gmra.mrb[56].mxu0 %vm950_vm0, %v8927_v58  ;;  %v10132_v58 = vld [vmem:[%s13236_s3 + $0x20] sm:$0xff] }
 0x134   : > { %8335 = vmatmul.mubr.msk.bf16.gmra.mrb[56].mxu1 %vm950_vm0, %v8929_v59  ;;  %8306 = vmatprep.mubr.msk.bf16.mxu0 %vm950_vm0, %v8930_v60 }
 0x135   : > { %v8104_v62 = vpop.f32.mrb[0].mxu0  ;;  %8338 = vmatprep.mubr.msk.bf16.mxu1 %vm950_vm0, %v8932_v61 }
 0x136   : > { %v2673_v0 = vmul.f32 0.35355338, %v8104_v62  ;;  %v8136_v1 = vpop.f32.mrb[0].mxu1  ;;  %v1033_v2 = vpop.f32.mrb[1].mxu0 }
 0x137   : > { %v2689_v3 = vmul.f32 0.35355338, %v8136_v1  ;;  %v1258_v4 = vpop.f32.mrb[1].mxu1  ;;  %v8105_v5 = vpop.f32.mrb[2].mxu0  ;;  %v2671_v12 = vmul.f32 0.35355338, %v1033_v2 }
 0x138   : > { %v2674_v7 = vmul.f32 0.35355338, %v8105_v5  ;;  %v8137_v8 = vpop.f32.mrb[2].mxu1  ;;  %v1036_v9 = vpop.f32.mrb[3].mxu0  ;;  %v10050_v10 = vadd.f32 %v10045_v63, %v2673_v0  ;;  %v2687_v19 = vmul.f32 0.35355338, %v1258_v4 }
 0x139   : > { %v1261_v13 = vpop.f32.mrb[3].mxu1  ;;  %v10054_v14 = vadd.f32 %v10045_v63, %v2689_v3  ;;  %v2690_v17 = vmul.f32 0.35355338, %v8137_v8  ;;  %v10074_v20 = vadd.f32 %v10065_v16, %v2671_v12  ;;  %v2672_v30 = vmul.f32 0.35355338, %v1036_v9  ;;  %v10146_v9 = vld [vmem:[%s13236_s3 + $0x58] sm:$0xff] }
 0x13a   : > { %2947 = vmax.xlane.f32.xlu1 %v10050_v10  ;;  %v10070_v18 = vadd.f32 %v10059_v15, %v2674_v7  ;;  %v2688_v26 = vmul.f32 0.35355338, %v1261_v13  ;;  %v10082_v31 = vadd.f32 %v10065_v16, %v2687_v19  ;;  %v10154_v12 = vld [vmem:[%s13236_s3 + $0x50] sm:$0xff] }
 0x13b   : > { %2979 = vmax.xlane.f32.xlu0 %v10054_v14  ;;  %8307 = vmatmul.mubr.msk.bf16.gmra.mrb[60].mxu0 %vm950_vm0, %v8931_v6  ;;  %v10079_v27 = vadd.f32 %v10059_v15, %v2690_v17  ;;  %v10105_v39 = vadd.f32 %v10087_v32, %v2672_v30 }
 0x13c   : > { %8339 = vmatmul.mubr.msk.bf16.gmra.mrb[60].mxu1 %vm950_vm0, %v8933_v11  ;;  %v10097_v37 = vadd.f32 %v10087_v32, %v2688_v26 }
 0x13d   : > { %v8108_v21 = vpop.f32.mrb[4].mxu0 }
 0x13e   : > { %2949 = vmax.xlane.f32.xlu1 %v10070_v18  ;;  %v1049_v22 = vpop.f32.mrb[5].mxu0  ;;  %v8140_v23 = vpop.f32.mrb[4].mxu1  ;;  %v2677_v35 = vmul.f32 0.35355338, %v8108_v21 }
 0x13f   : > { %2943 = vmax.xlane.f32.xlu0 %v10074_v20  ;;  %v8109_v24 = vpop.f32.mrb[6].mxu0  ;;  %v1274_v25 = vpop.f32.mrb[5].mxu1  ;;  %v2693_v45 = vmul.f32 0.35355338, %v8140_v23  ;;  %v2675_v55 = vmul.f32 0.35355338, %v1049_v22 }
 0x140   : > { %v1052_v28 = vpop.f32.mrb[7].mxu0  ;;  %v8141_v29 = vpop.f32.mrb[6].mxu1  ;;  %v2678_v34 = vmul.f32 0.35355338, %v8109_v24  ;;  %v10113_v46 = vadd.f32 %v10102_v38, %v2677_v35  ;;  %v2691_v4 = vmul.f32 0.35355338, %v1274_v25 }
 0x141   : > { %v1277_v33 = vpop.f32.mrb[7].mxu1  ;;  %v2694_v41 = vmul.f32 0.35355338, %v8141_v29  ;;  %v10121_v53 = vadd.f32 %v10102_v38, %v2693_v45  ;;  %v2676_v54 = vmul.f32 0.35355338, %v1052_v28  ;;  %v10139_v5 = vadd.f32 %v10132_v58, %v2675_v55  ;;  %v10178_v28 = vld [vmem:[%s13236_s3 + $0x48] sm:$0xff] }
 0x142   : > { %2981 = vmax.xlane.f32.xlu1 %v10079_v27  ;;  %v10109_v42 = vadd.f32 %v10094_v36, %v2678_v34  ;;  %v2692_v0 = vmul.f32 0.35355338, %v1277_v33  ;;  %v10157_v13 = vadd.f32 %v10132_v58, %v2691_v4  ;;  %v10184_v29 = vld [vmem:[%s13236_s3 + $0x40] sm:$0xff]  ;;  %v10206_v45 = vld [vmem:[%s13236_s3 + $0x70] sm:$0xff] }
 0x143   : > { %2975 = vmax.xlane.f32.xlu0 %v10082_v31  ;;  %v10117_v52 = vadd.f32 %v10094_v36, %v2694_v41  ;;  %v10136_v1 = vadd.f32 %v10126_v56, %v2676_v54 }
 0x144   : > { %v10149_v11 = vadd.f32 %v10126_v56, %v2692_v0  ;;  %v10236_v0 = vld [vmem:[%s13236_s3 + $0x60] sm:$0xff] }
 0x145   : > { %v8112_v40 = vpop.f32.mrb[8].mxu0 }
 0x146   : > { %2977 = vmax.xlane.f32.xlu1 %v10097_v37  ;;  %v1065_v43 = vpop.f32.mrb[9].mxu0  ;;  %v8144_v44 = vpop.f32.mrb[8].mxu1  ;;  %v2681_v8 = vmul.f32 0.35355338, %v8112_v40 }
 0x147   : > { %2945 = vmax.xlane.f32.xlu0 %v10105_v39  ;;  %v8113_v47 = vpop.f32.mrb[10].mxu0  ;;  %v1290_v48 = vpop.f32.mrb[9].mxu1  ;;  %v2697_v21 = vmul.f32 0.35355338, %v8144_v44  ;;  %v2679_v26 = vmul.f32 0.35355338, %v1065_v43 }
 0x148   : > { %v1068_v49 = vpop.f32.mrb[11].mxu0  ;;  %v8145_v50 = vpop.f32.mrb[10].mxu1  ;;  %v2682_v7 = vmul.f32 0.35355338, %v8113_v47  ;;  %v10165_v22 = vadd.f32 %v10154_v12, %v2681_v8  ;;  %v2695_v34 = vmul.f32 0.35355338, %v1290_v48 }
 0x149   : > { %v1293_v51 = vpop.f32.mrb[11].mxu1  ;;  %v2698_v17 = vmul.f32 0.35355338, %v8145_v50  ;;  %v10173_v24 = vadd.f32 %v10154_v12, %v2697_v21  ;;  %v2680_v25 = vmul.f32 0.35355338, %v1068_v49  ;;  %v10191_v35 = vadd.f32 %v10184_v29, %v2679_v26  ;;  %v10198_v43 = vld [vmem:[%s13236_s3 + $0x78] sm:$0xff] }
 0x14a   : > { %2957 = vmax.xlane.f32.xlu1 %v10109_v42  ;;  %v10161_v19 = vadd.f32 %v10146_v9, %v2682_v7  ;;  %v2696_v30 = vmul.f32 0.35355338, %v1293_v51  ;;  %v10209_v47 = vadd.f32 %v10184_v29, %v2695_v34 }
 0x14b   : > { %2955 = vmax.xlane.f32.xlu0 %v10113_v46  ;;  %v10169_v23 = vadd.f32 %v10146_v9, %v2698_v17  ;;  %v10188_v33 = vadd.f32 %v10178_v28, %v2680_v25  ;;  %13238 = vst [vmem:[#allocation7_spill] sm:$0xff] %v10191_v35 }
 0x14c   : > { %v10201_v44 = vadd.f32 %v10178_v28, %v2696_v30  ;;  %13240 = vst [vmem:[#allocation9_spill] sm:$0xff] %v10209_v47 }
 0x14d   : > { %v8116_v57 = vpop.f32.mrb[12].mxu0  ;;  %13237 = vst [vmem:[#allocation6_spill] sm:$0xff] %v10188_v33 }
 0x14e   : > { %2989 = vmax.xlane.f32.xlu1 %v10117_v52  ;;  %v1081_v59 = vpop.f32.mrb[13].mxu0  ;;  %v8148_v60 = vpop.f32.mrb[12].mxu1  ;;  %v2685_v41 = vmul.f32 0.35355338, %v8116_v57  ;;  %13239 = vst [vmem:[#allocation8_spill] sm:$0xff] %v10201_v44 }
 0x14f   : > { %2987 = vmax.xlane.f32.xlu0 %v10121_v53  ;;  %v8117_v61 = vpop.f32.mrb[14].mxu0  ;;  %v1306_v62 = vpop.f32.mrb[13].mxu1  ;;  %v2701_v50 = vmul.f32 0.35355338, %v8148_v60  ;;  %v10230_v60 = vld [vmem:[%s13236_s3 + $0x68] sm:$0xff] }
 0x150   : > { %v1084_v2 = vpop.f32.mrb[15].mxu0  ;;  %v8149_v3 = vpop.f32.mrb[14].mxu1  ;;  %v2686_v40 = vmul.f32 0.35355338, %v8117_v61  ;;  %v10217_v51 = vadd.f32 %v10206_v45, %v2685_v41  ;;  %v2683_v61 = vmul.f32 0.35355338, %v1081_v59 }
 0x151   : > { %v1309_v6 = vpop.f32.mrb[15].mxu1  ;;  %v2702_v48 = vmul.f32 0.35355338, %v8149_v3  ;;  %v10225_v55 = vadd.f32 %v10206_v45, %v2701_v50  ;;  %v2684_v57 = vmul.f32 0.35355338, %v1084_v2 }
 0x152   : > { %2953 = vmax.xlane.f32.xlu1 %v10136_v1  ;;  %v10213_v49 = vadd.f32 %v10198_v43, %v2686_v40  ;;  %13242 = vst [vmem:[#allocation11_spill] sm:$0xff] %v10217_v51  ;;  %v2700_v3 = vmul.f32 0.35355338, %v1309_v6  ;;  %v2699_v2 = vmul.f32 0.35355338, %v1306_v62  ;;  %v10243_v59 = vadd.f32 %v10236_v0, %v2683_v61 }
 0x153   : > { %2951 = vmax.xlane.f32.xlu0 %v10139_v5  ;;  %v10221_v54 = vadd.f32 %v10198_v43, %v2702_v48  ;;  %13244 = vst [vmem:[#allocation13_spill] sm:$0xff] %v10225_v55  ;;  %v10240_v4 = vadd.f32 %v10230_v60, %v2684_v57 }
 0x154   : > { %13241 = vst [vmem:[#allocation10_spill] sm:$0xff] %v10213_v49  ;;  %13246 = vst [vmem:[#allocation15_spill] sm:$0xff] %v10243_v59  ;;  %v10248_v7 = vadd.f32 %v10230_v60, %v2700_v3  ;;  %v10251_v17 = vadd.f32 %v10236_v0, %v2699_v2 }
 0x155   : > { %13243 = vst [vmem:[#allocation12_spill] sm:$0xff] %v10221_v54  ;;  %13245 = vst [vmem:[#allocation14_spill] sm:$0xff] %v10240_v4 }
 0x156   : > { %2985 = vmax.xlane.f32.xlu1 %v10149_v11  ;;  %13247 = vst [vmem:[#allocation16_spill] sm:$0xff] %v10248_v7  ;;  %13248 = vst [vmem:[#allocation17_spill] sm:$0xff] %v10251_v17 }
 0x157   : > { %2983 = vmax.xlane.f32.xlu0 %v10157_v13 }
 0x15a   : > { %2965 = vmax.xlane.f32.xlu1 %v10161_v19 }
 0x15b   : > { %2963 = vmax.xlane.f32.xlu0 %v10165_v22 }
 0x15e   : > { %2997 = vmax.xlane.f32.xlu1 %v10169_v23 }
 0x15f   : > { %2995 = vmax.xlane.f32.xlu0 %v10173_v24 }
 0x162   : > { %2961 = vmax.xlane.f32.xlu1 %v10188_v33 }
 0x163   : > { %2959 = vmax.xlane.f32.xlu0 %v10191_v35 }
 0x166   : > { %2993 = vmax.xlane.f32.xlu1 %v10201_v44 }
 0x167   : > { %2991 = vmax.xlane.f32.xlu0 %v10209_v47 }
 0x16a   : > { %2973 = vmax.xlane.f32.xlu1 %v10213_v49 }
 0x16b   : > { %2971 = vmax.xlane.f32.xlu0 %v10217_v51 }
 0x16e   : > { %3005 = vmax.xlane.f32.xlu1 %v10221_v54 }
 0x16f   : > { %3003 = vmax.xlane.f32.xlu0 %v10225_v55 }
 0x172   : > { %2969 = vmax.xlane.f32.xlu1 %v10240_v4 }
 0x173   : > { %2967 = vmax.xlane.f32.xlu0 %v10243_v59 }
 0x175   : > { %v8168_v8 = vpop.f32.mrb[16].mxu0 }
 0x176   : > { %v2705_v21 = vmul.f32 0.35355338, %v8168_v8  ;;  %v8200_v6 = vpop.f32.mrb[16].mxu1  ;;  %3001 = vmax.xlane.f32.xlu1 %v10248_v7  ;;  %v1483_v25 = vpop.f32.mrb[17].mxu0 }
 0x177   : > { %v2721_v62 = vmul.f32 0.35355338, %v8200_v6  ;;  %2999 = vmax.xlane.f32.xlu0 %v10251_v17  ;;  %v8169_v26 = vpop.f32.mrb[18].mxu0  ;;  %v1708_v30 = vpop.f32.mrb[17].mxu1  ;;  %v2703_v2 = vmul.f32 0.35355338, %v1483_v25 }
 0x178   : > { %v2706_v34 = vmul.f32 0.35355338, %v8169_v26  ;;  %v1486_v40 = vpop.f32.mrb[19].mxu0  ;;  %v8201_v41 = vpop.f32.mrb[18].mxu1  ;;  %v10256_v48 = vadd.f32 %v10045_v63, %v2705_v21 }
 0x179   : > { %v1711_v50 = vpop.f32.mrb[19].mxu1  ;;  %v2722_v57 = vmul.f32 0.35355338, %v8201_v41  ;;  %v10263_v3 = vadd.f32 %v10045_v63, %v2721_v62  ;;  %v2704_v6 = vmul.f32 0.35355338, %v1486_v40  ;;  %v10272_v4 = vadd.f32 %v10065_v16, %v2703_v2 }
 0x17a   : > { %13249 = vst [vmem:[#allocation18_spill] sm:$0xff] %v10256_v48  ;;  %v10259_v61 = vadd.f32 %v10059_v15, %v2706_v34  ;;  %v2719_v62 = vmul.f32 0.35355338, %v1708_v30 }
 0x17b   : > { %3011 = vmax.xlane.f32.xlu0 %v10256_v48  ;;  %13251 = vst [vmem:[#allocation20_spill] sm:$0xff] %v10263_v3  ;;  %v10267_v26 = vadd.f32 %v10059_v15, %v2722_v57  ;;  %13253 = vst [vmem:[#allocation22_spill] sm:$0xff] %v10272_v4  ;;  %v10275_v40 = vadd.f32 %v10087_v32, %v2704_v6 }
 0x17c   : > { %13250 = vst [vmem:[#allocation19_spill] sm:$0xff] %v10259_v61  ;;  %3013 = vmax.xlane.f32.xlu1 %v10259_v61  ;;  %v2720_v61 = vmul.f32 0.35355338, %v1711_v50 }
 0x17d   : > { %v8172_v8 = vpop.f32.mrb[20].mxu0  ;;  %13252 = vst [vmem:[#allocation21_spill] sm:$0xff] %v10267_v26  ;;  %13254 = vst [vmem:[#allocation23_spill] sm:$0xff] %v10275_v40 }
 0x17e   : > { %v1499_v21 = vpop.f32.mrb[21].mxu0  ;;  %v8204_v7 = vpop.f32.mrb[20].mxu1  ;;  %v2709_v57 = vmul.f32 0.35355338, %v8172_v8  ;;  %v10283_v30 = vadd.f32 %v10087_v32, %v2720_v61 }
 0x17f   : > { %3043 = vmax.xlane.f32.xlu0 %v10263_v3  ;;  %v8173_v41 = vpop.f32.mrb[22].mxu0  ;;  %v1724_v34 = vpop.f32.mrb[21].mxu1  ;;  %v10280_v3 = vadd.f32 %v10065_v16, %v2719_v62  ;;  %v2725_v55 = vmul.f32 0.35355338, %v8204_v7  ;;  %v2707_v61 = vmul.f32 0.35355338, %v1499_v21 }
 0x180   : > { %3045 = vmax.xlane.f32.xlu1 %v10267_v26  ;;  %v1502_v48 = vpop.f32.mrb[23].mxu0  ;;  %v8205_v17 = vpop.f32.mrb[22].mxu1  ;;  %v2710_v59 = vmul.f32 0.35355338, %v8173_v41  ;;  %13256 = vst [vmem:[#allocation25_spill] sm:$0xff] %v10283_v30  ;;  %v10287_v50 = vadd.f32 %v10102_v38, %v2709_v57 }
 0x181   : > { %v1727_v25 = vpop.f32.mrb[23].mxu1  ;;  %13255 = vst [vmem:[#allocation24_spill] sm:$0xff] %v10280_v3  ;;  %v2726_v49 = vmul.f32 0.35355338, %v8205_v17  ;;  %v10295_v7 = vadd.f32 %v10102_v38, %v2725_v55  ;;  %v2723_v55 = vmul.f32 0.35355338, %v1724_v34  ;;  %v10304_v35 = vadd.f32 %v10132_v58, %v2707_v61 }
 0x182   : > { %13257 = vst [vmem:[#allocation26_spill] sm:$0xff] %v10287_v50  ;;  %v10291_v41 = vadd.f32 %v10094_v36, %v2710_v59 }
 0x183   : > { %3007 = vmax.xlane.f32.xlu0 %v10272_v4  ;;  %13259 = vst [vmem:[#allocation28_spill] sm:$0xff] %v10295_v7  ;;  %v10299_v51 = vadd.f32 %v10094_v36, %v2726_v49  ;;  %13261 = vst [vmem:[#allocation30_spill] sm:$0xff] %v10304_v35 }
 0x184   : > { %3009 = vmax.xlane.f32.xlu1 %v10275_v40  ;;  %13258 = vst [vmem:[#allocation27_spill] sm:$0xff] %v10291_v41 }
 0x185   : > { %v8176_v26 = vpop.f32.mrb[24].mxu0  ;;  %13260 = vst [vmem:[#allocation29_spill] sm:$0xff] %v10299_v51 }
 0x186   : > { %v1515_v2 = vpop.f32.mrb[25].mxu0  ;;  %v8208_v54 = vpop.f32.mrb[24].mxu1  ;;  %v2713_v49 = vmul.f32 0.35355338, %v8176_v26 }
 0x187   : > { %3039 = vmax.xlane.f32.xlu0 %v10280_v3  ;;  %v8177_v6 = vpop.f32.mrb[26].mxu0  ;;  %v1740_v8 = vpop.f32.mrb[25].mxu1  ;;  %v2708_v3 = vmul.f32 0.35355338, %v1502_v48  ;;  %v2729_v34 = vmul.f32 0.35355338, %v8208_v54 }
 0x188   : > { %3041 = vmax.xlane.f32.xlu1 %v10283_v30  ;;  %v1518_v40 = vpop.f32.mrb[27].mxu0  ;;  %v8209_v62 = vpop.f32.mrb[26].mxu1 }
 0x189   : > { %v1743_v4 = vpop.f32.mrb[27].mxu1  ;;  %v10307_v48 = vadd.f32 %v10126_v56, %v2708_v3  ;;  %v2730_v3 = vmul.f32 0.35355338, %v8209_v62  ;;  %v10327_v61 = vadd.f32 %v10154_v12, %v2729_v34  ;;  %v2712_v54 = vmul.f32 0.35355338, %v1518_v40 }
 0x18a   : > { %v2727_v62 = vmul.f32 0.35355338, %v1740_v8 }
 0x18b   : > { %3019 = vmax.xlane.f32.xlu0 %v10287_v50  ;;  %13262 = vst [vmem:[#allocation31_spill] sm:$0xff] %v10307_v48  ;;  %13267 = vst [vmem:[#allocation36_spill] sm:$0xff] %v10327_v61 }
 0x18c   : > { %3021 = vmax.xlane.f32.xlu1 %v10291_v41  ;;  %v2724_v41 = vmul.f32 0.35355338, %v1727_v25  ;;  %v10319_v25 = vadd.f32 %v10154_v12, %v2713_v49  ;;  %v10339_v49 = vadd.f32 %v10178_v28, %v2712_v54  ;;  %v10344_v40 = vadd.f32 %v10184_v29, %v2727_v62 }
 0x18d   : > { %v8180_v57 = vpop.f32.mrb[28].mxu0 }
 0x18e   : > { %v1531_v30 = vpop.f32.mrb[29].mxu0  ;;  %v8212_v47 = vpop.f32.mrb[28].mxu1  ;;  %v10315_v33 = vadd.f32 %v10126_v56, %v2724_v41  ;;  %13265 = vst [vmem:[#allocation34_spill] sm:$0xff] %v10319_v25  ;;  %v10331_v41 = vadd.f32 %v10146_v9, %v2730_v3  ;;  %13270 = vst [vmem:[#allocation39_spill] sm:$0xff] %v10339_v49  ;;  %v2717_v34 = vmul.f32 0.35355338, %v8180_v57 }
 0x18f   : > { %3051 = vmax.xlane.f32.xlu0 %v10295_v7  ;;  %v8181_v17 = vpop.f32.mrb[30].mxu0  ;;  %v1756_v59 = vpop.f32.mrb[29].mxu1  ;;  %v10312_v7 = vadd.f32 %v10132_v58, %v2723_v55  ;;  %v2728_v55 = vmul.f32 0.35355338, %v1743_v4  ;;  %13271 = vst [vmem:[#allocation40_spill] sm:$0xff] %v10344_v40 }
 0x190   : > { %3053 = vmax.xlane.f32.xlu1 %v10299_v51  ;;  %v1534_v50 = vpop.f32.mrb[31].mxu0  ;;  %v8213_v44 = vpop.f32.mrb[30].mxu1  ;;  %v2714_v51 = vmul.f32 0.35355338, %v8177_v6  ;;  %13264 = vst [vmem:[#allocation33_spill] sm:$0xff] %v10315_v33  ;;  %13268 = vst [vmem:[#allocation37_spill] sm:$0xff] %v10331_v41  ;;  %v10351_v4 = vadd.f32 %v10206_v45, %v2717_v34 }
 0x191   : > { %v1759_v21 = vpop.f32.mrb[31].mxu1  ;;  %13263 = vst [vmem:[#allocation32_spill] sm:$0xff] %v10312_v7  ;;  %v2711_v6 = vmul.f32 0.35355338, %v1515_v2  ;;  %v2718_v2 = vmul.f32 0.35355338, %v8181_v17  ;;  %v10347_v3 = vadd.f32 %v10178_v28, %v2728_v55 }
 0x192   : > { %v10323_v26 = vadd.f32 %v10146_v9, %v2714_v51  ;;  %v2733_v8 = vmul.f32 0.35355338, %v8212_v47  ;;  %13273 = vst [vmem:[#allocation42_spill] sm:$0xff] %v10351_v4  ;;  %v2715_v17 = vmul.f32 0.35355338, %v1531_v30 }
 0x193   : > { %3015 = vmax.xlane.f32.xlu0 %v10304_v35  ;;  %v10336_v51 = vadd.f32 %v10184_v29, %v2711_v6  ;;  %13272 = vst [vmem:[#allocation41_spill] sm:$0xff] %v10347_v3  ;;  %v2734_v6 = vmul.f32 0.35355338, %v8213_v44  ;;  %v10355_v57 = vadd.f32 %v10198_v43, %v2718_v2  ;;  %v2716_v47 = vmul.f32 0.35355338, %v1534_v50 }
 0x194   : > { %3017 = vmax.xlane.f32.xlu1 %v10307_v48  ;;  %13266 = vst [vmem:[#allocation35_spill] sm:$0xff] %v10323_v26  ;;  %v10359_v54 = vadd.f32 %v10206_v45, %v2733_v8  ;;  %v2731_v44 = vmul.f32 0.35355338, %v1756_v59  ;;  %v10368_v55 = vadd.f32 %v10236_v0, %v2715_v17  ;;  %v2732_v34 = vmul.f32 0.35355338, %v1759_v21 }
 0x195   : > { %13269 = vst [vmem:[#allocation38_spill] sm:$0xff] %v10336_v51  ;;  %13274 = vst [vmem:[#allocation43_spill] sm:$0xff] %v10355_v57  ;;  %v10363_v62 = vadd.f32 %v10198_v43, %v2734_v6  ;;  %v10371_v2 = vadd.f32 %v10230_v60, %v2716_v47 }
 0x196   : > { %13275 = vst [vmem:[#allocation44_spill] sm:$0xff] %v10359_v54  ;;  %13277 = vst [vmem:[#allocation46_spill] sm:$0xff] %v10368_v55  ;;  %v10376_v50 = vadd.f32 %v10236_v0, %v2731_v44  ;;  %v10379_v59 = vadd.f32 %v10230_v60, %v2732_v34 }
 0x197   : > { %3047 = vmax.xlane.f32.xlu0 %v10312_v7  ;;  %13276 = vst [vmem:[#allocation45_spill] sm:$0xff] %v10363_v62  ;;  %13278 = vst [vmem:[#allocation47_spill] sm:$0xff] %v10371_v2 }
 0x198   : > { %3049 = vmax.xlane.f32.xlu1 %v10315_v33  ;;  %13279 = vst [vmem:[#allocation48_spill] sm:$0xff] %v10376_v50  ;;  %13280 = vst [vmem:[#allocation49_spill] sm:$0xff] %v10379_v59 }
 0x19b   : > { %3027 = vmax.xlane.f32.xlu0 %v10319_v25 }
 0x19c   : > { %3029 = vmax.xlane.f32.xlu1 %v10323_v26 }
 0x19f   : > { %3059 = vmax.xlane.f32.xlu0 %v10327_v61 }
 0x1a0   : > { %3061 = vmax.xlane.f32.xlu1 %v10331_v41 }
 0x1a3   : > { %3023 = vmax.xlane.f32.xlu0 %v10336_v51 }
 0x1a4   : > { %3025 = vmax.xlane.f32.xlu1 %v10339_v49 }
 0x1a7   : > { %3055 = vmax.xlane.f32.xlu0 %v10344_v40 }
 0x1a8   : > { %3057 = vmax.xlane.f32.xlu1 %v10347_v3 }
 0x1ab   : > { %3035 = vmax.xlane.f32.xlu0 %v10351_v4 }
 0x1ac   : > { %3037 = vmax.xlane.f32.xlu1 %v10355_v57 }
 0x1af   : > { %3067 = vmax.xlane.f32.xlu0 %v10359_v54 }
 0x1b0   : > { %3069 = vmax.xlane.f32.xlu1 %v10363_v62 }
 0x1b3   : > { %3031 = vmax.xlane.f32.xlu0 %v10368_v55 }
 0x1b4   : > { %3033 = vmax.xlane.f32.xlu1 %v10371_v2 }
 0x1b5   : > { %v8232_v30 = vpop.f32.mrb[32].mxu0 }
 0x1b6   : > { %v2737_v8 = vmul.f32 0.35355338, %v8232_v30  ;;  %v8264_v6 = vpop.f32.mrb[32].mxu1  ;;  %v1933_v54 = vpop.f32.mrb[33].mxu0 }
 0x1b7   : > { %v2753_v17 = vmul.f32 0.35355338, %v8264_v6  ;;  %3063 = vmax.xlane.f32.xlu0 %v10376_v50  ;;  %v8233_v21 = vpop.f32.mrb[34].mxu0  ;;  %v2158_v47 = vpop.f32.mrb[33].mxu1  ;;  %v2735_v6 = vmul.f32 0.35355338, %v1933_v54 }
 0x1b8   : > { %v2738_v62 = vmul.f32 0.35355338, %v8233_v21  ;;  %v8265_v57 = vpop.f32.mrb[34].mxu1  ;;  %3065 = vmax.xlane.f32.xlu1 %v10379_v59  ;;  %v1936_v2 = vpop.f32.mrb[35].mxu0  ;;  %v10384_v55 = vadd.f32 %v10045_v63, %v2737_v8 }
 0x1b9   : > { %v2161_v44 = vpop.f32.mrb[35].mxu1  ;;  %v2754_v30 = vmul.f32 0.35355338, %v8265_v57  ;;  %v10391_v34 = vadd.f32 %v10045_v63, %v2753_v17  ;;  %v2736_v50 = vmul.f32 0.35355338, %v1936_v2  ;;  %v10400_v17 = vadd.f32 %v10065_v16, %v2735_v6 }
 0x1ba   : > { %13281 = vst [vmem:[#allocation50_spill] sm:$0xff] %v10384_v55  ;;  %v10387_v4 = vadd.f32 %v10059_v15, %v2738_v62  ;;  %v2751_v63 = vmul.f32 0.35355338, %v2158_v47 }
 0x1bb   : > { %3075 = vmax.xlane.f32.xlu0 %v10384_v55  ;;  %13283 = vst [vmem:[#allocation52_spill] sm:$0xff] %v10391_v34  ;;  %v10395_v59 = vadd.f32 %v10059_v15, %v2754_v30  ;;  %13285 = vst [vmem:[#allocation54_spill] sm:$0xff] %v10400_v17  ;;  %v10403_v2 = vadd.f32 %v10087_v32, %v2736_v50 }
 0x1bc   : > { %13282 = vst [vmem:[#allocation51_spill] sm:$0xff] %v10387_v4  ;;  %3077 = vmax.xlane.f32.xlu1 %v10387_v4  ;;  %v2752_v4 = vmul.f32 0.35355338, %v2161_v44  ;;  %v10408_v30 = vadd.f32 %v10065_v16, %v2751_v63 }
 0x1bd   : > { %v8236_v21 = vpop.f32.mrb[36].mxu0  ;;  %13284 = vst [vmem:[#allocation53_spill] sm:$0xff] %v10395_v59  ;;  %13286 = vst [vmem:[#allocation55_spill] sm:$0xff] %v10403_v2 }
 0x1be   : > { %v1949_v8 = vpop.f32.mrb[37].mxu0  ;;  %v8268_v3 = vpop.f32.mrb[36].mxu1  ;;  %v2741_v15 = vmul.f32 0.35355338, %v8236_v21  ;;  %13287 = vst [vmem:[#allocation56_spill] sm:$0xff] %v10408_v30  ;;  %v10411_v47 = vadd.f32 %v10087_v32, %v2752_v4 }
 0x1bf   : > { %3107 = vmax.xlane.f32.xlu0 %v10391_v34  ;;  %v8237_v57 = vpop.f32.mrb[38].mxu0  ;;  %v2174_v62 = vpop.f32.mrb[37].mxu1  ;;  %v2757_v51 = vmul.f32 0.35355338, %v8268_v3 }
 0x1c0   : > { %3109 = vmax.xlane.f32.xlu1 %v10395_v59  ;;  %v1952_v55 = vpop.f32.mrb[39].mxu0  ;;  %v8269_v40 = vpop.f32.mrb[38].mxu1  ;;  %v2742_v34 = vmul.f32 0.35355338, %v8237_v57  ;;  %13288 = vst [vmem:[#allocation57_spill] sm:$0xff] %v10411_v47  ;;  %v10417_v44 = vadd.f32 %v10102_v38, %v2741_v15 }
 0x1c1   : > { %v2177_v54 = vpop.f32.mrb[39].mxu1  ;;  %v2758_v63 = vmul.f32 0.35355338, %v8269_v40  ;;  %v2740_v61 = vmul.f32 0.35355338, %v1952_v55 }
 0x1c2   : > { %13289 = vst [vmem:[#allocation58_spill] sm:$0xff] %v10417_v44  ;;  %v10423_v32 = vadd.f32 %v10094_v36, %v2742_v34 }
 0x1c3   : > { %3071 = vmax.xlane.f32.xlu0 %v10400_v17  ;;  %v10435_v40 = vadd.f32 %v10094_v36, %v2758_v63  ;;  %v2756_v63 = vmul.f32 0.35355338, %v2177_v54 }
 0x1c4   : > { %3073 = vmax.xlane.f32.xlu1 %v10403_v2  ;;  %13290 = vst [vmem:[#allocation59_spill] sm:$0xff] %v10423_v32 }
 0x1c5   : > { %v8240_v59 = vpop.f32.mrb[40].mxu0  ;;  %13292 = vst [vmem:[#allocation61_spill] sm:$0xff] %v10435_v40  ;;  %v10467_v54 = vadd.f32 %v10126_v56, %v2756_v63 }
 0x1c6   : > { %v1965_v6 = vpop.f32.mrb[41].mxu0  ;;  %v8272_v49 = vpop.f32.mrb[40].mxu1  ;;  %v2745_v33 = vmul.f32 0.35355338, %v8240_v59 }
 0x1c7   : > { %3103 = vmax.xlane.f32.xlu0 %v10408_v30  ;;  %v10414_v50 = vpop.xlane.xlu1 %2947  ;;  %v8241_v21 = vpop.f32.mrb[42].mxu0  ;;  %v10429_v30 = vadd.f32 %v10102_v38, %v2757_v51  ;;  %13296 = vst [vmem:[#allocation65_spill] sm:$0xff] %v10467_v54 }
 0x1c8   : > { %v10419_v2 = vpop.xlane.xlu0 %2979  ;;  %3105 = vmax.xlane.f32.xlu1 %v10411_v47  ;;  %v1968_v16 = vpop.f32.mrb[43].mxu0  ;;  %v2739_v47 = vmul.f32 0.35355338, %v1949_v8  ;;  %v2755_v8 = vmul.f32 0.35355338, %v2174_v62  ;;  %v10473_v59 = vadd.f32 %v10154_v12, %v2745_v33 }
 0x1c9   : > { %v2190_v57 = vpop.f32.mrb[41].mxu1  ;;  %13291 = vst [vmem:[#allocation60_spill] sm:$0xff] %v10429_v30  ;;  %v2743_v33 = vmul.f32 0.35355338, %v1965_v6 }
 0x1ca   : > { %v8273_v4 = vpop.f32.mrb[42].mxu1  ;;  %v10448_v55 = vadd.f32 %v10132_v58, %v2739_v47  ;;  %v10464_v62 = vadd.f32 %v10132_v58, %v2755_v8  ;;  %v2746_v47 = vmul.f32 0.35355338, %v8241_v21  ;;  %13297 = vst [vmem:[#allocation66_spill] sm:$0xff] %v10473_v59  ;;  %v2744_v8 = vmul.f32 0.35355338, %v1968_v16 }
 0x1cb   : > { %3083 = vmax.xlane.f32.xlu0 %v10417_v44  ;;  %v10426_v3 = vpop.xlane.xlu1 %2949  ;;  %v2193_v15 = vpop.f32.mrb[43].mxu1 }
 0x1cc   : > { %v10431_v17 = vpop.xlane.xlu0 %2943  ;;  %3085 = vmax.xlane.f32.xlu1 %v10423_v32  ;;  %13293 = vst [vmem:[#allocation62_spill] sm:$0xff] %v10448_v55  ;;  %v10453_v32 = vadd.f32 %v10126_v56, %v2740_v61  ;;  %13295 = vst [vmem:[#allocation64_spill] sm:$0xff] %v10464_v62  ;;  %v2761_v61 = vmul.f32 0.35355338, %v8272_v49  ;;  %v10479_v58 = vadd.f32 %v10146_v9, %v2746_v47 }
 0x1cd   : > { %v8244_v41 = vpop.f32.mrb[44].mxu0 }
 0x1ce   : > { %v10437_v34 = vpop.f32.mrb[45].mxu0  ;;  %v8276_v26 = vpop.f32.mrb[44].mxu1  ;;  %13294 = vst [vmem:[#allocation63_spill] sm:$0xff] %v10453_v32  ;;  %13298 = vst [vmem:[#allocation67_spill] sm:$0xff] %v10479_v58  ;;  %v10485_v49 = vadd.f32 %v10154_v12, %v2761_v61  ;;  %v10500_v12 = vadd.f32 %v10184_v29, %v2743_v33  ;;  %v2760_v61 = vmul.f32 0.35355338, %v2193_v15  ;;  %v3201_v15 = vsub.f32 %v10050_v10, %v10414_v50 }
 0x1cf   : > { %3115 = vmax.xlane.f32.xlu0 %v10429_v30  ;;  %v10440_v44 = vpop.xlane.xlu1 %2981  ;;  %v8245_v38 = vpop.f32.mrb[46].mxu0 }
 0x1d0   : > { %v10442_v51 = vpop.xlane.xlu0 %2975  ;;  %3117 = vmax.xlane.f32.xlu1 %v10435_v40  ;;  %v10445_v25 = vpop.f32.mrb[47].mxu0  ;;  %13299 = vst [vmem:[#allocation68_spill] sm:$0xff] %v10485_v49  ;;  %13301 = vst [vmem:[#allocation70_spill] sm:$0xff] %v10500_v12  ;;  %v10515_v33 = vadd.f32 %v10178_v28, %v2760_v61  ;;  %v3331_v10 = vmul.f32 1.442695, %v3201_v15 }
 0x1d1   : > { %v10450_v36 = vpop.f32.mrb[45].mxu1  ;;  %v2747_v61 = vmul.f32 0.35355338, %v10437_v34 }
 0x1d2   : > { %v8277_v30 = vpop.f32.mrb[46].mxu1  ;;  %13304 = vst [vmem:[#allocation73_spill] sm:$0xff] %v10515_v33  ;;  %8998 = vpow2.f32 %v3331_v10 }
 0x1d3   : > { %3079 = vmax.xlane.f32.xlu0 %v10448_v55  ;;  %v10456_v7 = vpop.xlane.xlu1 %2977  ;;  %v10458_v48 = vpop.f32.mrb[47].mxu1 }
 0x1d4   : > { %v10460_v40 = vpop.xlane.xlu0 %2945  ;;  %3081 = vmax.xlane.f32.xlu1 %v10453_v32  ;;  %v2762_v32 = vmul.f32 0.35355338, %v8273_v4  ;;  %v2764_v34 = vmul.f32 0.35355338, %v10458_v48  ;;  %v3216_v48 = vsub.f32 %v10097_v37, %v10456_v7 }
 0x1d6   : > { %v10491_v63 = vadd.f32 %v10146_v9, %v2762_v32  ;;  %v2749_v9 = vmul.f32 0.35355338, %v8244_v41 }
 0x1d7   : > { %3111 = vmax.xlane.f32.xlu0 %v10464_v62  ;;  %v10470_v55 = vpop.xlane.xlu1 %2957 }
 0x1d8   : > { %v10475_v35 = vpop.xlane.xlu0 %2955  ;;  %3113 = vmax.xlane.f32.xlu1 %v10467_v54  ;;  %13300 = vst [vmem:[#allocation69_spill] sm:$0xff] %v10491_v63 }
 0x1d9   : > { %v3205_v37 = vsub.f32 %v10113_v46, %v10475_v35 }
 0x1db   : > { %3091 = vmax.xlane.f32.xlu0 %v10473_v59  ;;  %v10482_v56 = vpop.xlane.xlu1 %2989  ;;  %v2759_v59 = vmul.f32 0.35355338, %v2190_v57  ;;  %v2750_v57 = vmul.f32 0.35355338, %v8245_v38 }
 0x1dc   : > { %v10487_v21 = vpop.xlane.xlu0 %2987  ;;  %3093 = vmax.xlane.f32.xlu1 %v10479_v58  ;;  %v10503_v58 = vadd.f32 %v10178_v28, %v2744_v8  ;;  %v2765_v8 = vmul.f32 0.35355338, %v8276_v26  ;;  %v2766_v28 = vmul.f32 0.35355338, %v8277_v30  ;;  %v3218_v30 = vsub.f32 %v10079_v27, %v10440_v44 }
 0x1dd   : > { %v10512_v32 = vadd.f32 %v10184_v29, %v2759_v59  ;;  %v10531_v38 = vadd.f32 %v10198_v43, %v2750_v57  ;;  %v3217_v59 = vsub.f32 %v10054_v14, %v10419_v2  ;;  %v3199_v2 = vsub.f32 %v10074_v20, %v10431_v17 }
 0x1de   : > { %13302 = vst [vmem:[#allocation71_spill] sm:$0xff] %v10503_v58  ;;  %v10537_v50 = vadd.f32 %v10206_v45, %v2765_v8  ;;  %v10549_v57 = vadd.f32 %v10198_v43, %v2766_v28  ;;  %v3365_v27 = vmul.f32 1.442695, %v3218_v30  ;;  %v2763_v43 = vmul.f32 0.35355338, %v10450_v36 }
 0x1df   : > { %3123 = vmax.xlane.f32.xlu0 %v10485_v49  ;;  %v10494_v4 = vpop.xlane.xlu1 %2953  ;;  %13303 = vst [vmem:[#allocation72_spill] sm:$0xff] %v10512_v32  ;;  %13306 = vst [vmem:[#allocation75_spill] sm:$0xff] %v10531_v38  ;;  %v3363_v14 = vmul.f32 1.442695, %v3217_v59  ;;  %v10563_v44 = vadd.f32 %v10236_v0, %v2747_v61  ;;  %v3327_v17 = vmul.f32 1.442695, %v3199_v2  ;;  %v3215_v8 = vsub.f32 %v10082_v31, %v10442_v51 }
 0x1e0   : > { %v10496_v47 = vpop.xlane.xlu0 %2951  ;;  %3125 = vmax.xlane.f32.xlu1 %v10491_v63  ;;  %13307 = vst [vmem:[#allocation76_spill] sm:$0xff] %v10537_v50  ;;  %13308 = vst [vmem:[#allocation77_spill] sm:$0xff] %v10549_v57  ;;  %v10580_v36 = vadd.f32 %v10236_v0, %v2763_v43  ;;  %v10583_v28 = vadd.f32 %v10230_v60, %v2764_v34  ;;  %v3206_v30 = vsub.f32 %v10109_v42, %v10470_v55 }
 0x1e1   : > { %13309 = vst [vmem:[#allocation78_spill] sm:$0xff] %v10563_v44  ;;  %v3359_v59 = vmul.f32 1.442695, %v3215_v8  ;;  %v3339_v2 = vmul.f32 1.442695, %v3205_v37  ;;  %v3222_v43 = vsub.f32 %v10117_v52, %v10482_v56 }
 0x1e2   : > { %13311 = vst [vmem:[#allocation80_spill] sm:$0xff] %v10580_v36  ;;  %13312 = vst [vmem:[#allocation81_spill] sm:$0xff] %v10583_v28  ;;  %v3341_v55 = vmul.f32 1.442695, %v3206_v30 }
 0x1e3   : > { %3087 = vmax.xlane.f32.xlu0 %v10500_v12  ;;  %v10506_v6 = vpop.xlane.xlu1 %2985  ;;  %v10523_v12 = vadd.f32 %v10206_v45, %v2749_v9  ;;  %v2748_v9 = vmul.f32 0.35355338, %v10445_v25  ;;  %v3200_v25 = vsub.f32 %v10105_v39, %v10460_v40  ;;  %v3373_v37 = vmul.f32 1.442695, %v3222_v43 }
 0x1e4   : > { %v10508_v16 = vpop.xlane.xlu0 %2983  ;;  %3089 = vmax.xlane.f32.xlu1 %v10503_v58  ;;  %v3202_v58 = vsub.f32 %v10070_v18, %v10426_v3 }
 0x1e5   : > { %13305 = vst [vmem:[#allocation74_spill] sm:$0xff] %v10523_v12  ;;  %v10567_v15 = vadd.f32 %v10230_v60, %v2748_v9  ;;  %v3329_v40 = vmul.f32 1.442695, %v3200_v25  ;;  %v10599_v60 = vpop.eup %8998 }
 0x1e6   : > { %v3333_v18 = vmul.f32 1.442695, %v3202_v58  ;;  %13313 = vst [vmem:[#allocation82_spill] sm:$0xff] %v10599_v60 }
 0x1e7   : > { %3119 = vmax.xlane.f32.xlu0 %v10512_v32  ;;  %v10520_v41 = vpop.xlane.xlu1 %2965  ;;  %13310 = vst [vmem:[#allocation79_spill] sm:$0xff] %v10567_v15 }
 0x1e8   : > { %v10527_v29 = vpop.xlane.xlu0 %2963  ;;  %3121 = vmax.xlane.f32.xlu1 %v10515_v33  ;;  %9000 = vpow2.f32 %v3333_v18  ;;  %v3361_v18 = vmul.f32 1.442695, %v3216_v48 }
 0x1e9   : > { %9002 = vpow2.f32 %v3363_v14 }
 0x1ea   : > { %9004 = vpow2.f32 %v3365_v27  ;;  %v3221_v27 = vsub.f32 %v10121_v53, %v10487_v21  ;;  %v3203_v53 = vsub.f32 %v10139_v5, %v10496_v47 }
 0x1eb   : > { %3099 = vmax.xlane.f32.xlu0 %v10523_v12  ;;  %v10534_v26 = vpop.xlane.xlu1 %2997  ;;  %9006 = vpow2.f32 %v3327_v17 }
 0x1ec   : > { %v10541_v3 = vpop.xlane.xlu0 %2995  ;;  %3101 = vmax.xlane.f32.xlu1 %v10531_v38  ;;  %9008 = vpow2.f32 %v3329_v40  ;;  %v3371_v52 = vmul.f32 1.442695, %v3221_v27  ;;  %v3335_v27 = vmul.f32 1.442695, %v3203_v53  ;;  %v3220_v53 = vsub.f32 %v10149_v11, %v10506_v6 }
 0x1ed   : > { %9010 = vpow2.f32 %v3359_v59  ;;  %v3209_v6 = vsub.f32 %v10165_v22, %v10527_v29  ;;  %v3210_v38 = vsub.f32 %v10161_v19, %v10520_v41  ;;  %v8936_v22 = vld [vmem:[%s10655_s12 + $0x40] sm:$0xff]   ;;  %v3225_v41 = vsub.f32 %v10173_v24, %v10541_v3  ;;  %v8937_v3 = vld [vmem:[%s10655_s12 + $0x10] sm:$0xff]  }
 0x1ee   : > { %9012 = vpow2.f32 %v3361_v18  ;;  %v3204_v18 = vsub.f32 %v10136_v1, %v10494_v4  ;;  %v8934_v1 = vld [vmem:[%s10655_s12] sm:$0xff]   ;;  %v3219_v4 = vsub.f32 %v10157_v13, %v10508_v16  ;;  %8374 = vmatprep.subr.bf16.mxu1 %v8936_v22  ;;  %v3226_v54 = vsub.f32 %v10169_v23, %v10534_v26 }
 0x1ef   : > { %3131 = vmax.xlane.f32.xlu0 %v10537_v50  ;;  %v10552_v45 = vpop.xlane.xlu1 %2961  ;;  %9014 = vpow2.f32 %v3339_v2  ;;  %8342 = vmatprep.subr.bf16.mxu0 %v8934_v1  ;;  %v3369_v50 = vmul.f32 1.442695, %v3220_v53  ;;  %v3347_v19 = vmul.f32 1.442695, %v3209_v6  ;;  %v3349_v49 = vmul.f32 1.442695, %v3210_v38 }
 0x1f0   : > { %v10556_v58 = vpop.xlane.xlu0 %2959  ;;  %3133 = vmax.xlane.f32.xlu1 %v10549_v57  ;;  %9016 = vpow2.f32 %v3341_v55  ;;  %8343 = vmatpush3.bf16.msra.mxu0 %v8934_v1  ;;  %v3367_v11 = vmul.f32 1.442695, %v3219_v4  ;;  %v3379_v26 = vmul.f32 1.442695, %v3225_v41 }
 0x1f1   : > { %9018 = vpow2.f32 %v3371_v52  ;;  %8375 = vmatpush3.bf16.msra.mxu1 %v8936_v22 }
 0x1f2   : > { %v10607_v14 = vpop.eup %9000  ;;  %9020 = vpow2.f32 %v3373_v37 }
 0x1f3   : > { %3095 = vmax.xlane.f32.xlu0 %v10563_v44  ;;  %v10570_v20 = vpop.xlane.xlu1 %2993  ;;  %13314 = vst [vmem:[#allocation83_spill] sm:$0xff] %v10607_v14  ;;  %v10625_v17 = vpop.eup %9002  ;;  %9022 = vpow2.f32 %v3335_v27  ;;  %v8935_v27 = vld [vmem:[%s10655_s12 + $0x8] sm:$0xff]  }
 0x1f4   : > { %v10574_v39 = vpop.xlane.xlu0 %2991  ;;  %3097 = vmax.xlane.f32.xlu1 %v10567_v15  ;;  %13315 = vst [vmem:[#allocation84_spill] sm:$0xff] %v10625_v17  ;;  %v10629_v48 = vpop.eup %9004  ;;  %8344 = vmatprep.subr.bf16.mxu0 %v8935_v27 }
 0x1f5   : > { %13316 = vst [vmem:[#allocation85_spill] sm:$0xff] %v10629_v48  ;;  %v10649_v30 = vpop.eup %9006  ;;  %8345 = vmatpush3.bf16.msra.mxu0 %v8935_v27 }
 0x1f6   : > { %v10585_v10 = vpop.f32.mrb[48].mxu0  ;;  %13317 = vst [vmem:[#allocation86_spill] sm:$0xff] %v10649_v30  ;;  %v10657_v2 = vpop.eup %9008  ;;  %8346 = vmatprep.subr.bf16.mxu0 %v8937_v3 }
 0x1f7   : > { %3127 = vmax.xlane.f32.xlu0 %v10580_v36  ;;  %v10588_v31 = vpop.xlane.xlu1 %2973  ;;  %v10590_v51 = vpop.f32.mrb[49].mxu0  ;;  %13319 = vst [vmem:[#allocation87_spill] sm:$0xff] %v10657_v2  ;;  %v3337_v36 = vmul.f32 1.442695, %v3204_v18 }
 0x1f8   : > { %v10594_v7 = vpop.xlane.xlu0 %2971  ;;  %3129 = vmax.xlane.f32.xlu1 %v10583_v28  ;;  %v10597_v0 = vpop.f32.mrb[50].mxu0 }
 0x1f9   : > { %v10603_v61 = vpop.f32.mrb[51].mxu0  ;;  %v10605_v9 = vpop.f32.mrb[48].mxu1  ;;  %9024 = vpow2.f32 %v3337_v36  ;;  %8347 = vmatpush3.bf16.msra.mxu0 %v8937_v3  ;;  %v13331_v3 = vld [vmem:[#allocation9_spill] sm:$0xff] }
 0x1fa   : > { %v10612_v35 = vpop.f32.mrb[49].mxu1  ;;  %v10676_v52 = vpop.eup %9010  ;;  %9026 = vpow2.f32 %v3367_v11 }
 0x1fb   : > { %3587 = vadd.xlane.f32.xlu0 %v10599_v60  ;;  %v10610_v46 = vpop.xlane.xlu1 %3005  ;;  %v10619_v42 = vpop.f32.mrb[50].mxu1  ;;  %13320 = vst [vmem:[#allocation88_spill] sm:$0xff] %v10676_v52  ;;  %9028 = vpow2.f32 %v3369_v50  ;;  %v13327_v50 = vld [vmem:[#allocation7_spill] sm:$0xff] }
 0x1fc   : > { %v10616_v25 = vpop.xlane.xlu0 %3003  ;;  %3589 = vadd.xlane.f32.xlu1 %v10607_v14  ;;  %v10623_v34 = vpop.f32.mrb[51].mxu1  ;;  %9030 = vpow2.f32 %v3347_v19  ;;  %v3207_v27 = vsub.f32 %v13327_v50, %v10556_v58  ;;  %v8939_v19 = vld [vmem:[%s10655_s12 + $0x18] sm:$0xff]   ;;  %v8940_v58 = vld [vmem:[%s10655_s12 + $0x50] sm:$0xff]  }
 0x1fd   : > { %v10680_v13 = vpop.eup %9012  ;;  %9032 = vpow2.f32 %v3349_v49  ;;  %8348 = vmatprep.subr.bf16.mxu0 %v8939_v19 }
 0x1fe   : > { %v10627_v8 = vpop.f32.mrb[52].mxu0  ;;  %13321 = vst [vmem:[#allocation89_spill] sm:$0xff] %v10680_v13  ;;  %v10701_v4 = vpop.eup %9014  ;;  %9034 = vpow2.f32 %v3379_v26  ;;  %8349 = vmatpush3.bf16.msra.mxu0 %v8939_v19  ;;  %v8942_v19 = vld [vmem:[%s10655_s12 + $0x58] sm:$0xff]  }
 0x1ff   : > { %3619 = vadd.xlane.f32.xlu0 %v10625_v17  ;;  %v10634_v21 = vpop.xlane.xlu1 %2969  ;;  %v10636_v40 = vpop.f32.mrb[53].mxu0  ;;  %13322 = vst [vmem:[#allocation90_spill] sm:$0xff] %v10701_v4 }
 0x200   : > { %v10638_v56 = vpop.xlane.xlu0 %2967  ;;  %3621 = vadd.xlane.f32.xlu1 %v10629_v48  ;;  %v10641_v59 = vpop.f32.mrb[54].mxu0  ;;  %v13330_v48 = vld [vmem:[#allocation8_spill] sm:$0xff] }
 0x201   : > { %v10645_v5 = vpop.f32.mrb[55].mxu0  ;;  %v10647_v47 = vpop.f32.mrb[52].mxu1  ;;  %v3224_v49 = vsub.f32 %v13330_v48, %v10570_v20  ;;  %v8941_v48 = vld [vmem:[%s10655_s12 + $0x20] sm:$0xff]  }
 0x202   : > { %v10660_v55 = vpop.f32.mrb[53].mxu1  ;;  %v10706_v29 = vpop.eup %9016  ;;  %8350 = vmatprep.subr.bf16.mxu0 %v8941_v48 }
 0x203   : > { %3583 = vadd.xlane.f32.xlu0 %v10649_v30  ;;  %v10668_v28 = vpop.f32.mrb[54].mxu1  ;;  %v10672_v15 = vpop.xlane.xlu1 %3001  ;;  %13323 = vst [vmem:[#allocation91_spill] sm:$0xff] %v10706_v29  ;;  %8351 = vmatpush3.bf16.msra.mxu0 %v8941_v48 }
 0x204   : > { %v10665_v43 = vpop.xlane.xlu0 %2999  ;;  %3585 = vadd.xlane.f32.xlu1 %v10657_v2  ;;  %v10674_v44 = vpop.f32.mrb[55].mxu1  ;;  %v3223_v2 = vsub.f32 %v13331_v3, %v10574_v39 }
 0x205   : > { %v10722_v11 = vpop.eup %9018 }
 0x206   : > { %v10678_v57 = vpop.f32.mrb[56].mxu0  ;;  %13324 = vst [vmem:[#allocation92_spill] sm:$0xff] %v10722_v11  ;;  %v10727_v6 = vpop.eup %9020 }
 0x207   : > { %3615 = vadd.xlane.f32.xlu0 %v10676_v52  ;;  %v10683_v16 = vpop.f32.mrb[57].mxu0  ;;  %v10685_v37 = vpop.f32.mrb[56].mxu1  ;;  %13325 = vst [vmem:[#allocation93_spill] sm:$0xff] %v10727_v6 }
 0x208   : > { %v10689_v18 = vpop.xlane.xlu0 %3011  ;;  %3617 = vadd.xlane.f32.xlu1 %v10680_v13  ;;  %v10692_v1 = vpop.f32.mrb[58].mxu0 }
 0x209   : > { %v10696_v12 = vpop.xlane.xlu1 %3013  ;;  %v10698_v33 = vpop.f32.mrb[59].mxu0 }
 0x20a   : > { %v10703_v32 = vpop.f32.mrb[57].mxu1  ;;  %v10749_v41 = vpop.eup %9022 }
 0x20b   : > { %3595 = vadd.xlane.f32.xlu0 %v10701_v4  ;;  %v10709_v63 = vpop.f32.mrb[58].mxu1  ;;  %v13326_v4 = vld [vmem:[#allocation6_spill] sm:$0xff]  ;;  %v10754_v50 = vpop.eup %9024 }
 0x20c   : > { %v10713_v36 = vpop.xlane.xlu0 %3043  ;;  %3597 = vadd.xlane.f32.xlu1 %v10706_v29  ;;  %v10716_v53 = vpop.f32.mrb[59].mxu1  ;;  %v3208_v29 = vsub.f32 %v13326_v4, %v10552_v45  ;;  %v8938_v45 = vld [vmem:[%s10655_s12 + $0x48] sm:$0xff]   ;;  %v3381_v4 = vmul.f32 1.442695, %v3226_v54  ;;  %13328 = vst [vmem:[#allocation6_spill] sm:$0xff] %v10749_v41  ;;  %13329 = vst [vmem:[#allocation7_spill] sm:$0xff] %v10754_v50 }
 0x20d   : > { %v10720_v62 = vpop.xlane.xlu1 %3045  ;;  %8376 = vmatprep.subr.bf16.mxu1 %v8938_v45  ;;  %v3343_v54 = vmul.f32 1.442695, %v3207_v27  ;;  %v10771_v26 = vpop.eup %9026  ;;  %v3377_v27 = vmul.f32 1.442695, %v3224_v49 }
 0x20e   : > { %v10724_v24 = vpop.f32.mrb[60].mxu0  ;;  %8377 = vmatpush3.bf16.msra.mxu1 %v8938_v45  ;;  %9036 = vpow2.f32 %v3381_v4  ;;  %13332 = vst [vmem:[#allocation8_spill] sm:$0xff] %v10771_v26  ;;  %v10773_v39 = vpop.eup %9028  ;;  %v3375_v45 = vmul.f32 1.442695, %v3223_v2  ;;  %v13334_v4 = vld [vmem:[#allocation11_spill] sm:$0xff]  ;;  %v8944_v2 = vld [vmem:[%s10655_s12 + $0x60] sm:$0xff]  }
 0x20f   : > { %3627 = vadd.xlane.f32.xlu0 %v10722_v11  ;;  %v10732_v38 = vpop.f32.mrb[61].mxu0  ;;  %v10734_v23 = vpop.f32.mrb[60].mxu1  ;;  %8378 = vmatprep.subr.bf16.mxu1 %v8940_v58  ;;  %13333 = vst [vmem:[#allocation9_spill] sm:$0xff] %v10773_v39  ;;  %9038 = vpow2.f32 %v3343_v54  ;;  %v3213_v3 = vsub.f32 %v13334_v4, %v10594_v7  ;;  %v13339_v54 = vld [vmem:[#allocation13_spill] sm:$0xff]  ;;  %v13340_v4 = vld [vmem:[#allocation12_spill] sm:$0xff] }
 0x210   : > { %v10738_v22 = vpop.xlane.xlu0 %3007  ;;  %3629 = vadd.xlane.f32.xlu1 %v10727_v6  ;;  %v10741_v13 = vpop.f32.mrb[62].mxu0  ;;  %v3345_v6 = vmul.f32 1.442695, %v3208_v29 }
 0x211   : > { %v10744_v11 = vpop.xlane.xlu1 %3009  ;;  %v10746_v52 = vpop.f32.mrb[63].mxu0 }
 0x212   : > { %v10751_v17 = vpop.f32.mrb[61].mxu1  ;;  %8379 = vmatpush3.bf16.msra.mxu1 %v8940_v58  ;;  %9040 = vpow2.f32 %v3345_v6  ;;  %v10787_v58 = vpop.eup %9030  ;;  %v3355_v6 = vmul.f32 1.442695, %v3213_v3 }
 0x213   : > { %3591 = vadd.xlane.f32.xlu0 %v10749_v41  ;;  %v10764_v60 = vpop.f32.mrb[62].mxu1  ;;  %v13335_v41 = vld [vmem:[#allocation10_spill] sm:$0xff]  ;;  %8380 = vmatprep.subr.bf16.mxu1 %v8942_v19  ;;  %v10790_v7 = vpop.eup %9032  ;;  %9042 = vpow2.f32 %v3375_v45  ;;  %v8946_v45 = vld [vmem:[%s10655_s12 + $0x68] sm:$0xff]  }
 0x214   : > { %v10761_v30 = vpop.xlane.xlu0 %3039  ;;  %3593 = vadd.xlane.f32.xlu1 %v10754_v50  ;;  %v10768_v20 = vpop.f32.mrb[63].mxu1  ;;  %v3214_v14 = vsub.f32 %v13335_v41, %v10588_v31  ;;  %13337 = vst [vmem:[#allocation10_spill] sm:$0xff] %v10787_v58  ;;  %13338 = vst [vmem:[#allocation94_spill] sm:$0xff] %v10790_v7  ;;  %v3229_v31 = vsub.f32 %v13339_v54, %v10616_v25  ;;  %9044 = vpow2.f32 %v3377_v27  ;;  %v13343_v27 = vld [vmem:[#allocation15_spill] sm:$0xff] }
 0x215   : > { %v10766_v29 = vpop.xlane.xlu1 %3041  ;;  %v10804_v3 = vpop.eup %9034  ;;  %9046 = vpow2.f32 %v3355_v6  ;;  %v8948_v6 = vld [vmem:[%s10655_s12 + $0x70] sm:$0xff]  }
 0x216   : > { %8381 = vmatpush3.bf16.msra.mxu1 %v8942_v19  ;;  %v3357_v48 = vmul.f32 1.442695, %v3214_v14  ;;  %v8945_v19 = vld [vmem:[%s10655_s12 + $0x30] sm:$0xff]   ;;  %13341 = vst [vmem:[#allocation13_spill] sm:$0xff] %v10804_v3  ;;  %v3387_v14 = vmul.f32 1.442695, %v3229_v31 }
 0x217   : > { %3623 = vadd.xlane.f32.xlu0 %v10771_v26  ;;  %v8943_v26 = vld [vmem:[%s10655_s12 + $0x28] sm:$0xff]   ;;  %8382 = vmatprep.subr.bf16.mxu1 %v8944_v2 }
 0x218   : > { %v10778_v50 = vpop.xlane.xlu0 %3019  ;;  %3625 = vadd.xlane.f32.xlu1 %v10773_v39  ;;  %8352 = vmatprep.subr.bf16.mxu0 %v8943_v26  ;;  %v3230_v39 = vsub.f32 %v13340_v4, %v10610_v46  ;;  %v10806_v25 = vpop.eup %9036  ;;  %v3211_v46 = vsub.f32 %v13343_v27, %v10638_v56  ;;  %9048 = vpow2.f32 %v3357_v48  ;;  %v13344_v4 = vld [vmem:[#allocation14_spill] sm:$0xff] }
 0x219   : > { %v10784_v49 = vpop.xlane.xlu1 %3021  ;;  %8353 = vmatpush3.bf16.msra.mxu0 %v8943_v26  ;;  %13342 = vst [vmem:[#allocation12_spill] sm:$0xff] %v10806_v25  ;;  %v10820_v31 = vpop.eup %9038  ;;  %9050 = vpow2.f32 %v3387_v14 }
 0x21a   : > { %13336 = vst [vmem:[#allocation11_spill] sm:$0xff] %v10784_v49  ;;  %8383 = vmatpush3.bf16.msra.mxu1 %v8944_v2  ;;  %8354 = vmatprep.subr.bf16.mxu0 %v8945_v19  ;;  %v3389_v26 = vmul.f32 1.442695, %v3230_v39  ;;  %v8947_v2 = vld [vmem:[%s10655_s12 + $0x38] sm:$0xff]   ;;  %13345 = vst [vmem:[#allocation15_spill] sm:$0xff] %v10820_v31 }
 0x21b   : > { %3603 = vadd.xlane.f32.xlu0 %v10787_v58  ;;  %v3212_v58 = vsub.f32 %v13344_v4, %v10634_v21  ;;  %8384 = vmatprep.subr.bf16.mxu1 %v8946_v45  ;;  %v3351_v48 = vmul.f32 1.442695, %v3211_v46  ;;  %v13347_v39 = vld [vmem:[#allocation17_spill] sm:$0xff]  ;;  %v13348_v4 = vld [vmem:[#allocation16_spill] sm:$0xff] }
 0x21c   : > { %v10795_v41 = vpop.xlane.xlu0 %3051  ;;  %3605 = vadd.xlane.f32.xlu1 %v10790_v7  ;;  %v10822_v56 = vpop.eup %9040  ;;  %v3227_v27 = vsub.f32 %v13347_v39, %v10665_v43  ;;  %9052 = vpow2.f32 %v3389_v26 }
 0x21d   : > { %v10800_v49 = vpop.xlane.xlu1 %3053  ;;  %8355 = vmatpush3.bf16.msra.mxu0 %v8945_v19  ;;  %13346 = vst [vmem:[#allocation14_spill] sm:$0xff] %v10822_v56  ;;  %v3353_v19 = vmul.f32 1.442695, %v3212_v58  ;;  %v10835_v14 = vpop.eup %9042  ;;  %9054 = vpow2.f32 %v3351_v48 }
 0x21e   : > { %8385 = vmatpush3.bf16.msra.mxu1 %v8946_v45  ;;  %8356 = vmatprep.subr.bf16.mxu0 %v8947_v2  ;;  %v8949_v45 = vld [vmem:[%s10655_s12 + $0x78] sm:$0xff]   ;;  %13349 = vst [vmem:[#allocation17_spill] sm:$0xff] %v10835_v14  ;;  %v10837_v46 = vpop.eup %9044  ;;  %v3383_v43 = vmul.f32 1.442695, %v3227_v27 }
 0x21f   : > { %3635 = vadd.xlane.f32.xlu0 %v10804_v3  ;;  %v3228_v3 = vsub.f32 %v13348_v4, %v10672_v15  ;;  %8386 = vmatprep.subr.bf16.mxu1 %v8948_v6  ;;  %13350 = vst [vmem:[#allocation16_spill] sm:$0xff] %v10837_v46  ;;  %9056 = vpow2.f32 %v3353_v19  ;;  %v10845_v26 = vpop.eup %9046 }
 0x220   : > { %v10811_v54 = vpop.xlane.xlu0 %3015  ;;  %3637 = vadd.xlane.f32.xlu1 %v10806_v25  ;;  %13351 = vst [vmem:[#allocation95_spill] sm:$0xff] %v10845_v26  ;;  %9058 = vpow2.f32 %v3383_v43 }
 0x221   : > { %v10816_v7 = vpop.xlane.xlu1 %3017  ;;  %8357 = vmatpush3.bf16.msra.mxu0 %v8947_v2  ;;  %v3385_v15 = vmul.f32 1.442695, %v3228_v3 }
 0x222   : > { %8387 = vmatpush3.bf16.msra.mxu1 %v8948_v6  ;;  %v10847_v2 = vpop.eup %9048 }
 0x223   : > { %3599 = vadd.xlane.f32.xlu0 %v10820_v31  ;;  %8388 = vmatprep.subr.bf16.mxu1 %v8949_v45  ;;  %13352 = vst [vmem:[#allocation96_spill] sm:$0xff] %v10847_v2  ;;  %9060 = vpow2.f32 %v3385_v15  ;;  %v10855_v27 = vpop.eup %9050  ;;  %v2769_v15 = vmul.f32 0.35355338, %v10585_v10  ;;  %v2785_v10 = vmul.f32 0.35355338, %v10605_v9  ;;  %v9511_v31 = vld [vmem:[%s13236_s3 + $0x18] sm:$0xff] }
 0x224   : > { %v10827_v21 = vpop.xlane.xlu0 %3047  ;;  %3601 = vadd.xlane.f32.xlu1 %v10822_v56  ;;  %13353 = vst [vmem:[#allocation97_spill] sm:$0xff] %v10855_v27  ;;  %v2767_v9 = vmul.f32 0.35355338, %v10590_v51  ;;  %v9512_v51 = vld [vmem:[%s13236_s3] sm:$0xff] }
 0x225   : > { %v10832_v25 = vpop.xlane.xlu1 %3049 }
 0x226   : > { %8389 = vmatpush3.bf16.msra.mxu1 %v8949_v45  ;;  %v10857_v3 = vpop.eup %9052 }
 0x227   : > { %3631 = vadd.xlane.f32.xlu0 %v10835_v14  ;;  %13354 = vst [vmem:[#allocation98_spill] sm:$0xff] %v10857_v3  ;;  %v10865_v45 = vpop.eup %9054  ;;  %v9510_v14 = vld [vmem:[%s13236_s3 + $0x10] sm:$0xff] }
 0x228   : > { %v10840_v39 = vpop.xlane.xlu0 %3027  ;;  %3633 = vadd.xlane.f32.xlu1 %v10837_v46  ;;  %13355 = vst [vmem:[#allocation99_spill] sm:$0xff] %v10865_v45  ;;  %v10884_v56 = vadd.f32 %v9510_v14, %v2769_v15  ;;  %v10899_v15 = vadd.f32 %v9510_v14, %v2785_v10  ;;  %v10919_v10 = vadd.f32 %v9512_v51, %v2767_v9 }
 0x229   : > { %v10843_v58 = vpop.xlane.xlu1 %3029  ;;  %v10867_v43 = vpop.eup %9056 }
 0x22a   : > { %13356 = vst [vmem:[#allocation100_spill] sm:$0xff] %v10867_v43  ;;  %v10877_v46 = vpop.eup %9058  ;;  %13360 = vst [vmem:[#allocation104_spill] sm:$0xff] %v10884_v56 }
 0x22b   : > { %3611 = vadd.xlane.f32.xlu0 %v10845_v26  ;;  %13358 = vst [vmem:[#allocation102_spill] sm:$0xff] %v10877_v46  ;;  %13363 = vst [vmem:[#allocation107_spill] sm:$0xff] %v10899_v15 }
 0x22c   : > { %v10850_v6 = vpop.xlane.xlu0 %3059  ;;  %3613 = vadd.xlane.f32.xlu1 %v10847_v2  ;;  %13365 = vst [vmem:[#allocation109_spill] sm:$0xff] %v10919_v10 }
 0x22d   : > { %v10853_v48 = vpop.xlane.xlu1 %3061 }
 0x22f   : > { %3643 = vadd.xlane.f32.xlu0 %v10855_v27  ;;  %v2770_v27 = vmul.f32 0.35355338, %v10597_v0  ;;  %v2786_v0 = vmul.f32 0.35355338, %v10619_v42  ;;  %v2768_v42 = vmul.f32 0.35355338, %v10603_v61 }
 0x230   : > { %v10860_v19 = vpop.xlane.xlu0 %3023  ;;  %3645 = vadd.xlane.f32.xlu1 %v10857_v3  ;;  %v10879_v3 = vpop.eup %9060  ;;  %v2784_v61 = vmul.f32 0.35355338, %v10623_v34  ;;  %v2774_v34 = vmul.f32 0.35355338, %v10641_v59  ;;  %v2790_v59 = vmul.f32 0.35355338, %v10668_v28 }
 0x231   : > { %v10863_v4 = vpop.xlane.xlu1 %3025  ;;  %13359 = vst [vmem:[#allocation103_spill] sm:$0xff] %v10879_v3  ;;  %v2772_v28 = vmul.f32 0.35355338, %v10645_v5  ;;  %v2788_v5 = vmul.f32 0.35355338, %v10674_v44 }
 0x233   : > { %3607 = vadd.xlane.f32.xlu0 %v10865_v45 }
 0x234   : > { %v10871_v26 = vpop.xlane.xlu0 %3055  ;;  %3609 = vadd.xlane.f32.xlu1 %v10867_v43 }
 0x235   : > { %v10875_v2 = vpop.xlane.xlu1 %3057 }
 0x236   : > { %13357 = vst [vmem:[#allocation101_spill] sm:$0xff] %v10875_v2  ;;  %v10897_v2 = vadd.f32 %v9511_v31, %v2770_v27  ;;  %v2783_v27 = vmul.f32 0.35355338, %v10612_v35  ;;  %v2773_v35 = vmul.f32 0.35355338, %v10627_v8 }
 0x237   : > { %3639 = vadd.xlane.f32.xlu0 %v10877_v46  ;;  %v2789_v8 = vmul.f32 0.35355338, %v10647_v47  ;;  %v2771_v47 = vmul.f32 0.35355338, %v10636_v40  ;;  %v9516_v40 = vld [vmem:[%s13236_s3 + $0x20] sm:$0xff] }
 0x238   : > { %v10888_v45 = vpop.xlane.xlu0 %3035  ;;  %3641 = vadd.xlane.f32.xlu1 %v10879_v3  ;;  %13362 = vst [vmem:[#allocation106_spill] sm:$0xff] %v10897_v2  ;;  %v10934_v9 = vadd.f32 %v9512_v51, %v2783_v27  ;;  %v9515_v51 = vld [vmem:[%s13236_s3 + $0x38] sm:$0xff] }
 0x239   : > { %v10892_v43 = vpop.xlane.xlu1 %3037 }
 0x23a   : > { %13361 = vst [vmem:[#allocation105_spill] sm:$0xff] %v10892_v43  ;;  %v10909_v43 = vadd.f32 %v9511_v31, %v2786_v0  ;;  %v9513_v31 = vld [vmem:[%s13236_s3 + $0x8] sm:$0xff]  ;;  %13368 = vst [vmem:[#allocation112_spill] sm:$0xff] %v10934_v9 }
 0x23b   : > { %3139 = vmax.xlane.f32.xlu0 %v10884_v56  ;;  %v10927_v0 = vadd.f32 %v9513_v31, %v2768_v42  ;;  %v10939_v56 = vadd.f32 %v9513_v31, %v2784_v61  ;;  %v9514_v42 = vld [vmem:[%s13236_s3 + $0x30] sm:$0xff]  ;;  %v10957_v61 = vadd.f32 %v9515_v51, %v2774_v34  ;;  %v2787_v34 = vmul.f32 0.35355338, %v10660_v55 }
 0x23c   : > { %v10903_v46 = vpop.xlane.xlu0 %3067  ;;  %3141 = vmax.xlane.f32.xlu1 %v10897_v2  ;;  %13364 = vst [vmem:[#allocation108_spill] sm:$0xff] %v10909_v43  ;;  %v10959_v31 = vadd.f32 %v9514_v42, %v2789_v8  ;;  %v10979_v8 = vadd.f32 %v9516_v40, %v2771_v47  ;;  %v2777_v55 = vmul.f32 0.35355338, %v10678_v57  ;;  %v2793_v57 = vmul.f32 0.35355338, %v10685_v37 }
 0x23d   : > { %v10907_v3 = vpop.xlane.xlu1 %3069  ;;  %13367 = vst [vmem:[#allocation111_spill] sm:$0xff] %v10927_v0  ;;  %13369 = vst [vmem:[#allocation113_spill] sm:$0xff] %v10939_v56  ;;  %v10994_v47 = vadd.f32 %v9516_v40, %v2787_v34 }
 0x23e   : > { %13371 = vst [vmem:[#allocation115_spill] sm:$0xff] %v10957_v61  ;;  %13372 = vst [vmem:[#allocation116_spill] sm:$0xff] %v10959_v31 }
 0x23f   : > { %3171 = vmax.xlane.f32.xlu0 %v10899_v15  ;;  %13374 = vst [vmem:[#allocation118_spill] sm:$0xff] %v10979_v8  ;;  %13376 = vst [vmem:[#allocation120_spill] sm:$0xff] %v10994_v47 }
 0x240   : > { %v10913_v14 = vpop.xlane.xlu0 %3031  ;;  %3173 = vmax.xlane.f32.xlu1 %v10909_v43 }
 0x241   : > { %v10922_v2 = vpop.xlane.xlu1 %3033 }
 0x242   : > { %13366 = vst [vmem:[#allocation110_spill] sm:$0xff] %v10922_v2  ;;  %v10944_v2 = vadd.f32 %v9514_v42, %v2773_v35 }
 0x243   : > { %3135 = vmax.xlane.f32.xlu0 %v10919_v10 }
 0x244   : > { %v10931_v43 = vpop.xlane.xlu0 %3063  ;;  %3137 = vmax.xlane.f32.xlu1 %v10927_v0  ;;  %13370 = vst [vmem:[#allocation114_spill] sm:$0xff] %v10944_v2 }
 0x245   : > { %v10937_v15 = vpop.xlane.xlu1 %3065 }
 0x247   : > { %3167 = vmax.xlane.f32.xlu0 %v10934_v9  ;;  %v10969_v9 = vadd.f32 %v9515_v51, %v2790_v59  ;;  %v9517_v59 = vld [vmem:[%s13236_s3 + $0x28] sm:$0xff] }
 0x248   : > { %v10948_v10 = vpop.xlane.xlu0 %3075  ;;  %3169 = vmax.xlane.f32.xlu1 %v10939_v56  ;;  %v10987_v51 = vadd.f32 %v9517_v59, %v2772_v28  ;;  %v10998_v44 = vadd.f32 %v9517_v59, %v2788_v5  ;;  %v9518_v28 = vld [vmem:[%s13236_s3 + $0x50] sm:$0xff]  ;;  %v2794_v5 = vmul.f32 0.35355338, %v10709_v63  ;;  %v9520_v63 = vld [vmem:[%s13236_s3 + $0x40] sm:$0xff] }
 0x249   : > { %v10952_v27 = vpop.xlane.xlu1 %3077  ;;  %13373 = vst [vmem:[#allocation117_spill] sm:$0xff] %v10969_v9  ;;  %v11004_v0 = vadd.f32 %v9518_v28, %v2777_v55  ;;  %v11019_v59 = vadd.f32 %v9518_v28, %v2793_v57  ;;  %v2775_v55 = vmul.f32 0.35355338, %v10683_v16  ;;  %v2791_v16 = vmul.f32 0.35355338, %v10703_v32 }
 0x24a   : > { %13375 = vst [vmem:[#allocation119_spill] sm:$0xff] %v10987_v51  ;;  %13377 = vst [vmem:[#allocation121_spill] sm:$0xff] %v10998_v44 }
 0x24b   : > { %3147 = vmax.xlane.f32.xlu0 %v10944_v2  ;;  %v2778_v2 = vmul.f32 0.35355338, %v10692_v1  ;;  %13378 = vst [vmem:[#allocation122_spill] sm:$0xff] %v11004_v0  ;;  %v9519_v1 = vld [vmem:[%s13236_s3 + $0x58] sm:$0xff]  ;;  %13380 = vst [vmem:[#allocation124_spill] sm:$0xff] %v11019_v59  ;;  %v11038_v28 = vadd.f32 %v9520_v63, %v2775_v55  ;;  %v11054_v55 = vadd.f32 %v9520_v63, %v2791_v16  ;;  %v13389_v63 = vld [vmem:[#allocation19_spill] sm:$0xff] }
 0x24c   : > { %v10963_v35 = vpop.xlane.xlu0 %3107  ;;  %3149 = vmax.xlane.f32.xlu1 %v10957_v61  ;;  %v3234_v16 = vsub.f32 %v13389_v63, %v10696_v12  ;;  %v13394_v63 = vld [vmem:[#allocation20_spill] sm:$0xff] }
 0x24d   : > { %v10967_v56 = vpop.xlane.xlu1 %3109  ;;  %v11016_v40 = vadd.f32 %v9519_v1, %v2778_v2  ;;  %13382 = vst [vmem:[#allocation126_spill] sm:$0xff] %v11038_v28  ;;  %13385 = vst [vmem:[#allocation129_spill] sm:$0xff] %v11054_v55 }
 0x24e   : > { %v3397_v12 = vmul.f32 1.442695, %v3234_v16 }
 0x24f   : > { %3179 = vmax.xlane.f32.xlu0 %v10959_v31  ;;  %13379 = vst [vmem:[#allocation123_spill] sm:$0xff] %v11016_v40 }
 0x250   : > { %v10973_v42 = vpop.xlane.xlu0 %3071  ;;  %3181 = vmax.xlane.f32.xlu1 %v10969_v9 }
 0x251   : > { %v10982_v61 = vpop.xlane.xlu1 %3073 }
 0x253   : > { %3143 = vmax.xlane.f32.xlu0 %v10979_v8 }
 0x254   : > { %v10991_v9 = vpop.xlane.xlu0 %3103  ;;  %3145 = vmax.xlane.f32.xlu1 %v10987_v51  ;;  %v11029_v51 = vadd.f32 %v9519_v1, %v2794_v5  ;;  %v2792_v5 = vmul.f32 0.35355338, %v10716_v53  ;;  %v9522_v53 = vld [vmem:[%s13236_s3 + $0x70] sm:$0xff] }
 0x255   : > { %v10996_v31 = vpop.xlane.xlu1 %3105 }
 0x256   : > { %13381 = vst [vmem:[#allocation125_spill] sm:$0xff] %v11029_v51 }
 0x257   : > { %3175 = vmax.xlane.f32.xlu0 %v10994_v47  ;;  %v2776_v47 = vmul.f32 0.35355338, %v10698_v33  ;;  %v9521_v33 = vld [vmem:[%s13236_s3 + $0x48] sm:$0xff] }
 0x258   : > { %v11008_v8 = vpop.xlane.xlu0 %3083  ;;  %3177 = vmax.xlane.f32.xlu1 %v10998_v44 }
 0x259   : > { %v11011_v34 = vpop.xlane.xlu1 %3085  ;;  %v11046_v1 = vadd.f32 %v9521_v33, %v2776_v47  ;;  %v13387_v47 = vld [vmem:[#allocation18_spill] sm:$0xff] }
 0x25b   : > { %3155 = vmax.xlane.f32.xlu0 %v11004_v0  ;;  %13384 = vst [vmem:[#allocation128_spill] sm:$0xff] %v11046_v1  ;;  %v2782_v0 = vmul.f32 0.35355338, %v10741_v13 }
 0x25c   : > { %v11022_v37 = vpop.xlane.xlu0 %3115  ;;  %3157 = vmax.xlane.f32.xlu1 %v11016_v40  ;;  %v11058_v40 = vadd.f32 %v9521_v33, %v2792_v5 }
 0x25d   : > { %v11026_v44 = vpop.xlane.xlu1 %3117 }
 0x25e   : > { %13386 = vst [vmem:[#allocation130_spill] sm:$0xff] %v11058_v40 }
 0x25f   : > { %3187 = vmax.xlane.f32.xlu0 %v11019_v59 }
 0x260   : > { %v11032_v2 = vpop.xlane.xlu0 %3079  ;;  %3189 = vmax.xlane.f32.xlu1 %v11029_v51  ;;  %v2781_v51 = vmul.f32 0.35355338, %v10724_v24 }
 0x261   : > { %v11041_v57 = vpop.xlane.xlu1 %3081 }
 0x262   : > { %13383 = vst [vmem:[#allocation127_spill] sm:$0xff] %v11041_v57  ;;  %v3233_v57 = vsub.f32 %v13387_v47, %v10689_v18  ;;  %v11066_v24 = vadd.f32 %v9522_v53, %v2781_v51  ;;  %v9523_v18 = vld [vmem:[%s13236_s3 + $0x78] sm:$0xff]  ;;  %v2798_v51 = vmul.f32 0.35355338, %v10764_v60  ;;  %v2780_v60 = vmul.f32 0.35355338, %v10746_v52 }
 0x263   : > { %3151 = vmax.xlane.f32.xlu0 %v11038_v28  ;;  %v2797_v28 = vmul.f32 0.35355338, %v10734_v23  ;;  %v11080_v5 = vadd.f32 %v9523_v18, %v2782_v0  ;;  %v2779_v0 = vmul.f32 0.35355338, %v10732_v38  ;;  %v13398_v38 = vld [vmem:[#allocation23_spill] sm:$0xff]  ;;  %v9524_v52 = vld [vmem:[%s13236_s3 + $0x60] sm:$0xff] }
 0x264   : > { %v11051_v59 = vpop.xlane.xlu0 %3111  ;;  %3153 = vmax.xlane.f32.xlu1 %v11046_v1  ;;  %13388 = vst [vmem:[#allocation18_spill] sm:$0xff] %v11066_v24  ;;  %v3395_v23 = vmul.f32 1.442695, %v3233_v57  ;;  %v13395_v1 = vld [vmem:[#allocation21_spill] sm:$0xff]  ;;  %v13397_v57 = vld [vmem:[#allocation22_spill] sm:$0xff] }
 0x265   : > { %v11056_v32 = vpop.xlane.xlu1 %3113  ;;  %13392 = vst [vmem:[#allocation132_spill] sm:$0xff] %v11080_v5  ;;  %v11083_v47 = vadd.f32 %v9522_v53, %v2797_v28  ;;  %v11097_v28 = vadd.f32 %v9523_v18, %v2798_v51  ;;  %v3231_v53 = vsub.f32 %v13397_v57, %v10738_v22  ;;  %v11110_v18 = vadd.f32 %v9524_v52, %v2779_v0  ;;  %v9525_v22 = vld [vmem:[%s13236_s3 + $0x68] sm:$0xff]  ;;  %v13402_v57 = vld [vmem:[#allocation25_spill] sm:$0xff]  ;;  %s13658_s3 = smov 32  }
 0x266   : > { %9062 = vpow2.f32 %v3395_v23  ;;  %v2795_v51 = vmul.f32 0.35355338, %v10751_v17  ;;  %v11118_v23 = vadd.f32 %v9525_v22, %v2780_v60 }
 0x267   : > { %3183 = vmax.xlane.f32.xlu0 %v11054_v55  ;;  %13393 = vst [vmem:[#allocation133_spill] sm:$0xff] %v11083_v47  ;;  %v3249_v55 = vsub.f32 %v13394_v63, %v10713_v36  ;;  %13396 = vst [vmem:[#allocation20_spill] sm:$0xff] %v11097_v28  ;;  %9064 = vpow2.f32 %v3397_v12  ;;  %v13401_v12 = vld [vmem:[#allocation24_spill] sm:$0xff] }
 0x268   : > { %v11072_v33 = vpop.xlane.xlu0 %3091  ;;  %3185 = vmax.xlane.f32.xlu1 %v11058_v40  ;;  %13399 = vst [vmem:[#allocation21_spill] sm:$0xff] %v11110_v18  ;;  %13400 = vst [vmem:[#allocation22_spill] sm:$0xff] %v11118_v23  ;;  %v3247_v63 = vsub.f32 %v13401_v12, %v10761_v30  ;;  %v11129_v60 = vadd.f32 %v9524_v52, %v2795_v51  ;;  %v13405_v30 = vld [vmem:[#allocation26_spill] sm:$0xff]  ;;  %v13408_v52 = vld [vmem:[#allocation27_spill] sm:$0xff] }
 0x269   : > { %13390 = vst [vmem:[#allocation19_spill] sm:$0xff] %v11072_v33  ;;  %v11075_v13 = vpop.xlane.xlu1 %3093  ;;  %v3427_v36 = vmul.f32 1.442695, %v3249_v55 }
 0x26a   : > { %13391 = vst [vmem:[#allocation131_spill] sm:$0xff] %v11075_v13  ;;  %v3250_v13 = vsub.f32 %v13395_v1, %v10720_v62  ;;  %v3232_v1 = vsub.f32 %v13398_v38, %v10744_v11  ;;  %v3391_v11 = vmul.f32 1.442695, %v3231_v53  ;;  %v3248_v38 = vsub.f32 %v13402_v57, %v10766_v29  ;;  %13403 = vst [vmem:[#allocation23_spill] sm:$0xff] %v11129_v60 }
 0x26b   : > { %3163 = vmax.xlane.f32.xlu0 %v11066_v24  ;;  %9066 = vpow2.f32 %v3427_v36  ;;  %v3423_v36 = vmul.f32 1.442695, %v3247_v63  ;;  %v3237_v53 = vsub.f32 %v13405_v30, %v10778_v50  ;;  %v13410_v50 = vld [vmem:[#allocation28_spill] sm:$0xff] }
 0x26c   : > { %v11088_v40 = vpop.xlane.xlu0 %3123  ;;  %3165 = vmax.xlane.f32.xlu1 %v11080_v5  ;;  %v3429_v62 = vmul.f32 1.442695, %v3250_v13  ;;  %v2796_v13 = vmul.f32 0.35355338, %v10768_v20  ;;  %v3393_v17 = vmul.f32 1.442695, %v3232_v1  ;;  %v3253_v63 = vsub.f32 %v13410_v50, %v10795_v41 }
 0x26d   : > { %v11094_v33 = vpop.xlane.xlu1 %3125  ;;  %v3425_v29 = vmul.f32 1.442695, %v3248_v38  ;;  %v13407_v1 = vld [vmem:[#allocation11_spill] sm:$0xff]  ;;  %v13411_v38 = vld [vmem:[#allocation29_spill] sm:$0xff]  ;;  %v13457_v24 = vld [vmem:[#allocation84_spill] sm:$0xff] }
 0x26e   : > { %9068 = vpow2.f32 %v3429_v62  ;;  %v11133_v20 = vadd.f32 %v9525_v22, %v2796_v13  ;;  %v3238_v51 = vsub.f32 %v13408_v52, %v13407_v1  ;;  %v3254_v30 = vsub.f32 %v13411_v38, %v10800_v49  ;;  %v13415_v50 = vld [vmem:[#allocation31_spill] sm:$0xff]  ;;  %v13416_v38 = vld [vmem:[#allocation32_spill] sm:$0xff] }
 0x26f   : > { %3195 = vmax.xlane.f32.xlu0 %v11083_v47  ;;  %9070 = vpow2.f32 %v3391_v11  ;;  %v3403_v11 = vmul.f32 1.442695, %v3237_v53  ;;  %v3435_v41 = vmul.f32 1.442695, %v3253_v63 }
 0x270   : > { %v11102_v16 = vpop.xlane.xlu0 %3087  ;;  %3197 = vmax.xlane.f32.xlu1 %v11097_v28  ;;  %13404 = vst [vmem:[#allocation24_spill] sm:$0xff] %v11133_v20  ;;  %v11141_v62 = vpop.eup %9062  ;;  %9072 = vpow2.f32 %v3393_v17  ;;  %v3405_v17 = vmul.f32 1.442695, %v3238_v51  ;;  %v3437_v49 = vmul.f32 1.442695, %v3254_v30 }
 0x271   : > { %v11113_v55 = vpop.xlane.xlu1 %3089  ;;  %13406 = vst [vmem:[#allocation25_spill] sm:$0xff] %v11141_v62  ;;  %v11147_v13 = vpop.eup %9064  ;;  %9074 = vpow2.f32 %v3423_v36  ;;  %v13414_v36 = vld [vmem:[#allocation30_spill] sm:$0xff] }
 0x272   : > { %13409 = vst [vmem:[#allocation26_spill] sm:$0xff] %v11147_v13  ;;  %9076 = vpow2.f32 %v3425_v29  ;;  %v3235_v53 = vsub.f32 %v13414_v36, %v10811_v54  ;;  %v3236_v29 = vsub.f32 %v13415_v50, %v10816_v7  ;;  %v13420_v50 = vld [vmem:[#allocation34_spill] sm:$0xff] }
 0x273   : > { %3159 = vmax.xlane.f32.xlu0 %v11110_v18  ;;  %9078 = vpow2.f32 %v3403_v11  ;;  %v13418_v11 = vld [vmem:[#allocation33_spill] sm:$0xff] }
 0x274   : > { %v11124_v0 = vpop.xlane.xlu0 %3119  ;;  %3161 = vmax.xlane.f32.xlu1 %v11118_v23  ;;  %9080 = vpow2.f32 %v3405_v17  ;;  %v3252_v63 = vsub.f32 %v13418_v11, %v10832_v25  ;;  %v3399_v7 = vmul.f32 1.442695, %v3235_v53  ;;  %v3401_v17 = vmul.f32 1.442695, %v3236_v29  ;;  %v11192_v53 = vld [vmem:[%s10655_s12 + $0x80] sm:$0xff]   ;;  %v13456_v18 = vld [vmem:[#allocation85_spill] sm:$0xff] }
 0x275   : > { %v11131_v28 = vpop.xlane.xlu1 %3121  ;;  %v11159_v52 = vpop.eup %9066  ;;  %9082 = vpow2.f32 %v3435_v41  ;;  %v13424_v41 = vld [vmem:[#allocation36_spill] sm:$0xff]  ;;  %8406 = vmatprep.subr.bf16.mxu0 %v11192_v53 }
 0x276   : > { %13412 = vst [vmem:[#allocation11_spill] sm:$0xff] %v11159_v52  ;;  %9084 = vpow2.f32 %v3437_v49  ;;  %v3257_v29 = vsub.f32 %v13424_v41, %v10850_v6 }
 0x277   : > { %3191 = vmax.xlane.f32.xlu0 %v11129_v60  ;;  %9086 = vpow2.f32 %v3399_v7 }
 0x278   : > { %v11138_v12 = vpop.xlane.xlu0 %3099  ;;  %3193 = vmax.xlane.f32.xlu1 %v11133_v20  ;;  %v11161_v47 = vpop.eup %9068  ;;  %v3251_v20 = vsub.f32 %v13416_v38, %v10827_v21  ;;  %v13421_v21 = vld [vmem:[#allocation35_spill] sm:$0xff]  ;;  %9088 = vpow2.f32 %v3401_v17  ;;  %v3443_v6 = vmul.f32 1.442695, %v3257_v29  ;;  %v13431_v29 = vld [vmem:[#allocation38_spill] sm:$0xff] }
 0x279   : > { %v11145_v22 = vpop.xlane.xlu1 %3101  ;;  %13413 = vst [vmem:[#allocation27_spill] sm:$0xff] %v11161_v47  ;;  %v11175_v54 = vpop.eup %9070  ;;  %v3242_v30 = vsub.f32 %v13421_v21, %v10843_v58 }
 0x27a   : > { %13417 = vst [vmem:[#allocation28_spill] sm:$0xff] %v11175_v54  ;;  %v11179_v36 = vpop.eup %9072 }
 0x27b   : > { %3651 = vadd.xlane.f32.xlu0 %v11141_v62  ;;  %13419 = vst [vmem:[#allocation29_spill] sm:$0xff] %v11179_v36  ;;  %v11194_v11 = vpop.eup %9074 }
 0x27c   : > { %v11152_v57 = vpop.xlane.xlu0 %3131  ;;  %3653 = vadd.xlane.f32.xlu1 %v11147_v13  ;;  %13423 = vst [vmem:[#allocation31_spill] sm:$0xff] %v11194_v11 }
 0x27d   : > { %v11157_v1 = vpop.xlane.xlu1 %3133 }
 0x27f   : > { %3683 = vadd.xlane.f32.xlu0 %v11159_v52  ;;  %v3241_v52 = vsub.f32 %v13420_v50, %v10840_v39  ;;  %v3433_v39 = vmul.f32 1.442695, %v3252_v63  ;;  %v11198_v50 = vpop.eup %9076 }
 0x280   : > { %v11168_v51 = vpop.xlane.xlu0 %3095  ;;  %3685 = vadd.xlane.f32.xlu1 %v11161_v47  ;;  %v3431_v47 = vmul.f32 1.442695, %v3251_v20  ;;  %13425 = vst [vmem:[#allocation32_spill] sm:$0xff] %v11198_v50  ;;  %v3413_v20 = vmul.f32 1.442695, %v3242_v30  ;;  %v11206_v63 = vpop.eup %9078 }
 0x281   : > { %v11173_v60 = vpop.xlane.xlu1 %3097  ;;  %v3411_v58 = vmul.f32 1.442695, %v3241_v52  ;;  %13426 = vst [vmem:[#allocation33_spill] sm:$0xff] %v11206_v63  ;;  %v11208_v41 = vpop.eup %9080  ;;  %v13428_v52 = vld [vmem:[#allocation37_spill] sm:$0xff] }
 0x282   : > { %9090 = vpow2.f32 %v3431_v47  ;;  %13427 = vst [vmem:[#allocation34_spill] sm:$0xff] %v11208_v41  ;;  %v3258_v7 = vsub.f32 %v13428_v52, %v10853_v48  ;;  %v11215_v30 = vpop.eup %9082 }
 0x283   : > { %3647 = vadd.xlane.f32.xlu0 %v11175_v54  ;;  %9092 = vpow2.f32 %v3433_v39  ;;  %13429 = vst [vmem:[#allocation35_spill] sm:$0xff] %v11215_v30  ;;  %v11217_v39 = vpop.eup %9084 }
 0x284   : > { %v11186_v38 = vpop.xlane.xlu0 %3127  ;;  %3649 = vadd.xlane.f32.xlu1 %v11179_v36  ;;  %v11204_v36 = vld [vmem:[%s10655_s12 + $0xc0] sm:$0xff]   ;;  %9094 = vpow2.f32 %v3411_v58  ;;  %13430 = vst [vmem:[#allocation36_spill] sm:$0xff] %v11217_v39  ;;  %v3239_v58 = vsub.f32 %v13431_v29, %v10860_v19  ;;  %v13436_v19 = vld [vmem:[#allocation101_spill] sm:$0xff] }
 0x285   : > { %v11189_v25 = vpop.xlane.xlu1 %3129  ;;  %8438 = vmatprep.subr.bf16.mxu1 %v11204_v36  ;;  %9096 = vpow2.f32 %v3413_v20  ;;  %v3445_v20 = vmul.f32 1.442695, %v3258_v7 }
 0x286   : > { %13422 = vst [vmem:[#allocation30_spill] sm:$0xff] %v11189_v25 }
 0x287   : > { %3679 = vadd.xlane.f32.xlu0 %v11194_v11 }
 0x288   : > { %v3588_v49 = vpop.xlane.xlu0 %3587  ;;  %3681 = vadd.xlane.f32.xlu1 %v11198_v50 }
 0x289   : > { %v3590_v21 = vpop.xlane.xlu1 %3589 }
 0x28a   : > { %9098 = vrcp.f32 %v3590_v21  ;;  %v11225_v21 = vpop.eup %9086 }
 0x28b   : > { %3659 = vadd.xlane.f32.xlu0 %v11206_v63  ;;  %9100 = vpow2.f32 %v3443_v6  ;;  %v13432_v63 = vld [vmem:[#allocation39_spill] sm:$0xff]  ;;  %13433 = vst [vmem:[#allocation37_spill] sm:$0xff] %v11225_v21  ;;  %v13434_v6 = vld [vmem:[#allocation40_spill] sm:$0xff]  ;;  %v11229_v11 = vpop.eup %9088 }
 0x28c   : > { %v3620_v17 = vpop.xlane.xlu0 %3619  ;;  %3661 = vadd.xlane.f32.xlu1 %v11208_v41  ;;  %9102 = vrcp.f32 %v3588_v49  ;;  %v3240_v48 = vsub.f32 %v13432_v63, %v10863_v4  ;;  %v3255_v41 = vsub.f32 %v13434_v6, %v10871_v26  ;;  %13435 = vst [vmem:[#allocation38_spill] sm:$0xff] %v11229_v11  ;;  %v13437_v49 = vld [vmem:[#allocation41_spill] sm:$0xff]  ;;  %v11233_v7 = vpop.eup %9090  ;;  %v3407_v4 = vmul.f32 1.442695, %v3239_v58  ;;  %v13439_v63 = vld [vmem:[#allocation42_spill] sm:$0xff]  ;;  %v13442_v6 = vld [vmem:[#allocation43_spill] sm:$0xff] }
 0x28d   : > { %v3622_v47 = vpop.xlane.xlu1 %3621  ;;  %v3256_v29 = vsub.f32 %v13437_v49, %v13436_v19  ;;  %13438 = vst [vmem:[#allocation39_spill] sm:$0xff] %v11233_v7  ;;  %v13445_v49 = vld [vmem:[#allocation44_spill] sm:$0xff] }
 0x28e   : > { %9104 = vrcp.f32 %v3622_v47  ;;  %v3245_v47 = vsub.f32 %v13439_v63, %v10888_v45  ;;  %v3409_v26 = vmul.f32 1.442695, %v3240_v48  ;;  %v3439_v58 = vmul.f32 1.442695, %v3255_v41 }
 0x28f   : > { %3691 = vadd.xlane.f32.xlu0 %v11215_v30  ;;  %v11238_v30 = vpop.eup %9092  ;;  %v3261_v63 = vsub.f32 %v13445_v49, %v10903_v46 }
 0x290   : > { %v3584_v52 = vpop.xlane.xlu0 %3583  ;;  %3693 = vadd.xlane.f32.xlu1 %v11217_v39  ;;  %13440 = vst [vmem:[#allocation40_spill] sm:$0xff] %v11238_v30  ;;  %v3419_v48 = vmul.f32 1.442695, %v3245_v47  ;;  %v13448_v47 = vld [vmem:[#allocation83_spill] sm:$0xff] }
 0x291   : > { %9106 = vrcp.f32 %v3584_v52  ;;  %v3586_v50 = vpop.xlane.xlu1 %3585  ;;  %v13441_v52 = vld [vmem:[#allocation105_spill] sm:$0xff] }
 0x292   : > { %9108 = vrcp.f32 %v3586_v50  ;;  %v3246_v39 = vsub.f32 %v13442_v6, %v13441_v52  ;;  %v11243_v50 = vpop.eup %9094 }
 0x293   : > { %9110 = vrcp.f32 %v3620_v17  ;;  %3655 = vadd.xlane.f32.xlu0 %v11225_v21  ;;  %13443 = vst [vmem:[#allocation101_spill] sm:$0xff] %v11243_v50  ;;  %v11245_v45 = vpop.eup %9096  ;;  %v3441_v17 = vmul.f32 1.442695, %v3256_v29  ;;  %v13447_v29 = vld [vmem:[#allocation45_spill] sm:$0xff]  ;;  %v4096_v21 = vld [vmem:[%s11260_s13 + $0x8] sm:$0xff] }
 0x294   : > { %9112 = vpow2.f32 %v3445_v20  ;;  %v3616_v54 = vpop.xlane.xlu0 %3615  ;;  %3657 = vadd.xlane.f32.xlu1 %v11229_v11  ;;  %13444 = vst [vmem:[#allocation41_spill] sm:$0xff] %v11245_v45  ;;  %v9099_v20 = vpop.eup %9098  ;;  %v3421_v6 = vmul.f32 1.442695, %v3246_v39  ;;  %v3262_v11 = vsub.f32 %v13447_v29, %v10907_v3  ;;  %v4098_v3 = vld [vmem:[%s11260_s13 + $0x18] sm:$0xff] }
 0x295   : > { %9114 = vrcp.f32 %v3616_v54  ;;  %v3618_v19 = vpop.xlane.xlu1 %3617  ;;  %v11251_v52 = vpop.eup %9100  ;;  %v3846_v49 = vmul.f32 %v9099_v20, %v13448_v47  ;;  %v13451_v47 = vld [vmem:[#allocation86_spill] sm:$0xff] }
 0x296   : > { %9116 = vrcp.f32 %v3618_v19  ;;  %13446 = vst [vmem:[#allocation42_spill] sm:$0xff] %v11251_v52  ;;  %v9103_v54 = vpop.eup %9102 }
 0x297   : > { %9118 = vpow2.f32 %v3407_v4  ;;  %3687 = vadd.xlane.f32.xlu0 %v11233_v7  ;;  %v3451_v4 = vmul.f32 1.442695, %v3261_v63  ;;  %v13450_v63 = vld [vmem:[#allocation82_spill] sm:$0xff] }
 0x298   : > { %9120 = vpow2.f32 %v3409_v26  ;;  %v3596_v41 = vpop.xlane.xlu0 %3595  ;;  %3689 = vadd.xlane.f32.xlu1 %v11238_v30  ;;  %v9105_v19 = vpop.eup %9104  ;;  %v13449_v26 = vld [vmem:[#allocation46_spill] sm:$0xff]  ;;  %v3844_v20 = vmul.f32 %v9103_v54, %v13450_v63  ;;  %v13455_v54 = vld [vmem:[#allocation47_spill] sm:$0xff] }
 0x299   : > { %9122 = vpow2.f32 %v3439_v58  ;;  %v3598_v46 = vpop.xlane.xlu1 %3597  ;;  %v3243_v58 = vsub.f32 %v13449_v26, %v10913_v14  ;;  %v4095_v7 = vld [vmem:[%s11260_s13] sm:$0xff]  ;;  %v13452_v26 = vld [vmem:[#allocation87_spill] sm:$0xff] }
 0x29a   : > { %9124 = vpow2.f32 %v3441_v17 }
 0x29b   : > { %v9107_v39 = vpop.eup %9106  ;;  %9126 = vpow2.f32 %v3419_v48  ;;  %3667 = vadd.xlane.f32.xlu0 %v11243_v50  ;;  %v3453_v48 = vmul.f32 1.442695, %v3262_v11  ;;  %v4097_v50 = vld [vmem:[%s11260_s13 + $0x10] sm:$0xff]  ;;  %v3415_v5 = vmul.f32 1.442695, %v3243_v58  ;;  %v4112_v58 = vld [vmem:[%s11260_s13 + $0x88] sm:$0xff] }
 0x29c   : > { %v9109_v17 = vpop.eup %9108  ;;  %9128 = vpow2.f32 %v3421_v6  ;;  %v3628_v29 = vpop.xlane.xlu0 %3627  ;;  %3669 = vadd.xlane.f32.xlu1 %v11245_v45  ;;  %v3840_v30 = vmul.f32 %v9107_v39, %v13451_v47  ;;  %v13454_v6 = vld [vmem:[#allocation110_spill] sm:$0xff]  ;;  %v3878_v45 = vmul.f32 %v9105_v19, %v13456_v18  ;;  %v4226_v39 = vmul.f32 %v4098_v3, %v3846_v49  ;;  %v13458_v19 = vld [vmem:[#allocation88_spill] sm:$0xff] }
 0x29d   : > { %v9111_v62 = vpop.eup %9110  ;;  %9130 = vrcp.f32 %v3598_v46  ;;  %v3630_v14 = vpop.xlane.xlu1 %3629  ;;  %v3842_v13 = vmul.f32 %v9109_v17, %v13452_v26  ;;  %v3244_v63 = vsub.f32 %v13455_v54, %v13454_v6  ;;  %v4114_v17 = vld [vmem:[%s11260_s13 + $0x98] sm:$0xff]  ;;  %v4225_v18 = vmul.f32 %v4097_v50, %v3844_v20  ;;  %v4111_v3 = vld [vmem:[%s11260_s13 + $0x80] sm:$0xff] }
 0x29e   : > { %v11273_v23 = vpop.eup %9112  ;;  %9132 = vpow2.f32 %v3451_v4  ;;  %v4223_v11 = vmul.f32 %v4095_v7, %v3840_v30  ;;  %v3876_v4 = vmul.f32 %v9111_v62, %v13457_v24  ;;  %v13459_v30 = vld [vmem:[#allocation48_spill] sm:$0xff]  ;;  %v13460_v6 = vld [vmem:[#allocation89_spill] sm:$0xff] }
 0x29f   : > { %13453 = vst [vmem:[#allocation105_spill] sm:$0xff] %v11273_v23  ;;  %v9115_v47 = vpop.eup %9114  ;;  %9134 = vrcp.f32 %v3596_v41  ;;  %3699 = vadd.xlane.f32.xlu0 %v11251_v52  ;;  %v4224_v46 = vmul.f32 %v4096_v21, %v3842_v13  ;;  %v3259_v13 = vsub.f32 %v13459_v30, %v10931_v43  ;;  %v4113_v62 = vld [vmem:[%s11260_s13 + $0x90] sm:$0xff]  ;;  %v13461_v50 = vld [vmem:[#allocation49_spill] sm:$0xff]  ;;  %v4352_v54 = vpack.c.bf16 %v4226_v39, %v4225_v18  ;;  %v8954_v30 = vld [vmem:[%s10655_s12 + $0xc8] sm:$0xff]  }
 0x2a0   : > { %v9117_v26 = vpop.eup %9116  ;;  %9136 = vrcp.f32 %v3630_v14  ;;  %v3592_v25 = vpop.xlane.xlu0 %3591  ;;  %3701 = vadd.xlane.f32.xlu1 %v11273_v23  ;;  %v3872_v49 = vmul.f32 %v9115_v47, %v13458_v19  ;;  %v3260_v20 = vsub.f32 %v13461_v50, %v10937_v15  ;;  %v4242_v47 = vmul.f32 %v4114_v17, %v3878_v45  ;;  %v8951_v19 = vld [vmem:[%s10655_s12 + $0x88] sm:$0xff]   ;;  %v13462_v23 = vld [vmem:[#allocation50_spill] sm:$0xff] }
 0x2a1   : > { %v11285_v41 = vpop.eup %9118  ;;  %9138 = vrcp.f32 %v3592_v25  ;;  %v3594_v21 = vpop.xlane.xlu1 %3593  ;;  %v4351_v7 = vpack.c.bf16 %v4224_v46, %v4223_v11  ;;  %v3874_v24 = vmul.f32 %v9117_v26, %v13460_v6  ;;  %v3265_v43 = vsub.f32 %v13462_v23, %v10948_v10  ;;  %v13463_v15 = vld [vmem:[#allocation51_spill] sm:$0xff]  ;;  %v13465_v6 = vld [vmem:[#allocation53_spill] sm:$0xff] }
 0x2a2   : > { %v11291_v14 = vpop.eup %9120  ;;  %9140 = vrcp.f32 %v3594_v21  ;;  %v4239_v25 = vmul.f32 %v4111_v3, %v3872_v49  ;;  %v3417_v26 = vmul.f32 1.442695, %v3244_v63  ;;  %v3266_v39 = vsub.f32 %v13463_v15, %v10952_v27  ;;  %v13464_v27 = vld [vmem:[#allocation52_spill] sm:$0xff]  ;;  %v13468_v15 = vld [vmem:[#allocation6_spill] sm:$0xff] }
 0x2a3   : > { %v11296_v52 = vpop.eup %9122  ;;  %9142 = vrcp.f32 %v3628_v29  ;;  %3663 = vadd.xlane.f32.xlu0 %v11285_v41  ;;  %8358 = vmatprep.mubr.bf16.mxu0 %v4351_v7  ;;  %v4240_v11 = vmul.f32 %v4112_v58, %v3874_v24  ;;  %v4241_v10 = vmul.f32 %v4113_v62, %v3876_v4  ;;  %v3447_v29 = vmul.f32 1.442695, %v3259_v13  ;;  %v8953_v58 = vld [vmem:[%s10655_s12 + $0x90] sm:$0xff]  }
 0x2a4   : > { %v11301_v46 = vpop.eup %9124  ;;  %9144 = vpow2.f32 %v3453_v48  ;;  %v3624_v45 = vpop.xlane.xlu0 %3623  ;;  %8359 = vmatmul.mubr.bf16.vlgmr.msra.gmra.mrb[64].mxu0 %v4352_v54  ;;  %3665 = vadd.xlane.f32.xlu1 %v11291_v14  ;;  %v3449_v63 = vmul.f32 1.442695, %v3260_v20  ;;  %v3281_v49 = vsub.f32 %v13464_v27, %v10963_v35  ;;  %v3459_v21 = vmul.f32 1.442695, %v3265_v43  ;;  %v13466_v20 = vld [vmem:[#allocation91_spill] sm:$0xff]  ;;  %v8956_v43 = vld [vmem:[%s10655_s12 + $0xd0] sm:$0xff]  }
 0x2a5   : > { %v11306_v23 = vpop.eup %9126  ;;  %9146 = vrcp.f32 %v3624_v45  ;;  %v3626_v17 = vpop.xlane.xlu1 %3625  ;;  %v4359_v18 = vpack.c.bf16 %v4240_v11, %v4239_v25  ;;  %8407 = vmatpush3.bf16.msra.mxu0 %v11192_v53  ;;  %v4360_v3 = vpack.c.bf16 %v4242_v47, %v4241_v10  ;;  %v3461_v53 = vmul.f32 1.442695, %v3266_v39  ;;  %v8955_v47 = vld [vmem:[%s10655_s12 + $0x98] sm:$0xff]   ;;  %v4099_v45 = vld [vmem:[%s11260_s13 + $0x20] sm:$0xff]  ;;  %v4100_v10 = vld [vmem:[%s11260_s13 + $0x28] sm:$0xff] }
 0x2a6   : > { %v11309_v48 = vpop.eup %9128  ;;  %9148 = vrcp.f32 %v3626_v17  ;;  %8408 = vmatprep.subr.bf16.mxu0 %v8951_v19  ;;  %v3282_v24 = vsub.f32 %v13465_v6, %v10967_v56  ;;  %v3491_v50 = vmul.f32 1.442695, %v3281_v49  ;;  %v13467_v56 = vld [vmem:[#allocation54_spill] sm:$0xff]  ;;  %v13470_v27 = vld [vmem:[#allocation7_spill] sm:$0xff] }
 0x2a7   : > { %v9131_v4 = vpop.eup %9130  ;;  %9150 = vpow2.f32 %v3415_v5  ;;  %3695 = vadd.xlane.f32.xlu0 %v11296_v52  ;;  %8390 = vmatprep.mubr.bf16.mxu1 %v4359_v18  ;;  %v3263_v11 = vsub.f32 %v13467_v56, %v10973_v42 }
 0x2a8   : > { %v11316_v13 = vpop.eup %9132  ;;  %9152 = vpow2.f32 %v3417_v26  ;;  %v3604_v7 = vpop.xlane.xlu0 %3603  ;;  %8391 = vmatmul.mubr.bf16.vlgmr.msra.gmra.mrb[64].mxu1 %v4360_v3  ;;  %3697 = vadd.xlane.f32.xlu1 %v11301_v46  ;;  %v3854_v54 = vmul.f32 %v9131_v4, %v13466_v20  ;;  %v4101_v3 = vld [vmem:[%s11260_s13 + $0x30] sm:$0xff] }
 0x2a9   : > { %v9135_v35 = vpop.eup %9134  ;;  %9154 = vpow2.f32 %v3447_v29  ;;  %v3606_v5 = vpop.xlane.xlu1 %3605  ;;  %8409 = vmatpush3.bf16.msra.mxu0 %v8951_v19  ;;  %8439 = vmatpush3.bf16.msra.mxu1 %v11204_v36  ;;  %v4102_v36 = vld [vmem:[%s11260_s13 + $0x38] sm:$0xff]  ;;  %v13469_v29 = vld [vmem:[#allocation90_spill] sm:$0xff]  ;;  %v11343_v56 = vmul.f32 1.442695, %v3263_v11 }
 0x2aa   : > { %v9137_v62 = vpop.eup %9136  ;;  %9156 = vpow2.f32 %v3449_v63  ;;  %8410 = vmatprep.subr.bf16.mxu0 %v8953_v58  ;;  %8440 = vmatprep.subr.bf16.mxu1 %v8954_v30  ;;  %v3852_v17 = vmul.f32 %v9135_v35, %v13469_v29  ;;  %v3493_v63 = vmul.f32 1.442695, %v3282_v24  ;;  %v4230_v6 = vmul.f32 %v4102_v36, %v3854_v54  ;;  %v13472_v35 = vld [vmem:[#allocation93_spill] sm:$0xff]  ;;  %v8957_v24 = vld [vmem:[%s10655_s12 + $0xa0] sm:$0xff]   ;;  %v13473_v36 = vld [vmem:[#allocation8_spill] sm:$0xff] }
 0x2ab   : > { %v9139_v25 = vpop.eup %9138  ;;  %9158 = vpow2.f32 %v3459_v21  ;;  %3675 = vadd.xlane.f32.xlu0 %v11306_v23  ;;  %v13471_v21 = vld [vmem:[#allocation55_spill] sm:$0xff]  ;;  %v3886_v20 = vmul.f32 %v9137_v62, %v13472_v35  ;;  %v4117_v35 = vld [vmem:[%s11260_s13 + $0xb0] sm:$0xff] }
 0x2ac   : > { %v9141_v19 = vpop.eup %9140  ;;  %9160 = vpow2.f32 %v3461_v53  ;;  %v3636_v26 = vpop.xlane.xlu0 %3635  ;;  %3677 = vadd.xlane.f32.xlu1 %v11309_v48  ;;  %v3848_v39 = vmul.f32 %v9139_v25, %v13468_v15  ;;  %v3264_v53 = vsub.f32 %v13471_v21, %v10982_v61  ;;  %v4229_v62 = vmul.f32 %v4101_v3, %v3852_v17  ;;  %v4115_v15 = vld [vmem:[%s11260_s13 + $0xa0] sm:$0xff]  ;;  %v4116_v29 = vld [vmem:[%s11260_s13 + $0xa8] sm:$0xff]  ;;  %v13477_v3 = vld [vmem:[#allocation57_spill] sm:$0xff] }
 0x2ad   : > { %v9143_v18 = vpop.eup %9142  ;;  %9162 = vrcp.f32 %v3606_v5  ;;  %v3638_v42 = vpop.xlane.xlu1 %3637  ;;  %v3850_v49 = vmul.f32 %v9141_v19, %v13470_v27  ;;  %8411 = vmatpush3.bf16.msra.mxu0 %v8953_v58  ;;  %8441 = vmatpush3.bf16.msra.mxu1 %v8954_v30  ;;  %v8958_v5 = vld [vmem:[%s10655_s12 + $0xd8] sm:$0xff]   ;;  %v13474_v27 = vld [vmem:[#allocation92_spill] sm:$0xff] }
 0x2ae   : > { %v11336_v4 = vpop.eup %9144  ;;  %9164 = vpow2.f32 %v3491_v50  ;;  %8412 = vmatprep.subr.bf16.mxu0 %v8955_v47  ;;  %8442 = vmatprep.subr.bf16.mxu1 %v8956_v43  ;;  %v4227_v58 = vmul.f32 %v4099_v45, %v3848_v39  ;;  %v4118_v50 = vld [vmem:[%s11260_s13 + $0xb8] sm:$0xff]  ;;  %v3884_v11 = vmul.f32 %v9143_v18, %v13474_v27  ;;  %v3280_v18 = vsub.f32 %v13477_v3, %v10996_v31  ;;  %v8960_v27 = vld [vmem:[%s10655_s12 + $0xe0] sm:$0xff]  }
 0x2af   : > { %v9147_v25 = vpop.eup %9146  ;;  %9166 = vrcp.f32 %v3604_v7  ;;  %3707 = vadd.xlane.f32.xlu0 %v11316_v13  ;;  %v4228_v30 = vmul.f32 %v4100_v10, %v3850_v49  ;;  %v13475_v7 = vld [vmem:[#allocation56_spill] sm:$0xff]  ;;  %v3457_v31 = vmul.f32 1.442695, %v3264_v53  ;;  %v13482_v3 = vld [vmem:[#allocation61_spill] sm:$0xff] }
 0x2b0   : > { %v9149_v61 = vpop.eup %9148  ;;  %9168 = vrcp.f32 %v3638_v42  ;;  %v3600_v54 = vpop.xlane.xlu0 %3599  ;;  %3709 = vadd.xlane.f32.xlu1 %v11336_v4  ;;  %v3880_v19 = vmul.f32 %v9147_v25, %v13473_v36  ;;  %v3279_v39 = vsub.f32 %v13475_v7, %v10991_v9  ;;  %v13476_v42 = vld [vmem:[#allocation9_spill] sm:$0xff]  ;;  %v4354_v25 = vpack.c.bf16 %v4230_v6, %v4229_v62  ;;  %v8959_v9 = vld [vmem:[%s10655_s12 + $0xa8] sm:$0xff]  }
 0x2b1   : > { %v11352_v21 = vpop.eup %9150  ;;  %9170 = vrcp.f32 %v3600_v54  ;;  %v3602_v45 = vpop.xlane.xlu1 %3601  ;;  %v4353_v10 = vpack.c.bf16 %v4228_v30, %v4227_v58  ;;  %v3882_v49 = vmul.f32 %v9149_v61, %v13476_v42  ;;  %8413 = vmatpush3.bf16.msra.mxu0 %v8955_v47  ;;  %8443 = vmatpush3.bf16.msra.mxu1 %v8956_v43  ;;  %v4246_v36 = vmul.f32 %v4118_v50, %v3886_v20  ;;  %v13478_v58 = vld [vmem:[#allocation58_spill] sm:$0xff]  ;;  %v13479_v6 = vld [vmem:[#allocation59_spill] sm:$0xff] }
 0x2b2   : > { %v11358_v17 = vpop.eup %9152  ;;  %9172 = vrcp.f32 %v3602_v45  ;;  %8414 = vmatprep.subr.bf16.mxu0 %v8957_v24  ;;  %8444 = vmatprep.subr.bf16.mxu1 %v8958_v5  ;;  %v3269_v30 = vsub.f32 %v13478_v58, %v11008_v8  ;;  %v4243_v47 = vmul.f32 %v4115_v15, %v3880_v19  ;;  %v3270_v20 = vsub.f32 %v13479_v6, %v11011_v34  ;;  %v13480_v34 = vld [vmem:[#allocation60_spill] sm:$0xff]  ;;  %v8962_v45 = vld [vmem:[%s10655_s12 + $0xe8] sm:$0xff]   ;;  %v8963_v58 = vld [vmem:[%s10655_s12 + $0xb8] sm:$0xff]  }
 0x2b3   : > { %v11364_v54 = vpop.eup %9154  ;;  %9174 = vrcp.f32 %v3636_v26  ;;  %3671 = vadd.xlane.f32.xlu0 %v11352_v21  ;;  %8362 = vmatprep.mubr.bf16.mxu0 %v4353_v10  ;;  %v4244_v43 = vmul.f32 %v4116_v29, %v3882_v49  ;;  %v4245_v62 = vmul.f32 %v4117_v35, %v3884_v11  ;;  %v3487_v26 = vmul.f32 1.442695, %v3279_v39  ;;  %v8961_v11 = vld [vmem:[%s10655_s12 + $0xb0] sm:$0xff]   ;;  %v4103_v6 = vld [vmem:[%s11260_s13 + $0x40] sm:$0xff] }
 0x2b4   : > { %v11369_v61 = vpop.eup %9156  ;;  %9176 = vpow2.f32 %v3493_v63  ;;  %v3632_v50 = vpop.xlane.xlu0 %3631  ;;  %8363 = vmatmul.mubr.bf16.gmra.mrb[68].mxu0 %v4354_v25  ;;  %3673 = vadd.xlane.f32.xlu1 %v11358_v17  ;;  %v3489_v53 = vmul.f32 1.442695, %v3280_v18  ;;  %v3285_v29 = vsub.f32 %v13480_v34, %v11022_v37  ;;  %v3467_v39 = vmul.f32 1.442695, %v3269_v30  ;;  %v13483_v25 = vld [vmem:[#allocation94_spill] sm:$0xff]  ;;  %v8964_v30 = vld [vmem:[%s10655_s12 + $0xf0] sm:$0xff]  }
 0x2b5   : > { %v11374_v8 = vpop.eup %9158  ;;  %9178 = vrcp.f32 %v3632_v50  ;;  %v3634_v19 = vpop.xlane.xlu1 %3633  ;;  %v4361_v15 = vpack.c.bf16 %v4244_v43, %v4243_v47  ;;  %8415 = vmatpush3.bf16.msra.mxu0 %v8957_v24  ;;  %8445 = vmatpush3.bf16.msra.mxu1 %v8958_v5  ;;  %v4362_v7 = vpack.c.bf16 %v4246_v36, %v4245_v62  ;;  %v3469_v5 = vmul.f32 1.442695, %v3270_v20  ;;  %v4104_v20 = vld [vmem:[%s11260_s13 + $0x48] sm:$0xff]  ;;  %v13485_v50 = vld [vmem:[#allocation10_spill] sm:$0xff]  ;;  %v4105_v34 = vld [vmem:[%s11260_s13 + $0x50] sm:$0xff] }
 0x2b6   : > { %v11376_v63 = vpop.eup %9160  ;;  %9180 = vrcp.f32 %v3634_v19  ;;  %8416 = vmatprep.subr.bf16.mxu0 %v8959_v9  ;;  %8446 = vmatprep.subr.bf16.mxu1 %v8960_v27  ;;  %v3499_v35 = vmul.f32 1.442695, %v3285_v29  ;;  %v3286_v18 = vsub.f32 %v13482_v3, %v11026_v44  ;;  %v13488_v3 = vld [vmem:[#allocation62_spill] sm:$0xff] }
 0x2b7   : > { %v9163_v10 = vpop.eup %9162  ;;  %9182 = vpow2.f32 %v11343_v56  ;;  %3703 = vadd.xlane.f32.xlu0 %v11364_v54  ;;  %8394 = vmatprep.mubr.bf16.mxu1 %v4361_v15  ;;  %v13486_v15 = vld [vmem:[#allocation14_spill] sm:$0xff] }
 0x2b8   : > { %v11384_v24 = vpop.eup %9164  ;;  %9184 = vpow2.f32 %v3457_v31  ;;  %v3612_v42 = vpop.xlane.xlu0 %3611  ;;  %8395 = vmatmul.mubr.bf16.gmra.mrb[68].mxu1 %v4362_v7  ;;  %3705 = vadd.xlane.f32.xlu1 %v11369_v61  ;;  %v3862_v36 = vmul.f32 %v9163_v10, %v13483_v25  ;;  %v13484_v31 = vld [vmem:[#allocation15_spill] sm:$0xff]  ;;  %v3501_v7 = vmul.f32 1.442695, %v3286_v18  ;;  %v3267_v25 = vsub.f32 %v13488_v3, %v11032_v2  ;;  %v4121_v3 = vld [vmem:[%s11260_s13 + $0xd0] sm:$0xff] }
 0x2b9   : > { %13481 = vst [vmem:[#allocation43_spill] sm:$0xff] %v11384_v24  ;;  %v9167_v37 = vpop.eup %9166  ;;  %9186 = vpow2.f32 %v3487_v26  ;;  %v3614_v49 = vpop.xlane.xlu1 %3613  ;;  %8417 = vmatpush3.bf16.msra.mxu0 %v8959_v9  ;;  %8447 = vmatpush3.bf16.msra.mxu1 %v8960_v27  ;;  %v4106_v9 = vld [vmem:[%s11260_s13 + $0x58] sm:$0xff] }
 0x2ba   : > { %v9169_v56 = vpop.eup %9168  ;;  %9188 = vpow2.f32 %v3489_v53  ;;  %8418 = vmatprep.subr.bf16.mxu0 %v8961_v11  ;;  %8448 = vmatprep.subr.bf16.mxu1 %v8962_v45  ;;  %v3860_v62 = vmul.f32 %v9167_v37, %v13485_v50  ;;  %v4234_v10 = vmul.f32 %v4106_v9, %v3862_v36  ;;  %v8965_v37 = vld [vmem:[%s10655_s12 + $0xf8] sm:$0xff]  }
 0x2bb   : > { %v9171_v47 = vpop.eup %9170  ;;  %9190 = vpow2.f32 %v3467_v39  ;;  %3715 = vadd.xlane.f32.xlu0 %v11374_v8  ;;  %v13487_v39 = vld [vmem:[#allocation12_spill] sm:$0xff]  ;;  %v13489_v36 = vld [vmem:[#allocation17_spill] sm:$0xff] }
 0x2bc   : > { %v9173_v27 = vpop.eup %9172  ;;  %9192 = vpow2.f32 %v3469_v5  ;;  %v3644_v43 = vpop.xlane.xlu0 %3643  ;;  %3717 = vadd.xlane.f32.xlu1 %v11376_v63  ;;  %v3856_v44 = vmul.f32 %v9171_v47, %v13484_v31  ;;  %v3894_v5 = vmul.f32 %v9169_v56, %v13487_v39  ;;  %v4122_v47 = vld [vmem:[%s11260_s13 + $0xd8] sm:$0xff]  ;;  %v4233_v56 = vmul.f32 %v4105_v34, %v3860_v62  ;;  %v4120_v31 = vld [vmem:[%s11260_s13 + $0xc8] sm:$0xff] }
 0x2bd   : > { %v9175_v26 = vpop.eup %9174  ;;  %9194 = vrcp.f32 %v3614_v49  ;;  %v3646_v19 = vpop.xlane.xlu1 %3645  ;;  %v3858_v53 = vmul.f32 %v9173_v27, %v13486_v15  ;;  %8419 = vmatpush3.bf16.msra.mxu0 %v8961_v11  ;;  %8449 = vmatpush3.bf16.msra.mxu1 %v8962_v45  ;;  %v4119_v27 = vld [vmem:[%s11260_s13 + $0xc0] sm:$0xff]  ;;  %v13490_v50 = vld [vmem:[#allocation13_spill] sm:$0xff]  ;;  %v13492_v39 = vld [vmem:[#allocation63_spill] sm:$0xff] }
 0x2be   : > { %v11401_v29 = vpop.eup %9176  ;;  %9196 = vpow2.f32 %v3499_v35  ;;  %8420 = vmatprep.subr.bf16.mxu0 %v8963_v58  ;;  %8450 = vmatprep.subr.bf16.mxu1 %v8964_v30  ;;  %v4231_v11 = vmul.f32 %v4103_v6, %v3856_v44  ;;  %v3892_v15 = vmul.f32 %v9175_v26, %v13490_v50  ;;  %v4356_v34 = vpack.c.bf16 %v4234_v10, %v4233_v56 }
 0x2bf   : > { %v9179_v49 = vpop.eup %9178  ;;  %9198 = vrcp.f32 %v3612_v42  ;;  %3747 = vadd.xlane.f32.xlu0 %v11384_v24  ;;  %v4232_v45 = vmul.f32 %v4104_v20, %v3858_v53  ;;  %v13491_v42 = vld [vmem:[#allocation127_spill] sm:$0xff]  ;;  %v13493_v53 = vld [vmem:[#allocation16_spill] sm:$0xff] }
 0x2c0   : > { %v9181_v35 = vpop.eup %9180  ;;  %9200 = vrcp.f32 %v3646_v19  ;;  %v3608_v18 = vpop.xlane.xlu0 %3607  ;;  %3749 = vadd.xlane.f32.xlu1 %v11401_v29  ;;  %v3888_v9 = vmul.f32 %v9179_v49, %v13489_v36  ;;  %v3268_v44 = vsub.f32 %v13492_v39, %v13491_v42  ;;  %v4250_v49 = vmul.f32 %v4122_v47, %v3894_v5  ;;  %v13498_v47 = vld [vmem:[#allocation65_spill] sm:$0xff]  ;;  %v13502_v39 = vld [vmem:[#allocation131_spill] sm:$0xff] }
 0x2c1   : > { %v11414_v2 = vpop.eup %9182  ;;  %9202 = vrcp.f32 %v3608_v18  ;;  %v3610_v6 = vpop.xlane.xlu1 %3609  ;;  %v4355_v20 = vpack.c.bf16 %v4232_v45, %v4231_v11  ;;  %v3890_v19 = vmul.f32 %v9181_v35, %v13493_v53  ;;  %8421 = vmatpush3.bf16.msra.mxu0 %v8963_v58  ;;  %8451 = vmatpush3.bf16.msra.mxu1 %v8964_v30  ;;  %v3463_v58 = vmul.f32 1.442695, %v3267_v25  ;;  %v13496_v30 = vld [vmem:[#allocation64_spill] sm:$0xff] }
 0x2c2   : > { %v11420_v62 = vpop.eup %9184  ;;  %9204 = vrcp.f32 %v3610_v6  ;;  %8452 = vmatprep.subr.bf16.mxu1 %v8965_v37  ;;  %v4247_v18 = vmul.f32 %v4119_v27, %v3888_v9  ;;  %v3283_v45 = vsub.f32 %v13496_v30, %v11051_v59  ;;  %v4249_v10 = vmul.f32 %v4121_v3, %v3892_v15  ;;  %v13500_v59 = vld [vmem:[#allocation19_spill] sm:$0xff] }
 0x2c3   : > { %v11422_v26 = vpop.eup %9186  ;;  %9206 = vrcp.f32 %v3644_v43  ;;  %3711 = vadd.xlane.f32.xlu0 %v11414_v2  ;;  %8366 = vmatprep.mubr.bf16.mxu0 %v4355_v20  ;;  %v4248_v36 = vmul.f32 %v4120_v31, %v3890_v19  ;;  %v3465_v43 = vmul.f32 1.442695, %v3268_v44  ;;  %v3284_v56 = vsub.f32 %v13498_v47, %v11056_v32  ;;  %v13501_v31 = vld [vmem:[#allocation66_spill] sm:$0xff]  ;;  %v13503_v44 = vld [vmem:[#allocation67_spill] sm:$0xff] }
 0x2c4   : > { %13494 = vst [vmem:[#allocation44_spill] sm:$0xff] %v11422_v26  ;;  %v11425_v11 = vpop.eup %9188  ;;  %9208 = vpow2.f32 %v3501_v7  ;;  %v3640_v35 = vpop.xlane.xlu0 %3639  ;;  %8367 = vmatmul.mubr.bf16.gmra.mrb[72].mxu0 %v4356_v34  ;;  %3713 = vadd.xlane.f32.xlu1 %v11420_v62  ;;  %v11435_v7 = vld [vmem:[%s10655_s12 + $0x100] sm:$0xff]   ;;  %v3273_v50 = vsub.f32 %v13501_v31, %v13500_v59  ;;  %v4364_v42 = vpack.c.bf16 %v4250_v49, %v4249_v10  ;;  %v4108_v31 = vld [vmem:[%s11260_s13 + $0x68] sm:$0xff] }
 0x2c5   : > { %13495 = vst [vmem:[#allocation45_spill] sm:$0xff] %v11425_v11  ;;  %v11430_v5 = vpop.eup %9190  ;;  %9210 = vrcp.f32 %v3640_v35  ;;  %v3642_v9 = vpop.xlane.xlu1 %3641  ;;  %v4363_v27 = vpack.c.bf16 %v4248_v36, %v4247_v18  ;;  %8453 = vmatpush3.bf16.msra.mxu1 %v8965_v37  ;;  %v3274_v6 = vsub.f32 %v13503_v44, %v13502_v39  ;;  %v3495_v37 = vmul.f32 1.442695, %v3283_v45  ;;  %8470 = vmatprep.subr.bf16.mxu0 %v11435_v7  ;;  %v11453_v34 = vld [vmem:[%s10655_s12 + $0x140] sm:$0xff]   ;;  %v13505_v36 = vld [vmem:[#allocation96_spill] sm:$0xff] }
 0x2c6   : > { %13497 = vst [vmem:[#allocation83_spill] sm:$0xff] %v11430_v5  ;;  %v11437_v25 = vpop.eup %9192  ;;  %9212 = vrcp.f32 %v3642_v9  ;;  %v3497_v19 = vmul.f32 1.442695, %v3284_v56  ;;  %v3475_v18 = vmul.f32 1.442695, %v3273_v50  ;;  %v13506_v35 = vld [vmem:[#allocation68_spill] sm:$0xff]  ;;  %8502 = vmatprep.subr.bf16.mxu1 %v11453_v34 }
 0x2c7   : > { %13499 = vst [vmem:[#allocation46_spill] sm:$0xff] %v11437_v25  ;;  %v9195_v15 = vpop.eup %9194  ;;  %3743 = vadd.xlane.f32.xlu0 %v11422_v26  ;;  %8398 = vmatprep.mubr.bf16.mxu1 %v4363_v27  ;;  %9214 = vpow2.f32 %v3463_v58  ;;  %v3477_v45 = vmul.f32 1.442695, %v3274_v6  ;;  %v3289_v10 = vsub.f32 %v13506_v35, %v11088_v40  ;;  %v13507_v9 = vld [vmem:[#allocation99_spill] sm:$0xff]  ;;  %v4107_v59 = vld [vmem:[%s11260_s13 + $0x60] sm:$0xff]  ;;  %v13509_v40 = vld [vmem:[#allocation69_spill] sm:$0xff] }
 0x2c8   : > { %v11444_v32 = vpop.eup %9196  ;;  %v11446_v20 = vpop.xlane.xlu0 %3139  ;;  %8399 = vmatmul.mubr.bf16.gmra.mrb[72].mxu1 %v4364_v42  ;;  %3745 = vadd.xlane.f32.xlu1 %v11425_v11  ;;  %9216 = vpow2.f32 %v3465_v43  ;;  %v3870_v58 = vmul.f32 %v9195_v15, %v13505_v36  ;;  %v4110_v43 = vld [vmem:[%s11260_s13 + $0x78] sm:$0xff]  ;;  %v13508_v50 = vld [vmem:[#allocation95_spill] sm:$0xff]  ;;  %v3290_v39 = vsub.f32 %v13509_v40, %v11094_v33  ;;  %v13510_v6 = vld [vmem:[#allocation100_spill] sm:$0xff] }
 0x2c9   : > { %13504 = vst [vmem:[#allocation82_spill] sm:$0xff] %v11444_v32  ;;  %v9199_v53 = vpop.eup %9198  ;;  %v11449_v3 = vpop.xlane.xlu1 %3141  ;;  %9218 = vpow2.f32 %v3495_v37  ;;  %v4109_v36 = vld [vmem:[%s11260_s13 + $0x70] sm:$0xff]  ;;  %v4126_v40 = vld [vmem:[%s11260_s13 + $0xf8] sm:$0xff]  ;;  %v13517_v26 = vld [vmem:[#allocation103_spill] sm:$0xff] }
 0x2ca   : > { %v9201_v49 = vpop.eup %9200  ;;  %v3868_v42 = vmul.f32 %v9199_v53, %v13508_v50  ;;  %9220 = vpow2.f32 %v3497_v19  ;;  %v3507_v50 = vmul.f32 1.442695, %v3289_v10  ;;  %v13515_v10 = vld [vmem:[#allocation97_spill] sm:$0xff] }
 0x2cb   : > { %v9203_v30 = vpop.eup %9202  ;;  %3723 = vadd.xlane.f32.xlu0 %v11430_v5  ;;  %9222 = vpow2.f32 %v3475_v18 }
 0x2cc   : > { %v9205_v47 = vpop.eup %9204  ;;  %v11461_v56 = vpop.xlane.xlu0 %3171  ;;  %3725 = vadd.xlane.f32.xlu1 %v11437_v25  ;;  %v3864_v27 = vmul.f32 %v9203_v30, %v13507_v9  ;;  %v4238_v30 = vmul.f32 %v4110_v43, %v3870_v58  ;;  %v13512_v9 = vld [vmem:[#allocation98_spill] sm:$0xff]  ;;  %9224 = vpow2.f32 %v3477_v45  ;;  %v4237_v18 = vmul.f32 %v4109_v36, %v3868_v42  ;;  %v4124_v45 = vld [vmem:[%s11260_s13 + $0xe8] sm:$0xff] }
 0x2cd   : > { %v9207_v15 = vpop.eup %9206  ;;  %v11470_v44 = vpop.xlane.xlu1 %3173  ;;  %v3866_v37 = vmul.f32 %v9205_v47, %v13510_v6  ;;  %v3902_v5 = vmul.f32 %v9201_v49, %v13512_v9  ;;  %v13513_v47 = vld [vmem:[#allocation70_spill] sm:$0xff]  ;;  %9226 = vpow2.f32 %v3507_v50 }
 0x2ce   : > { %v11474_v35 = vpop.eup %9208  ;;  %v4235_v19 = vmul.f32 %v4107_v59, %v3864_v27  ;;  %v3271_v6 = vsub.f32 %v13513_v47, %v11102_v16  ;;  %v13514_v58 = vld [vmem:[#allocation102_spill] sm:$0xff]  ;;  %v3900_v9 = vmul.f32 %v9207_v15, %v13515_v10  ;;  %v13516_v27 = vld [vmem:[#allocation71_spill] sm:$0xff]  ;;  %v4125_v47 = vld [vmem:[%s11260_s13 + $0xf0] sm:$0xff] }
 0x2cf   : > { %13511 = vst [vmem:[#allocation86_spill] sm:$0xff] %v11474_v35  ;;  %v9211_v53 = vpop.eup %9210  ;;  %3755 = vadd.xlane.f32.xlu0 %v11444_v32  ;;  %v4236_v33 = vmul.f32 %v4108_v31, %v3866_v37  ;;  %v4123_v43 = vld [vmem:[%s11260_s13 + $0xe0] sm:$0xff]  ;;  %v3509_v32 = vmul.f32 1.442695, %v3290_v39  ;;  %v3272_v59 = vsub.f32 %v13516_v27, %v11113_v55  ;;  %v4254_v42 = vmul.f32 %v4126_v40, %v3902_v5  ;;  %v13518_v55 = vld [vmem:[#allocation72_spill] sm:$0xff]  ;;  %v13521_v10 = vld [vmem:[#allocation75_spill] sm:$0xff] }
 0x2d0   : > { %v9213_v25 = vpop.eup %9212  ;;  %v11481_v11 = vpop.xlane.xlu0 %3135  ;;  %3757 = vadd.xlane.f32.xlu1 %v11474_v35  ;;  %v3896_v49 = vmul.f32 %v9211_v53, %v13514_v58  ;;  %v4358_v35 = vpack.c.bf16 %v4238_v30, %v4237_v18  ;;  %v3471_v53 = vmul.f32 1.442695, %v3271_v6  ;;  %v3287_v58 = vsub.f32 %v13518_v55, %v11124_v0 }
 0x2d1   : > { %v11490_v31 = vpop.xlane.xlu1 %3137  ;;  %v4357_v37 = vpack.c.bf16 %v4236_v33, %v4235_v19  ;;  %v3898_v16 = vmul.f32 %v9213_v25, %v13517_v26  ;;  %v11494_v24 = vpop.eup %9214  ;;  %v4253_v26 = vmul.f32 %v4125_v47, %v3900_v9  ;;  %9228 = vpow2.f32 %v3509_v32  ;;  %v13519_v25 = vld [vmem:[#allocation73_spill] sm:$0xff]  ;;  %v13520_v32 = vld [vmem:[#allocation74_spill] sm:$0xff] }
 0x2d2   : > { %v11496_v36 = vpop.eup %9216  ;;  %v4251_v15 = vmul.f32 %v4123_v43, %v3896_v49  ;;  %v3473_v5 = vmul.f32 1.442695, %v3272_v59  ;;  %v3288_v30 = vsub.f32 %v13519_v25, %v11131_v28  ;;  %9230 = vpow2.f32 %v3471_v53 }
 0x2d3   : > { %3719 = vadd.xlane.f32.xlu0 %v11494_v24  ;;  %8370 = vmatprep.mubr.bf16.mxu0 %v4357_v37  ;;  %v4252_v39 = vmul.f32 %v4124_v45, %v3898_v16  ;;  %v11508_v18 = vpop.eup %9218  ;;  %v4366_v50 = vpack.c.bf16 %v4254_v42, %v4253_v26  ;;  %v3277_v49 = vsub.f32 %v13520_v32, %v11138_v12  ;;  %v13522_v12 = vld [vmem:[#allocation76_spill] sm:$0xff]  ;;  %v13523_v42 = vld [vmem:[#allocation77_spill] sm:$0xff] }
 0x2d4   : > { %v11501_v19 = vpop.xlane.xlu0 %3167  ;;  %8371 = vmatmul.mubr.bf16.gmra.mrb[76].mxu0 %v4358_v35  ;;  %3721 = vadd.xlane.f32.xlu1 %v11496_v36  ;;  %v11510_v6 = vpop.eup %9220  ;;  %v3503_v35 = vmul.f32 1.442695, %v3287_v58  ;;  %9232 = vpow2.f32 %v3473_v5  ;;  %v3505_v45 = vmul.f32 1.442695, %v3288_v30  ;;  %v3278_v9 = vsub.f32 %v13521_v10, %v11145_v22  ;;  %v13528_v10 = vld [vmem:[#allocation81_spill] sm:$0xff] }
 0x2d5   : > { %v11506_v33 = vpop.xlane.xlu1 %3169  ;;  %v4365_v40 = vpack.c.bf16 %v4252_v39, %v4251_v15  ;;  %v11513_v0 = vpop.eup %9222  ;;  %v3483_v59 = vmul.f32 1.442695, %v3277_v49  ;;  %v3293_v37 = vsub.f32 %v13522_v12, %v11152_v57  ;;  %v3294_v15 = vsub.f32 %v13523_v42, %v11157_v1  ;;  %v13524_v57 = vld [vmem:[#allocation78_spill] sm:$0xff]  ;;  %v13525_v1 = vld [vmem:[#allocation79_spill] sm:$0xff] }
 0x2d6   : > { %v11520_v28 = vpop.eup %9224  ;;  %9234 = vpow2.f32 %v3503_v35  ;;  %v3485_v47 = vmul.f32 1.442695, %v3278_v9  ;;  %v3275_v58 = vsub.f32 %v13524_v57, %v11168_v51  ;;  %v3276_v25 = vsub.f32 %v13525_v1, %v11173_v60  ;;  %v13526_v51 = vld [vmem:[#allocation80_spill] sm:$0xff]  ;;  %v13527_v60 = vld [vmem:[#allocation30_spill] sm:$0xff] }
 0x2d7   : > { %3751 = vadd.xlane.f32.xlu0 %v11508_v18  ;;  %8402 = vmatprep.mubr.bf16.mxu1 %v4365_v40  ;;  %9236 = vpow2.f32 %v3505_v45  ;;  %v11536_v22 = vpop.eup %9226  ;;  %v3515_v55 = vmul.f32 1.442695, %v3293_v37  ;;  %v3517_v5 = vmul.f32 1.442695, %v3294_v15  ;;  %v3291_v32 = vsub.f32 %v13526_v51, %v11186_v38  ;;  %v13529_v38 = vld [vmem:[#allocation104_spill] sm:$0xff]  ;;  %v13530_v57 = vld [vmem:[#allocation106_spill] sm:$0xff] }
 0x2d8   : > { %v11517_v43 = vpop.xlane.xlu0 %3147  ;;  %8403 = vmatmul.mubr.bf16.gmra.mrb[76].mxu1 %v4366_v50  ;;  %3753 = vadd.xlane.f32.xlu1 %v11510_v6  ;;  %9238 = vpow2.f32 %v3483_v59  ;;  %v3479_v35 = vmul.f32 1.442695, %v3275_v58  ;;  %v3481_v45 = vmul.f32 1.442695, %v3276_v25  ;;  %v3292_v9 = vsub.f32 %v13528_v10, %v13527_v60 }
 0x2d9   : > { %v11524_v27 = vpop.xlane.xlu1 %3149  ;;  %9240 = vpow2.f32 %v3485_v47  ;;  %v3511_v47 = vmul.f32 1.442695, %v3291_v32  ;;  %v3297_v42 = vsub.f32 %v13529_v38, %v11446_v20  ;;  %v3298_v58 = vsub.f32 %v13530_v57, %v11449_v3  ;;  %v13533_v20 = vld [vmem:[#allocation109_spill] sm:$0xff]  ;;  %v13534_v3 = vld [vmem:[#allocation111_spill] sm:$0xff] }
 0x2da   : > { %9242 = vpow2.f32 %v3515_v55  ;;  %v3513_v55 = vmul.f32 1.442695, %v3292_v9  ;;  %v3295_v51 = vsub.f32 %v13533_v20, %v11481_v11  ;;  %v3296_v60 = vsub.f32 %v13534_v3, %v11490_v31  ;;  %v13537_v11 = vld [vmem:[#allocation112_spill] sm:$0xff]  ;;  %v13538_v31 = vld [vmem:[#allocation113_spill] sm:$0xff] }
 0x2db   : > { %3731 = vadd.xlane.f32.xlu0 %v11513_v0  ;;  %v11538_v53 = vpop.eup %9228  ;;  %9244 = vpow2.f32 %v3517_v5 }
 0x2dc   : > { %v11529_v16 = vpop.xlane.xlu0 %3179  ;;  %3733 = vadd.xlane.f32.xlu1 %v11520_v28  ;;  %v11550_v40 = vpop.eup %9230  ;;  %9246 = vpow2.f32 %v3479_v35  ;;  %v3523_v35 = vmul.f32 1.442695, %v3297_v42  ;;  %v3311_v42 = vsub.f32 %v13537_v11, %v11501_v19 }
 0x2dd   : > { %v11534_v39 = vpop.xlane.xlu1 %3181  ;;  %9248 = vpow2.f32 %v3481_v45  ;;  %v3525_v45 = vmul.f32 1.442695, %v3298_v58  ;;  %v3312_v58 = vsub.f32 %v13538_v31, %v11506_v33 }
 0x2de   : > { %v11552_v50 = vpop.eup %9232  ;;  %9250 = vpow2.f32 %v3511_v47  ;;  %v3519_v47 = vmul.f32 1.442695, %v3295_v51  ;;  %v3551_v51 = vmul.f32 1.442695, %v3311_v42 }
 0x2df   : > { %3763 = vadd.xlane.f32.xlu0 %v11536_v22  ;;  %9252 = vpow2.f32 %v3513_v55  ;;  %v3521_v55 = vmul.f32 1.442695, %v3296_v60  ;;  %v3553_v60 = vmul.f32 1.442695, %v3312_v58 }
 0x2e0   : > { %v11543_v26 = vpop.xlane.xlu0 %3143  ;;  %3765 = vadd.xlane.f32.xlu1 %v11538_v53  ;;  %v11564_v12 = vpop.eup %9234  ;;  %9254 = vpow2.f32 %v3523_v35  ;;  %v13541_v35 = vld [vmem:[#allocation107_spill] sm:$0xff] }
 0x2e1   : > { %v11548_v30 = vpop.xlane.xlu1 %3145  ;;  %v11566_v37 = vpop.eup %9236  ;;  %9256 = vpow2.f32 %v3525_v45  ;;  %v3313_v19 = vsub.f32 %v13541_v35, %v11461_v56  ;;  %v13542_v45 = vld [vmem:[#allocation108_spill] sm:$0xff] }
 0x2e2   : > { %v11578_v1 = vpop.eup %9238  ;;  %9258 = vpow2.f32 %v3519_v47  ;;  %v3314_v33 = vsub.f32 %v13542_v45, %v11470_v44  ;;  %v13545_v47 = vld [vmem:[#allocation114_spill] sm:$0xff] }
 0x2e3   : > { %3727 = vadd.xlane.f32.xlu0 %v11550_v40  ;;  %13531 = vst [vmem:[#allocation87_spill] sm:$0xff] %v11578_v1  ;;  %v11580_v25 = vpop.eup %9240  ;;  %9260 = vpow2.f32 %v3521_v55  ;;  %v3555_v56 = vmul.f32 1.442695, %v3313_v19  ;;  %v3301_v42 = vsub.f32 %v13545_v47, %v11517_v43  ;;  %v13546_v55 = vld [vmem:[#allocation115_spill] sm:$0xff]  ;;  %v13549_v43 = vld [vmem:[#allocation118_spill] sm:$0xff] }
 0x2e4   : > { %v11557_v49 = vpop.xlane.xlu0 %3175  ;;  %3729 = vadd.xlane.f32.xlu1 %v11552_v50  ;;  %13532 = vst [vmem:[#allocation110_spill] sm:$0xff] %v11580_v25  ;;  %v11592_v9 = vpop.eup %9242  ;;  %9262 = vpow2.f32 %v3551_v51  ;;  %v3557_v44 = vmul.f32 1.442695, %v3314_v33  ;;  %v3302_v58 = vsub.f32 %v13546_v55, %v11524_v27  ;;  %v3299_v51 = vsub.f32 %v13549_v43, %v11543_v26  ;;  %v13550_v27 = vld [vmem:[#allocation119_spill] sm:$0xff]  ;;  %v13554_v43 = vld [vmem:[#allocation120_spill] sm:$0xff] }
 0x2e5   : > { %v11562_v59 = vpop.xlane.xlu1 %3177  ;;  %13535 = vst [vmem:[#allocation47_spill] sm:$0xff] %v11592_v9  ;;  %v11594_v38 = vpop.eup %9244  ;;  %9264 = vpow2.f32 %v3553_v60  ;;  %v3531_v19 = vmul.f32 1.442695, %v3301_v42  ;;  %v3300_v60 = vsub.f32 %v13550_v27, %v11548_v30  ;;  %v13555_v27 = vld [vmem:[#allocation121_spill] sm:$0xff] }
 0x2e6   : > { %13536 = vst [vmem:[#allocation85_spill] sm:$0xff] %v11594_v38  ;;  %v11606_v3 = vpop.eup %9246  ;;  %9266 = vpow2.f32 %v3555_v56  ;;  %v3533_v33 = vmul.f32 1.442695, %v3302_v58  ;;  %v13553_v56 = vld [vmem:[#allocation116_spill] sm:$0xff]  ;;  %v3527_v26 = vmul.f32 1.442695, %v3299_v51 }
 0x2e7   : > { %3759 = vadd.xlane.f32.xlu0 %v11564_v12  ;;  %13539 = vst [vmem:[#allocation84_spill] sm:$0xff] %v11606_v3  ;;  %9268 = vpow2.f32 %v3557_v44  ;;  %v3317_v42 = vsub.f32 %v13553_v56, %v11529_v16  ;;  %v3315_v44 = vsub.f32 %v13554_v43, %v11557_v49  ;;  %v3529_v30 = vmul.f32 1.442695, %v3300_v60  ;;  %v13557_v16 = vld [vmem:[#allocation117_spill] sm:$0xff]  ;;  %v13559_v49 = vld [vmem:[#allocation122_spill] sm:$0xff]  ;;  %v13560_v60 = vld [vmem:[#allocation123_spill] sm:$0xff] }
 0x2e8   : > { %v11571_v15 = vpop.xlane.xlu0 %3155  ;;  %3761 = vadd.xlane.f32.xlu1 %v11566_v37  ;;  %9270 = vpow2.f32 %v3531_v19  ;;  %v3318_v19 = vsub.f32 %v13557_v16, %v11534_v39 }
 0x2e9   : > { %v11576_v5 = vpop.xlane.xlu1 %3157  ;;  %9272 = vpow2.f32 %v3533_v33  ;;  %v3563_v56 = vmul.f32 1.442695, %v3317_v42  ;;  %v3305_v43 = vsub.f32 %v13559_v49, %v11571_v15  ;;  %v3559_v33 = vmul.f32 1.442695, %v3315_v44  ;;  %v13562_v15 = vld [vmem:[#allocation126_spill] sm:$0xff] }
 0x2ea   : > { %9274 = vpow2.f32 %v3527_v26  ;;  %v3565_v42 = vmul.f32 1.442695, %v3318_v19 }
 0x2eb   : > { %3739 = vadd.xlane.f32.xlu0 %v11578_v1  ;;  %v11608_v1 = vpop.eup %9248  ;;  %9276 = vpow2.f32 %v3529_v30  ;;  %v3539_v26 = vmul.f32 1.442695, %v3305_v43 }
 0x2ec   : > { %v11585_v32 = vpop.xlane.xlu0 %3187  ;;  %3741 = vadd.xlane.f32.xlu1 %v11580_v25  ;;  %13540 = vst [vmem:[#allocation88_spill] sm:$0xff] %v11608_v1  ;;  %9278 = vpow2.f32 %v3563_v56 }
 0x2ed   : > { %v11590_v10 = vpop.xlane.xlu1 %3189  ;;  %9280 = vpow2.f32 %v3559_v33 }
 0x2ef   : > { %3771 = vadd.xlane.f32.xlu0 %v11592_v9  ;;  %v11620_v9 = vpop.eup %9250 }
 0x2f0   : > { %v11599_v57 = vpop.xlane.xlu0 %3151  ;;  %3773 = vadd.xlane.f32.xlu1 %v11594_v38  ;;  %13543 = vst [vmem:[#allocation48_spill] sm:$0xff] %v11620_v9  ;;  %v11622_v38 = vpop.eup %9252 }
 0x2f1   : > { %v11604_v20 = vpop.xlane.xlu1 %3153  ;;  %13544 = vst [vmem:[#allocation89_spill] sm:$0xff] %v11622_v38  ;;  %v3303_v49 = vsub.f32 %v13562_v15, %v11599_v57  ;;  %v13566_v57 = vld [vmem:[#allocation128_spill] sm:$0xff] }
 0x2f2   : > { %v3304_v56 = vsub.f32 %v13566_v57, %v11604_v20 }
 0x2f3   : > { %3735 = vadd.xlane.f32.xlu0 %v11606_v3  ;;  %v3535_v19 = vmul.f32 1.442695, %v3303_v49 }
 0x2f4   : > { %v11613_v11 = vpop.xlane.xlu0 %3183  ;;  %3737 = vadd.xlane.f32.xlu1 %v11608_v1  ;;  %v11634_v1 = vpop.eup %9254  ;;  %v3537_v49 = vmul.f32 1.442695, %v3304_v56 }
 0x2f5   : > { %v11618_v31 = vpop.xlane.xlu1 %3185  ;;  %13547 = vst [vmem:[#allocation49_spill] sm:$0xff] %v11634_v1  ;;  %v11636_v3 = vpop.eup %9256 }
 0x2f6   : > { %13548 = vst [vmem:[#allocation50_spill] sm:$0xff] %v11636_v3 }
 0x2f7   : > { %3767 = vadd.xlane.f32.xlu0 %v11620_v9 }
 0x2f8   : > { %v11627_v35 = vpop.xlane.xlu0 %3163  ;;  %3769 = vadd.xlane.f32.xlu1 %v11622_v38  ;;  %v11648_v38 = vpop.eup %9258 }
 0x2f9   : > { %v11632_v45 = vpop.xlane.xlu1 %3165  ;;  %13551 = vst [vmem:[#allocation51_spill] sm:$0xff] %v11648_v38  ;;  %v11650_v9 = vpop.eup %9260 }
 0x2fa   : > { %13552 = vst [vmem:[#allocation52_spill] sm:$0xff] %v11650_v9  ;;  %v11664_v25 = vpop.eup %9262 }
 0x2fb   : > { %3779 = vadd.xlane.f32.xlu0 %v11634_v1  ;;  %v3316_v1 = vsub.f32 %v13555_v27, %v11562_v59  ;;  %13556 = vst [vmem:[#allocation53_spill] sm:$0xff] %v11664_v25  ;;  %v11668_v51 = vpop.eup %9264  ;;  %v3306_v59 = vsub.f32 %v13560_v60, %v11576_v5 }
 0x2fc   : > { %v11641_v47 = vpop.xlane.xlu0 %3195  ;;  %3781 = vadd.xlane.f32.xlu1 %v11636_v3  ;;  %13558 = vst [vmem:[#allocation91_spill] sm:$0xff] %v11668_v51  ;;  %v11680_v16 = vpop.eup %9266 }
 0x2fd   : > { %v11646_v55 = vpop.xlane.xlu1 %3197  ;;  %13561 = vst [vmem:[#allocation54_spill] sm:$0xff] %v11680_v16  ;;  %v3541_v5 = vmul.f32 1.442695, %v3306_v59 }
 0x2ff   : > { %3775 = vadd.xlane.f32.xlu0 %v11648_v38  ;;  %v13591_v38 = vld [vmem:[#allocation11_spill] sm:$0xff] }
 0x300   : > { %v11657_v58 = vpop.xlane.xlu0 %3159  ;;  %3777 = vadd.xlane.f32.xlu1 %v11650_v9  ;;  %v3561_v9 = vmul.f32 1.442695, %v3316_v1 }
 0x301   : > { %v11662_v3 = vpop.xlane.xlu1 %3161 }
 0x302   : > { %9282 = vpow2.f32 %v3561_v9 }
 0x303   : > { %3807 = vadd.xlane.f32.xlu0 %v11664_v25  ;;  %v11684_v25 = vpop.eup %9268  ;;  %9284 = vpow2.f32 %v3565_v42  ;;  %v13569_v42 = vld [vmem:[#allocation124_spill] sm:$0xff] }
 0x304   : > { %v11675_v27 = vpop.xlane.xlu0 %3191  ;;  %3809 = vadd.xlane.f32.xlu1 %v11668_v51  ;;  %13563 = vst [vmem:[#allocation6_spill] sm:$0xff] %v11684_v25  ;;  %v11688_v30 = vpop.eup %9270  ;;  %9286 = vpow2.f32 %v3539_v26  ;;  %v3321_v15 = vsub.f32 %v13569_v42, %v11585_v32  ;;  %v13570_v26 = vld [vmem:[#allocation129_spill] sm:$0xff] }
 0x305   : > { %v11678_v39 = vpop.xlane.xlu1 %3193  ;;  %13564 = vst [vmem:[#allocation90_spill] sm:$0xff] %v11688_v30  ;;  %v11690_v60 = vpop.eup %9272  ;;  %9288 = vpow2.f32 %v3541_v5  ;;  %v3319_v20 = vsub.f32 %v13570_v26, %v11613_v11  ;;  %v13574_v32 = vld [vmem:[#allocation125_spill] sm:$0xff] }
 0x306   : > { %13565 = vst [vmem:[#allocation7_spill] sm:$0xff] %v11690_v60  ;;  %v11696_v9 = vpop.eup %9274  ;;  %v3571_v11 = vmul.f32 1.442695, %v3321_v15 }
 0x307   : > { %3811 = vadd.xlane.f32.xlu0 %v11680_v16  ;;  %13567 = vst [vmem:[#allocation55_spill] sm:$0xff] %v11696_v9  ;;  %v11698_v59 = vpop.eup %9276  ;;  %v13589_v16 = vld [vmem:[#allocation27_spill] sm:$0xff] }
 0x308   : > { %v3652_v44 = vpop.xlane.xlu0 %3651  ;;  %3813 = vadd.xlane.f32.xlu1 %v11684_v25  ;;  %13568 = vst [vmem:[#allocation93_spill] sm:$0xff] %v11698_v59  ;;  %v4128_v25 = vld [vmem:[%s11260_s13 + $0x108] sm:$0xff] }
 0x309   : > { %v3654_v1 = vpop.xlane.xlu1 %3653 }
 0x30a   : > { %9290 = vrcp.f32 %v3654_v1  ;;  %v11706_v1 = vpop.eup %9278 }
 0x30b   : > { %3787 = vadd.xlane.f32.xlu0 %v11688_v30  ;;  %9292 = vpow2.f32 %v3535_v19  ;;  %13571 = vst [vmem:[#allocation8_spill] sm:$0xff] %v11706_v1  ;;  %v13572_v19 = vld [vmem:[#allocation130_spill] sm:$0xff] }
 0x30c   : > { %v3684_v43 = vpop.xlane.xlu0 %3683  ;;  %3789 = vadd.xlane.f32.xlu1 %v11690_v60  ;;  %9294 = vrcp.f32 %v3652_v44  ;;  %v3320_v57 = vsub.f32 %v13572_v19, %v11618_v31  ;;  %v11710_v60 = vpop.eup %9280  ;;  %v3322_v44 = vsub.f32 %v13574_v32, %v11590_v10  ;;  %v3567_v31 = vmul.f32 1.442695, %v3319_v20 }
 0x30d   : > { %v3686_v33 = vpop.xlane.xlu1 %3685  ;;  %13573 = vst [vmem:[#allocation92_spill] sm:$0xff] %v11710_v60  ;;  %v11714_v56 = vpop.eup %9282 }
 0x30e   : > { %9296 = vrcp.f32 %v3686_v33  ;;  %13575 = vst [vmem:[#allocation56_spill] sm:$0xff] %v11714_v56  ;;  %v13576_v33 = vld [vmem:[#allocation18_spill] sm:$0xff]  ;;  %v11719_v26 = vpop.eup %9284 }
 0x30f   : > { %3783 = vadd.xlane.f32.xlu0 %v11696_v9  ;;  %v3309_v42 = vsub.f32 %v13576_v33, %v11627_v35  ;;  %13577 = vst [vmem:[#allocation9_spill] sm:$0xff] %v11719_v26  ;;  %v11724_v10 = vpop.eup %9286  ;;  %v3573_v35 = vmul.f32 1.442695, %v3322_v44  ;;  %v4127_v9 = vld [vmem:[%s11260_s13 + $0x100] sm:$0xff] }
 0x310   : > { %v3648_v5 = vpop.xlane.xlu0 %3647  ;;  %3785 = vadd.xlane.f32.xlu1 %v11698_v59  ;;  %13579 = vst [vmem:[#allocation57_spill] sm:$0xff] %v11724_v10  ;;  %v11726_v32 = vpop.eup %9288 }
 0x311   : > { %9298 = vrcp.f32 %v3648_v5  ;;  %v3650_v30 = vpop.xlane.xlu1 %3649  ;;  %v13578_v5 = vld [vmem:[#allocation132_spill] sm:$0xff]  ;;  %13580 = vst [vmem:[#allocation58_spill] sm:$0xff] %v11726_v32  ;;  %v3547_v20 = vmul.f32 1.442695, %v3309_v42 }
 0x312   : > { %9300 = vrcp.f32 %v3650_v30  ;;  %v3310_v19 = vsub.f32 %v13578_v5, %v11632_v45  ;;  %v3569_v30 = vmul.f32 1.442695, %v3320_v57 }
 0x313   : > { %9302 = vrcp.f32 %v3684_v43  ;;  %3815 = vadd.xlane.f32.xlu0 %v11710_v60  ;;  %v13581_v43 = vld [vmem:[#allocation21_spill] sm:$0xff] }
 0x314   : > { %9304 = vpow2.f32 %v3537_v49  ;;  %v3680_v59 = vpop.xlane.xlu0 %3679  ;;  %3817 = vadd.xlane.f32.xlu1 %v11714_v56  ;;  %v3307_v33 = vsub.f32 %v13581_v43, %v11657_v58  ;;  %v9291_v49 = vpop.eup %9290  ;;  %v3549_v5 = vmul.f32 1.442695, %v3310_v19 }
 0x315   : > { %9306 = vrcp.f32 %v3680_v59  ;;  %v3682_v15 = vpop.xlane.xlu1 %3681  ;;  %v11731_v45 = vpop.eup %9292 }
 0x316   : > { %9308 = vrcp.f32 %v3682_v15  ;;  %13582 = vst [vmem:[#allocation59_spill] sm:$0xff] %v11731_v45  ;;  %v9295_v59 = vpop.eup %9294  ;;  %v3543_v58 = vmul.f32 1.442695, %v3307_v33  ;;  %v13584_v15 = vld [vmem:[#allocation26_spill] sm:$0xff] }
 0x317   : > { %9310 = vpow2.f32 %v3571_v11  ;;  %3819 = vadd.xlane.f32.xlu0 %v11706_v1  ;;  %v13583_v11 = vld [vmem:[#allocation22_spill] sm:$0xff]  ;;  %v3910_v43 = vmul.f32 %v9291_v49, %v13584_v15  ;;  %v4129_v15 = vld [vmem:[%s11260_s13 + $0x110] sm:$0xff] }
 0x318   : > { %9312 = vpow2.f32 %v3567_v31  ;;  %v3660_v57 = vpop.xlane.xlu0 %3659  ;;  %3821 = vadd.xlane.f32.xlu1 %v11719_v26  ;;  %v9297_v56 = vpop.eup %9296  ;;  %v3308_v42 = vsub.f32 %v13583_v11, %v11662_v3  ;;  %v4130_v31 = vld [vmem:[%s11260_s13 + $0x118] sm:$0xff] }
 0x319   : > { %9314 = vpow2.f32 %v3569_v30  ;;  %v3662_v44 = vpop.xlane.xlu1 %3661  ;;  %v13585_v30 = vld [vmem:[#allocation25_spill] sm:$0xff] }
 0x31a   : > { %9316 = vpow2.f32 %v3573_v35  ;;  %v3908_v26 = vmul.f32 %v9295_v59, %v13585_v30  ;;  %v13586_v35 = vld [vmem:[#allocation28_spill] sm:$0xff]  ;;  %v13587_v11 = vld [vmem:[#allocation29_spill] sm:$0xff]  ;;  %v3942_v59 = vmul.f32 %v9297_v56, %v13589_v16  ;;  %v4258_v30 = vmul.f32 %v4130_v31, %v3910_v43  ;;  %v13592_v56 = vld [vmem:[#allocation31_spill] sm:$0xff] }
 0x31b   : > { %v9299_v1 = vpop.eup %9298  ;;  %9318 = vpow2.f32 %v3547_v20  ;;  %3795 = vadd.xlane.f32.xlu0 %v11724_v10  ;;  %v4143_v31 = vld [vmem:[%s11260_s13 + $0x180] sm:$0xff] }
 0x31c   : > { %v9301_v19 = vpop.eup %9300  ;;  %9320 = vpow2.f32 %v3549_v5  ;;  %v3692_v60 = vpop.xlane.xlu0 %3691  ;;  %3797 = vadd.xlane.f32.xlu1 %v11726_v32  ;;  %v3904_v33 = vmul.f32 %v9299_v1, %v13586_v35  ;;  %v3545_v5 = vmul.f32 1.442695, %v3308_v42  ;;  %v13590_v1 = vld [vmem:[#allocation23_spill] sm:$0xff]  ;;  %v4257_v16 = vmul.f32 %v4129_v15, %v3908_v26 }
 0x31d   : > { %v9303_v3 = vpop.eup %9302  ;;  %9322 = vrcp.f32 %v3662_v44  ;;  %v3694_v49 = vpop.xlane.xlu1 %3693  ;;  %v3906_v20 = vmul.f32 %v9301_v19, %v13587_v11  ;;  %v3323_v35 = vsub.f32 %v13590_v1, %v11675_v27  ;;  %v4146_v19 = vld [vmem:[%s11260_s13 + $0x198] sm:$0xff]  ;;  %v4144_v27 = vld [vmem:[%s11260_s13 + $0x188] sm:$0xff]  ;;  %v13594_v1 = vld [vmem:[#allocation32_spill] sm:$0xff] }
 0x31e   : > { %v11746_v10 = vpop.eup %9304  ;;  %9324 = vpow2.f32 %v3543_v58  ;;  %v4255_v44 = vmul.f32 %v4127_v9, %v3904_v33  ;;  %v3940_v58 = vmul.f32 %v9303_v3, %v13591_v38  ;;  %v13593_v9 = vld [vmem:[#allocation24_spill] sm:$0xff]  ;;  %v4274_v26 = vmul.f32 %v4146_v19, %v3942_v59  ;;  %v8967_v15 = vld [vmem:[%s10655_s12 + $0x108] sm:$0xff]  }
 0x31f   : > { %13588 = vst [vmem:[#allocation60_spill] sm:$0xff] %v11746_v10  ;;  %v9307_v32 = vpop.eup %9306  ;;  %9326 = vrcp.f32 %v3660_v57  ;;  %3791 = vadd.xlane.f32.xlu0 %v11731_v45  ;;  %v4256_v51 = vmul.f32 %v4128_v25, %v3906_v20  ;;  %v3324_v25 = vsub.f32 %v13593_v9, %v11678_v39  ;;  %v4145_v3 = vld [vmem:[%s11260_s13 + $0x190] sm:$0xff]  ;;  %v3575_v59 = vmul.f32 1.442695, %v3323_v35  ;;  %v8970_v35 = vld [vmem:[%s10655_s12 + $0x148] sm:$0xff]  }
 0x320   : > { %v9309_v11 = vpop.eup %9308  ;;  %9328 = vrcp.f32 %v3694_v49  ;;  %v3656_v42 = vpop.xlane.xlu0 %3655  ;;  %3793 = vadd.xlane.f32.xlu1 %v11746_v10  ;;  %v3936_v43 = vmul.f32 %v9307_v32, %v13592_v56  ;;  %v4368_v10 = vpack.c.bf16 %v4258_v30, %v4257_v16  ;;  %v13595_v56 = vld [vmem:[#allocation133_spill] sm:$0xff] }
 0x321   : > { %v11758_v57 = vpop.eup %9310  ;;  %9330 = vrcp.f32 %v3656_v42  ;;  %v3658_v33 = vpop.xlane.xlu1 %3657  ;;  %v4367_v20 = vpack.c.bf16 %v4256_v51, %v4255_v44  ;;  %v3938_v38 = vmul.f32 %v9309_v11, %v13594_v1  ;;  %v3325_v45 = vsub.f32 %v13595_v56, %v11641_v47  ;;  %v13596_v11 = vld [vmem:[#allocation20_spill] sm:$0xff]  ;;  %v4134_v56 = vld [vmem:[%s11260_s13 + $0x138] sm:$0xff] }
 0x322   : > { %v11764_v49 = vpop.eup %9312  ;;  %9332 = vrcp.f32 %v3658_v33  ;;  %v4271_v39 = vmul.f32 %v4143_v31, %v3936_v43  ;;  %v3326_v42 = vsub.f32 %v13596_v11, %v11646_v55  ;;  %v4273_v47 = vmul.f32 %v4145_v3, %v3940_v58  ;;  %v8972_v3 = vld [vmem:[%s10655_s12 + $0x150] sm:$0xff]   ;;  %v4131_v11 = vld [vmem:[%s11260_s13 + $0x120] sm:$0xff] }
 0x323   : > { %v11767_v32 = vpop.eup %9314  ;;  %9334 = vrcp.f32 %v3692_v60  ;;  %3823 = vadd.xlane.f32.xlu0 %v11764_v49  ;;  %8422 = vmatprep.mubr.bf16.mxu0 %v4367_v20  ;;  %v4272_v51 = vmul.f32 %v4144_v27, %v3938_v38  ;;  %v3577_v19 = vmul.f32 1.442695, %v3324_v25  ;;  %v3579_v9 = vmul.f32 1.442695, %v3325_v45  ;;  %v13599_v20 = vld [vmem:[#allocation34_spill] sm:$0xff]  ;;  %v8971_v38 = vld [vmem:[%s10655_s12 + $0x118] sm:$0xff]  }
 0x324   : > { %v11772_v44 = vpop.eup %9316  ;;  %9336 = vpow2.f32 %v3545_v5  ;;  %v3688_v30 = vpop.xlane.xlu0 %3687  ;;  %3825 = vadd.xlane.f32.xlu1 %v11767_v32  ;;  %8423 = vmatmul.mubr.bf16.vlgmr.msra.gmra.mrb[80].mxu0 %v4368_v10  ;;  %v4376_v55 = vpack.c.bf16 %v4274_v26, %v4273_v47  ;;  %v8969_v5 = vld [vmem:[%s10655_s12 + $0x110] sm:$0xff]   ;;  %v3581_v58 = vmul.f32 1.442695, %v3326_v42  ;;  %v4132_v42 = vld [vmem:[%s11260_s13 + $0x128] sm:$0xff] }
 0x325   : > { %v11777_v60 = vpop.eup %9318  ;;  %9338 = vrcp.f32 %v3688_v30  ;;  %v3690_v16 = vpop.xlane.xlu1 %3689  ;;  %v4375_v43 = vpack.c.bf16 %v4272_v51, %v4271_v39  ;;  %8471 = vmatpush3.bf16.msra.mxu0 %v11435_v7 }
 0x326   : > { %13597 = vst [vmem:[#allocation61_spill] sm:$0xff] %v11777_v60  ;;  %v11780_v31 = vpop.eup %9320  ;;  %9340 = vrcp.f32 %v3690_v16  ;;  %8472 = vmatprep.subr.bf16.mxu0 %v8967_v15  ;;  %v13602_v16 = vld [vmem:[#allocation38_spill] sm:$0xff] }
 0x327   : > { %v9323_v27 = vpop.eup %9322  ;;  %3827 = vadd.xlane.f32.xlu0 %v11758_v57  ;;  %8454 = vmatprep.mubr.bf16.mxu1 %v4375_v43  ;;  %9342 = vpow2.f32 %v3575_v59  ;;  %v13601_v59 = vld [vmem:[#allocation33_spill] sm:$0xff] }
 0x328   : > { %v11785_v10 = vpop.eup %9324  ;;  %v3668_v25 = vpop.xlane.xlu0 %3667  ;;  %3829 = vadd.xlane.f32.xlu1 %v11772_v44  ;;  %8455 = vmatmul.mubr.bf16.vlgmr.msra.gmra.mrb[80].mxu1 %v4376_v55  ;;  %9344 = vpow2.f32 %v3577_v19  ;;  %v3918_v1 = vmul.f32 %v9323_v27, %v13599_v20  ;;  %v4133_v55 = vld [vmem:[%s11260_s13 + $0x130] sm:$0xff] }
 0x329   : > { %13598 = vst [vmem:[#allocation94_spill] sm:$0xff] %v11785_v10  ;;  %v9327_v7 = vpop.eup %9326  ;;  %v3670_v33 = vpop.xlane.xlu1 %3669  ;;  %8473 = vmatpush3.bf16.msra.mxu0 %v8967_v15  ;;  %8503 = vmatpush3.bf16.msra.mxu1 %v11453_v34  ;;  %9346 = vpow2.f32 %v3579_v9  ;;  %v13600_v34 = vld [vmem:[#allocation37_spill] sm:$0xff] }
 0x32a   : > { %v9329_v45 = vpop.eup %9328  ;;  %8474 = vmatprep.subr.bf16.mxu0 %v8969_v5  ;;  %8504 = vmatprep.subr.bf16.mxu1 %v8970_v35  ;;  %9348 = vpow2.f32 %v3581_v58  ;;  %v3916_v30 = vmul.f32 %v9327_v7, %v13601_v59  ;;  %v4262_v9 = vmul.f32 %v4134_v56, %v3918_v1  ;;  %v13604_v58 = vld [vmem:[#allocation36_spill] sm:$0xff]  ;;  %v8974_v7 = vld [vmem:[%s10655_s12 + $0x158] sm:$0xff]   ;;  %v13605_v1 = vld [vmem:[#allocation39_spill] sm:$0xff] }
 0x32b   : > { %v9331_v26 = vpop.eup %9330  ;;  %3803 = vadd.xlane.f32.xlu0 %v11777_v60  ;;  %9350 = vrcp.f32 %v3670_v33  ;;  %v3950_v20 = vmul.f32 %v9329_v45, %v13604_v58  ;;  %v4148_v58 = vld [vmem:[%s11260_s13 + $0x1a8] sm:$0xff] }
 0x32c   : > { %v9333_v39 = vpop.eup %9332  ;;  %v3700_v15 = vpop.xlane.xlu0 %3699  ;;  %3805 = vadd.xlane.f32.xlu1 %v11780_v31  ;;  %v3912_v51 = vmul.f32 %v9331_v26, %v13600_v34  ;;  %v8973_v26 = vld [vmem:[%s10655_s12 + $0x120] sm:$0xff]   ;;  %9352 = vrcp.f32 %v3668_v25  ;;  %v4261_v45 = vmul.f32 %v4133_v55, %v3916_v30  ;;  %v13606_v60 = vld [vmem:[#allocation35_spill] sm:$0xff] }
 0x32d   : > { %v9335_v47 = vpop.eup %9334  ;;  %v3702_v19 = vpop.xlane.xlu1 %3701  ;;  %v3914_v43 = vmul.f32 %v9333_v39, %v13602_v16  ;;  %8475 = vmatpush3.bf16.msra.mxu0 %v8969_v5  ;;  %8505 = vmatpush3.bf16.msra.mxu1 %v8970_v35  ;;  %v4150_v5 = vld [vmem:[%s11260_s13 + $0x1b8] sm:$0xff]  ;;  %v4147_v16 = vld [vmem:[%s11260_s13 + $0x1a0] sm:$0xff] }
 0x32e   : > { %v11801_v27 = vpop.eup %9336  ;;  %8476 = vmatprep.subr.bf16.mxu0 %v8971_v38  ;;  %8506 = vmatprep.subr.bf16.mxu1 %v8972_v3  ;;  %v4259_v33 = vmul.f32 %v4131_v11, %v3912_v51  ;;  %9354 = vrcp.f32 %v3702_v19  ;;  %v3948_v25 = vmul.f32 %v9335_v47, %v13606_v60  ;;  %v13607_v11 = vld [vmem:[#allocation40_spill] sm:$0xff]  ;;  %v4370_v30 = vpack.c.bf16 %v4262_v9, %v4261_v45 }
 0x32f   : > { %13603 = vst [vmem:[#allocation15_spill] sm:$0xff] %v11801_v27  ;;  %v9339_v34 = vpop.eup %9338  ;;  %3799 = vadd.xlane.f32.xlu0 %v11785_v10  ;;  %v4260_v39 = vmul.f32 %v4132_v42, %v3914_v43  ;;  %v4149_v43 = vld [vmem:[%s11260_s13 + $0x1b0] sm:$0xff]  ;;  %v4278_v55 = vmul.f32 %v4150_v5, %v3950_v20  ;;  %v8978_v5 = vld [vmem:[%s10655_s12 + $0x168] sm:$0xff]  }
 0x330   : > { %v9341_v35 = vpop.eup %9340  ;;  %v3664_v59 = vpop.xlane.xlu0 %3663  ;;  %3801 = vadd.xlane.f32.xlu1 %v11801_v27  ;;  %v3944_v56 = vmul.f32 %v9339_v34, %v13605_v1  ;;  %v8975_v34 = vld [vmem:[%s10655_s12 + $0x128] sm:$0xff]   ;;  %v8976_v1 = vld [vmem:[%s10655_s12 + $0x160] sm:$0xff]  }
 0x331   : > { %9356 = vrcp.f32 %v3664_v59  ;;  %v3666_v10 = vpop.xlane.xlu1 %3665  ;;  %v4369_v51 = vpack.c.bf16 %v4260_v39, %v4259_v33  ;;  %v3946_v42 = vmul.f32 %v9341_v35, %v13607_v11  ;;  %8477 = vmatpush3.bf16.msra.mxu0 %v8971_v38  ;;  %8507 = vmatpush3.bf16.msra.mxu1 %v8972_v3  ;;  %v11815_v19 = vpop.eup %9342  ;;  %v8977_v39 = vld [vmem:[%s10655_s12 + $0x130] sm:$0xff]   ;;  %v4138_v11 = vld [vmem:[%s11260_s13 + $0x158] sm:$0xff] }
 0x332   : > { %9358 = vrcp.f32 %v3666_v10  ;;  %8478 = vmatprep.subr.bf16.mxu0 %v8973_v26  ;;  %8508 = vmatprep.subr.bf16.mxu1 %v8974_v7  ;;  %v11819_v27 = vpop.eup %9344  ;;  %v4275_v60 = vmul.f32 %v4147_v16, %v3944_v56  ;;  %v4277_v10 = vmul.f32 %v4149_v43, %v3948_v25  ;;  %v13611_v56 = vld [vmem:[#allocation41_spill] sm:$0xff]  ;;  %v8980_v25 = vld [vmem:[%s10655_s12 + $0x170] sm:$0xff]  }
 0x333   : > { %13608 = vst [vmem:[#allocation10_spill] sm:$0xff] %v11819_v27  ;;  %9360 = vrcp.f32 %v3700_v15  ;;  %3831 = vadd.xlane.f32.xlu0 %v11815_v19  ;;  %8426 = vmatprep.mubr.bf16.mxu0 %v4369_v51  ;;  %v4276_v47 = vmul.f32 %v4148_v58, %v3946_v42  ;;  %v11823_v3 = vpop.eup %9346  ;;  %v8979_v58 = vld [vmem:[%s10655_s12 + $0x138] sm:$0xff]  }
 0x334   : > { %v3696_v38 = vpop.xlane.xlu0 %3695  ;;  %3833 = vadd.xlane.f32.xlu1 %v11819_v27  ;;  %8427 = vmatmul.mubr.bf16.gmra.mrb[84].mxu0 %v4370_v30  ;;  %13609 = vst [vmem:[#allocation14_spill] sm:$0xff] %v11823_v3  ;;  %v11825_v15 = vpop.eup %9348  ;;  %v4378_v33 = vpack.c.bf16 %v4278_v55, %v4277_v10  ;;  %v4135_v55 = vld [vmem:[%s11260_s13 + $0x140] sm:$0xff]  ;;  %v4153_v27 = vld [vmem:[%s11260_s13 + $0x1d0] sm:$0xff] }
 0x335   : > { %9362 = vrcp.f32 %v3696_v38  ;;  %v3698_v9 = vpop.xlane.xlu1 %3697  ;;  %v4377_v20 = vpack.c.bf16 %v4276_v47, %v4275_v60  ;;  %8479 = vmatpush3.bf16.msra.mxu0 %v8973_v26  ;;  %8509 = vmatpush3.bf16.msra.mxu1 %v8974_v7  ;;  %13610 = vst [vmem:[#allocation12_spill] sm:$0xff] %v11825_v15  ;;  %v9351_v35 = vpop.eup %9350  ;;  %v4136_v60 = vld [vmem:[%s11260_s13 + $0x148] sm:$0xff] }
 0x336   : > { %9364 = vrcp.f32 %v3698_v9  ;;  %8480 = vmatprep.subr.bf16.mxu0 %v8975_v34  ;;  %8510 = vmatprep.subr.bf16.mxu1 %v8976_v1  ;;  %v9353_v26 = vpop.eup %9352  ;;  %v3926_v16 = vmul.f32 %v9351_v35, %v13611_v56  ;;  %v4137_v9 = vld [vmem:[%s11260_s13 + $0x150] sm:$0xff]  ;;  %v11844_v56 = vld [vmem:[%s10655_s12 + $0x180] sm:$0xff]  }
 0x337   : > { %3835 = vadd.xlane.f32.xlu0 %v11823_v3  ;;  %8458 = vmatprep.mubr.bf16.mxu1 %v4377_v20 }
 0x338   : > { %v3676_v59 = vpop.xlane.xlu0 %3675  ;;  %3837 = vadd.xlane.f32.xlu1 %v11825_v15  ;;  %8459 = vmatmul.mubr.bf16.gmra.mrb[84].mxu1 %v4378_v33  ;;  %v9355_v45 = vpop.eup %9354  ;;  %v4266_v20 = vmul.f32 %v4138_v11, %v3926_v16  ;;  %v13613_v33 = vld [vmem:[#allocation105_spill] sm:$0xff]  ;;  %v4152_v11 = vld [vmem:[%s11260_s13 + $0x1c8] sm:$0xff] }
 0x339   : > { %v3678_v7 = vpop.xlane.xlu1 %3677  ;;  %8481 = vmatpush3.bf16.msra.mxu0 %v8975_v34  ;;  %8511 = vmatpush3.bf16.msra.mxu1 %v8976_v1  ;;  %v13612_v34 = vld [vmem:[#allocation101_spill] sm:$0xff]  ;;  %v3958_v35 = vmul.f32 %v9355_v45, %v13613_v33  ;;  %v4151_v45 = vld [vmem:[%s11260_s13 + $0x1c0] sm:$0xff] }
 0x33a   : > { %8482 = vmatprep.subr.bf16.mxu0 %v8977_v39  ;;  %8512 = vmatprep.subr.bf16.mxu1 %v8978_v5  ;;  %v3924_v1 = vmul.f32 %v9353_v26, %v13612_v34  ;;  %9366 = vrcp.f32 %v3678_v7  ;;  %v4154_v34 = vld [vmem:[%s11260_s13 + $0x1d8] sm:$0xff] }
 0x33b   : > { %v9357_v51 = vpop.eup %9356  ;;  %9368 = vrcp.f32 %v3676_v59 }
 0x33c   : > { %v9359_v42 = vpop.eup %9358  ;;  %v3708_v43 = vpop.xlane.xlu0 %3707  ;;  %v3920_v30 = vmul.f32 %v9357_v51, %v11285_v41  ;;  %v8981_v41 = vld [vmem:[%s10655_s12 + $0x178] sm:$0xff]  }
 0x33d   : > { %v9361_v47 = vpop.eup %9360  ;;  %v3710_v38 = vpop.xlane.xlu1 %3709  ;;  %v3922_v10 = vmul.f32 %v9359_v42, %v11291_v14  ;;  %8483 = vmatpush3.bf16.msra.mxu0 %v8977_v39  ;;  %8513 = vmatpush3.bf16.msra.mxu1 %v8978_v5  ;;  %v4265_v5 = vmul.f32 %v4137_v9, %v3924_v1  ;;  %v13614_v42 = vld [vmem:[#allocation42_spill] sm:$0xff] }
 0x33e   : > { %8484 = vmatprep.subr.bf16.mxu0 %v8979_v58  ;;  %8514 = vmatprep.subr.bf16.mxu1 %v8980_v25  ;;  %v4263_v7 = vmul.f32 %v4135_v55, %v3920_v30  ;;  %9370 = vrcp.f32 %v3710_v38  ;;  %v3956_v33 = vmul.f32 %v9361_v47, %v13614_v42  ;;  %v4282_v55 = vmul.f32 %v4154_v34, %v3958_v35  ;;  %v4142_v35 = vld [vmem:[%s11260_s13 + $0x178] sm:$0xff]  ;;  %v4140_v34 = vld [vmem:[%s11260_s13 + $0x168] sm:$0xff] }
 0x33f   : > { %v9363_v26 = vpop.eup %9362  ;;  %v4264_v51 = vmul.f32 %v4136_v60, %v3922_v10  ;;  %v4372_v30 = vpack.c.bf16 %v4266_v20, %v4265_v5 }
 0x340   : > { %v9365_v14 = vpop.eup %9364  ;;  %v3672_v39 = vpop.xlane.xlu0 %3671  ;;  %v3952_v16 = vmul.f32 %v9363_v26, %v11296_v52  ;;  %v11855_v52 = vld [vmem:[%s10655_s12 + $0x1c0] sm:$0xff]   ;;  %v4281_v38 = vmul.f32 %v4153_v27, %v3956_v33 }
 0x341   : > { %9372 = vrcp.f32 %v3672_v39  ;;  %v3674_v15 = vpop.xlane.xlu1 %3673  ;;  %v4371_v3 = vpack.c.bf16 %v4264_v51, %v4263_v7  ;;  %v3954_v59 = vmul.f32 %v9365_v14, %v11301_v46  ;;  %8485 = vmatpush3.bf16.msra.mxu0 %v8979_v58  ;;  %8515 = vmatpush3.bf16.msra.mxu1 %v8980_v25  ;;  %v4139_v51 = vld [vmem:[%s11260_s13 + $0x160] sm:$0xff] }
 0x342   : > { %9374 = vrcp.f32 %v3674_v15  ;;  %8516 = vmatprep.subr.bf16.mxu1 %v8981_v41  ;;  %8534 = vmatprep.subr.bf16.mxu0 %v11844_v56  ;;  %v4279_v60 = vmul.f32 %v4151_v45, %v3952_v16  ;;  %v4380_v15 = vpack.c.bf16 %v4282_v55, %v4281_v38  ;;  %v4141_v45 = vld [vmem:[%s11260_s13 + $0x170] sm:$0xff] }
 0x343   : > { %9376 = vrcp.f32 %v3708_v43  ;;  %8430 = vmatprep.mubr.bf16.mxu0 %v4371_v3  ;;  %v4280_v1 = vmul.f32 %v4152_v11, %v3954_v59  ;;  %v4158_v59 = vld [vmem:[%s11260_s13 + $0x1f8] sm:$0xff] }
 0x344   : > { %v3704_v47 = vpop.xlane.xlu0 %3703  ;;  %8431 = vmatmul.mubr.bf16.gmra.mrb[88].mxu0 %v4372_v30  ;;  %v9367_v25 = vpop.eup %9366 }
 0x345   : > { %9378 = vrcp.f32 %v3704_v47  ;;  %v3706_v46 = vpop.xlane.xlu1 %3705  ;;  %v4379_v58 = vpack.c.bf16 %v4280_v1, %v4279_v60  ;;  %8517 = vmatpush3.bf16.msra.mxu1 %v8981_v41  ;;  %v9369_v3 = vpop.eup %9368  ;;  %v3934_v27 = vmul.f32 %v9367_v25, %v11309_v48  ;;  %v4155_v1 = vld [vmem:[%s11260_s13 + $0x1e0] sm:$0xff]  ;;  %v4156_v47 = vld [vmem:[%s11260_s13 + $0x1e8] sm:$0xff] }
 0x346   : > { %9380 = vrcp.f32 %v3706_v46  ;;  %8566 = vmatprep.subr.bf16.mxu1 %v11855_v52  ;;  %v3932_v14 = vmul.f32 %v9369_v3, %v11306_v23 }
 0x347   : > { %8462 = vmatprep.mubr.bf16.mxu1 %v4379_v58  ;;  %v4270_v48 = vmul.f32 %v4142_v35, %v3934_v27  ;;  %v4157_v58 = vld [vmem:[%s11260_s13 + $0x1f0] sm:$0xff] }
 0x348   : > { %v3716_v43 = vpop.xlane.xlu0 %3715  ;;  %8463 = vmatmul.mubr.bf16.gmra.mrb[88].mxu1 %v4380_v15  ;;  %v9371_v9 = vpop.eup %9370  ;;  %v4269_v55 = vmul.f32 %v4141_v45, %v3932_v14  ;;  %v4159_v45 = vld [vmem:[%s11260_s13 + $0x200] sm:$0xff] }
 0x349   : > { %v3718_v10 = vpop.xlane.xlu1 %3717  ;;  %v3966_v11 = vmul.f32 %v9371_v9, %v11336_v4 }
 0x34a   : > { %9382 = vrcp.f32 %v3718_v10  ;;  %v4374_v15 = vpack.c.bf16 %v4270_v48, %v4269_v55  ;;  %v4160_v48 = vld [vmem:[%s11260_s13 + $0x208] sm:$0xff]  ;;  %v4178_v55 = vld [vmem:[%s11260_s13 + $0x298] sm:$0xff] }
 0x34b   : > { %v9373_v20 = vpop.eup %9372  ;;  %9384 = vrcp.f32 %v3716_v43  ;;  %v4286_v25 = vmul.f32 %v4158_v59, %v3966_v11 }
 0x34c   : > { %v9375_v26 = vpop.eup %9374  ;;  %v3748_v41 = vpop.xlane.xlu0 %3747  ;;  %v3928_v7 = vmul.f32 %v9373_v20, %v11352_v21 }
 0x34d   : > { %v9377_v39 = vpop.eup %9376  ;;  %v3750_v5 = vpop.xlane.xlu1 %3749  ;;  %v3930_v16 = vmul.f32 %v9375_v26, %v11358_v17 }
 0x34e   : > { %v4267_v33 = vmul.f32 %v4139_v51, %v3928_v7  ;;  %9386 = vrcp.f32 %v3750_v5  ;;  %v3964_v17 = vmul.f32 %v9377_v39, %v11316_v13 }
 0x34f   : > { %v9379_v42 = vpop.eup %9378  ;;  %v4268_v21 = vmul.f32 %v4140_v34, %v3930_v16  ;;  %v4162_v34 = vld [vmem:[%s11260_s13 + $0x218] sm:$0xff] }
 0x350   : > { %v9381_v30 = vpop.eup %9380  ;;  %v3712_v23 = vpop.xlane.xlu0 %3711  ;;  %v3960_v60 = vmul.f32 %v9379_v42, %v11364_v54  ;;  %v4285_v54 = vmul.f32 %v4157_v58, %v3964_v17 }
 0x351   : > { %9388 = vrcp.f32 %v3712_v23  ;;  %v3714_v38 = vpop.xlane.xlu1 %3713  ;;  %v4373_v46 = vpack.c.bf16 %v4268_v21, %v4267_v33  ;;  %v3962_v4 = vmul.f32 %v9381_v30, %v11369_v61  ;;  %v4161_v21 = vld [vmem:[%s11260_s13 + $0x210] sm:$0xff] }
 0x352   : > { %9390 = vrcp.f32 %v3714_v38  ;;  %v4283_v43 = vmul.f32 %v4155_v1, %v3960_v60  ;;  %v4382_v27 = vpack.c.bf16 %v4286_v25, %v4285_v54  ;;  %v13615_v60 = vld [vmem:[#allocation43_spill] sm:$0xff]  ;;  %v13616_v38 = vld [vmem:[#allocation44_spill] sm:$0xff] }
 0x353   : > { %9392 = vrcp.f32 %v3748_v41  ;;  %8434 = vmatprep.mubr.bf16.mxu0 %v4373_v46  ;;  %v4284_v3 = vmul.f32 %v4156_v47, %v3962_v4  ;;  %v4175_v46 = vld [vmem:[%s11260_s13 + $0x280] sm:$0xff]  ;;  %v4176_v4 = vld [vmem:[%s11260_s13 + $0x288] sm:$0xff] }
 0x354   : > { %v3744_v10 = vpop.xlane.xlu0 %3743  ;;  %8435 = vmatmul.mubr.bf16.gmra.mrb[92].mxu0 %v4374_v15  ;;  %v9383_v61 = vpop.eup %9382  ;;  %v13617_v15 = vld [vmem:[#allocation45_spill] sm:$0xff]  ;;  %v8983_v54 = vld [vmem:[%s10655_s12 + $0x188] sm:$0xff]  }
 0x355   : > { %9394 = vrcp.f32 %v3744_v10  ;;  %v3746_v9 = vpop.xlane.xlu1 %3745  ;;  %v4381_v13 = vpack.c.bf16 %v4284_v3, %v4283_v43  ;;  %v9385_v35 = vpop.eup %9384  ;;  %v3974_v7 = vmul.f32 %v9383_v61, %v11376_v63  ;;  %v4177_v43 = vld [vmem:[%s11260_s13 + $0x290] sm:$0xff] }
 0x356   : > { %9396 = vrcp.f32 %v3746_v9  ;;  %v3972_v39 = vmul.f32 %v9385_v35, %v11374_v8 }
 0x357   : > { %8466 = vmatprep.mubr.bf16.mxu1 %v4381_v13  ;;  %v4290_v59 = vmul.f32 %v4162_v34, %v3974_v7  ;;  %v8986_v7 = vld [vmem:[%s10655_s12 + $0x1c8] sm:$0xff]  }
 0x358   : > { %v3724_v20 = vpop.xlane.xlu0 %3723  ;;  %8467 = vmatmul.mubr.bf16.gmra.mrb[92].mxu1 %v4382_v27  ;;  %v9387_v41 = vpop.eup %9386  ;;  %v4289_v17 = vmul.f32 %v4161_v21, %v3972_v39 }
 0x359   : > { %v3726_v26 = vpop.xlane.xlu1 %3725  ;;  %v4006_v63 = vmul.f32 %v9387_v41, %v11401_v29  ;;  %v8985_v41 = vld [vmem:[%s10655_s12 + $0x190] sm:$0xff]  }
 0x35a   : > { %9398 = vrcp.f32 %v3726_v26  ;;  %v4384_v3 = vpack.c.bf16 %v4290_v59, %v4289_v17  ;;  %v4163_v59 = vld [vmem:[%s11260_s13 + $0x220] sm:$0xff] }
 0x35b   : > { %v9389_v51 = vpop.eup %9388  ;;  %9400 = vrcp.f32 %v3724_v20  ;;  %v4306_v10 = vmul.f32 %v4178_v55, %v4006_v63 }
 0x35c   : > { %v9391_v14 = vpop.eup %9390  ;;  %v3756_v5 = vpop.xlane.xlu0 %3755  ;;  %v3968_v16 = vmul.f32 %v9389_v51, %v11414_v2 }
 0x35d   : > { %v9393_v11 = vpop.eup %9392  ;;  %v3758_v42 = vpop.xlane.xlu1 %3757  ;;  %v3970_v33 = vmul.f32 %v9391_v14, %v11420_v62 }
 0x35e   : > { %v4287_v8 = vmul.f32 %v4159_v45, %v3968_v16  ;;  %v4004_v1 = vmul.f32 %v9393_v11, %v13615_v60  ;;  %9402 = vrcp.f32 %v3758_v42  ;;  %v8987_v45 = vld [vmem:[%s10655_s12 + $0x198] sm:$0xff]   ;;  %v4165_v60 = vld [vmem:[%s11260_s13 + $0x230] sm:$0xff] }
 0x35f   : > { %v9395_v30 = vpop.eup %9394  ;;  %v4288_v23 = vmul.f32 %v4160_v48, %v3970_v33  ;;  %v8988_v48 = vld [vmem:[%s10655_s12 + $0x1d0] sm:$0xff]   ;;  %v4166_v42 = vld [vmem:[%s11260_s13 + $0x238] sm:$0xff] }
 0x360   : > { %v9397_v2 = vpop.eup %9396  ;;  %v3720_v47 = vpop.xlane.xlu0 %3719  ;;  %v4000_v62 = vmul.f32 %v9395_v30, %v13616_v38  ;;  %v4305_v61 = vmul.f32 %v4177_v43, %v4004_v1  ;;  %v4164_v30 = vld [vmem:[%s11260_s13 + $0x228] sm:$0xff]  ;;  %v8990_v38 = vld [vmem:[%s10655_s12 + $0x1d8] sm:$0xff]   ;;  %v4179_v43 = vld [vmem:[%s11260_s13 + $0x2a0] sm:$0xff] }
 0x361   : > { %9404 = vrcp.f32 %v3720_v47  ;;  %v3722_v29 = vpop.xlane.xlu1 %3721  ;;  %v4383_v58 = vpack.c.bf16 %v4288_v23, %v4287_v8  ;;  %v4002_v25 = vmul.f32 %v9397_v2, %v13617_v15  ;;  %v13619_v8 = vld [vmem:[#allocation83_spill] sm:$0xff]  ;;  %v13620_v47 = vld [vmem:[#allocation86_spill] sm:$0xff] }
 0x362   : > { %9406 = vrcp.f32 %v3722_v29  ;;  %v4303_v9 = vmul.f32 %v4175_v46, %v4000_v62  ;;  %v4392_v26 = vpack.c.bf16 %v4306_v10, %v4305_v61  ;;  %v4182_v29 = vld [vmem:[%s11260_s13 + $0x2b8] sm:$0xff]  ;;  %v13621_v10 = vld [vmem:[#allocation82_spill] sm:$0xff]  ;;  %v4181_v61 = vld [vmem:[%s11260_s13 + $0x2b0] sm:$0xff] }
 0x363   : > { %9408 = vrcp.f32 %v3756_v5  ;;  %8486 = vmatprep.mubr.bf16.mxu0 %v4383_v58  ;;  %v4304_v13 = vmul.f32 %v4176_v4, %v4002_v25  ;;  %v13618_v5 = vld [vmem:[#allocation46_spill] sm:$0xff] }
 0x364   : > { %v3752_v27 = vpop.xlane.xlu0 %3751  ;;  %8487 = vmatmul.mubr.bf16.vlgmr.msra.gmra.mrb[96].mxu0 %v4384_v3  ;;  %v9399_v51 = vpop.eup %9398  ;;  %v4180_v3 = vld [vmem:[%s11260_s13 + $0x2a8] sm:$0xff] }
 0x365   : > { %9410 = vrcp.f32 %v3752_v27  ;;  %v3754_v20 = vpop.xlane.xlu1 %3753  ;;  %v4391_v35 = vpack.c.bf16 %v4304_v13, %v4303_v9  ;;  %8535 = vmatpush3.bf16.msra.mxu0 %v11844_v56  ;;  %v9401_v14 = vpop.eup %9400  ;;  %v3982_v16 = vmul.f32 %v9399_v51, %v13618_v5  ;;  %v8994_v5 = vld [vmem:[%s10655_s12 + $0x1e8] sm:$0xff]  }
 0x366   : > { %9412 = vrcp.f32 %v3754_v20  ;;  %8536 = vmatprep.subr.bf16.mxu0 %v8983_v54 }
 0x367   : > { %8518 = vmatprep.mubr.bf16.mxu1 %v4391_v35  ;;  %v4294_v1 = vmul.f32 %v4166_v42, %v3982_v16 }
 0x368   : > { %v3732_v34 = vpop.xlane.xlu0 %3731  ;;  %8519 = vmatmul.mubr.bf16.vlgmr.msra.gmra.mrb[96].mxu1 %v4392_v26  ;;  %v9403_v56 = vpop.eup %9402  ;;  %v8992_v26 = vld [vmem:[%s10655_s12 + $0x1e0] sm:$0xff]  }
 0x369   : > { %v3734_v39 = vpop.xlane.xlu1 %3733  ;;  %8537 = vmatpush3.bf16.msra.mxu0 %v8983_v54  ;;  %8567 = vmatpush3.bf16.msra.mxu1 %v11855_v52  ;;  %v3980_v52 = vmul.f32 %v9401_v14, %v13619_v8  ;;  %v4014_v17 = vmul.f32 %v9403_v56, %v13620_v47  ;;  %v8993_v56 = vld [vmem:[%s10655_s12 + $0x1b0] sm:$0xff]   ;;  %v4170_v8 = vld [vmem:[%s11260_s13 + $0x258] sm:$0xff] }
 0x36a   : > { %8538 = vmatprep.subr.bf16.mxu0 %v8985_v41  ;;  %8568 = vmatprep.subr.bf16.mxu1 %v8986_v7  ;;  %9414 = vrcp.f32 %v3734_v39 }
 0x36b   : > { %v9405_v11 = vpop.eup %9404  ;;  %9416 = vrcp.f32 %v3732_v34  ;;  %v4293_v15 = vmul.f32 %v4165_v60, %v3980_v52  ;;  %v4310_v35 = vmul.f32 %v4182_v29, %v4014_v17  ;;  %v8995_v52 = vld [vmem:[%s10655_s12 + $0x1b8] sm:$0xff]   ;;  %v6238_v60 = vld [vmem:[%s13017_s7 + $0x80] sm:$0xff] }
 0x36c   : > { %v9407_v33 = vpop.eup %9406  ;;  %v3764_v21 = vpop.xlane.xlu0 %3763  ;;  %v3976_v63 = vmul.f32 %v9405_v11, %v11494_v24  ;;  %v8989_v24 = vld [vmem:[%s10655_s12 + $0x1a0] sm:$0xff]  }
 0x36d   : > { %v9409_v23 = vpop.eup %9408  ;;  %v3766_v55 = vpop.xlane.xlu1 %3765  ;;  %v3978_v2 = vmul.f32 %v9407_v33, %v11496_v36  ;;  %8539 = vmatpush3.bf16.msra.mxu0 %v8985_v41  ;;  %8569 = vmatpush3.bf16.msra.mxu1 %v8986_v7  ;;  %v4386_v20 = vpack.c.bf16 %v4294_v1, %v4293_v15  ;;  %v6239_v1 = vld [vmem:[%s13017_s7 + $0x88] sm:$0xff]  ;;  %v4169_v15 = vld [vmem:[%s11260_s13 + $0x250] sm:$0xff] }
 0x36e   : > { %8540 = vmatprep.subr.bf16.mxu0 %v8987_v45  ;;  %8570 = vmatprep.subr.bf16.mxu1 %v8988_v48  ;;  %v4291_v46 = vmul.f32 %v4163_v59, %v3976_v63  ;;  %9418 = vrcp.f32 %v3766_v55  ;;  %v4012_v54 = vmul.f32 %v9409_v23, %v13621_v10 }
 0x36f   : > { %v9411_v62 = vpop.eup %9410  ;;  %v4292_v4 = vmul.f32 %v4164_v30, %v3978_v2  ;;  %v8996_v2 = vld [vmem:[%s10655_s12 + $0x1f0] sm:$0xff]  }
 0x370   : > { %v9413_v58 = vpop.eup %9412  ;;  %v3728_v36 = vpop.xlane.xlu0 %3727  ;;  %v4008_v25 = vmul.f32 %v9411_v62, %v11508_v18  ;;  %v8991_v18 = vld [vmem:[%s10655_s12 + $0x1a8] sm:$0xff]   ;;  %v4309_v34 = vmul.f32 %v4181_v61, %v4012_v54 }
 0x371   : > { %9420 = vrcp.f32 %v3728_v36  ;;  %v3730_v9 = vpop.xlane.xlu1 %3729  ;;  %v4385_v13 = vpack.c.bf16 %v4292_v4, %v4291_v46  ;;  %v4010_v27 = vmul.f32 %v9413_v58, %v11510_v6  ;;  %8541 = vmatpush3.bf16.msra.mxu0 %v8987_v45  ;;  %8571 = vmatpush3.bf16.msra.mxu1 %v8988_v48  ;;  %v4168_v62 = vld [vmem:[%s11260_s13 + $0x248] sm:$0xff] }
 0x372   : > { %9422 = vrcp.f32 %v3730_v9  ;;  %8542 = vmatprep.subr.bf16.mxu0 %v8989_v24  ;;  %8572 = vmatprep.subr.bf16.mxu1 %v8990_v38  ;;  %v4307_v41 = vmul.f32 %v4179_v43, %v4008_v25  ;;  %v4394_v39 = vpack.c.bf16 %v4310_v35, %v4309_v34  ;;  %v4183_v9 = vld [vmem:[%s11260_s13 + $0x2c0] sm:$0xff] }
 0x373   : > { %9424 = vrcp.f32 %v3764_v21  ;;  %8490 = vmatprep.mubr.bf16.mxu0 %v4385_v13  ;;  %v4308_v7 = vmul.f32 %v4180_v3, %v4010_v27  ;;  %v4186_v13 = vld [vmem:[%s11260_s13 + $0x2d8] sm:$0xff] }
 0x374   : > { %v3760_v51 = vpop.xlane.xlu0 %3759  ;;  %8491 = vmatmul.mubr.bf16.gmra.mrb[100].mxu0 %v4386_v20  ;;  %v9415_v16 = vpop.eup %9414 }
 0x375   : > { %9426 = vrcp.f32 %v3760_v51  ;;  %v3762_v6 = vpop.xlane.xlu1 %3761  ;;  %v4393_v14 = vpack.c.bf16 %v4308_v7, %v4307_v41  ;;  %8543 = vmatpush3.bf16.msra.mxu0 %v8989_v24  ;;  %8573 = vmatpush3.bf16.msra.mxu1 %v8990_v38  ;;  %v9417_v42 = vpop.eup %9416  ;;  %v3990_v30 = vmul.f32 %v9415_v16, %v11520_v28  ;;  %v4167_v38 = vld [vmem:[%s11260_s13 + $0x240] sm:$0xff]  ;;  %v6271_v41 = vld [vmem:[%s13017_s7 + $0x188] sm:$0xff] }
 0x376   : > { %9428 = vrcp.f32 %v3762_v6  ;;  %8544 = vmatprep.subr.bf16.mxu0 %v8991_v18  ;;  %8574 = vmatprep.subr.bf16.mxu1 %v8992_v26  ;;  %v3988_v46 = vmul.f32 %v9417_v42, %v11513_v0  ;;  %v8598_v0 = vpack.c.bf16 %v6239_v1, %v6238_v60  ;;  %v4185_v6 = vld [vmem:[%s11260_s13 + $0x2d0] sm:$0xff]  ;;  %v4174_v1 = vld [vmem:[%s11260_s13 + $0x278] sm:$0xff] }
 0x377   : > { %v8360_v45 = vpop.f32.mrb[64].mxu0  ;;  %8522 = vmatprep.mubr.bf16.mxu1 %v4393_v14  ;;  %v4298_v43 = vmul.f32 %v4170_v8, %v3990_v30 }
 0x378   : > { %v3740_v48 = vpop.xlane.xlu0 %3739  ;;  %5577 = vst.msk [vmem:[#allocation2 + $0x10] sm:$0xff] %vm950_vm0, %v8360_v45  ;;  %v4497_v11 = vpop.f32.mrb[65].mxu0  ;;  %8523 = vmatmul.mubr.bf16.gmra.mrb[100].mxu1 %v4394_v39  ;;  %v4297_v20 = vmul.f32 %v4169_v15, %v3988_v46  ;;  %v4172_v46 = vld [vmem:[%s11260_s13 + $0x268] sm:$0xff] }
 0x379   : > { %5575 = vst.msk [vmem:[#allocation2] sm:$0xff] %vm950_vm0, %v4497_v11  ;;  %v8361_v33 = vpop.f32.mrb[66].mxu0  ;;  %v3742_v21 = vpop.xlane.xlu1 %3741  ;;  %8545 = vmatpush3.bf16.msra.mxu0 %v8991_v18  ;;  %8575 = vmatpush3.bf16.msra.mxu1 %v8992_v26  ;;  %v6270_v26 = vld [vmem:[%s13017_s7 + $0x180] sm:$0xff] }
 0x37a   : > { %v9419_v63 = vpop.eup %9418  ;;  %5578 = vst.msk [vmem:[#allocation2 + $0x18] sm:$0xff] %vm950_vm0, %v8361_v33  ;;  %v4500_v59 = vpop.f32.mrb[67].mxu0  ;;  %8546 = vmatprep.subr.bf16.mxu0 %v8993_v56  ;;  %8576 = vmatprep.subr.bf16.mxu1 %v8994_v5  ;;  %9430 = vrcp.f32 %v3742_v21 }
 0x37b   : > { %v9421_v23 = vpop.eup %9420  ;;  %5576 = vst.msk [vmem:[#allocation2 + $0x8] sm:$0xff] %vm950_vm0, %v4500_v59  ;;  %v8392_v55 = vpop.f32.mrb[64].mxu1  ;;  %9432 = vrcp.f32 %v3740_v48 }
 0x37c   : > { %v9423_v28 = vpop.eup %9422  ;;  %v3772_v47 = vpop.xlane.xlu0 %3771  ;;  %5611 = vrot.lane.b32.xlu1 %v8392_v55, %s13223_s24  ;;  %v3984_v24 = vmul.f32 %v9421_v23, %v11550_v40  ;;  %v4022_v40 = vmul.f32 %v9419_v63, %v11538_v53  ;;  %v4184_v53 = vld [vmem:[%s11260_s13 + $0x2c8] sm:$0xff]  ;;  %v13622_v23 = vld [vmem:[#allocation110_spill] sm:$0xff] }
 0x37d   : > { %v4642_v17 = vpop.f32.mrb[65].mxu1  ;;  %v9425_v4 = vpop.eup %9424  ;;  %v3986_v36 = vmul.f32 %v9423_v28, %v11552_v50  ;;  %8547 = vmatpush3.bf16.msra.mxu0 %v8993_v56  ;;  %8577 = vmatpush3.bf16.msra.mxu1 %v8994_v5  ;;  %v8997_v50 = vld [vmem:[%s10655_s12 + $0x1f8] sm:$0xff]   ;;  %v8630_v56 = vpack.c.bf16 %v6271_v41, %v6270_v26  ;;  %v4187_v26 = vld [vmem:[%s11260_s13 + $0x2e0] sm:$0xff]  ;;  %v4188_v41 = vld [vmem:[%s11260_s13 + $0x2e8] sm:$0xff]  ;;  %s452_s12 = sand.u32 1, %s9580_s18  }
 0x37e   : > { %v8393_v29 = vpop.f32.mrb[66].mxu1  ;;  %5607 = vrot.lane.b32.xlu0 %v4642_v17, %s13223_s24  ;;  %v3774_v58 = vpop.xlane.xlu1 %3773  ;;  %8548 = vmatprep.subr.bf16.mxu0 %v8995_v52  ;;  %v4295_v10 = vmul.f32 %v4167_v38, %v3984_v24  ;;  %v4020_v18 = vmul.f32 %v9425_v4, %v11536_v22  ;;  %v4314_v22 = vmul.f32 %v4186_v13, %v4022_v40  ;;  %v13623_v24 = vld [vmem:[#allocation84_spill] sm:$0xff]  ;;  %v13624_v4 = vld [vmem:[#allocation87_spill] sm:$0xff] }
 0x37f   : > { %v4645_v25 = vpop.f32.mrb[67].mxu1  ;;  %v9427_v3 = vpop.eup %9426  ;;  %v4296_v54 = vmul.f32 %v4168_v62, %v3986_v36  ;;  %8578 = vmatprep.subr.bf16.mxu1 %v8996_v2  ;;  %9434 = vrcp.f32 %v3774_v58  ;;  %v4171_v62 = vld [vmem:[%s11260_s13 + $0x260] sm:$0xff]  ;;  %v4173_v40 = vld [vmem:[%s11260_s13 + $0x270] sm:$0xff] }
 0x380   : > { %v9429_v27 = vpop.eup %9428  ;;  %v3736_v61 = vpop.xlane.xlu0 %3735  ;;  %v4016_v35 = vmul.f32 %v9427_v3, %v11564_v12  ;;  %v4388_v12 = vpack.c.bf16 %v4298_v43, %v4297_v20  ;;  %v4313_v16 = vmul.f32 %v4185_v6, %v4020_v18 }
 0x381   : > { %9436 = vrcp.f32 %v3736_v61  ;;  %v4387_v51 = vpack.c.bf16 %v4296_v54, %v4295_v10  ;;  %v4018_v34 = vmul.f32 %v9429_v27, %v11566_v37  ;;  %8549 = vmatpush3.bf16.msra.mxu0 %v8995_v52  ;;  %8579 = vmatpush3.bf16.msra.mxu1 %v8996_v2  ;;  %v13626_v10 = vld [vmem:[#allocation85_spill] sm:$0xff] }
 0x382   : > { %5613 = vrot.lane.b32.xlu0 %v8393_v29, %s13223_s24  ;;  %v3738_v7 = vpop.xlane.xlu1 %3737  ;;  %8599 = vmatprep.subr.bf16.mxu0 %v8598_v0  ;;  %v4311_v14 = vmul.f32 %v4183_v9, %v4016_v35  ;;  %v4396_v48 = vpack.c.bf16 %v4314_v22, %v4313_v16  ;;  %v4190_v27 = vld [vmem:[%s11260_s13 + $0x2f8] sm:$0xff] }
 0x383   : > { %9438 = vrcp.f32 %v3738_v7  ;;  %8494 = vmatprep.mubr.bf16.mxu0 %v4387_v51  ;;  %v4312_v39 = vmul.f32 %v4184_v53, %v4018_v34  ;;  %8580 = vmatprep.subr.bf16.mxu1 %v8997_v50  ;;  %v13627_v53 = vld [vmem:[#allocation48_spill] sm:$0xff]  ;;  %v13628_v7 = vld [vmem:[#allocation47_spill] sm:$0xff] }
 0x384   : > { %9440 = vrcp.f32 %v3772_v47  ;;  %v3768_v5 = vpop.xlane.xlu0 %3767  ;;  %8495 = vmatmul.mubr.bf16.gmra.mrb[104].mxu0 %v4388_v12  ;;  %v9431_v11 = vpop.eup %9430  ;;  %v13629_v12 = vld [vmem:[#allocation89_spill] sm:$0xff] }
 0x385   : > { %9442 = vrcp.f32 %v3768_v5  ;;  %v4395_v45 = vpack.c.bf16 %v4312_v39, %v4311_v14  ;;  %8581 = vmatpush3.bf16.msra.mxu1 %v8997_v50  ;;  %v9433_v63 = vpop.eup %9432  ;;  %v3998_v55 = vmul.f32 %v9431_v11, %v13622_v23  ;;  %v4189_v14 = vld [vmem:[%s11260_s13 + $0x2f0] sm:$0xff] }
 0x386   : > { %5609 = vrot.lane.b32.xlu0 %v4645_v25, %s13223_s24  ;;  %v3770_v37 = vpop.xlane.xlu1 %3769  ;;  %8631 = vmatprep.subr.bf16.mxu1 %v8630_v56  ;;  %v3996_v29 = vmul.f32 %v9433_v63, %v13624_v4  ;;  %v13625_v25 = vld [vmem:[#allocation88_spill] sm:$0xff] }
 0x387   : > { %9444 = vrcp.f32 %v3770_v37  ;;  %v8364_v42 = vpop.f32.mrb[68].mxu0  ;;  %8526 = vmatprep.mubr.bf16.mxu1 %v4395_v45  ;;  %v4302_v3 = vmul.f32 %v4174_v1, %v3998_v55  ;;  %v13631_v55 = vld [vmem:[#allocation49_spill] sm:$0xff] }
 0x388   : > { %v3780_v33 = vpop.xlane.xlu0 %3779  ;;  %5581 = vst.msk [vmem:[#allocation2 + $0x30] sm:$0xff] %vm950_vm0, %v8364_v42  ;;  %v4513_v21 = vpop.f32.mrb[69].mxu0  ;;  %8527 = vmatmul.mubr.bf16.gmra.mrb[104].mxu1 %v4396_v48  ;;  %v4301_v35 = vmul.f32 %v4173_v40, %v3996_v29  ;;  %v4193_v29 = vld [vmem:[%s11260_s13 + $0x310] sm:$0xff] }
 0x389   : > { %5579 = vst.msk [vmem:[#allocation2 + $0x20] sm:$0xff] %vm950_vm0, %v4513_v21  ;;  %v8365_v59 = vpop.f32.mrb[70].mxu0  ;;  %v9435_v8 = vpop.eup %9434  ;;  %v13630_v21 = vld [vmem:[#allocation50_spill] sm:$0xff] }
 0x38a   : > { %v3782_v30 = vpop.xlane.xlu1 %3781  ;;  %5582 = vst.msk [vmem:[#allocation2 + $0x38] sm:$0xff] %vm950_vm0, %v8365_v59  ;;  %v4516_v52 = vpop.f32.mrb[71].mxu0  ;;  %v4030_v54 = vmul.f32 %v9435_v8, %v13626_v10  ;;  %v4390_v39 = vpack.c.bf16 %v4302_v3, %v4301_v35  ;;  %v6240_v10 = vld [vmem:[%s13017_s7 + $0x90] sm:$0xff]  ;;  %v4207_v35 = vld [vmem:[%s11260_s13 + $0x380] sm:$0xff] }
 0x38b   : > { %9446 = vrcp.f32 %v3782_v30  ;;  %v9437_v2 = vpop.eup %9436  ;;  %5580 = vst.msk [vmem:[#allocation2 + $0x28] sm:$0xff] %vm950_vm0, %v4516_v52  ;;  %v8396_v60 = vpop.f32.mrb[68].mxu1  ;;  %v4194_v52 = vld [vmem:[%s11260_s13 + $0x318] sm:$0xff] }
 0x38c   : > { %9448 = vrcp.f32 %v3780_v33  ;;  %v3776_v47 = vpop.xlane.xlu0 %3775  ;;  %v4658_v17 = vpop.f32.mrb[69].mxu1  ;;  %5619 = vrot.lane.b32.xlu1 %v8396_v60, %s13223_s24  ;;  %v3992_v38 = vmul.f32 %v9437_v2, %v13623_v24  ;;  %v4318_v56 = vmul.f32 %v4190_v27, %v4030_v54  ;;  %v4192_v24 = vld [vmem:[%s11260_s13 + $0x308] sm:$0xff]  ;;  %v6241_v54 = vld [vmem:[%s13017_s7 + $0x98] sm:$0xff] }
 0x38d   : > { %v9439_v28 = vpop.eup %9438  ;;  %9450 = vrcp.f32 %v3776_v47  ;;  %v8397_v36 = vpop.f32.mrb[70].mxu1 }
 0x38e   : > { %v9441_v58 = vpop.eup %9440  ;;  %v3778_v15 = vpop.xlane.xlu1 %3777  ;;  %v3994_v43 = vmul.f32 %v9439_v28, %v13625_v25  ;;  %5621 = vrot.lane.b32.xlu0 %v8397_v36, %s13223_s24  ;;  %v4299_v13 = vmul.f32 %v4171_v62, %v3992_v38  ;;  %v13632_v28 = vld [vmem:[#allocation51_spill] sm:$0xff] }
 0x38f   : > { %9452 = vrcp.f32 %v3778_v15  ;;  %v4661_v0 = vpop.f32.mrb[71].mxu1  ;;  %v9443_v9 = vpop.eup %9442  ;;  %v4028_v51 = vmul.f32 %v9441_v58, %v13628_v7  ;;  %v6222_v15 = vld [vmem:[%s13017_s7] sm:$0xff]  ;;  %v6223_v25 = vld [vmem:[%s13017_s7 + $0x8] sm:$0xff] }
 0x390   : > { %v4300_v50 = vmul.f32 %v4172_v46, %v3994_v43  ;;  %v3808_v20 = vpop.xlane.xlu0 %3807  ;;  %5615 = vrot.lane.b32.xlu1 %v4658_v17, %s13223_s24  ;;  %v4024_v18 = vmul.f32 %v9443_v9, %v13627_v53  ;;  %v4191_v17 = vld [vmem:[%s11260_s13 + $0x300] sm:$0xff]  ;;  %v13633_v46 = vld [vmem:[#allocation52_spill] sm:$0xff]  ;;  %v4208_v53 = vld [vmem:[%s11260_s13 + $0x388] sm:$0xff] }
 0x391   : > { %v9445_v61 = vpop.eup %9444  ;;  %9454 = vrcp.f32 %v3808_v20  ;;  %v4317_v48 = vmul.f32 %v4189_v14, %v4028_v51  ;;  %v13636_v7 = vld [vmem:[#allocation91_spill] sm:$0xff]  ;;  %v6224_v14 = vld [vmem:[%s13017_s7 + $0x10] sm:$0xff] }
 0x392   : > { %v3810_v34 = vpop.xlane.xlu1 %3809  ;;  %v4389_v6 = vpack.c.bf16 %v4300_v50, %v4299_v13  ;;  %v4026_v22 = vmul.f32 %v9445_v61, %v13629_v12  ;;  %5617 = vrot.lane.b32.xlu0 %v4661_v0, %s13223_s24  ;;  %v4315_v5 = vmul.f32 %v4187_v26, %v4024_v18  ;;  %v13635_v61 = vld [vmem:[#allocation53_spill] sm:$0xff]  ;;  %s7356_s24 = sshll.u32 %s452_s12, 9 }
 0x393   : > { %9456 = vrcp.f32 %v3810_v34  ;;  %v4398_v59 = vpack.c.bf16 %v4318_v56, %v4317_v48  ;;  %v8600_v34 = vpack.c.bf16 %v6223_v25, %v6222_v15  ;;  %s12831_s25 = scalar_lea.vmem [#allocation3], %s7356_s24 }
 0x394   : > { %8498 = vmatprep.mubr.bf16.mxu0 %v4389_v6  ;;  %v4316_v16 = vmul.f32 %v4188_v41, %v4026_v22  ;;  %v3812_v45 = vpop.xlane.xlu0 %3811  ;;  %v8602_v22 = vpack.c.bf16 %v6241_v54, %v6240_v10  ;;  %v12063_v10 = vld [vmem:[%s13017_s7 + $0x1a0] sm:$0xff]  ;;  %v13639_v54 = vld [vmem:[#allocation7_spill] sm:$0xff] }
 0x395   : > { %v9447_v37 = vpop.eup %9446  ;;  %8499 = vmatmul.mubr.bf16.gmra.mrb[108].mxu0 %v4390_v39  ;;  %9458 = vrcp.f32 %v3812_v45  ;;  %v6225_v39 = vld [vmem:[%s13017_s7 + $0x18] sm:$0xff]  ;;  %v6243_v45 = vld [vmem:[%s13017_s7 + $0xa8] sm:$0xff] }
 0x396   : > { %v9449_v11 = vpop.eup %9448  ;;  %v3814_v42 = vpop.xlane.xlu1 %3813  ;;  %v4397_v33 = vpack.c.bf16 %v4316_v16, %v4315_v5  ;;  %v4038_v63 = vmul.f32 %v9447_v37, %v13630_v21  ;;  %v6242_v37 = vld [vmem:[%s13017_s7 + $0xa0] sm:$0xff]  ;;  %v4209_v21 = vld [vmem:[%s11260_s13 + $0x390] sm:$0xff] }
 0x397   : > { %9460 = vrcp.f32 %v3814_v42  ;;  %v9451_v30 = vpop.eup %9450  ;;  %v8368_v8 = vpop.f32.mrb[72].mxu0  ;;  %v4036_v2 = vmul.f32 %v9449_v11, %v13631_v55  ;;  %v13637_v11 = vld [vmem:[#allocation54_spill] sm:$0xff]  ;;  %v6255_v55 = vld [vmem:[%s13017_s7 + $0x108] sm:$0xff] }
 0x398   : > { %8530 = vmatprep.mubr.bf16.mxu1 %v4397_v33  ;;  %v3788_v60 = vpop.xlane.xlu0 %3787  ;;  %5585 = vst.msk [vmem:[#allocation2 + $0x50] sm:$0xff] %vm950_vm0, %v8368_v8  ;;  %v4529_v1 = vpop.f32.mrb[73].mxu0  ;;  %v4032_v47 = vmul.f32 %v9451_v30, %v13632_v28  ;;  %v4322_v36 = vmul.f32 %v4194_v52, %v4038_v63  ;;  %v4210_v63 = vld [vmem:[%s11260_s13 + $0x398] sm:$0xff]  ;;  %v8606_v28 = vpack.c.bf16 %v6243_v45, %v6242_v37 }
 0x399   : > { %v9453_v23 = vpop.eup %9452  ;;  %8531 = vmatmul.mubr.bf16.gmra.mrb[108].mxu1 %v4398_v59  ;;  %5583 = vst.msk [vmem:[#allocation2 + $0x40] sm:$0xff] %vm950_vm0, %v4529_v1  ;;  %v8369_v38 = vpop.f32.mrb[74].mxu0  ;;  %v4321_v27 = vmul.f32 %v4193_v29, %v4036_v2  ;;  %v13638_v59 = vld [vmem:[#allocation6_spill] sm:$0xff]  ;;  %v8604_v2 = vpack.c.bf16 %v6225_v39, %v6224_v14  ;;  %v6273_v1 = vld [vmem:[%s13017_s7 + $0x198] sm:$0xff] }
 0x39a   : > { %v3790_v62 = vpop.xlane.xlu1 %3789  ;;  %v4034_v4 = vmul.f32 %v9453_v23, %v13633_v46  ;;  %5586 = vst.msk [vmem:[#allocation2 + $0x58] sm:$0xff] %vm950_vm0, %v8369_v38  ;;  %v4532_v58 = vpop.f32.mrb[75].mxu0  ;;  %v4319_v0 = vmul.f32 %v4191_v17, %v4032_v47  ;;  %v6254_v23 = vld [vmem:[%s13017_s7 + $0x100] sm:$0xff]  ;;  %v6227_v17 = vld [vmem:[%s13017_s7 + $0x28] sm:$0xff]  ;;  %v6245_v46 = vld [vmem:[%s13017_s7 + $0xb8] sm:$0xff] }
 0x39b   : > { %9462 = vrcp.f32 %v3790_v62  ;;  %v9455_v43 = vpop.eup %9454  ;;  %5584 = vst.msk [vmem:[#allocation2 + $0x48] sm:$0xff] %vm950_vm0, %v4532_v58  ;;  %v8400_v40 = vpop.f32.mrb[72].mxu1  ;;  %v4400_v12 = vpack.c.bf16 %v4322_v36, %v4321_v27  ;;  %v6226_v47 = vld [vmem:[%s13017_s7 + $0x20] sm:$0xff]  ;;  %v6244_v62 = vld [vmem:[%s13017_s7 + $0xb0] sm:$0xff]  ;;  %v8632_v58 = vpack.c.bf16 %v6255_v55, %v6254_v23  ;;  %v13642_v37 = vld [vmem:[#allocation93_spill] sm:$0xff] }
 0x39c   : > { %9464 = vrcp.f32 %v3788_v60  ;;  %v4320_v3 = vmul.f32 %v4192_v24, %v4034_v4  ;;  %v3784_v13 = vpop.xlane.xlu0 %3783  ;;  %v4674_v50 = vpop.f32.mrb[73].mxu1  ;;  %5627 = vrot.lane.b32.xlu1 %v8400_v40, %s13634_s22  ;;  %v4064_v20 = vmul.f32 %v9455_v43, %v13635_v61  ;;  %v6272_v60 = vld [vmem:[%s13017_s7 + $0x190] sm:$0xff]  ;;  %v6229_v61 = vld [vmem:[%s13017_s7 + $0x38] sm:$0xff]  ;;  %v13641_v14 = vld [vmem:[#allocation90_spill] sm:$0xff] }
 0x39d   : > { %v9457_v9 = vpop.eup %9456  ;;  %9466 = vrcp.f32 %v3784_v13  ;;  %v8401_v18 = vpop.f32.mrb[74].mxu1  ;;  %v8634_v43 = vpack.c.bf16 %v6273_v1, %v6272_v60  ;;  %v6256_v40 = vld [vmem:[%s13017_s7 + $0x110] sm:$0xff]  ;;  %v12069_v13 = vld [vmem:[%s13017_s7 + $0x1a8] sm:$0xff]  ;;  %v4211_v1 = vld [vmem:[%s11260_s13 + $0x3a0] sm:$0xff] }
 0x39e   : > { %v3786_v26 = vpop.xlane.xlu1 %3785  ;;  %v4399_v41 = vpack.c.bf16 %v4320_v3, %v4319_v0  ;;  %v4066_v51 = vmul.f32 %v9457_v9, %v13636_v7  ;;  %v4677_v6 = vpop.f32.mrb[75].mxu1  ;;  %5629 = vrot.lane.b32.xlu0 %v8401_v18, %s13634_s22  ;;  %v4335_v5 = vmul.f32 %v4207_v35, %v4064_v20  ;;  %v6257_v0 = vld [vmem:[%s13017_s7 + $0x118] sm:$0xff]  ;;  %v8608_v3 = vpack.c.bf16 %v6227_v17, %v6226_v47  ;;  %v12074_v27 = vld [vmem:[%s13017_s7 + $0x30] sm:$0xff]  ;;  %v12083_v18 = vld [vmem:[%s13017_s7 + $0xc0] sm:$0xff] }
 0x39f   : > { %9468 = vrcp.f32 %v3786_v26  ;;  %v9459_v56 = vpop.eup %9458  ;;  %v12088_v26 = vld [vmem:[%s13017_s7 + $0xc8] sm:$0xff]  ;;  %v6277_v47 = vld [vmem:[%s13017_s7 + $0x1b8] sm:$0xff] }
 0x3a0   : > { %8550 = vmatprep.mubr.bf16.mxu0 %v4399_v41  ;;  %v4336_v16 = vmul.f32 %v4208_v53, %v4066_v51  ;;  %v4068_v42 = vmul.f32 %v9459_v56, %v13637_v11  ;;  %v3816_v33 = vpop.xlane.xlu0 %3815  ;;  %5623 = vrot.lane.b32.xlu1 %v4674_v50, %s13634_s22  ;;  %v8610_v50 = vpack.c.bf16 %v6245_v46, %v6244_v62  ;;  %v4198_v53 = vld [vmem:[%s11260_s13 + $0x338] sm:$0xff]  ;;  %v13643_v46 = vld [vmem:[#allocation92_spill] sm:$0xff] }
 0x3a1   : > { %v9461_v48 = vpop.eup %9460  ;;  %8551 = vmatmul.mubr.bf16.vlgmr.msra.gmra.mrb[112].mxu0 %v4400_v12  ;;  %9470 = vrcp.f32 %v3816_v33  ;;  %v4195_v12 = vld [vmem:[%s11260_s13 + $0x320] sm:$0xff]  ;;  %v8636_v56 = vpack.c.bf16 %v6257_v0, %v6256_v40  ;;  %v8638_v11 = vpack.c.bf16 %v12069_v13, %v12063_v10  ;;  %v12108_v33 = vld [vmem:[%s13017_s7 + $0x128] sm:$0xff]  ;;  %v13644_v0 = vld [vmem:[#allocation56_spill] sm:$0xff] }
 0x3a2   : > { %v4070_v30 = vmul.f32 %v9461_v48, %v13638_v59  ;;  %v3818_v8 = vpop.xlane.xlu1 %3817  ;;  %v4407_v52 = vpack.c.bf16 %v4336_v16, %v4335_v5  ;;  %8601 = vmatpush3.bf16.msra.mxu0 %v8600_v34  ;;  %5625 = vrot.lane.b32.xlu0 %v4677_v6, %s13634_s22  ;;  %v4337_v24 = vmul.f32 %v4209_v21, %v4068_v42  ;;  %v13640_v34 = vld [vmem:[#allocation55_spill] sm:$0xff]  ;;  %v4197_v48 = vld [vmem:[%s11260_s13 + $0x330] sm:$0xff]  ;;  %v12103_v42 = vld [vmem:[%s13017_s7 + $0x120] sm:$0xff] }
 0x3a3   : > { %9472 = vrcp.f32 %v3818_v8  ;;  %8603 = vmatprep.subr.bf16.mxu0 %v8602_v22  ;;  %v4196_v22 = vld [vmem:[%s11260_s13 + $0x328] sm:$0xff]  ;;  %v8612_v21 = vpack.c.bf16 %v6229_v61, %v12074_v27  ;;  %v6230_v8 = vld [vmem:[%s13017_s7 + $0x40] sm:$0xff]  ;;  %v6260_v10 = vld [vmem:[%s13017_s7 + $0x130] sm:$0xff] }
 0x3a4   : > { %8582 = vmatprep.mubr.bf16.mxu1 %v4407_v52  ;;  %v4338_v38 = vmul.f32 %v4210_v63, %v4070_v30  ;;  %v3820_v29 = vpop.xlane.xlu0 %3819  ;;  %v8614_v30 = vpack.c.bf16 %v12088_v26, %v12083_v18  ;;  %v6231_v52 = vld [vmem:[%s13017_s7 + $0x48] sm:$0xff]  ;;  %v6278_v61 = vld [vmem:[%s13017_s7 + $0x1c0] sm:$0xff] }
 0x3a5   : > { %v9463_v4 = vpop.eup %9462  ;;  %9474 = vrcp.f32 %v3820_v29  ;;  %v4212_v29 = vld [vmem:[%s11260_s13 + $0x3a8] sm:$0xff] }
 0x3a6   : > { %v9465_v36 = vpop.eup %9464  ;;  %v3822_v15 = vpop.xlane.xlu1 %3821  ;;  %v4408_v25 = vpack.c.bf16 %v4338_v38, %v4337_v24  ;;  %8605 = vmatpush3.bf16.msra.mxu0 %v8604_v2  ;;  %v4046_v9 = vmul.f32 %v9463_v4, %v13639_v54  ;;  %v6261_v54 = vld [vmem:[%s13017_s7 + $0x138] sm:$0xff] }
 0x3a7   : > { %9476 = vrcp.f32 %v3822_v15  ;;  %8607 = vmatprep.subr.bf16.mxu0 %v8606_v28  ;;  %v9467_v20 = vpop.eup %9466  ;;  %v8372_v35 = vpop.f32.mrb[76].mxu0  ;;  %v4044_v39 = vmul.f32 %v9465_v36, %v13641_v14  ;;  %v6276_v28 = vld [vmem:[%s13017_s7 + $0x1b0] sm:$0xff]  ;;  %v6249_v15 = vld [vmem:[%s13017_s7 + $0xd8] sm:$0xff] }
 0x3a8   : > { %8583 = vmatmul.mubr.bf16.vlgmr.msra.gmra.mrb[112].mxu1 %v4408_v25  ;;  %v3796_v7 = vpop.xlane.xlu0 %3795  ;;  %5589 = vst.msk [vmem:[#allocation2 + $0x70] sm:$0xff] %vm950_vm0, %v8372_v35  ;;  %v4545_v51 = vpop.f32.mrb[77].mxu0  ;;  %v4040_v6 = vmul.f32 %v9467_v20, %v13640_v34  ;;  %v4326_v59 = vmul.f32 %v4198_v53, %v4046_v9  ;;  %v6248_v36 = vld [vmem:[%s13017_s7 + $0xd0] sm:$0xff]  ;;  %v8616_v9 = vpack.c.bf16 %v6231_v52, %v6230_v8  ;;  %v6233_v35 = vld [vmem:[%s13017_s7 + $0x58] sm:$0xff]  ;;  %v6251_v34 = vld [vmem:[%s13017_s7 + $0xe8] sm:$0xff] }
 0x3a9   : > { %v9469_v41 = vpop.eup %9468  ;;  %8633 = vmatpush3.bf16.msra.mxu1 %v8632_v58  ;;  %5587 = vst.msk [vmem:[#allocation2 + $0x60] sm:$0xff] %vm950_vm0, %v4545_v51  ;;  %v8373_v5 = vpop.f32.mrb[78].mxu0  ;;  %v4325_v62 = vmul.f32 %v4197_v48, %v4044_v39  ;;  %v8640_v58 = vpack.c.bf16 %v12108_v33, %v12103_v42  ;;  %v8642_v27 = vpack.c.bf16 %v6277_v47, %v6276_v28  ;;  %v6232_v20 = vld [vmem:[%s13017_s7 + $0x50] sm:$0xff]  ;;  %v6250_v51 = vld [vmem:[%s13017_s7 + $0xe0] sm:$0xff]  ;;  %v6263_v42 = vld [vmem:[%s13017_s7 + $0x148] sm:$0xff] }
 0x3aa   : > { %v3798_v16 = vpop.xlane.xlu1 %3797  ;;  %v4042_v45 = vmul.f32 %v9469_v41, %v13642_v37  ;;  %8635 = vmatprep.subr.bf16.mxu1 %v8634_v43  ;;  %8609 = vmatpush3.bf16.msra.mxu0 %v8608_v3  ;;  %5590 = vst.msk [vmem:[#allocation2 + $0x78] sm:$0xff] %vm950_vm0, %v8373_v5  ;;  %v4548_v63 = vpop.f32.mrb[79].mxu0  ;;  %v4323_v2 = vmul.f32 %v4195_v12, %v4040_v6  ;;  %v6279_v41 = vld [vmem:[%s13017_s7 + $0x1c8] sm:$0xff]  ;;  %v4213_v39 = vld [vmem:[%s11260_s13 + $0x3b0] sm:$0xff] }
 0x3ab   : > { %9478 = vrcp.f32 %v3798_v16  ;;  %8611 = vmatprep.subr.bf16.mxu0 %v8610_v50  ;;  %v9471_v23 = vpop.eup %9470  ;;  %5588 = vst.msk [vmem:[#allocation2 + $0x68] sm:$0xff] %vm950_vm0, %v4548_v63  ;;  %v8404_v55 = vpop.f32.mrb[76].mxu1  ;;  %v4402_v50 = vpack.c.bf16 %v4326_v59, %v4325_v62  ;;  %v8644_v5 = vpack.c.bf16 %v6261_v54, %v6260_v10  ;;  %v8620_v33 = vpack.c.bf16 %v6233_v35, %v6232_v20  ;;  %v6280_v63 = vld [vmem:[%s13017_s7 + $0x1d0] sm:$0xff]  ;;  %v6235_v8 = vld [vmem:[%s13017_s7 + $0x68] sm:$0xff]  ;;  %v13649_v20 = vld [vmem:[#allocation57_spill] sm:$0xff] }
 0x3ac   : > { %9480 = vrcp.f32 %v3796_v7  ;;  %v4324_v60 = vmul.f32 %v4196_v22, %v4042_v45  ;;  %v3792_v24 = vpop.xlane.xlu0 %3791  ;;  %v4690_v38 = vpop.f32.mrb[77].mxu1  ;;  %5635 = vrot.lane.b32.xlu1 %v8404_v55, %s13634_s22  ;;  %v4072_v4 = vmul.f32 %v9471_v23, %v13643_v46  ;;  %v8618_v7 = vpack.c.bf16 %v6249_v15, %v6248_v36  ;;  %v13645_v22 = vld [vmem:[#allocation8_spill] sm:$0xff]  ;;  %v13646_v45 = vld [vmem:[#allocation9_spill] sm:$0xff]  ;;  %v6283_v10 = vld [vmem:[%s13017_s7 + $0x1e8] sm:$0xff] }
 0x3ad   : > { %v9473_v17 = vpop.eup %9472  ;;  %8637 = vmatpush3.bf16.msra.mxu1 %v8636_v56  ;;  %9482 = vrcp.f32 %v3792_v24  ;;  %v8405_v25 = vpop.f32.mrb[78].mxu1  ;;  %v4214_v56 = vld [vmem:[%s11260_s13 + $0x3b8] sm:$0xff]  ;;  %v8622_v59 = vpack.c.bf16 %v6251_v34, %v6250_v51  ;;  %v6264_v62 = vld [vmem:[%s13017_s7 + $0x150] sm:$0xff] }
 0x3ae   : > { %v3794_v43 = vpop.xlane.xlu1 %3793  ;;  %v4401_v40 = vpack.c.bf16 %v4324_v60, %v4323_v2  ;;  %v4074_v3 = vmul.f32 %v9473_v17, %v13644_v0  ;;  %8639 = vmatprep.subr.bf16.mxu1 %v8638_v11  ;;  %8613 = vmatpush3.bf16.msra.mxu0 %v8612_v21  ;;  %v4693_v13 = vpop.f32.mrb[79].mxu1  ;;  %v4339_v18 = vmul.f32 %v4211_v1, %v4072_v4  ;;  %v6262_v11 = vld [vmem:[%s13017_s7 + $0x140] sm:$0xff]  ;;  %v6281_v55 = vld [vmem:[%s13017_s7 + $0x1d8] sm:$0xff]  ;;  %v6252_v2 = vld [vmem:[%s13017_s7 + $0xf0] sm:$0xff] }
 0x3af   : > { %9484 = vrcp.f32 %v3794_v43  ;;  %5637 = vrot.lane.b32.xlu0 %v8405_v25, %s13634_s22  ;;  %8615 = vmatprep.subr.bf16.mxu0 %v8614_v30  ;;  %v9475_v53 = vpop.eup %9474  ;;  %v8646_v21 = vpack.c.bf16 %v6279_v41, %v6278_v61  ;;  %v6234_v30 = vld [vmem:[%s13017_s7 + $0x60] sm:$0xff]  ;;  %v6253_v60 = vld [vmem:[%s13017_s7 + $0xf8] sm:$0xff]  ;;  %v6236_v25 = vld [vmem:[%s13017_s7 + $0x70] sm:$0xff] }
 0x3b0   : > { %8554 = vmatprep.mubr.bf16.mxu0 %v4401_v40  ;;  %v4340_v26 = vmul.f32 %v4212_v29, %v4074_v3  ;;  %v3824_v12 = vpop.xlane.xlu0 %3823  ;;  %5631 = vrot.lane.b32.xlu1 %v4690_v38, %s13634_s22  ;;  %v4076_v14 = vmul.f32 %v9475_v53, %v13645_v22  ;;  %v8648_v38 = vpack.c.bf16 %v6263_v42, %v6262_v11  ;;  %v13647_v4 = vld [vmem:[#allocation58_spill] sm:$0xff]  ;;  %v6265_v36 = vld [vmem:[%s13017_s7 + $0x158] sm:$0xff]  ;;  %v4200_v61 = vld [vmem:[%s11260_s13 + $0x348] sm:$0xff] }
 0x3b1   : > { %v9477_v6 = vpop.eup %9476  ;;  %8555 = vmatmul.mubr.bf16.gmra.mrb[116].mxu0 %v4402_v50  ;;  %9486 = vrcp.f32 %v3824_v12  ;;  %8641 = vmatpush3.bf16.msra.mxu1 %v8640_v58  ;;  %v8624_v46 = vpack.c.bf16 %v6235_v8, %v6234_v30  ;;  %v8650_v58 = vpack.c.bf16 %v6281_v55, %v6280_v63  ;;  %v8626_v15 = vpack.c.bf16 %v6253_v60, %v6252_v2  ;;  %v6237_v43 = vld [vmem:[%s13017_s7 + $0x78] sm:$0xff]  ;;  %v6282_v3 = vld [vmem:[%s13017_s7 + $0x1e0] sm:$0xff]  ;;  %v4201_v41 = vld [vmem:[%s11260_s13 + $0x350] sm:$0xff] }
 0x3b2   : > { %v3826_v16 = vpop.xlane.xlu1 %3825  ;;  %v4409_v37 = vpack.c.bf16 %v4340_v26, %v4339_v18  ;;  %v4078_v48 = vmul.f32 %v9477_v6, %v13646_v45  ;;  %8617 = vmatpush3.bf16.msra.mxu0 %v8616_v9  ;;  %8643 = vmatprep.subr.bf16.mxu1 %v8642_v27  ;;  %v4341_v52 = vmul.f32 %v4213_v39, %v4076_v14  ;;  %v4202_v0 = vld [vmem:[%s11260_s13 + $0x358] sm:$0xff]  ;;  %v4199_v27 = vld [vmem:[%s11260_s13 + $0x340] sm:$0xff]  ;;  %v13650_v18 = vld [vmem:[#allocation60_spill] sm:$0xff] }
 0x3b3   : > { %9488 = vrcp.f32 %v3826_v16  ;;  %5633 = vrot.lane.b32.xlu0 %v4693_v13, %s13634_s22  ;;  %8619 = vmatprep.subr.bf16.mxu0 %v8618_v7  ;;  %v13648_v13 = vld [vmem:[#allocation59_spill] sm:$0xff]  ;;  %v8652_v7 = vpack.c.bf16 %v6265_v36, %v6264_v62  ;;  %v8628_v51 = vpack.c.bf16 %v6237_v43, %v6236_v25  ;;  %v8654_v6 = vpack.c.bf16 %v6283_v10, %v6282_v3  ;;  %v6266_v12 = vld [vmem:[%s13017_s7 + $0x160] sm:$0xff]  ;;  %v6285_v16 = vld [vmem:[%s13017_s7 + $0x1f8] sm:$0xff]  ;;  %s13226_s22 = smov 32  }
 0x3b4   : > { %8586 = vmatprep.mubr.bf16.mxu1 %v4409_v37  ;;  %v4342_v23 = vmul.f32 %v4214_v56, %v4078_v48  ;;  %v3828_v28 = vpop.xlane.xlu0 %3827  ;;  %v6267_v22 = vld [vmem:[%s13017_s7 + $0x168] sm:$0xff]  ;;  %v4215_v42 = vld [vmem:[%s11260_s13 + $0x3c0] sm:$0xff] }
 0x3b5   : > { %v9479_v1 = vpop.eup %9478  ;;  %9490 = vrcp.f32 %v3828_v28  ;;  %8645 = vmatpush3.bf16.msra.mxu1 %v8644_v5  ;;  %v6284_v5 = vld [vmem:[%s13017_s7 + $0x1f0] sm:$0xff]  ;;  %v8656_v30 = vpack.c.bf16 %v6267_v22, %v6266_v12  ;;  %v13651_v3 = vld [vmem:[#allocation94_spill] sm:$0xff] }
 0x3b6   : > { %v9481_v47 = vpop.eup %9480  ;;  %v3830_v17 = vpop.xlane.xlu1 %3829  ;;  %v4410_v24 = vpack.c.bf16 %v4342_v23, %v4341_v52  ;;  %8621 = vmatpush3.bf16.msra.mxu0 %v8620_v33  ;;  %v4054_v29 = vmul.f32 %v9479_v1, %v13647_v4  ;;  %8647 = vmatprep.subr.bf16.mxu1 %v8646_v21  ;;  %v4216_v33 = vld [vmem:[%s11260_s13 + $0x3c8] sm:$0xff]  ;;  %v8658_v52 = vpack.c.bf16 %v6285_v16, %v6284_v5  ;;  %v6269_v23 = vld [vmem:[%s13017_s7 + $0x178] sm:$0xff]  ;;  %v13654_v12 = vld [vmem:[#allocation10_spill] sm:$0xff] }
 0x3b7   : > { %9492 = vrcp.f32 %v3830_v17  ;;  %8623 = vmatprep.subr.bf16.mxu0 %v8622_v59  ;;  %v9483_v40 = vpop.eup %9482  ;;  %v4052_v35 = vmul.f32 %v9481_v47, %v13649_v20  ;;  %v4217_v47 = vld [vmem:[%s11260_s13 + $0x3d0] sm:$0xff]  ;;  %v4218_v17 = vld [vmem:[%s11260_s13 + $0x3d8] sm:$0xff] }
 0x3b8   : > { %8587 = vmatmul.mubr.bf16.gmra.mrb[116].mxu1 %v4410_v24  ;;  %v3804_v9 = vpop.xlane.xlu0 %3803  ;;  %v4048_v50 = vmul.f32 %v9483_v40, %v13648_v13  ;;  %v4330_v34 = vmul.f32 %v4202_v0, %v4054_v29  ;;  %v4206_v40 = vld [vmem:[%s11260_s13 + $0x378] sm:$0xff]  ;;  %v4205_v20 = vld [vmem:[%s11260_s13 + $0x370] sm:$0xff] }
 0x3b9   : > { %v9485_v54 = vpop.eup %9484  ;;  %8649 = vmatpush3.bf16.msra.mxu1 %v8648_v38  ;;  %v4329_v48 = vmul.f32 %v4201_v41, %v4052_v35  ;;  %v13652_v13 = vld [vmem:[#allocation61_spill] sm:$0xff] }
 0x3ba   : > { %v3806_v53 = vpop.xlane.xlu1 %3805  ;;  %v4050_v26 = vmul.f32 %v9485_v54, %v13650_v18  ;;  %8625 = vmatpush3.bf16.msra.mxu0 %v8624_v46  ;;  %8651 = vmatprep.subr.bf16.mxu1 %v8650_v58  ;;  %v4327_v39 = vmul.f32 %v4199_v27, %v4048_v50  ;;  %v4203_v54 = vld [vmem:[%s11260_s13 + $0x360] sm:$0xff]  ;;  %v13653_v27 = vld [vmem:[#allocation15_spill] sm:$0xff] }
 0x3bb   : > { %9494 = vrcp.f32 %v3806_v53  ;;  %8627 = vmatprep.subr.bf16.mxu0 %v8626_v15  ;;  %v9487_v14 = vpop.eup %9486  ;;  %v4404_v8 = vpack.c.bf16 %v4330_v34, %v4329_v48  ;;  %v4220_v34 = vld [vmem:[%s11260_s13 + $0x3e8] sm:$0xff] }
 0x3bc   : > { %9496 = vrcp.f32 %v3804_v9  ;;  %v4328_v56 = vmul.f32 %v4200_v61, %v4050_v26  ;;  %v3800_v45 = vpop.xlane.xlu0 %3799  ;;  %v4080_v11 = vmul.f32 %v9487_v14, %v11764_v49  ;;  %v6268_v49 = vld [vmem:[%s13017_s7 + $0x170] sm:$0xff]  ;;  %v4204_v9 = vld [vmem:[%s11260_s13 + $0x368] sm:$0xff] }
 0x3bd   : > { %v9489_v37 = vpop.eup %9488  ;;  %9498 = vrcp.f32 %v3800_v45  ;;  %8653 = vmatpush3.bf16.msra.mxu1 %v8652_v7  ;;  %v8660_v46 = vpack.c.bf16 %v6269_v23, %v6268_v49  ;;  %v13655_v45 = vld [vmem:[#allocation14_spill] sm:$0xff]  ;;  %v6163_v49 = vld [vmem:[%s12259_s1 + $0x28] sm:$0xff] }
 0x3be   : > { %v3802_v21 = vpop.xlane.xlu1 %3801  ;;  %v4403_v63 = vpack.c.bf16 %v4328_v56, %v4327_v39  ;;  %v4082_v59 = vmul.f32 %v9489_v37, %v11767_v32  ;;  %8629 = vmatpush3.bf16.msra.mxu0 %v8628_v51  ;;  %8655 = vmatprep.subr.bf16.mxu1 %v8654_v6  ;;  %v4343_v32 = vmul.f32 %v4215_v42, %v4080_v11  ;;  %v4219_v51 = vld [vmem:[%s11260_s13 + $0x3e0] sm:$0xff]  ;;  %v6159_v39 = vld [vmem:[%s12259_s1 + $0x8] sm:$0xff]  ;;  %v4221_v11 = vld [vmem:[%s11260_s13 + $0x3f0] sm:$0xff] }
 0x3bf   : > { %9500 = vrcp.f32 %v3802_v21  ;;  %v9491_v55 = vpop.eup %9490  ;;  %v6162_v23 = vld [vmem:[%s12259_s1 + $0x20] sm:$0xff] }
 0x3c0   : > { %8558 = vmatprep.mubr.bf16.mxu0 %v4403_v63  ;;  %v4344_v2 = vmul.f32 %v4216_v33, %v4082_v59  ;;  %v3832_v1 = vpop.xlane.xlu0 %3831  ;;  %v4084_v28 = vmul.f32 %v9491_v55, %v11758_v57  ;;  %v13656_v33 = vld [vmem:[#allocation12_spill] sm:$0xff]  ;;  %v6167_v55 = vld [vmem:[%s12259_s1 + $0x48] sm:$0xff] }
 0x3c1   : > { %v9493_v60 = vpop.eup %9492  ;;  %8559 = vmatmul.mubr.bf16.gmra.mrb[120].mxu0 %v4404_v8  ;;  %9502 = vrcp.f32 %v3832_v1  ;;  %8657 = vmatpush3.bf16.msra.mxu1 %v8656_v30  ;;  %v6158_v8 = vld [vmem:[%s12259_s1] sm:$0xff]  ;;  %v6171_v1 = vld [vmem:[%s12259_s1 + $0x68] sm:$0xff] }
 0x3c2   : > { %v3834_v24 = vpop.xlane.xlu1 %3833  ;;  %v4411_v38 = vpack.c.bf16 %v4344_v2, %v4343_v32  ;;  %v4086_v62 = vmul.f32 %v9493_v60, %v11772_v44  ;;  %8659 = vmatprep.subr.bf16.mxu1 %v8658_v52  ;;  %v4345_v4 = vmul.f32 %v4217_v47, %v4084_v28  ;;  %v6161_v52 = vld [vmem:[%s12259_s1 + $0x18] sm:$0xff]  ;;  %v6160_v32 = vld [vmem:[%s12259_s1 + $0x10] sm:$0xff]  ;;  %v6166_v60 = vld [vmem:[%s12259_s1 + $0x40] sm:$0xff] }
 0x3c3   : > { %9504 = vrcp.f32 %v3834_v24  ;;  %v6165_v2 = vld [vmem:[%s12259_s1 + $0x38] sm:$0xff]  ;;  %v6164_v28 = vld [vmem:[%s12259_s1 + $0x30] sm:$0xff]  ;;  %v6175_v24 = vld [vmem:[%s12259_s1 + $0x88] sm:$0xff] }
 0x3c4   : > { %8590 = vmatprep.mubr.bf16.mxu1 %v4411_v38  ;;  %v4346_v29 = vmul.f32 %v4218_v17, %v4086_v62  ;;  %v3836_v36 = vpop.xlane.xlu0 %3835  ;;  %v6169_v47 = vld [vmem:[%s12259_s1 + $0x58] sm:$0xff]  ;;  %v6170_v17 = vld [vmem:[%s12259_s1 + $0x60] sm:$0xff]  ;;  %v6168_v38 = vld [vmem:[%s12259_s1 + $0x50] sm:$0xff] }
 0x3c5   : > { %v9495_v58 = vpop.eup %9494  ;;  %9506 = vrcp.f32 %v3836_v36  ;;  %8661 = vmatpush3.bf16.msra.mxu1 %v8660_v46  ;;  %v6173_v62 = vld [vmem:[%s12259_s1 + $0x78] sm:$0xff]  ;;  %v6174_v46 = vld [vmem:[%s12259_s1 + $0x80] sm:$0xff] }
 0x3c6   : > { %v9497_v57 = vpop.eup %9496  ;;  %v3838_v15 = vpop.xlane.xlu1 %3837  ;;  %v4412_v25 = vpack.c.bf16 %v4346_v29, %v4345_v4  ;;  %v4062_v44 = vmul.f32 %v9495_v58, %v11780_v31  ;;  %v6179_v4 = vld [vmem:[%s12259_s1 + $0xa8] sm:$0xff]  ;;  %v6172_v29 = vld [vmem:[%s12259_s1 + $0x70] sm:$0xff]  ;;  %v6177_v58 = vld [vmem:[%s12259_s1 + $0x98] sm:$0xff] }
 0x3c7   : > { %9508 = vrcp.f32 %v3838_v15  ;;  %v9499_v43 = vpop.eup %9498  ;;  %v4060_v50 = vmul.f32 %v9497_v57, %v13652_v13  ;;  %v6178_v36 = vld [vmem:[%s12259_s1 + $0xa0] sm:$0xff]  ;;  %v6183_v57 = vld [vmem:[%s12259_s1 + $0xc8] sm:$0xff]  ;;  %v6176_v15 = vld [vmem:[%s12259_s1 + $0x90] sm:$0xff] }
 0x3c8   : > { %8591 = vmatmul.mubr.bf16.gmra.mrb[120].mxu1 %v4412_v25  ;;  %v4056_v10 = vmul.f32 %v9499_v43, %v13651_v3  ;;  %v4334_v35 = vmul.f32 %v4206_v40, %v4062_v44  ;;  %v6181_v25 = vld [vmem:[%s12259_s1 + $0xb8] sm:$0xff]  ;;  %v6182_v44 = vld [vmem:[%s12259_s1 + $0xc0] sm:$0xff]  ;;  %v6187_v40 = vld [vmem:[%s12259_s1 + $0xe8] sm:$0xff] }
 0x3c9   : > { %v9501_v0 = vpop.eup %9500  ;;  %v4333_v41 = vmul.f32 %v4205_v20, %v4060_v50  ;;  %v6180_v3 = vld [vmem:[%s12259_s1 + $0xb0] sm:$0xff] }
 0x3ca   : > { %v4058_v61 = vmul.f32 %v9501_v0, %v13653_v27  ;;  %v4331_v18 = vmul.f32 %v4203_v54, %v4056_v10  ;;  %v6185_v10 = vld [vmem:[%s12259_s1 + $0xd8] sm:$0xff]  ;;  %v6186_v54 = vld [vmem:[%s12259_s1 + $0xe0] sm:$0xff]  ;;  %v6184_v50 = vld [vmem:[%s12259_s1 + $0xd0] sm:$0xff] }
 0x3cb   : > { %v9503_v53 = vpop.eup %9502  ;;  %v4406_v14 = vpack.c.bf16 %v4334_v35, %v4333_v41  ;;  %v6189_v27 = vld [vmem:[%s12259_s1 + $0xf8] sm:$0xff] }
 0x3cc   : > { %v4332_v26 = vmul.f32 %v4204_v9, %v4058_v61  ;;  %v4088_v7 = vmul.f32 %v9503_v53, %v11815_v19  ;;  %v4222_v19 = vld [vmem:[%s11260_s13 + $0x3f8] sm:$0xff]  ;;  %v6191_v9 = vld [vmem:[%s12259_s1 + $0x108] sm:$0xff]  ;;  %v6190_v61 = vld [vmem:[%s12259_s1 + $0x100] sm:$0xff]  ;;  %s13225_s13 = smov 24  }
 0x3cd   : > { %v9505_v31 = vpop.eup %9504  ;;  %v6195_v53 = vld [vmem:[%s12259_s1 + $0x128] sm:$0xff]  ;;  %v6193_v41 = vld [vmem:[%s12259_s1 + $0x118] sm:$0xff] }
 0x3ce   : > { %v4405_v6 = vpack.c.bf16 %v4332_v26, %v4331_v18  ;;  %v4090_v22 = vmul.f32 %v9505_v31, %v13654_v12  ;;  %v4347_v5 = vmul.f32 %v4219_v51, %v4088_v7  ;;  %v6188_v26 = vld [vmem:[%s12259_s1 + $0xf0] sm:$0xff]  ;;  %v6194_v51 = vld [vmem:[%s12259_s1 + $0x120] sm:$0xff] }
 0x3cf   : > { %v9507_v56 = vpop.eup %9506 }
 0x3d0   : > { %8562 = vmatprep.mubr.bf16.mxu0 %v4405_v6  ;;  %v4348_v16 = vmul.f32 %v4220_v34, %v4090_v22  ;;  %v4092_v48 = vmul.f32 %v9507_v56, %v13655_v45  ;;  %v6199_v6 = vld [vmem:[%s12259_s1 + $0x148] sm:$0xff]  ;;  %v6192_v22 = vld [vmem:[%s12259_s1 + $0x110] sm:$0xff] }
 0x3d1   : > { %v9509_v37 = vpop.eup %9508  ;;  %8563 = vmatmul.mubr.bf16.gmra.mrb[124].mxu0 %v4406_v14 }
 0x3d2   : > { %v4413_v42 = vpack.c.bf16 %v4348_v16, %v4347_v5  ;;  %v4094_v21 = vmul.f32 %v9509_v37, %v13656_v33  ;;  %6357 = vmatprep.mubr.f32.mxu0 %v6159_v39  ;;  %v4349_v63 = vmul.f32 %v4221_v11, %v4092_v48  ;;  %v6197_v39 = vld [vmem:[%s12259_s1 + $0x138] sm:$0xff]  ;;  %v6198_v16 = vld [vmem:[%s12259_s1 + $0x140] sm:$0xff]  ;;  %v6203_v37 = vld [vmem:[%s12259_s1 + $0x168] sm:$0xff] }
 0x3d3   : > { %v6196_v48 = vld [vmem:[%s12259_s1 + $0x130] sm:$0xff]  ;;  %v6201_v11 = vld [vmem:[%s12259_s1 + $0x158] sm:$0xff]  ;;  %v6207_v33 = vld [vmem:[%s12259_s1 + $0x188] sm:$0xff] }
 0x3d4   : > { %8594 = vmatprep.mubr.bf16.mxu1 %v4413_v42  ;;  %v4350_v59 = vmul.f32 %v4222_v19, %v4094_v21  ;;  %v6202_v42 = vld [vmem:[%s12259_s1 + $0x160] sm:$0xff] }
 0x3d6   : > { %v4414_v30 = vpack.c.bf16 %v4350_v59, %v4349_v63  ;;  %v6200_v63 = vld [vmem:[%s12259_s1 + $0x150] sm:$0xff]  ;;  %v6205_v59 = vld [vmem:[%s12259_s1 + $0x178] sm:$0xff] }
 0x3d8   : > { %8595 = vmatmul.mubr.bf16.gmra.mrb[124].mxu1 %v4414_v30  ;;  %v6206_v30 = vld [vmem:[%s12259_s1 + $0x180] sm:$0xff] }
 0x3d9   : > { %6358 = vmatmul.mubr.f32.vlgmr.msra.gmra.mrb[128].mxu0 %v6158_v8  ;;  %6502 = vmatprep.mubr.f32.mxu1 %v6161_v52  ;;  %v6211_v52 = vld [vmem:[%s12259_s1 + $0x1a8] sm:$0xff] }
 0x3da   : > { %6362 = vmatprep.mubr.f32.mxu0 %v6163_v49 }
 0x3dd   : > { %6363 = vmatmul.mubr.f32.gmra.mrb[130].mxu0 %v6162_v23  ;;  %v6204_v23 = vld [vmem:[%s12259_s1 + $0x170] sm:$0xff] }
 0x3de   : > { %6367 = vmatprep.mubr.f32.mxu0 %v6167_v55 }
 0x3e0   : > { %6503 = vmatmul.mubr.f32.vlgmr.msra.gmra.mrb[128].mxu1 %v6160_v32  ;;  %v6209_v32 = vld [vmem:[%s12259_s1 + $0x198] sm:$0xff] }
 0x3e1   : > { %6507 = vmatprep.mubr.f32.mxu1 %v6165_v2  ;;  %6368 = vmatmul.mubr.f32.gmra.mrb[132].mxu0 %v6166_v60  ;;  %v6210_v60 = vld [vmem:[%s12259_s1 + $0x1a0] sm:$0xff] }
 0x3e2   : > { %6372 = vmatprep.mubr.f32.mxu0 %v6171_v1 }
 0x3e4   : > { %6508 = vmatmul.mubr.f32.gmra.mrb[130].mxu1 %v6164_v28  ;;  %v6215_v28 = vld [vmem:[%s12259_s1 + $0x1c8] sm:$0xff] }
 0x3e5   : > { %6512 = vmatprep.mubr.f32.mxu1 %v6169_v47  ;;  %6373 = vmatmul.mubr.f32.gmra.mrb[134].mxu0 %v6170_v17  ;;  %v6208_v17 = vld [vmem:[%s12259_s1 + $0x190] sm:$0xff] }
 0x3e6   : > { %6377 = vmatprep.mubr.f32.mxu0 %v6175_v24 }
 0x3e8   : > { %6513 = vmatmul.mubr.f32.gmra.mrb[132].mxu1 %v6168_v38  ;;  %v6213_v38 = vld [vmem:[%s12259_s1 + $0x1b8] sm:$0xff] }
 0x3e9   : > { %6517 = vmatprep.mubr.f32.mxu1 %v6173_v62  ;;  %6378 = vmatmul.mubr.f32.gmra.mrb[136].mxu0 %v6174_v46 }
 0x3ea   : > { %6382 = vmatprep.mubr.f32.mxu0 %v6179_v4  ;;  %v6214_v4 = vld [vmem:[%s12259_s1 + $0x1c0] sm:$0xff] }
 0x3ec   : > { %6518 = vmatmul.mubr.f32.gmra.mrb[134].mxu1 %v6172_v29  ;;  %v6219_v29 = vld [vmem:[%s12259_s1 + $0x1e8] sm:$0xff] }
 0x3ed   : > { %6522 = vmatprep.mubr.f32.mxu1 %v6177_v58  ;;  %6383 = vmatmul.mubr.f32.gmra.mrb[138].mxu0 %v6178_v36  ;;  %v6212_v36 = vld [vmem:[%s12259_s1 + $0x1b0] sm:$0xff] }
 0x3ee   : > { %6387 = vmatprep.mubr.f32.mxu0 %v6183_v57  ;;  %v5612_v43 = vpop.permute.xlu1 %5611  ;;  %v6217_v57 = vld [vmem:[%s12259_s1 + $0x1d8] sm:$0xff] }
 0x3ef   : > { %5658 = vst.msk [vmem:[#allocation2 + $0x10] sm:$0xff] %vm5655_vm1, %v5612_v43  ;;  %v6216_v43 = vld [vmem:[%s12259_s1 + $0x1d0] sm:$0xff] }
 0x3f0   : > { %v5608_v0 = vpop.permute.xlu0 %5607  ;;  %6523 = vmatmul.mubr.f32.gmra.mrb[136].mxu1 %v6176_v15 }
 0x3f1   : > { %5656 = vst.msk [vmem:[#allocation2] sm:$0xff] %vm5655_vm1, %v5608_v0  ;;  %6527 = vmatprep.mubr.f32.mxu1 %v6181_v25  ;;  %6388 = vmatmul.mubr.f32.gmra.mrb[140].mxu0 %v6182_v44  ;;  %v6218_v25 = vld [vmem:[%s12259_s1 + $0x1e0] sm:$0xff] }
 0x3f2   : > { %6392 = vmatprep.mubr.f32.mxu0 %v6187_v40  ;;  %v6221_v40 = vld [vmem:[%s12259_s1 + $0x1f8] sm:$0xff] }
 0x3f4   : > { %v5614_v13 = vpop.permute.xlu0 %5613  ;;  %6528 = vmatmul.mubr.f32.gmra.mrb[138].mxu1 %v6180_v3 }
 0x3f5   : > { %5659 = vst.msk [vmem:[#allocation2 + $0x18] sm:$0xff] %vm5655_vm1, %v5614_v13  ;;  %6532 = vmatprep.mubr.f32.mxu1 %v6185_v10  ;;  %6393 = vmatmul.mubr.f32.gmra.mrb[142].mxu0 %v6186_v54  ;;  %v6220_v10 = vld [vmem:[%s12259_s1 + $0x1f0] sm:$0xff]  ;;  %s9598_s1 = smov [#allocation3]  }
 0x3f6   : > { %6397 = vmatprep.mubr.f32.mxu0 %v6191_v9 }
 0x3f7   : > { %v8424_v35 = vpop.f32.mrb[80].mxu0 }
 0x3f8   : > { %v5610_v20 = vpop.permute.xlu0 %5609  ;;  %6533 = vmatmul.mubr.f32.gmra.mrb[140].mxu1 %v6184_v50  ;;  %v4787_v18 = vpop.f32.mrb[81].mxu0  ;;  %5692 = vrot.lane.b32.xlu1 %v8424_v35, %s9591_s30 }
 0x3f9   : > { %5657 = vst.msk [vmem:[#allocation2 + $0x8] sm:$0xff] %vm5655_vm1, %v5610_v20  ;;  %6537 = vmatprep.mubr.f32.mxu1 %v6189_v27  ;;  %v8425_v31 = vpop.f32.mrb[82].mxu0  ;;  %6398 = vmatmul.mubr.f32.gmra.mrb[144].mxu0 %v6190_v61 }
 0x3fa   : > { %5694 = vrot.lane.b32.xlu0 %v8425_v31, %s9591_s30  ;;  %v4790_v7 = vpop.f32.mrb[83].mxu0  ;;  %6402 = vmatprep.mubr.f32.mxu0 %v6195_v53 }
 0x3fb   : > { %v8456_v34 = vpop.f32.mrb[80].mxu1 }
 0x3fc   : > { %6538 = vmatmul.mubr.f32.gmra.mrb[142].mxu1 %v6188_v26  ;;  %v4932_v12 = vpop.f32.mrb[81].mxu1  ;;  %5773 = vrot.lane.b32.xlu1 %v8456_v34, %s13225_s13 }
 0x3fd   : > { %6542 = vmatprep.mubr.f32.mxu1 %v6193_v41  ;;  %v8457_v14 = vpop.f32.mrb[82].mxu1  ;;  %6403 = vmatmul.mubr.f32.gmra.mrb[146].mxu0 %v6194_v51 }
 0x3fe   : > { %5775 = vrot.lane.b32.xlu0 %v8457_v14, %s13225_s13  ;;  %v4935_v56 = vpop.f32.mrb[83].mxu1  ;;  %v5620_v5 = vpop.permute.xlu1 %5619  ;;  %6407 = vmatprep.mubr.f32.mxu0 %v6199_v6 }
 0x3ff   : > { %5662 = vst.msk [vmem:[#allocation2 + $0x30] sm:$0xff] %vm5655_vm1, %v5620_v5 }
 0x400   : > { %6543 = vmatmul.mubr.f32.gmra.mrb[144].mxu1 %v6192_v22  ;;  %v5622_v45 = vpop.permute.xlu0 %5621  ;;  %5688 = vrot.lane.b32.xlu1 %v4787_v18, %s9591_s30 }
 0x401   : > { %6547 = vmatprep.mubr.f32.mxu1 %v6197_v39  ;;  %5663 = vst.msk [vmem:[#allocation2 + $0x38] sm:$0xff] %vm5655_vm1, %v5622_v45  ;;  %6408 = vmatmul.mubr.f32.gmra.mrb[148].mxu0 %v6198_v16 }
 0x402   : > { %5690 = vrot.lane.b32.xlu0 %v4790_v7, %s9591_s30  ;;  %v5616_v19 = vpop.permute.xlu1 %5615  ;;  %6412 = vmatprep.mubr.f32.mxu0 %v6203_v37 }
 0x403   : > { %5660 = vst.msk [vmem:[#allocation2 + $0x20] sm:$0xff] %vm5655_vm1, %v5616_v19  ;;  %v6666_v19 = vld [vmem:[%s13019_s9 + $0x18] sm:$0xff] }
 0x404   : > { %6548 = vmatmul.mubr.f32.gmra.mrb[146].mxu1 %v6196_v48  ;;  %v5618_v21 = vpop.permute.xlu0 %5617  ;;  %5769 = vrot.lane.b32.xlu1 %v4932_v12, %s13225_s13  ;;  %v6664_v48 = vld [vmem:[%s13019_s9 + $0x8] sm:$0xff] }
 0x405   : > { %6552 = vmatprep.mubr.f32.mxu1 %v6201_v11  ;;  %5661 = vst.msk [vmem:[#allocation2 + $0x28] sm:$0xff] %vm5655_vm1, %v5618_v21  ;;  %6413 = vmatmul.mubr.f32.gmra.mrb[150].mxu0 %v6202_v42  ;;  %v6668_v11 = vld [vmem:[%s13019_s9 + $0x28] sm:$0xff] }
 0x406   : > { %5771 = vrot.lane.b32.xlu0 %v4935_v56, %s13225_s13  ;;  %6417 = vmatprep.mubr.f32.mxu0 %v6207_v33  ;;  %v8662_v42 = vpack.c.bf16 %v6668_v11, %v6664_v48  ;;  %v6670_v33 = vld [vmem:[%s13019_s9 + $0x38] sm:$0xff] }
 0x407   : > { %v8428_v8 = vpop.f32.mrb[84].mxu0  ;;  %v8678_v21 = vpack.c.bf16 %v6670_v33, %v6666_v19 }
 0x408   : > { %6553 = vmatmul.mubr.f32.gmra.mrb[148].mxu1 %v6200_v63  ;;  %v4803_v49 = vpop.f32.mrb[85].mxu0  ;;  %5700 = vrot.lane.b32.xlu1 %v8428_v8, %s9591_s30  ;;  %v6663_v63 = vld [vmem:[%s13019_s9] sm:$0xff] }
 0x409   : > { %6557 = vmatprep.mubr.f32.mxu1 %v6205_v59  ;;  %v8429_v55 = vpop.f32.mrb[86].mxu0  ;;  %6418 = vmatmul.mubr.f32.gmra.mrb[152].mxu0 %v6206_v30  ;;  %v6667_v59 = vld [vmem:[%s13019_s9 + $0x20] sm:$0xff]  ;;  %v6665_v30 = vld [vmem:[%s13019_s9 + $0x10] sm:$0xff] }
 0x40a   : > { %5702 = vrot.lane.b32.xlu0 %v8429_v55, %s9591_s30  ;;  %v4806_v2 = vpop.f32.mrb[87].mxu0  ;;  %6422 = vmatprep.mubr.f32.mxu0 %v6211_v52  ;;  %v8664_v8 = vpack.c.bf16 %v6667_v59, %v6663_v63  ;;  %v6669_v52 = vld [vmem:[%s13019_s9 + $0x30] sm:$0xff] }
 0x40b   : > { %v8460_v1 = vpop.f32.mrb[84].mxu1  ;;  %8663 = vmatprep.subr.bf16.mxu0 %v8662_v42  ;;  %8679 = vmatprep.subr.bf16.mxu1 %v8678_v21 }
 0x40c   : > { %6558 = vmatmul.mubr.f32.gmra.mrb[150].mxu1 %v6204_v23  ;;  %v4948_v47 = vpop.f32.mrb[85].mxu1  ;;  %5781 = vrot.lane.b32.xlu1 %v8460_v1, %s13225_s13 }
 0x40d   : > { %6562 = vmatprep.mubr.f32.mxu1 %v6209_v32  ;;  %v8461_v24 = vpop.f32.mrb[86].mxu1  ;;  %6423 = vmatmul.mubr.f32.gmra.mrb[154].mxu0 %v6210_v60 }
 0x40e   : > { %5783 = vrot.lane.b32.xlu0 %v8461_v24, %s13225_s13  ;;  %v4951_v62 = vpop.f32.mrb[87].mxu1  ;;  %v5628_v46 = vpop.permute.xlu1 %5627  ;;  %6427 = vmatprep.mubr.f32.mxu0 %v6215_v28  ;;  %v6676_v24 = vld [vmem:[%s13019_s9 + $0x68] sm:$0xff] }
 0x40f   : > { %5666 = vst.msk [vmem:[#allocation2 + $0x50] sm:$0xff] %vm5655_vm1, %v5628_v46  ;;  %8665 = vmatpush1.bf16.msra.mxu0 %v8664_v8  ;;  %v6678_v46 = vld [vmem:[%s13019_s9 + $0x78] sm:$0xff] }
 0x410   : > { %6563 = vmatmul.mubr.f32.gmra.mrb[152].mxu1 %v6208_v17  ;;  %v5630_v58 = vpop.permute.xlu0 %5629  ;;  %5696 = vrot.lane.b32.xlu1 %v4803_v49, %s9591_s30  ;;  %v8680_v49 = vpack.c.bf16 %v6669_v52, %v6665_v30  ;;  %v6672_v17 = vld [vmem:[%s13019_s9 + $0x48] sm:$0xff] }
 0x411   : > { %6567 = vmatprep.mubr.f32.mxu1 %v6213_v38  ;;  %5667 = vst.msk [vmem:[#allocation2 + $0x58] sm:$0xff] %vm5655_vm1, %v5630_v58  ;;  %6428 = vmatmul.mubr.f32.gmra.mrb[156].mxu0 %v6214_v4  ;;  %v6674_v38 = vld [vmem:[%s13019_s9 + $0x58] sm:$0xff]  ;;  %v6675_v58 = vld [vmem:[%s13019_s9 + $0x60] sm:$0xff]  ;;  %v6688_v52 = vld [vmem:[%s13019_s9 + $0xc8] sm:$0xff] }
 0x412   : > { %5698 = vrot.lane.b32.xlu0 %v4806_v2, %s9591_s30  ;;  %v5624_v15 = vpop.permute.xlu1 %5623  ;;  %6432 = vmatprep.mubr.f32.mxu0 %v6219_v29  ;;  %v8682_v4 = vpack.c.bf16 %v6678_v46, %v6674_v38  ;;  %v6671_v29 = vld [vmem:[%s13019_s9 + $0x40] sm:$0xff]  ;;  %v6693_v38 = vld [vmem:[%s13019_s9 + $0xf0] sm:$0xff] }
 0x413   : > { %5664 = vst.msk [vmem:[#allocation2 + $0x40] sm:$0xff] %vm5655_vm1, %v5624_v15  ;;  %8681 = vmatpush1.bf16.msra.mxu1 %v8680_v49  ;;  %v6677_v15 = vld [vmem:[%s13019_s9 + $0x70] sm:$0xff]  ;;  %v6692_v49 = vld [vmem:[%s13019_s9 + $0xe8] sm:$0xff] }
 0x414   : > { %6568 = vmatmul.mubr.f32.gmra.mrb[154].mxu1 %v6212_v36  ;;  %v5626_v44 = vpop.permute.xlu0 %5625  ;;  %5777 = vrot.lane.b32.xlu1 %v4948_v47, %s13225_s13  ;;  %v6673_v36 = vld [vmem:[%s13019_s9 + $0x50] sm:$0xff] }
 0x415   : > { %6572 = vmatprep.mubr.f32.mxu1 %v6217_v57  ;;  %5665 = vst.msk [vmem:[#allocation2 + $0x48] sm:$0xff] %vm5655_vm1, %v5626_v44  ;;  %6433 = vmatmul.mubr.f32.gmra.mrb[158].mxu0 %v6218_v25  ;;  %v8668_v57 = vpack.c.bf16 %v6675_v58, %v6671_v29  ;;  %v8684_v25 = vpack.c.bf16 %v6677_v15, %v6673_v36 }
 0x416   : > { %5779 = vrot.lane.b32.xlu0 %v4951_v62, %s13225_s13  ;;  %v8666_v62 = vpack.c.bf16 %v6676_v24, %v6672_v17  ;;  %8683 = vmatprep.subr.bf16.mxu1 %v8682_v4  ;;  %v6689_v24 = vld [vmem:[%s13019_s9 + $0xd0] sm:$0xff] }
 0x417   : > { %v8432_v0 = vpop.f32.mrb[88].mxu0  ;;  %8685 = vmatpush1.bf16.msra.mxu1 %v8684_v25  ;;  %v8692_v46 = vpack.c.bf16 %v6693_v38, %v6689_v24  ;;  %v9597_v25 = vmov 0.0   ;;  %v12590_v24 = vld [vmem:[%s13018_s8] ss:$0 sm:$0xff] }
 0x418   : > { %6573 = vmatmul.mubr.f32.gmra.mrb[156].mxu1 %v6216_v43  ;;  %v4819_v3 = vpop.f32.mrb[89].mxu0  ;;  %5708 = vrot.lane.b32.xlu1 %v8432_v0, %s9591_s30 }
 0x419   : > { %6577 = vmatprep.mubr.f32.mxu1 %v6221_v40  ;;  %v8433_v54 = vpop.f32.mrb[90].mxu0  ;;  %8667 = vmatprep.subr.bf16.mxu0 %v8666_v62 }
 0x41a   : > { %5710 = vrot.lane.b32.xlu0 %v8433_v54, %s9591_s30  ;;  %v4822_v9 = vpop.f32.mrb[91].mxu0  ;;  %8669 = vmatpush1.bf16.msra.mxu0 %v8668_v57 }
 0x41b   : > { %v8464_v13 = vpop.f32.mrb[88].mxu1  ;;  %6830 = vmatprep.mubr.f32.mxu0 %v9597_v25 }
 0x41c   : > { %6578 = vmatmul.mubr.f32.gmra.mrb[158].mxu1 %v6220_v10  ;;  %v4964_v50 = vpop.f32.mrb[89].mxu1  ;;  %5789 = vrot.lane.b32.xlu1 %v8464_v13, %s13225_s13  ;;  %v6680_v13 = vld [vmem:[%s13019_s9 + $0x88] sm:$0xff] }
 0x41d   : > { %v8465_v27 = vpop.f32.mrb[90].mxu1  ;;  %6991 = vmatprep.mubr.f32.mxu1 %v9597_v25 }
 0x41e   : > { %5791 = vrot.lane.b32.xlu0 %v8465_v27, %s13225_s13  ;;  %v4967_v61 = vpop.f32.mrb[91].mxu1  ;;  %v5636_v20 = vpop.permute.xlu1 %5635  ;;  %v6682_v27 = vld [vmem:[%s13019_s9 + $0x98] sm:$0xff] }
 0x41f   : > { %5670 = vst.msk [vmem:[#allocation2 + $0x70] sm:$0xff] %vm5655_vm1, %v5636_v20  ;;  %v6686_v20 = vld [vmem:[%s13019_s9 + $0xb8] sm:$0xff] }
 0x420   : > { %5704 = vrot.lane.b32.xlu1 %v4819_v3, %s9591_s30 }
 0x421   : > { %v5638_v35 = vpop.permute.xlu0 %5637 }
 0x422   : > { %5671 = vst.msk [vmem:[#allocation2 + $0x78] sm:$0xff] %vm5655_vm1, %v5638_v35  ;;  %5706 = vrot.lane.b32.xlu0 %v4822_v9, %s9591_s30  ;;  %v5632_v53 = vpop.permute.xlu1 %5631  ;;  %v6679_v35 = vld [vmem:[%s13019_s9 + $0x80] sm:$0xff] }
 0x423   : > { %5668 = vst.msk [vmem:[#allocation2 + $0x60] sm:$0xff] %vm5655_vm1, %v5632_v53  ;;  %v6683_v53 = vld [vmem:[%s13019_s9 + $0xa0] sm:$0xff] }
 0x424   : > { %5785 = vrot.lane.b32.xlu1 %v4964_v50, %s13225_s13  ;;  %v6684_v50 = vld [vmem:[%s13019_s9 + $0xa8] sm:$0xff] }
 0x425   : > { %v5634_v18 = vpop.permute.xlu0 %5633 }
 0x426   : > { %5669 = vst.msk [vmem:[#allocation2 + $0x68] sm:$0xff] %vm5655_vm1, %v5634_v18  ;;  %5787 = vrot.lane.b32.xlu0 %v4967_v61, %s13225_s13  ;;  %v8670_v61 = vpack.c.bf16 %v6684_v50, %v6680_v13  ;;  %v8686_v18 = vpack.c.bf16 %v6686_v20, %v6682_v27 }
 0x427   : > { %v8436_v26 = vpop.f32.mrb[92].mxu0 }
 0x428   : > { %v4835_v31 = vpop.f32.mrb[93].mxu0  ;;  %5716 = vrot.lane.b32.xlu1 %v8436_v26, %s9591_s30  ;;  %v8672_v26 = vpack.c.bf16 %v6683_v53, %v6679_v35  ;;  %8671 = vmatprep.subr.bf16.mxu0 %v8670_v61 }
 0x429   : > { %v12374_v41 = vpop.f32.mrb[94].mxu0  ;;  %8687 = vmatprep.subr.bf16.mxu1 %v8686_v18 }
 0x42a   : > { %v4838_v7 = vpop.f32.mrb[95].mxu0  ;;  %8673 = vmatpush1.bf16.msra.mxu0 %v8672_v26 }
 0x42b   : > { %5714 = vrot.lane.b32.xlu0 %v4838_v7, %s9591_s30  ;;  %v8468_v51 = vpop.f32.mrb[92].mxu1  ;;  %v6685_v7 = vld [vmem:[%s13019_s9 + $0xb0] sm:$0xff] }
 0x42c   : > { %v4980_v34 = vpop.f32.mrb[93].mxu1  ;;  %5797 = vrot.lane.b32.xlu1 %v8468_v51, %s13225_s13 }
 0x42d   : > { %v12378_v6 = vpop.f32.mrb[94].mxu1 }
 0x42e   : > { %v4983_v12 = vpop.f32.mrb[95].mxu1 }
 0x42f   : > { %5795 = vrot.lane.b32.xlu0 %v4983_v12, %s13225_s13 }
 0x430   : > { %5712 = vrot.lane.b32.xlu1 %v4835_v31, %s9591_s30  ;;  %v6681_v31 = vld [vmem:[%s13019_s9 + $0x90] sm:$0xff] }
 0x431   : > { %v8688_v51 = vpack.c.bf16 %v6685_v7, %v6681_v31 }
 0x433   : > { %8689 = vmatpush1.bf16.msra.mxu1 %v8688_v51 }
 0x434   : > { %5793 = vrot.lane.b32.xlu1 %v4980_v34, %s13225_s13 }
 0x437   : > { %v8488_v22 = vpop.f32.mrb[96].mxu0 }
 0x438   : > { %v5077_v14 = vpop.f32.mrb[97].mxu0  ;;  %5854 = vrot.lane.b32.xlu1 %v8488_v22, %s13226_s22 }
 0x439   : > { %v8489_v39 = vpop.f32.mrb[98].mxu0 }
 0x43a   : > { %5856 = vrot.lane.b32.xlu0 %v8489_v39, %s13226_s22  ;;  %v5080_v56 = vpop.f32.mrb[99].mxu0 }
 0x43b   : > { %v8520_v5 = vpop.f32.mrb[96].mxu1 }
 0x43c   : > { %v5222_v16 = vpop.f32.mrb[97].mxu1  ;;  %5935 = vrot.lane.b32.xlu1 %v8520_v5, %s9594_s14 }
 0x43d   : > { %v8521_v37 = vpop.f32.mrb[98].mxu1 }
 0x43e   : > { %5937 = vrot.lane.b32.xlu0 %v8521_v37, %s9594_s14  ;;  %v5225_v45 = vpop.f32.mrb[99].mxu1 }
 0x440   : > { %5850 = vrot.lane.b32.xlu1 %v5077_v14, %s13226_s22 }
 0x442   : > { %5852 = vrot.lane.b32.xlu0 %v5080_v56, %s13226_s22 }
 0x444   : > { %5931 = vrot.lane.b32.xlu1 %v5222_v16, %s9594_s14 }
 0x446   : > { %5933 = vrot.lane.b32.xlu0 %v5225_v45, %s9594_s14 }
 0x447   : > { %v8492_v23 = vpop.f32.mrb[100].mxu0 }
 0x448   : > { %v5093_v55 = vpop.f32.mrb[101].mxu0  ;;  %5862 = vrot.lane.b32.xlu1 %v8492_v23, %s13226_s22  ;;  %v6690_v23 = vld [vmem:[%s13019_s9 + $0xd8] sm:$0xff] }
 0x449   : > { %v8493_v32 = vpop.f32.mrb[102].mxu0 }
 0x44a   : > { %5864 = vrot.lane.b32.xlu0 %v8493_v32, %s13226_s22  ;;  %v5096_v2 = vpop.f32.mrb[103].mxu0  ;;  %v6694_v32 = vld [vmem:[%s13019_s9 + $0xf8] sm:$0xff] }
 0x44b   : > { %v8524_v60 = vpop.f32.mrb[100].mxu1 }
 0x44c   : > { %v5238_v1 = vpop.f32.mrb[101].mxu1  ;;  %5943 = vrot.lane.b32.xlu1 %v8524_v60, %s9594_s14  ;;  %v6691_v60 = vld [vmem:[%s13019_s9 + $0xe0] sm:$0xff] }
 0x44d   : > { %v8525_v28 = vpop.f32.mrb[102].mxu1 }
 0x44e   : > { %5945 = vrot.lane.b32.xlu0 %v8525_v28, %s9594_s14  ;;  %v5241_v47 = vpop.f32.mrb[103].mxu1 }
 0x450   : > { %5858 = vrot.lane.b32.xlu1 %v5093_v55, %s13226_s22  ;;  %v8674_v55 = vpack.c.bf16 %v6692_v49, %v6688_v52 }
 0x452   : > { %5860 = vrot.lane.b32.xlu0 %v5096_v2, %s13226_s22  ;;  %v6687_v2 = vld [vmem:[%s13019_s9 + $0xc0] sm:$0xff]  ;;  %8675 = vmatprep.subr.bf16.mxu0 %v8674_v55 }
 0x453   : > { %v8676_v17 = vpack.c.bf16 %v6691_v60, %v6687_v2 }
 0x454   : > { %5939 = vrot.lane.b32.xlu1 %v5238_v1, %s9594_s14 }
 0x455   : > { %8677 = vmatpush1.bf16.msra.mxu0 %v8676_v17 }
 0x456   : > { %5941 = vrot.lane.b32.xlu0 %v5241_v47, %s9594_s14  ;;  %v8690_v47 = vpack.c.bf16 %v6694_v32, %v6690_v23 }
 0x457   : > { %v8496_v44 = vpop.f32.mrb[104].mxu0 }
 0x458   : > { %v5109_v43 = vpop.f32.mrb[105].mxu0  ;;  %5870 = vrot.lane.b32.xlu1 %v8496_v44, %s13226_s22  ;;  %8691 = vmatprep.subr.bf16.mxu1 %v8690_v47 }
 0x459   : > { %v8497_v40 = vpop.f32.mrb[106].mxu0  ;;  %8693 = vmatpush1.bf16.msra.mxu1 %v8692_v46 }
 0x45a   : > { %5872 = vrot.lane.b32.xlu0 %v8497_v40, %s13226_s22  ;;  %v5112_v0 = vpop.f32.mrb[107].mxu0 }
 0x45b   : > { %v8528_v3 = vpop.f32.mrb[104].mxu1 }
 0x45c   : > { %v5254_v10 = vpop.f32.mrb[105].mxu1  ;;  %5951 = vrot.lane.b32.xlu1 %v8528_v3, %s9594_s14 }
 0x45d   : > { %v8529_v54 = vpop.f32.mrb[106].mxu1 }
 0x45e   : > { %5953 = vrot.lane.b32.xlu0 %v8529_v54, %s9594_s14  ;;  %v5257_v9 = vpop.f32.mrb[107].mxu1 }
 0x460   : > { %5866 = vrot.lane.b32.xlu1 %v5109_v43, %s13226_s22 }
 0x462   : > { %5868 = vrot.lane.b32.xlu0 %v5112_v0, %s13226_s22 }
 0x464   : > { %5947 = vrot.lane.b32.xlu1 %v5254_v10, %s9594_s14 }
 0x466   : > { %5949 = vrot.lane.b32.xlu0 %v5257_v9, %s9594_s14 }
 0x468   : > { %v8500_v34 = vpop.f32.mrb[108].mxu0 }
 0x469   : > { %v5125_v12 = vpop.f32.mrb[109].mxu0  ;;  %5878 = vrot.lane.b32.xlu1 %v8500_v34, %s13226_s22 }
 0x46a   : > { %v12480_v22 = vpop.f32.mrb[110].mxu0  ;;  %v5693_v39 = vpop.permute.xlu1 %5692 }
 0x46b   : > { %v5128_v14 = vpop.f32.mrb[111].mxu0  ;;  %5739 = vst.msk [vmem:[#allocation2 + $0x10] sm:$0xff] %vm5736_vm2, %v5693_v39 }
 0x46c   : > { %5876 = vrot.lane.b32.xlu0 %v5128_v14, %s13226_s22  ;;  %v12484_v56 = vpop.f32.mrb[108].mxu1  ;;  %v5695_v5 = vpop.permute.xlu0 %5694 }
 0x46d   : > { %v5270_v16 = vpop.f32.mrb[109].mxu1  ;;  %5874 = vrot.lane.b32.xlu1 %v5125_v12, %s13226_s22  ;;  %5740 = vst.msk [vmem:[#allocation2 + $0x18] sm:$0xff] %vm5736_vm2, %v5695_v5  ;;  %s9596_s22 = smov 56  }
 0x46e   : > { %v12488_v37 = vpop.f32.mrb[110].mxu1  ;;  %v5774_v48 = vpop.permute.xlu1 %5773 }
 0x46f   : > { %v5273_v45 = vpop.f32.mrb[111].mxu1  ;;  %5820 = vst.msk [vmem:[#allocation2 + $0x10] sm:$0xff] %vm5817_vm3, %v5774_v48 }
 0x470   : > { %5957 = vrot.lane.b32.xlu0 %v5273_v45, %s9594_s14  ;;  %v5776_v11 = vpop.permute.xlu0 %5775 }
 0x471   : > { %5955 = vrot.lane.b32.xlu1 %v5270_v16, %s9594_s14  ;;  %5821 = vst.msk [vmem:[#allocation2 + $0x18] sm:$0xff] %vm5817_vm3, %v5776_v11 }
 0x472   : > { %v5689_v19 = vpop.permute.xlu1 %5688 }
 0x473   : > { %5737 = vst.msk [vmem:[#allocation2] sm:$0xff] %vm5736_vm2, %v5689_v19 }
 0x474   : > { %v8552_v42 = vpop.f32.mrb[112].mxu0  ;;  %v5691_v33 = vpop.permute.xlu0 %5690 }
 0x475   : > { %v5367_v21 = vpop.f32.mrb[113].mxu0  ;;  %6016 = vrot.lane.b32.xlu1 %v8552_v42, %s9595_s0  ;;  %5738 = vst.msk [vmem:[#allocation2 + $0x8] sm:$0xff] %vm5736_vm2, %v5691_v33 }
 0x476   : > { %v8553_v63 = vpop.f32.mrb[114].mxu0  ;;  %v5770_v30 = vpop.permute.xlu1 %5769 }
 0x477   : > { %6018 = vrot.lane.b32.xlu0 %v8553_v63, %s9595_s0  ;;  %v5370_v59 = vpop.f32.mrb[115].mxu0  ;;  %5818 = vst.msk [vmem:[#allocation2] sm:$0xff] %vm5817_vm3, %v5770_v30 }
 0x478   : > { %v5772_v8 = vpop.permute.xlu0 %5771 }
 0x479   : > { %5819 = vst.msk [vmem:[#allocation2 + $0x8] sm:$0xff] %vm5817_vm3, %v5772_v8 }
 0x47a   : > { %v5701_v28 = vpop.permute.xlu1 %5700 }
 0x47b   : > { %v8584_v1 = vpop.f32.mrb[112].mxu1  ;;  %5743 = vst.msk [vmem:[#allocation2 + $0x30] sm:$0xff] %vm5736_vm2, %v5701_v28 }
 0x47c   : > { %v5512_v62 = vpop.f32.mrb[113].mxu1  ;;  %6097 = vrot.lane.b32.xlu1 %v8584_v1, %s9596_s22  ;;  %v5703_v4 = vpop.permute.xlu0 %5702 }
 0x47d   : > { %v8585_v29 = vpop.f32.mrb[114].mxu1  ;;  %5744 = vst.msk [vmem:[#allocation2 + $0x38] sm:$0xff] %vm5736_vm2, %v5703_v4 }
 0x47e   : > { %6099 = vrot.lane.b32.xlu0 %v8585_v29, %s9596_s22  ;;  %v5515_v58 = vpop.f32.mrb[115].mxu1  ;;  %v5782_v36 = vpop.permute.xlu1 %5781 }
 0x47f   : > { %5824 = vst.msk [vmem:[#allocation2 + $0x30] sm:$0xff] %vm5817_vm3, %v5782_v36 }
 0x480   : > { %6012 = vrot.lane.b32.xlu1 %v5367_v21, %s9595_s0  ;;  %v5784_v57 = vpop.permute.xlu0 %5783 }
 0x481   : > { %5825 = vst.msk [vmem:[#allocation2 + $0x38] sm:$0xff] %vm5817_vm3, %v5784_v57 }
 0x482   : > { %6014 = vrot.lane.b32.xlu0 %v5370_v59, %s9595_s0  ;;  %v5697_v15 = vpop.permute.xlu1 %5696 }
 0x483   : > { %5741 = vst.msk [vmem:[#allocation2 + $0x20] sm:$0xff] %vm5736_vm2, %v5697_v15 }
 0x484   : > { %v8556_v44 = vpop.f32.mrb[116].mxu0  ;;  %6093 = vrot.lane.b32.xlu1 %v5512_v62, %s9596_s22  ;;  %v5699_v43 = vpop.permute.xlu0 %5698 }
 0x485   : > { %v5383_v40 = vpop.f32.mrb[117].mxu0  ;;  %5742 = vst.msk [vmem:[#allocation2 + $0x28] sm:$0xff] %vm5736_vm2, %v5699_v43 }
 0x486   : > { %6095 = vrot.lane.b32.xlu0 %v5515_v58, %s9596_s22  ;;  %v8557_v0 = vpop.f32.mrb[118].mxu0  ;;  %v5778_v10 = vpop.permute.xlu1 %5777 }
 0x487   : > { %v5386_v3 = vpop.f32.mrb[119].mxu0  ;;  %5822 = vst.msk [vmem:[#allocation2 + $0x20] sm:$0xff] %vm5817_vm3, %v5778_v10 }
 0x488   : > { %6024 = vrot.lane.b32.xlu1 %v8556_v44, %s9595_s0  ;;  %v5780_v54 = vpop.permute.xlu0 %5779 }
 0x489   : > { %5823 = vst.msk [vmem:[#allocation2 + $0x28] sm:$0xff] %vm5817_vm3, %v5780_v54 }
 0x48a   : > { %6026 = vrot.lane.b32.xlu0 %v8557_v0, %s9595_s0  ;;  %v5709_v13 = vpop.permute.xlu1 %5708 }
 0x48b   : > { %v8588_v9 = vpop.f32.mrb[116].mxu1  ;;  %5747 = vst.msk [vmem:[#allocation2 + $0x50] sm:$0xff] %vm5736_vm2, %v5709_v13 }
 0x48c   : > { %v5528_v50 = vpop.f32.mrb[117].mxu1  ;;  %6105 = vrot.lane.b32.xlu1 %v8588_v9, %s9596_s22  ;;  %v5711_v27 = vpop.permute.xlu0 %5710 }
 0x48d   : > { %v8589_v61 = vpop.f32.mrb[118].mxu1  ;;  %5748 = vst.msk [vmem:[#allocation2 + $0x58] sm:$0xff] %vm5736_vm2, %v5711_v27 }
 0x48e   : > { %6107 = vrot.lane.b32.xlu0 %v8589_v61, %s9596_s22  ;;  %v5531_v20 = vpop.f32.mrb[119].mxu1  ;;  %v5790_v35 = vpop.permute.xlu1 %5789 }
 0x48f   : > { %5828 = vst.msk [vmem:[#allocation2 + $0x50] sm:$0xff] %vm5817_vm3, %v5790_v35 }
 0x490   : > { %6020 = vrot.lane.b32.xlu1 %v5383_v40, %s9595_s0  ;;  %v5792_v53 = vpop.permute.xlu0 %5791 }
 0x491   : > { %5829 = vst.msk [vmem:[#allocation2 + $0x58] sm:$0xff] %vm5817_vm3, %v5792_v53 }
 0x492   : > { %6022 = vrot.lane.b32.xlu0 %v5386_v3, %s9595_s0  ;;  %v5705_v18 = vpop.permute.xlu1 %5704 }
 0x493   : > { %5745 = vst.msk [vmem:[#allocation2 + $0x40] sm:$0xff] %vm5736_vm2, %v5705_v18 }
 0x494   : > { %v8560_v26 = vpop.f32.mrb[120].mxu0  ;;  %6101 = vrot.lane.b32.xlu1 %v5528_v50, %s9596_s22  ;;  %v5707_v31 = vpop.permute.xlu0 %5706 }
 0x495   : > { %v5399_v7 = vpop.f32.mrb[121].mxu0  ;;  %5746 = vst.msk [vmem:[#allocation2 + $0x48] sm:$0xff] %vm5736_vm2, %v5707_v31 }
 0x496   : > { %6103 = vrot.lane.b32.xlu0 %v5531_v20, %s9596_s22  ;;  %v8561_v51 = vpop.f32.mrb[122].mxu0  ;;  %v5786_v12 = vpop.permute.xlu1 %5785 }
 0x497   : > { %v5402_v34 = vpop.f32.mrb[123].mxu0  ;;  %5826 = vst.msk [vmem:[#allocation2 + $0x40] sm:$0xff] %vm5817_vm3, %v5786_v12 }
 0x498   : > { %6032 = vrot.lane.b32.xlu1 %v8560_v26, %s9595_s0  ;;  %v5788_v14 = vpop.permute.xlu0 %5787 }
 0x499   : > { %5827 = vst.msk [vmem:[#allocation2 + $0x48] sm:$0xff] %vm5817_vm3, %v5788_v14 }
 0x49a   : > { %6034 = vrot.lane.b32.xlu0 %v8561_v51, %s9595_s0  ;;  %v5717_v5 = vpop.permute.xlu1 %5716 }
 0x49b   : > { %v8592_v39 = vpop.f32.mrb[120].mxu1  ;;  %5751 = vst.msk [vmem:[#allocation2 + $0x70] sm:$0xff] %vm5736_vm2, %v5717_v5 }
 0x49c   : > { %v5544_v16 = vpop.f32.mrb[121].mxu1  ;;  %6113 = vrot.lane.b32.xlu1 %v8592_v39, %s9596_s22 }
 0x49d   : > { %v8593_v45 = vpop.f32.mrb[122].mxu1  ;;  %v5715_v48 = vpop.permute.xlu0 %5714 }
 0x49e   : > { %6115 = vrot.lane.b32.xlu0 %v8593_v45, %s9596_s22  ;;  %v5547_v11 = vpop.f32.mrb[123].mxu1  ;;  %5750 = vst.msk [vmem:[#allocation2 + $0x68] sm:$0xff] %vm5736_vm2, %v5715_v48  ;;  %v5798_v19 = vpop.permute.xlu1 %5797 }
 0x49f   : > { %5832 = vst.msk [vmem:[#allocation2 + $0x70] sm:$0xff] %vm5817_vm3, %v5798_v19 }
 0x4a0   : > { %6028 = vrot.lane.b32.xlu1 %v5399_v7, %s9595_s0 }
 0x4a1   : > { %v5796_v42 = vpop.permute.xlu0 %5795 }
 0x4a2   : > { %6030 = vrot.lane.b32.xlu0 %v5402_v34, %s9595_s0  ;;  %5831 = vst.msk [vmem:[#allocation2 + $0x68] sm:$0xff] %vm5817_vm3, %v5796_v42  ;;  %v5713_v33 = vpop.permute.xlu1 %5712 }
 0x4a3   : > { %5749 = vst.msk [vmem:[#allocation2 + $0x60] sm:$0xff] %vm5736_vm2, %v5713_v33 }
 0x4a4   : > { %v8564_v21 = vpop.f32.mrb[124].mxu0  ;;  %6109 = vrot.lane.b32.xlu1 %v5544_v16, %s9596_s22 }
 0x4a5   : > { %v5415_v63 = vpop.f32.mrb[125].mxu0 }
 0x4a6   : > { %6111 = vrot.lane.b32.xlu0 %v5547_v11, %s9596_s22  ;;  %v12569_v59 = vpop.f32.mrb[126].mxu0  ;;  %v5794_v8 = vpop.permute.xlu1 %5793 }
 0x4a7   : > { %v5418_v30 = vpop.f32.mrb[127].mxu0  ;;  %5830 = vst.msk [vmem:[#allocation2 + $0x60] sm:$0xff] %vm5817_vm3, %v5794_v8 }
 0x4a8   : > { %5959 = vrot.lane.b32.xlu1 %v12484_v56, %s9594_s14 }
 0x4aa   : > { %5718 = vrot.lane.b32.xlu0 %v12374_v41, %s9591_s30  ;;  %v5855_v49 = vpop.permute.xlu1 %5854 }
 0x4ab   : > { %v8596_v52 = vpop.f32.mrb[124].mxu1  ;;  %5901 = vst.msk [vmem:[#allocation2 + $0x10] sm:$0xff] %vm5898_vm4, %v5855_v49 }
 0x4ac   : > { %v5560_v23 = vpop.f32.mrb[125].mxu1  ;;  %6040 = vrot.lane.b32.xlu1 %v8564_v21, %s9595_s0  ;;  %v7958_v55 = vpop.f32.mrb[128].mxu0 }
 0x4ad   : > { %v5857_v32 = vpop.permute.xlu0 %5856  ;;  %v12578_v2 = vpop.f32.mrb[126].mxu1 }
 0x4ae   : > { %5902 = vst.msk [vmem:[#allocation2 + $0x18] sm:$0xff] %vm5898_vm4, %v5857_v32  ;;  %5799 = vrot.lane.b32.xlu0 %v12378_v6, %s13657_s2  ;;  %v5563_v56 = vpop.f32.mrb[127].mxu1  ;;  %v7959_v60 = vpop.f32.mrb[129].mxu0  ;;  %s7230_s2 = sshll.u32 %s12831_s25, 4  ;;  %s12960_s2 = int_to_ptr.vmem [resolvable:$true] %s7230_s2 }
 0x4af   : > { %v5936_v41 = vpop.permute.xlu1 %5935  ;;  %v7960_v1 = vadd.f32 %v7959_v60, %v7958_v55 }
 0x4b0   : > { %5982 = vst.msk [vmem:[#allocation2 + $0x10] sm:$0xff] %vm5979_vm5, %v5936_v41  ;;  %6036 = vrot.lane.b32.xlu1 %v5415_v63, %s9595_s0  ;;  %v7961_v28 = vpop.f32.mrb[130].mxu0 }
 0x4b1   : > { %v5938_v47 = vpop.permute.xlu0 %5937  ;;  %v7962_v17 = vpop.f32.mrb[131].mxu0  ;;  %v6360_v62 = vadd.f32 %v7960_v1, %v12590_v24 }
 0x4b2   : > { %5983 = vst.msk [vmem:[#allocation2 + $0x18] sm:$0xff] %vm5979_vm5, %v5938_v47  ;;  %6038 = vrot.lane.b32.xlu0 %v5418_v30, %s9595_s0  ;;  %v7963_v6 = vadd.f32 %v7962_v17, %v7961_v28 }
 0x4b3   : > { %v5851_v38 = vpop.permute.xlu1 %5850  ;;  %v8038_v46 = vpop.f32.mrb[128].mxu1 }
 0x4b4   : > { %5899 = vst.msk [vmem:[#allocation2] sm:$0xff] %vm5898_vm4, %v5851_v38  ;;  %6117 = vrot.lane.b32.xlu1 %v5560_v23, %s9596_s22  ;;  %v8039_v4 = vpop.f32.mrb[129].mxu1  ;;  %v7964_v29 = vpop.f32.mrb[132].mxu0  ;;  %v6365_v43 = vadd.f32 %v7963_v6, %v12590_v24 }
 0x4b5   : > { %v5853_v58 = vpop.permute.xlu0 %5852  ;;  %v8040_v36 = vadd.f32 %v8039_v4, %v8038_v46  ;;  %v7965_v57 = vpop.f32.mrb[133].mxu0 }
 0x4b6   : > { %5900 = vst.msk [vmem:[#allocation2 + $0x8] sm:$0xff] %vm5898_vm4, %v5853_v58  ;;  %6119 = vrot.lane.b32.xlu0 %v5563_v56, %s9596_s22  ;;  %v7966_v15 = vadd.f32 %v7965_v57, %v7964_v29 }
 0x4b7   : > { %v5932_v44 = vpop.permute.xlu1 %5931  ;;  %v12598_v40 = vadd.f32 %v8040_v36, %v6360_v62  ;;  %v8041_v0 = vpop.f32.mrb[130].mxu1 }
 0x4b8   : > { %5980 = vst.msk [vmem:[#allocation2] sm:$0xff] %vm5979_vm5, %v5932_v44  ;;  %6121 = vrot.lane.b32.xlu1 %v8596_v52, %s9596_s22  ;;  %v8042_v3 = vpop.f32.mrb[131].mxu1  ;;  %v7967_v10 = vpop.f32.mrb[134].mxu0  ;;  %v6370_v61 = vadd.f32 %v7966_v15, %v12590_v24 }
 0x4b9   : > { %v5934_v54 = vpop.permute.xlu0 %5933  ;;  %v8043_v9 = vadd.f32 %v8042_v3, %v8041_v0  ;;  %v7968_v13 = vpop.f32.mrb[135].mxu0 }
 0x4ba   : > { %5981 = vst.msk [vmem:[#allocation2 + $0x8] sm:$0xff] %vm5979_vm5, %v5934_v54  ;;  %5880 = vrot.lane.b32.xlu0 %v12480_v22, %s13658_s3  ;;  %v7969_v50 = vadd.f32 %v7968_v13, %v7967_v10 }
 0x4bb   : > { %v5863_v27 = vpop.permute.xlu1 %5862  ;;  %v12606_v20 = vadd.f32 %v8043_v9, %v6365_v43  ;;  %v8044_v35 = vpop.f32.mrb[132].mxu1 }
 0x4bc   : > { %5905 = vst.msk [vmem:[#allocation2 + $0x30] sm:$0xff] %vm5898_vm4, %v5863_v27  ;;  %5961 = vrot.lane.b32.xlu1 %v12488_v37, %s9594_s14  ;;  %v8045_v53 = vpop.f32.mrb[133].mxu1  ;;  %v7970_v18 = vpop.f32.mrb[136].mxu0  ;;  %v6375_v34 = vadd.f32 %v7969_v50, %v12590_v24  ;;  %s7668_s14 = sshll.u32 %s9710_s29, 7 }
 0x4bd   : > { %v5865_v26 = vpop.permute.xlu0 %5864  ;;  %v8046_v31 = vadd.f32 %v8045_v53, %v8044_v35  ;;  %v7971_v7 = vpop.f32.mrb[137].mxu0  ;;  %s12686_s15 = scalar_lea.vmem %s13016_s6, %s7668_s14  ;;  %s12968_s14 = scalar_lea.sflag [#allocation4], %s452_s12 }
 0x4be   : > { %5906 = vst.msk [vmem:[#allocation2 + $0x38] sm:$0xff] %vm5898_vm4, %v5865_v26  ;;  %6042 = vrot.lane.b32.xlu0 %v12569_v59, %s9595_s0  ;;  %v7972_v22 = vadd.f32 %v7971_v7, %v7970_v18  ;;  %s9526_s0 = scalar_lea.vmem %s12960_s2, 8192 }
 0x4bf   : > { %v5944_v51 = vpop.permute.xlu1 %5943  ;;  %v12615_v12 = vadd.f32 %v8046_v31, %v6370_v61  ;;  %v8047_v14 = vpop.f32.mrb[134].mxu1  ;;  %p9527_p11 = scmp.ne.s32.totalorder %s12960_s2, %s9526_s0 }
 0x4c0   : > { %5986 = vst.msk [vmem:[#allocation2 + $0x30] sm:$0xff] %vm5979_vm5, %v5944_v51  ;;  %6123 = vrot.lane.b32.xlu1 %v12578_v2, %s9596_s22  ;;  %v8048_v37 = vpop.f32.mrb[135].mxu1  ;;  %v7973_v39 = vpop.f32.mrb[138].mxu0  ;;  %v6380_v42 = vadd.f32 %v7972_v22, %v12590_v24  ;;  %s7669_s22 = sshll.u32 %s9681_s21, 13 }
 0x4c1   : > { %v5946_v5 = vpop.permute.xlu0 %5945  ;;  %v8049_v16 = vadd.f32 %v8048_v37, %v8047_v14  ;;  %v7974_v45 = vpop.f32.mrb[139].mxu0  ;;  %s12958_s13 = scalar_lea.hbm %s13021_s11, %s7669_s22  ;;  %p9528_p12 = pnand %p9527_p11, %p9698_p5 }
 0x4c2   : > { %5987 = vst.msk [vmem:[#allocation2 + $0x38] sm:$0xff] %vm5979_vm5, %v5946_v5  ;;  %v7975_v48 = vadd.f32 %v7974_v45, %v7973_v39 }
 0x4c3   : > { %v5859_v11 = vpop.permute.xlu1 %5858  ;;  %v12621_v19 = vadd.f32 %v8049_v16, %v6375_v34  ;;  %v8050_v33 = vpop.f32.mrb[136].mxu1  ;;  %p9529_p13 = pneg %p9528_p12 }
 0x4c4   : > { %5903 = vst.msk [vmem:[#allocation2 + $0x20] sm:$0xff] %vm5898_vm4, %v5859_v11  ;;  %v8051_v21 = vpop.f32.mrb[137].mxu1  ;;  %v7976_v63 = vpop.f32.mrb[140].mxu0  ;;  %v6385_v23 = vadd.f32 %v7975_v48, %v12590_v24 }
 0x4c5   : > { %v5861_v59 = vpop.permute.xlu0 %5860  ;;  %v8052_v30 = vadd.f32 %v8051_v21, %v8050_v33  ;;  %v7977_v8 = vpop.f32.mrb[141].mxu0 }
 0x4c6   : > { %5904 = vst.msk [vmem:[#allocation2 + $0x28] sm:$0xff] %vm5898_vm4, %v5861_v59  ;;  %v7978_v52 = vadd.f32 %v7977_v8, %v7976_v63 }
 0x4c7   : > { %v5940_v49 = vpop.permute.xlu1 %5939  ;;  %v12627_v55 = vadd.f32 %v8052_v30, %v6380_v42  ;;  %v8053_v32 = vpop.f32.mrb[138].mxu1 }
 0x4c8   : > { %5984 = vst.msk [vmem:[#allocation2 + $0x20] sm:$0xff] %vm5979_vm5, %v5940_v49  ;;  %v8054_v2 = vpop.f32.mrb[139].mxu1  ;;  %v7979_v56 = vpop.f32.mrb[142].mxu0  ;;  %v6390_v17 = vadd.f32 %v7978_v52, %v12590_v24 }
 0x4c9   : > { %v5942_v60 = vpop.permute.xlu0 %5941  ;;  %v8055_v41 = vadd.f32 %v8054_v2, %v8053_v32  ;;  %v7980_v1 = vpop.f32.mrb[143].mxu0 }
 0x4ca   : > { %5985 = vst.msk [vmem:[#allocation2 + $0x28] sm:$0xff] %vm5979_vm5, %v5942_v60  ;;  %v7981_v28 = vadd.f32 %v7980_v1, %v7979_v56 }
 0x4cb   : > { %v5871_v47 = vpop.permute.xlu1 %5870  ;;  %v12632_v6 = vadd.f32 %v8055_v41, %v6385_v23  ;;  %v8056_v38 = vpop.f32.mrb[140].mxu1 }
 0x4cc   : > { %5909 = vst.msk [vmem:[#allocation2 + $0x50] sm:$0xff] %vm5898_vm4, %v5871_v47  ;;  %v8057_v62 = vpop.f32.mrb[141].mxu1  ;;  %v7982_v29 = vpop.f32.mrb[144].mxu0  ;;  %v6395_v57 = vadd.f32 %v7981_v28, %v12590_v24 }
 0x4cd   : > { %v5873_v46 = vpop.permute.xlu0 %5872  ;;  %v8058_v4 = vadd.f32 %v8057_v62, %v8056_v38  ;;  %v7983_v58 = vpop.f32.mrb[145].mxu0 }
 0x4ce   : > { %5910 = vst.msk [vmem:[#allocation2 + $0x58] sm:$0xff] %vm5898_vm4, %v5873_v46  ;;  %v7984_v43 = vadd.f32 %v7983_v58, %v7982_v29 }
 0x4cf   : > { %v5952_v36 = vpop.permute.xlu1 %5951  ;;  %v12637_v15 = vadd.f32 %v8058_v4, %v6390_v17  ;;  %v8059_v44 = vpop.f32.mrb[142].mxu1 }
 0x4d0   : > { %5990 = vst.msk [vmem:[#allocation2 + $0x50] sm:$0xff] %vm5979_vm5, %v5952_v36  ;;  %v8060_v0 = vpop.f32.mrb[143].mxu1  ;;  %v7985_v54 = vpop.f32.mrb[146].mxu0  ;;  %v6400_v27 = vadd.f32 %v7984_v43, %v12590_v24 }
 0x4d1   : > { %v5954_v3 = vpop.permute.xlu0 %5953  ;;  %v8061_v10 = vadd.f32 %v8060_v0, %v8059_v44  ;;  %v7986_v9 = vpop.f32.mrb[147].mxu0 }
 0x4d2   : > { %5991 = vst.msk [vmem:[#allocation2 + $0x58] sm:$0xff] %vm5979_vm5, %v5954_v3  ;;  %v7987_v35 = vadd.f32 %v7986_v9, %v7985_v54 }
 0x4d3   : > { %v5867_v13 = vpop.permute.xlu1 %5866  ;;  %v12641_v50 = vadd.f32 %v8061_v10, %v6395_v57  ;;  %v8062_v61 = vpop.f32.mrb[144].mxu1 }
 0x4d4   : > { %5907 = vst.msk [vmem:[#allocation2 + $0x40] sm:$0xff] %vm5898_vm4, %v5867_v13  ;;  %v8063_v53 = vpop.f32.mrb[145].mxu1  ;;  %v7988_v31 = vpop.f32.mrb[148].mxu0  ;;  %v6405_v51 = vadd.f32 %v7987_v35, %v12590_v24 }
 0x4d5   : > { %v5869_v18 = vpop.permute.xlu0 %5868  ;;  %v8064_v26 = vadd.f32 %v8063_v53, %v8062_v61  ;;  %v7989_v7 = vpop.f32.mrb[149].mxu0 }
 0x4d6   : > { %5908 = vst.msk [vmem:[#allocation2 + $0x48] sm:$0xff] %vm5898_vm4, %v5869_v18  ;;  %v7990_v37 = vadd.f32 %v7989_v7, %v7988_v31 }
 0x4d7   : > { %v5948_v22 = vpop.permute.xlu1 %5947  ;;  %v12647_v34 = vadd.f32 %v8064_v26, %v6400_v27  ;;  %v8065_v14 = vpop.f32.mrb[146].mxu1 }
 0x4d8   : > { %5988 = vst.msk [vmem:[#allocation2 + $0x40] sm:$0xff] %vm5979_vm5, %v5948_v22  ;;  %v8066_v39 = vpop.f32.mrb[147].mxu1  ;;  %v7991_v45 = vpop.f32.mrb[150].mxu0  ;;  %v6410_v42 = vadd.f32 %v7990_v37, %v12590_v24 }
 0x4d9   : > { %v5950_v5 = vpop.permute.xlu0 %5949  ;;  %v8067_v16 = vadd.f32 %v8066_v39, %v8065_v14  ;;  %v7992_v48 = vpop.f32.mrb[151].mxu0 }
 0x4da   : > { %5989 = vst.msk [vmem:[#allocation2 + $0x48] sm:$0xff] %vm5979_vm5, %v5950_v5  ;;  %v7993_v63 = vadd.f32 %v7992_v48, %v7991_v45 }
 0x4db   : > { %v5879_v11 = vpop.permute.xlu1 %5878  ;;  %v12652_v33 = vadd.f32 %v8067_v16, %v6405_v51  ;;  %v8068_v21 = vpop.f32.mrb[148].mxu1 }
 0x4dc   : > { %5913 = vst.msk [vmem:[#allocation2 + $0x70] sm:$0xff] %vm5898_vm4, %v5879_v11  ;;  %v8069_v59 = vpop.f32.mrb[149].mxu1  ;;  %v7994_v8 = vpop.f32.mrb[152].mxu0  ;;  %v6415_v32 = vadd.f32 %v7993_v63, %v12590_v24  ;;  %v6599_v63 = vld [vmem:[%s12686_s15] sm:$0xff] }
 0x4dd   : > { %v8070_v30 = vadd.f32 %v8069_v59, %v8068_v21  ;;  %v7995_v49 = vpop.f32.mrb[153].mxu0 }
 0x4de   : > { %v5877_v52 = vpop.permute.xlu0 %5876  ;;  %v7996_v60 = vadd.f32 %v7995_v49, %v7994_v8  ;;  %v6600_v49 = vld [vmem:[%s12686_s15 + $0x8] sm:$0xff] }
 0x4df   : > { %5912 = vst.msk [vmem:[#allocation2 + $0x68] sm:$0xff] %vm5898_vm4, %v5877_v52  ;;  %v5875_v23 = vpop.permute.xlu1 %5874  ;;  %v12657_v2 = vadd.f32 %v8070_v30, %v6410_v42  ;;  %v8071_v56 = vpop.f32.mrb[150].mxu1  ;;  %v6584_v52 = vmax.f32 %v12606_v20, 0.0 }
 0x4e0   : > { %5911 = vst.msk [vmem:[#allocation2 + $0x60] sm:$0xff] %vm5898_vm4, %v5875_v23  ;;  %v8072_v41 = vpop.f32.mrb[151].mxu1  ;;  %v7997_v28 = vpop.f32.mrb[154].mxu0  ;;  %v6420_v46 = vadd.f32 %v7996_v60, %v12590_v24  ;;  %v6585_v60 = vmax.f32 %v12615_v12, 0.0  ;;  %v6586_v12 = vmax.f32 %v12621_v19, 0.0  ;;  %v6587_v19 = vmax.f32 %v12627_v55, 0.0 }
 0x4e1   : > { %v8073_v1 = vadd.f32 %v8072_v41, %v8071_v56  ;;  %v7998_v17 = vpop.f32.mrb[155].mxu0 }
 0x4e2   : > { %v5958_v47 = vpop.permute.xlu0 %5957  ;;  %v7999_v29 = vadd.f32 %v7998_v17, %v7997_v28 }
 0x4e3   : > { %5993 = vst.msk [vmem:[#allocation2 + $0x68] sm:$0xff] %vm5979_vm5, %v5958_v47  ;;  %v5956_v38 = vpop.permute.xlu1 %5955  ;;  %v12661_v62 = vadd.f32 %v8073_v1, %v6415_v32  ;;  %v8074_v4 = vpop.f32.mrb[152].mxu1  ;;  %v6601_v1 = vld [vmem:[%s12686_s15 + $0x10] sm:$0xff] }
 0x4e4   : > { %5992 = vst.msk [vmem:[#allocation2 + $0x60] sm:$0xff] %vm5979_vm5, %v5956_v38  ;;  %v8075_v58 = vpop.f32.mrb[153].mxu1  ;;  %v8000_v57 = vpop.f32.mrb[156].mxu0  ;;  %v6425_v3 = vadd.f32 %v7999_v29, %v12590_v24  ;;  %v6617_v17 = vmul.f32 %v6601_v1, %v6585_v60  ;;  %v6593_v60 = vmax.f32 %v12657_v2, 0.0 }
 0x4e5   : > { %v8076_v36 = vadd.f32 %v8075_v58, %v8074_v4  ;;  %v8001_v44 = vpop.f32.mrb[157].mxu0  ;;  %v6594_v2 = vmax.f32 %v12661_v62, 0.0 }
 0x4e6   : > { %v8002_v54 = vadd.f32 %v8001_v44, %v8000_v57 }
 0x4e7   : > { %v6017_v43 = vpop.permute.xlu1 %6016  ;;  %v12665_v0 = vadd.f32 %v8076_v36, %v6420_v46  ;;  %v8077_v10 = vpop.f32.mrb[154].mxu1  ;;  %v6602_v46 = vld [vmem:[%s12686_s15 + $0x18] sm:$0xff] }
 0x4e8   : > { %6063 = vst.msk [vmem:[#allocation2 + $0x10] sm:$0xff] %vm6060_vm6, %v6017_v43  ;;  %v8078_v9 = vpop.f32.mrb[155].mxu1  ;;  %v8003_v61 = vpop.f32.mrb[158].mxu0  ;;  %v6430_v53 = vadd.f32 %v8002_v54, %v12590_v24  ;;  %v6618_v36 = vmul.f32 %v6602_v46, %v6586_v12  ;;  %v6603_v43 = vld [vmem:[%s12686_s15 + $0x20] sm:$0xff]  ;;  %v6610_v12 = vld [vmem:[%s12686_s15 + $0x58] sm:$0xff] }
 0x4e9   : > { %v6019_v13 = vpop.permute.xlu0 %6018  ;;  %v8079_v27 = vadd.f32 %v8078_v9, %v8077_v10  ;;  %v8004_v35 = vpop.f32.mrb[159].mxu0  ;;  %v6619_v55 = vmul.f32 %v6603_v43, %v6587_v19  ;;  %v6588_v9 = vmax.f32 %v12632_v6, 0.0  ;;  %v6595_v62 = vmax.f32 %v12665_v0, 0.0  ;;  %v6611_v19 = vld [vmem:[%s12686_s15 + $0x60] sm:$0xff] }
 0x4ea   : > { %6064 = vst.msk [vmem:[#allocation2 + $0x18] sm:$0xff] %vm6060_vm6, %v6019_v13  ;;  %v8005_v31 = vadd.f32 %v8004_v35, %v8003_v61  ;;  %v6604_v13 = vld [vmem:[%s12686_s15 + $0x28] sm:$0xff] }
 0x4eb   : > { %v12671_v18 = vadd.f32 %v8079_v27, %v6425_v3  ;;  %v8080_v26 = vpop.f32.mrb[156].mxu1  ;;  %v6627_v0 = vmul.f32 %v6611_v19, %v6595_v62 }
 0x4ec   : > { %v8081_v7 = vpop.f32.mrb[157].mxu1  ;;  %v6435_v37 = vadd.f32 %v8005_v31, %v12590_v24  ;;  %v6583_v24 = vmax.f32 %v12598_v40, 0.0  ;;  %v6616_v40 = vmul.f32 %v6600_v49, %v6584_v52  ;;  %v6605_v31 = vld [vmem:[%s12686_s15 + $0x30] sm:$0xff]  ;;  %v6592_v52 = vmax.f32 %v12652_v33, 0.0  ;;  %v6608_v49 = vld [vmem:[%s12686_s15 + $0x48] sm:$0xff] }
 0x4ed   : > { %v8082_v22 = vadd.f32 %v8081_v7, %v8080_v26  ;;  %v6589_v26 = vmax.f32 %v12637_v15, 0.0  ;;  %v6590_v15 = vmax.f32 %v12641_v50, 0.0  ;;  %v6591_v50 = vmax.f32 %v12647_v34, 0.0 }
 0x4ee   : > { %v6098_v51 = vpop.permute.xlu1 %6097  ;;  %v6615_v8 = vmul.f32 %v6599_v63, %v6583_v24  ;;  %v6607_v63 = vld [vmem:[%s12686_s15 + $0x40] sm:$0xff] }
 0x4ef   : > { %6144 = vst.msk [vmem:[#allocation2 + $0x10] sm:$0xff] %vm6141_vm7, %v6098_v51  ;;  %v12674_v14 = vadd.f32 %v8082_v22, %v6430_v53  ;;  %v8083_v39 = vpop.f32.mrb[158].mxu1  ;;  %v6620_v53 = vmul.f32 %v6604_v13, %v6588_v9  ;;  %v6623_v34 = vmul.f32 %v6607_v63, %v6591_v50 }
 0x4f0   : > { %v6100_v5 = vpop.permute.xlu0 %6099  ;;  %v8084_v16 = vpop.f32.mrb[159].mxu1 }
 0x4f1   : > { %6145 = vst.msk [vmem:[#allocation2 + $0x18] sm:$0xff] %vm6141_vm7, %v6100_v5  ;;  %v8085_v45 = vadd.f32 %v8084_v16, %v8083_v39  ;;  %v6606_v5 = vld [vmem:[%s12686_s15 + $0x38] sm:$0xff] }
 0x4f2   : > { %v6013_v48 = vpop.permute.xlu1 %6012 }
 0x4f3   : > { %6061 = vst.msk [vmem:[#allocation2] sm:$0xff] %vm6060_vm6, %v6013_v48  ;;  %v12679_v11 = vadd.f32 %v8085_v45, %v6435_v37  ;;  %v6621_v37 = vmul.f32 %v6605_v31, %v6589_v26 }
 0x4f4   : > { %v6015_v42 = vpop.permute.xlu0 %6014 }
 0x4f5   : > { %6062 = vst.msk [vmem:[#allocation2 + $0x8] sm:$0xff] %vm6060_vm6, %v6015_v42  ;;  %v6622_v42 = vmul.f32 %v6606_v5, %v6590_v15  ;;  %v6598_v31 = vmax.f32 %v12679_v11, 0.0 }
 0x4f6   : > { %v6094_v21 = vpop.permute.xlu1 %6093  ;;  %v6633_v29 = vld [vmem:[#allocation2 + $0x10] sm:$0xff] }
 0x4f7   : > { %6142 = vst.msk [vmem:[#allocation2] sm:$0xff] %vm6141_vm7, %v6094_v21  ;;  %v6649_v57 = vadd.f32 %v6633_v29, %v6617_v17  ;;  %v6626_v29 = vmul.f32 %v6610_v12, %v6594_v2 }
 0x4f8   : > { %v6096_v59 = vpop.permute.xlu0 %6095  ;;  %v6634_v44 = vld [vmem:[#allocation2 + $0x18] sm:$0xff] }
 0x4f9   : > { %6143 = vst.msk [vmem:[#allocation2 + $0x8] sm:$0xff] %vm6141_vm7, %v6096_v59  ;;  %v6650_v54 = vadd.f32 %v6634_v44, %v6618_v36 }
 0x4fa   : > { %v6025_v30 = vpop.permute.xlu1 %6024 }
 0x4fb   : > { %6067 = vst.msk [vmem:[#allocation2 + $0x30] sm:$0xff] %vm6060_vm6, %v6025_v30 }
 0x4fc   : > { %v6027_v23 = vpop.permute.xlu0 %6026 }
 0x4fd   : > { %6068 = vst.msk [vmem:[#allocation2 + $0x38] sm:$0xff] %vm6060_vm6, %v6027_v23 }
 0x4fe   : > { %v6106_v32 = vpop.permute.xlu1 %6105  ;;  %v6631_v56 = vld [vmem:[#allocation2] sm:$0xff] }
 0x4ff   : > { %6148 = vst.msk [vmem:[#allocation2 + $0x30] sm:$0xff] %vm6141_vm7, %v6106_v32  ;;  %v6647_v41 = vadd.f32 %v6631_v56, %v6615_v8 }
 0x500   : > { %v6108_v28 = vpop.permute.xlu0 %6107  ;;  %v6632_v47 = vld [vmem:[#allocation2 + $0x8] sm:$0xff] }
 0x501   : > { %6149 = vst.msk [vmem:[#allocation2 + $0x38] sm:$0xff] %vm6141_vm7, %v6108_v28  ;;  %7626 = vmatmul.mubr.msk.f32.vlgmr.msra.gmra.mrb[160].mxu0 %vm6717_vm8, %v6647_v41  ;;  %7642 = vmatmul.mubr.msk.f32.vlgmr.msra.gmra.mrb[160].mxu1 %vm6717_vm8, %v6647_v41  ;;  %v6648_v38 = vadd.f32 %v6632_v47, %v6616_v40  ;;  %v6624_v40 = vmul.f32 %v6608_v49, %v6592_v52  ;;  %v6609_v41 = vld [vmem:[%s12686_s15 + $0x50] sm:$0xff] }
 0x502   : > { %v6021_v20 = vpop.permute.xlu1 %6020  ;;  %6836 = vmatprep.mubr.f32.mxu0 %v9597_v25  ;;  %6997 = vmatprep.mubr.f32.mxu1 %v9597_v25 }
 0x503   : > { %6065 = vst.msk [vmem:[#allocation2 + $0x20] sm:$0xff] %vm6060_vm6, %v6021_v20  ;;  %v6625_v20 = vmul.f32 %v6609_v41, %v6593_v60 }
 0x504   : > { %v6023_v4 = vpop.permute.xlu0 %6022 }
 0x505   : > { %6066 = vst.msk [vmem:[#allocation2 + $0x28] sm:$0xff] %vm6060_vm6, %v6023_v4  ;;  %7627 = vmatmul.mubr.msk.f32.gmra.mrb[162].mxu0 %vm6717_vm8, %v6648_v38  ;;  %7643 = vmatmul.mubr.msk.f32.gmra.mrb[162].mxu1 %vm6717_vm8, %v6648_v38 }
 0x506   : > { %v6102_v58 = vpop.permute.xlu1 %6101  ;;  %6842 = vmatprep.mubr.f32.mxu0 %v9597_v25  ;;  %7003 = vmatprep.mubr.f32.mxu1 %v9597_v25  ;;  %v6637_v45 = vld [vmem:[#allocation2 + $0x30] sm:$0xff] }
 0x507   : > { %6146 = vst.msk [vmem:[#allocation2 + $0x20] sm:$0xff] %vm6141_vm7, %v6102_v58  ;;  %v6653_v21 = vadd.f32 %v6637_v45, %v6621_v37 }
 0x508   : > { %v6104_v3 = vpop.permute.xlu0 %6103  ;;  %v6638_v24 = vld [vmem:[#allocation2 + $0x38] sm:$0xff] }
 0x509   : > { %6147 = vst.msk [vmem:[#allocation2 + $0x28] sm:$0xff] %vm6141_vm7, %v6104_v3  ;;  %7628 = vmatmul.mubr.msk.f32.gmra.mrb[164].mxu0 %vm6717_vm8, %v6649_v57  ;;  %7644 = vmatmul.mubr.msk.f32.gmra.mrb[164].mxu1 %vm6717_vm8, %v6649_v57  ;;  %v6654_v8 = vadd.f32 %v6638_v24, %v6622_v42  ;;  %v6596_v3 = vmax.f32 %v12671_v18, 0.0  ;;  %v6597_v18 = vmax.f32 %v12674_v14, 0.0 }
 0x50a   : > { %v6033_v10 = vpop.permute.xlu1 %6032  ;;  %6848 = vmatprep.mubr.f32.mxu0 %v9597_v25  ;;  %7009 = vmatprep.mubr.f32.mxu1 %v9597_v25 }
 0x50b   : > { %6071 = vst.msk [vmem:[#allocation2 + $0x50] sm:$0xff] %vm6060_vm6, %v6033_v10  ;;  %v6612_v10 = vld [vmem:[%s12686_s15 + $0x68] sm:$0xff] }
 0x50c   : > { %v6035_v27 = vpop.permute.xlu0 %6034  ;;  %v6628_v13 = vmul.f32 %v6612_v10, %v6596_v3 }
 0x50d   : > { %6072 = vst.msk [vmem:[#allocation2 + $0x58] sm:$0xff] %vm6060_vm6, %v6035_v27  ;;  %7629 = vmatmul.mubr.msk.f32.gmra.mrb[166].mxu0 %vm6717_vm8, %v6650_v54  ;;  %7645 = vmatmul.mubr.msk.f32.gmra.mrb[166].mxu1 %vm6717_vm8, %v6650_v54 }
 0x50e   : > { %v6114_v61 = vpop.permute.xlu1 %6113  ;;  %6854 = vmatprep.mubr.f32.mxu0 %v9597_v25  ;;  %7015 = vmatprep.mubr.f32.mxu1 %v9597_v25  ;;  %v6635_v35 = vld [vmem:[#allocation2 + $0x20] sm:$0xff] }
 0x50f   : > { %6152 = vst.msk [vmem:[#allocation2 + $0x50] sm:$0xff] %vm6141_vm7, %v6114_v61  ;;  %v6651_v6 = vadd.f32 %v6635_v35, %v6619_v55  ;;  %v6613_v35 = vld [vmem:[%s12686_s15 + $0x70] sm:$0xff] }
 0x510   : > { %v6116_v7 = vpop.permute.xlu0 %6115  ;;  %v6636_v22 = vld [vmem:[#allocation2 + $0x28] sm:$0xff]  ;;  %v6629_v14 = vmul.f32 %v6613_v35, %v6597_v18 }
 0x511   : > { %6153 = vst.msk [vmem:[#allocation2 + $0x58] sm:$0xff] %vm6141_vm7, %v6116_v7  ;;  %7630 = vmatmul.mubr.msk.f32.gmra.mrb[168].mxu0 %vm6717_vm8, %v6651_v6  ;;  %7646 = vmatmul.mubr.msk.f32.gmra.mrb[168].mxu1 %vm6717_vm8, %v6651_v6  ;;  %v6652_v39 = vadd.f32 %v6636_v22, %v6620_v53  ;;  %v6614_v7 = vld [vmem:[%s12686_s15 + $0x78] sm:$0xff]  ;;  %s9530_s15 = sshll.u32 %s9598_s1, 4  ;;  %s9531_s15 = int_to_ptr.vmem [resolvable:$false] %s9530_s15 }
 0x512   : > { %v6029_v51 = vpop.permute.xlu1 %6028  ;;  %6860 = vmatprep.mubr.f32.mxu0 %v9597_v25  ;;  %7021 = vmatprep.mubr.f32.mxu1 %v9597_v25  ;;  %s9532_s29 = scalar_lea.vmem %s9531_s15, 16384  ;;  %p9533_p0 = scmp.lt.s32.totalorder %s12960_s2, %s9531_s15 }
 0x513   : > { %6069 = vst.msk [vmem:[#allocation2 + $0x40] sm:$0xff] %vm6060_vm6, %v6029_v51  ;;  %v6630_v51 = vmul.f32 %v6614_v7, %v6598_v31  ;;  %p9534_p1 = scmp.lt.s32.totalorder %s9532_s29, %s9526_s0 }
 0x514   : > { %v6031_v16 = vpop.permute.xlu0 %6030 }
 0x515   : > { %6070 = vst.msk [vmem:[#allocation2 + $0x48] sm:$0xff] %vm6060_vm6, %v6031_v16  ;;  %7631 = vmatmul.mubr.msk.f32.gmra.mrb[170].mxu0 %vm6717_vm8, %v6652_v39  ;;  %7647 = vmatmul.mubr.msk.f32.gmra.mrb[170].mxu1 %vm6717_vm8, %v6652_v39  ;;  %v6697_v39 = vlaneseq  ;;  %p9535_p2 = por %p9534_p1, %p9533_p0 }
 0x516   : > { %v6110_v48 = vpop.permute.xlu1 %6109  ;;  %6866 = vmatprep.mubr.f32.mxu0 %v9597_v25  ;;  %7027 = vmatprep.mubr.f32.mxu1 %v9597_v25  ;;  %v6641_v46 = vld [vmem:[#allocation2 + $0x50] sm:$0xff] }
 0x517   : > { %6150 = vst.msk [vmem:[#allocation2 + $0x40] sm:$0xff] %vm6141_vm7, %v6110_v48  ;;  %v6657_v58 = vadd.f32 %v6641_v46, %v6625_v20  ;;  %v6698_v5 = vshrl.u32 %v6697_v39, 7  ;;  %v6695_v48 = vld [vmem:[%s13020_s10] sm:$0xf]  ;;  %p9536_p3 = pnand %p9535_p2, %p9529_p13 }
 0x518   : > { %v6112_v59 = vpop.permute.xlu0 %6111  ;;  %v6642_v36 = vld [vmem:[#allocation2 + $0x58] sm:$0xff] }
 0x519   : > { %6151 = vst.msk [vmem:[#allocation2 + $0x48] sm:$0xff] %vm6141_vm7, %v6112_v59  ;;  %7632 = vmatmul.mubr.msk.f32.gmra.mrb[172].mxu0 %vm6717_vm8, %v6653_v21  ;;  %7648 = vmatmul.mubr.msk.f32.gmra.mrb[172].mxu1 %vm6717_vm8, %v6653_v21  ;;  %v6658_v43 = vadd.f32 %v6642_v36, %v6626_v29  ;;  %v6699_v16 = vsub.s32 0, %v6698_v5  ;;  %v6707_v45 = vsub.s32 2, %v6698_v5  ;;  %v6703_v42 = vsub.s32 1, %v6698_v5 }
 0x51a   : > { %v5960_v30 = vpop.permute.xlu1 %5959  ;;  %6872 = vmatprep.mubr.f32.mxu0 %v9597_v25  ;;  %7033 = vmatprep.mubr.f32.mxu1 %v9597_v25  ;;  %v6711_v50 = vsub.s32 3, %v6698_v5 }
 0x51b   : > { %5994 = vst.msk [vmem:[#allocation2 + $0x70] sm:$0xff] %vm5979_vm5, %v5960_v30  ;;  %v12817_v21 = vrot.slane %v6695_v48, %v6699_v16  ;;  %v12821_v24 = vrot.slane %v6695_v48, %v6703_v42 }
 0x51c   : > { %v5719_v23 = vpop.permute.xlu0 %5718  ;;  %v12823_v63 = vrot.slane %v6695_v48, %v6711_v50 }
 0x51d   : > { %5752 = vst.msk [vmem:[#allocation2 + $0x78] sm:$0xff] %vm5736_vm2, %v5719_v23  ;;  %7633 = vmatmul.mubr.msk.f32.gmra.mrb[174].mxu0 %vm6717_vm8, %v6654_v8  ;;  %7649 = vmatmul.mubr.msk.f32.gmra.mrb[174].mxu1 %vm6717_vm8, %v6654_v8 }
 0x51e   : > { %v6041_v32 = vpop.permute.xlu1 %6040  ;;  %6878 = vmatprep.mubr.f32.mxu0 %v9597_v25  ;;  %7039 = vmatprep.mubr.f32.mxu1 %v9597_v25  ;;  %v6639_v56 = vld [vmem:[#allocation2 + $0x40] sm:$0xff] }
 0x51f   : > { %6075 = vst.msk [vmem:[#allocation2 + $0x70] sm:$0xff] %vm6060_vm6, %v6041_v32  ;;  %v6655_v33 = vadd.f32 %v6639_v56, %v6623_v34 }
 0x520   : > { %v5800_v1 = vpop.permute.xlu0 %5799  ;;  %v6640_v28 = vld [vmem:[#allocation2 + $0x48] sm:$0xff] }
 0x521   : > { %5833 = vst.msk [vmem:[#allocation2 + $0x78] sm:$0xff] %vm5817_vm3, %v5800_v1  ;;  %7634 = vmatmul.mubr.msk.f32.gmra.mrb[176].mxu0 %vm6717_vm8, %v6655_v33  ;;  %7650 = vmatmul.mubr.msk.f32.gmra.mrb[176].mxu1 %vm6717_vm8, %v6655_v33  ;;  %v6656_v17 = vadd.f32 %v6640_v28, %v6624_v40 }
 0x522   : > { %v6037_v47 = vpop.permute.xlu1 %6036  ;;  %6884 = vmatprep.mubr.f32.mxu0 %v9597_v25  ;;  %7045 = vmatprep.mubr.f32.mxu1 %v9597_v25 }
 0x523   : > { %6073 = vst.msk [vmem:[#allocation2 + $0x60] sm:$0xff] %vm6060_vm6, %v6037_v47 }
 0x524   : > { %v6039_v38 = vpop.permute.xlu0 %6038 }
 0x525   : > { %6074 = vst.msk [vmem:[#allocation2 + $0x68] sm:$0xff] %vm6060_vm6, %v6039_v38  ;;  %7635 = vmatmul.mubr.msk.f32.gmra.mrb[178].mxu0 %vm6717_vm8, %v6656_v17  ;;  %7651 = vmatmul.mubr.msk.f32.gmra.mrb[178].mxu1 %vm6717_vm8, %v6656_v17 }
 0x526   : > { %v6118_v4 = vpop.permute.xlu1 %6117  ;;  %6890 = vmatprep.mubr.f32.mxu0 %v9597_v25  ;;  %7051 = vmatprep.mubr.f32.mxu1 %v9597_v25 }
 0x527   : > { %6154 = vst.msk [vmem:[#allocation2 + $0x60] sm:$0xff] %vm6141_vm7, %v6118_v4 }
 0x528   : > { %v6120_v57 = vpop.permute.xlu0 %6119 }
 0x529   : > { %6155 = vst.msk [vmem:[#allocation2 + $0x68] sm:$0xff] %vm6141_vm7, %v6120_v57  ;;  %7636 = vmatmul.mubr.msk.f32.gmra.mrb[180].mxu0 %vm6717_vm8, %v6657_v58  ;;  %7652 = vmatmul.mubr.msk.f32.gmra.mrb[180].mxu1 %vm6717_vm8, %v6657_v58 }
 0x52a   : > { %v6122_v44 = vpop.permute.xlu1 %6121  ;;  %6896 = vmatprep.mubr.f32.mxu0 %v9597_v25  ;;  %7057 = vmatprep.mubr.f32.mxu1 %v9597_v25 }
 0x52b   : > { %6156 = vst.msk [vmem:[#allocation2 + $0x70] sm:$0xff] %vm6141_vm7, %v6122_v44 }
 0x52c   : > { %v5881_v54 = vpop.permute.xlu0 %5880 }
 0x52d   : > { %5914 = vst.msk [vmem:[#allocation2 + $0x78] sm:$0xff] %vm5898_vm4, %v5881_v54  ;;  %7637 = vmatmul.mubr.msk.f32.gmra.mrb[182].mxu0 %vm6717_vm8, %v6658_v43  ;;  %7653 = vmatmul.mubr.msk.f32.gmra.mrb[182].mxu1 %vm6717_vm8, %v6658_v43 }
 0x52e   : > { %v5962_v55 = vpop.permute.xlu1 %5961  ;;  %6902 = vmatprep.mubr.f32.mxu0 %v9597_v25  ;;  %7063 = vmatprep.mubr.f32.mxu1 %v9597_v25  ;;  %v6643_v9 = vld [vmem:[#allocation2 + $0x60] sm:$0xff] }
 0x52f   : > { %5995 = vst.msk [vmem:[#allocation2 + $0x78] sm:$0xff] %vm5979_vm5, %v5962_v55  ;;  %v6659_v27 = vadd.f32 %v6643_v9, %v6627_v0 }
 0x530   : > { %v6644_v61 = vld [vmem:[#allocation2 + $0x68] sm:$0xff]  ;;  %v6043_v53 = vpop.permute.xlu0 %6042 }
 0x531   : > { %6076 = vst.msk [vmem:[#allocation2 + $0x78] sm:$0xff] %vm6060_vm6, %v6043_v53  ;;  %7638 = vmatmul.mubr.msk.f32.gmra.mrb[184].mxu0 %vm6717_vm8, %v6659_v27  ;;  %7654 = vmatmul.mubr.msk.f32.gmra.mrb[184].mxu1 %vm6717_vm8, %v6659_v27  ;;  %v6660_v6 = vadd.f32 %v6644_v61, %v6628_v13 }
 0x532   : > { %v6124_v26 = vpop.permute.xlu1 %6123  ;;  %6908 = vmatprep.mubr.f32.mxu0 %v9597_v25  ;;  %7069 = vmatprep.mubr.f32.mxu1 %v9597_v25  ;;  %v6645_v22 = vld [vmem:[#allocation2 + $0x70] sm:$0xff] }
 0x533   : > { %6157 = vst.msk [vmem:[#allocation2 + $0x78] sm:$0xff] %vm6141_vm7, %v6124_v26  ;;  %v6661_v37 = vadd.f32 %v6645_v22, %v6629_v14 }
 0x535   : > { %7639 = vmatmul.mubr.msk.f32.gmra.mrb[186].mxu0 %vm6717_vm8, %v6660_v6  ;;  %7655 = vmatmul.mubr.msk.f32.gmra.mrb[186].mxu1 %vm6717_vm8, %v6660_v6 }
 0x536   : > { %6914 = vmatprep.mubr.f32.mxu0 %v9597_v25  ;;  %7075 = vmatprep.mubr.f32.mxu1 %v9597_v25 }
 0x539   : > { %7640 = vmatmul.mubr.msk.f32.gmra.mrb[188].mxu0 %vm6717_vm8, %v6661_v37  ;;  %7656 = vmatmul.mubr.msk.f32.gmra.mrb[188].mxu1 %vm6717_vm8, %v6661_v37 }
 0x53a   : > { %6920 = vmatprep.mubr.f32.mxu0 %v9597_v25  ;;  %7081 = vmatprep.mubr.f32.mxu1 %v9597_v25  ;;  %v6646_v11 = vld [vmem:[#allocation2 + $0x78] sm:$0xff]  ;;  %v12819_v25 = vrot.slane %v6695_v48, %v6707_v45 }
 0x53b   : > { %v6662_v15 = vadd.f32 %v6646_v11, %v6630_v51 }
 0x53d   : > { %7641 = vmatmul.mubr.msk.f32.gmra.mrb[190].mxu0 %vm6717_vm8, %v6662_v15  ;;  %7657 = vmatmul.mubr.msk.f32.gmra.mrb[190].mxu1 %vm6717_vm8, %v6662_v15 }
 0x5d4   : > { %v6832_v59 = vpop.f32.mrb[160].mxu0  ;;  %v6993_v30 = vpop.f32.mrb[160].mxu1 }
 0x5d5   : > { %v6833_v8 = vadd.f32 %v6832_v59, %v12817_v21  ;;  %v6994_v34 = vadd.f32 %v6993_v30, %v12819_v25  ;;  %v6834_v52 = vpop.f32.mrb[161].mxu0  ;;  %v6995_v49 = vpop.f32.mrb[161].mxu1 }
 0x5d6   : > { %v6835_v23 = vadd.f32 %v6834_v52, %v12821_v24  ;;  %v6996_v32 = vadd.f32 %v6995_v49, %v12823_v63 }
 0x5d7   : > { %v7088_v56 = vmax.f32 %v6833_v8, 0.0  ;;  %v7090_v40 = vmax.f32 %v6994_v34, 0.0 }
 0x5d8   : > { %v7089_v60 = vmax.f32 %v6835_v23, 0.0  ;;  %v7091_v33 = vmax.f32 %v6996_v32, 0.0  ;;  %v6838_v41 = vpop.f32.mrb[162].mxu0  ;;  %v6999_v1 = vpop.f32.mrb[162].mxu1 }
 0x5d9   : > { %7152 = vst [vmem:[%s12831_s25] sm:$0xff] %v7088_v56  ;;  %7154 = vst [vmem:[%s12831_s25 + $0x10] sm:$0xff] %v7090_v40  ;;  %v6839_v28 = vadd.f32 %v6838_v41, %v12817_v21  ;;  %v7000_v47 = vadd.f32 %v6999_v1, %v12819_v25  ;;  %v6840_v20 = vpop.f32.mrb[163].mxu0  ;;  %v7001_v2 = vpop.f32.mrb[163].mxu1 }
 0x5da   : > { %7153 = vst [vmem:[%s12831_s25 + $0x8] sm:$0xff] %v7089_v60  ;;  %7155 = vst [vmem:[%s12831_s25 + $0x18] sm:$0xff] %v7091_v33  ;;  %v6841_v17 = vadd.f32 %v6840_v20, %v12821_v24  ;;  %v7002_v12 = vadd.f32 %v7001_v2, %v12823_v63 }
 0x5db   : > { %v7092_v38 = vmax.f32 %v6839_v28, 0.0  ;;  %v7094_v46 = vmax.f32 %v7000_v47, 0.0 }
 0x5dc   : > { %v7093_v4 = vmax.f32 %v6841_v17, 0.0  ;;  %v7095_v29 = vmax.f32 %v7002_v12, 0.0  ;;  %v6844_v62 = vpop.f32.mrb[164].mxu0  ;;  %v7005_v58 = vpop.f32.mrb[164].mxu1 }
 0x5dd   : > { %7156 = vst [vmem:[%s12831_s25 + $0x20] sm:$0xff] %v7092_v38  ;;  %7158 = vst [vmem:[%s12831_s25 + $0x30] sm:$0xff] %v7094_v46  ;;  %v6845_v36 = vadd.f32 %v6844_v62, %v12817_v21  ;;  %v7006_v19 = vadd.f32 %v7005_v58, %v12819_v25  ;;  %v6846_v57 = vpop.f32.mrb[165].mxu0  ;;  %v7007_v44 = vpop.f32.mrb[165].mxu1 }
 0x5de   : > { %7157 = vst [vmem:[%s12831_s25 + $0x28] sm:$0xff] %v7093_v4  ;;  %7159 = vst [vmem:[%s12831_s25 + $0x38] sm:$0xff] %v7095_v29  ;;  %v6847_v43 = vadd.f32 %v6846_v57, %v12821_v24  ;;  %v7008_v0 = vadd.f32 %v7007_v44, %v12823_v63 }
 0x5df   : > { %v7096_v3 = vmax.f32 %v6845_v36, 0.0  ;;  %v7098_v10 = vmax.f32 %v7006_v19, 0.0 }
 0x5e0   : > { %v7097_v54 = vmax.f32 %v6847_v43, 0.0  ;;  %v7099_v55 = vmax.f32 %v7008_v0, 0.0  ;;  %v6850_v9 = vpop.f32.mrb[166].mxu0  ;;  %v7011_v13 = vpop.f32.mrb[166].mxu1 }
 0x5e1   : > { %7160 = vst [vmem:[%s12831_s25 + $0x40] sm:$0xff] %v7096_v3  ;;  %7162 = vst [vmem:[%s12831_s25 + $0x50] sm:$0xff] %v7098_v10  ;;  %v6851_v18 = vadd.f32 %v6850_v9, %v12817_v21  ;;  %v7012_v27 = vadd.f32 %v7011_v13, %v12819_v25  ;;  %v6852_v61 = vpop.f32.mrb[167].mxu0  ;;  %v7013_v35 = vpop.f32.mrb[167].mxu1 }
 0x5e2   : > { %7161 = vst [vmem:[%s12831_s25 + $0x48] sm:$0xff] %v7097_v54  ;;  %7163 = vst [vmem:[%s12831_s25 + $0x58] sm:$0xff] %v7099_v55  ;;  %v6853_v53 = vadd.f32 %v6852_v61, %v12821_v24  ;;  %v7014_v26 = vadd.f32 %v7013_v35, %v12823_v63 }
 0x5e3   : > { %v7100_v6 = vmax.f32 %v6851_v18, 0.0  ;;  %v7102_v14 = vmax.f32 %v7012_v27, 0.0 }
 0x5e4   : > { %v7101_v31 = vmax.f32 %v6853_v53, 0.0  ;;  %v7103_v7 = vmax.f32 %v7014_v26, 0.0  ;;  %v6856_v22 = vpop.f32.mrb[168].mxu0  ;;  %v7017_v51 = vpop.f32.mrb[168].mxu1 }
 0x5e5   : > { %7164 = vst [vmem:[%s12831_s25 + $0x60] sm:$0xff] %v7100_v6  ;;  %7166 = vst [vmem:[%s12831_s25 + $0x70] sm:$0xff] %v7102_v14  ;;  %v6857_v37 = vadd.f32 %v6856_v22, %v12817_v21  ;;  %v7018_v11 = vadd.f32 %v7017_v51, %v12819_v25  ;;  %v6858_v15 = vpop.f32.mrb[169].mxu0  ;;  %v7019_v39 = vpop.f32.mrb[169].mxu1 }
 0x5e6   : > { %7165 = vst [vmem:[%s12831_s25 + $0x68] sm:$0xff] %v7101_v31  ;;  %7167 = vst [vmem:[%s12831_s25 + $0x78] sm:$0xff] %v7103_v7  ;;  %v6859_v5 = vadd.f32 %v6858_v15, %v12821_v24  ;;  %v7020_v16 = vadd.f32 %v7019_v39, %v12823_v63 }
 0x5e7   : > { %v7104_v45 = vmax.f32 %v6857_v37, 0.0  ;;  %v7106_v48 = vmax.f32 %v7018_v11, 0.0 }
 0x5e8   : > { %v7105_v42 = vmax.f32 %v6859_v5, 0.0  ;;  %v7107_v50 = vmax.f32 %v7020_v16, 0.0  ;;  %v6862_v59 = vpop.f32.mrb[170].mxu0  ;;  %v7023_v30 = vpop.f32.mrb[170].mxu1 }
 0x5e9   : > { %7168 = vst [vmem:[%s12831_s25 + $0x80] sm:$0xff] %v7104_v45  ;;  %7170 = vst [vmem:[%s12831_s25 + $0x90] sm:$0xff] %v7106_v48  ;;  %v6863_v8 = vadd.f32 %v6862_v59, %v12817_v21  ;;  %v7024_v34 = vadd.f32 %v7023_v30, %v12819_v25  ;;  %v6864_v52 = vpop.f32.mrb[171].mxu0  ;;  %v7025_v49 = vpop.f32.mrb[171].mxu1 }
 0x5ea   : > { %7169 = vst [vmem:[%s12831_s25 + $0x88] sm:$0xff] %v7105_v42  ;;  %7171 = vst [vmem:[%s12831_s25 + $0x98] sm:$0xff] %v7107_v50  ;;  %v6865_v23 = vadd.f32 %v6864_v52, %v12821_v24  ;;  %v7026_v32 = vadd.f32 %v7025_v49, %v12823_v63 }
 0x5eb   : > { %v7108_v56 = vmax.f32 %v6863_v8, 0.0  ;;  %v7110_v40 = vmax.f32 %v7024_v34, 0.0 }
 0x5ec   : > { %v7109_v60 = vmax.f32 %v6865_v23, 0.0  ;;  %v7111_v33 = vmax.f32 %v7026_v32, 0.0  ;;  %v6868_v41 = vpop.f32.mrb[172].mxu0  ;;  %v7029_v1 = vpop.f32.mrb[172].mxu1 }
 0x5ed   : > { %7172 = vst [vmem:[%s12831_s25 + $0xa0] sm:$0xff] %v7108_v56  ;;  %7174 = vst [vmem:[%s12831_s25 + $0xb0] sm:$0xff] %v7110_v40  ;;  %v6869_v28 = vadd.f32 %v6868_v41, %v12817_v21  ;;  %v7030_v47 = vadd.f32 %v7029_v1, %v12819_v25  ;;  %v6870_v20 = vpop.f32.mrb[173].mxu0  ;;  %v7031_v2 = vpop.f32.mrb[173].mxu1 }
 0x5ee   : > { %7173 = vst [vmem:[%s12831_s25 + $0xa8] sm:$0xff] %v7109_v60  ;;  %7175 = vst [vmem:[%s12831_s25 + $0xb8] sm:$0xff] %v7111_v33  ;;  %v6871_v17 = vadd.f32 %v6870_v20, %v12821_v24  ;;  %v7032_v12 = vadd.f32 %v7031_v2, %v12823_v63 }
 0x5ef   : > { %v7112_v38 = vmax.f32 %v6869_v28, 0.0  ;;  %v7114_v46 = vmax.f32 %v7030_v47, 0.0 }
 0x5f0   : > { %v7113_v4 = vmax.f32 %v6871_v17, 0.0  ;;  %v7115_v29 = vmax.f32 %v7032_v12, 0.0  ;;  %v6874_v62 = vpop.f32.mrb[174].mxu0  ;;  %v7035_v58 = vpop.f32.mrb[174].mxu1 }
 0x5f1   : > { %7176 = vst [vmem:[%s12831_s25 + $0xc0] sm:$0xff] %v7112_v38  ;;  %7178 = vst [vmem:[%s12831_s25 + $0xd0] sm:$0xff] %v7114_v46  ;;  %v6875_v36 = vadd.f32 %v6874_v62, %v12817_v21  ;;  %v7036_v19 = vadd.f32 %v7035_v58, %v12819_v25  ;;  %v6876_v57 = vpop.f32.mrb[175].mxu0  ;;  %v7037_v44 = vpop.f32.mrb[175].mxu1 }
 0x5f2   : > { %7177 = vst [vmem:[%s12831_s25 + $0xc8] sm:$0xff] %v7113_v4  ;;  %7179 = vst [vmem:[%s12831_s25 + $0xd8] sm:$0xff] %v7115_v29  ;;  %v6877_v43 = vadd.f32 %v6876_v57, %v12821_v24  ;;  %v7038_v0 = vadd.f32 %v7037_v44, %v12823_v63 }
 0x5f3   : > { %v7116_v3 = vmax.f32 %v6875_v36, 0.0  ;;  %v7118_v10 = vmax.f32 %v7036_v19, 0.0 }
 0x5f4   : > { %v7117_v54 = vmax.f32 %v6877_v43, 0.0  ;;  %v7119_v55 = vmax.f32 %v7038_v0, 0.0  ;;  %v6880_v9 = vpop.f32.mrb[176].mxu0  ;;  %v7041_v13 = vpop.f32.mrb[176].mxu1 }
 0x5f5   : > { %7180 = vst [vmem:[%s12831_s25 + $0xe0] sm:$0xff] %v7116_v3  ;;  %7182 = vst [vmem:[%s12831_s25 + $0xf0] sm:$0xff] %v7118_v10  ;;  %v6881_v18 = vadd.f32 %v6880_v9, %v12817_v21  ;;  %v7042_v27 = vadd.f32 %v7041_v13, %v12819_v25  ;;  %v6882_v61 = vpop.f32.mrb[177].mxu0  ;;  %v7043_v35 = vpop.f32.mrb[177].mxu1 }
 0x5f6   : > { %7181 = vst [vmem:[%s12831_s25 + $0xe8] sm:$0xff] %v7117_v54  ;;  %7183 = vst [vmem:[%s12831_s25 + $0xf8] sm:$0xff] %v7119_v55  ;;  %v6883_v53 = vadd.f32 %v6882_v61, %v12821_v24  ;;  %v7044_v26 = vadd.f32 %v7043_v35, %v12823_v63 }
 0x5f7   : > { %v7120_v6 = vmax.f32 %v6881_v18, 0.0  ;;  %v7122_v14 = vmax.f32 %v7042_v27, 0.0 }
 0x5f8   : > { %v7121_v31 = vmax.f32 %v6883_v53, 0.0  ;;  %v7123_v7 = vmax.f32 %v7044_v26, 0.0  ;;  %v6886_v22 = vpop.f32.mrb[178].mxu0  ;;  %v7047_v51 = vpop.f32.mrb[178].mxu1 }
 0x5f9   : > { %7184 = vst [vmem:[%s12831_s25 + $0x100] sm:$0xff] %v7120_v6  ;;  %7186 = vst [vmem:[%s12831_s25 + $0x110] sm:$0xff] %v7122_v14  ;;  %v6887_v37 = vadd.f32 %v6886_v22, %v12817_v21  ;;  %v7048_v11 = vadd.f32 %v7047_v51, %v12819_v25  ;;  %v6888_v15 = vpop.f32.mrb[179].mxu0  ;;  %v7049_v39 = vpop.f32.mrb[179].mxu1 }
 0x5fa   : > { %7185 = vst [vmem:[%s12831_s25 + $0x108] sm:$0xff] %v7121_v31  ;;  %7187 = vst [vmem:[%s12831_s25 + $0x118] sm:$0xff] %v7123_v7  ;;  %v6889_v5 = vadd.f32 %v6888_v15, %v12821_v24  ;;  %v7050_v16 = vadd.f32 %v7049_v39, %v12823_v63 }
 0x5fb   : > { %v7124_v45 = vmax.f32 %v6887_v37, 0.0  ;;  %v7126_v48 = vmax.f32 %v7048_v11, 0.0 }
 0x5fc   : > { %v7125_v42 = vmax.f32 %v6889_v5, 0.0  ;;  %v7127_v50 = vmax.f32 %v7050_v16, 0.0  ;;  %v6892_v59 = vpop.f32.mrb[180].mxu0  ;;  %v7053_v30 = vpop.f32.mrb[180].mxu1 }
 0x5fd   : > { %7188 = vst [vmem:[%s12831_s25 + $0x120] sm:$0xff] %v7124_v45  ;;  %7190 = vst [vmem:[%s12831_s25 + $0x130] sm:$0xff] %v7126_v48  ;;  %v6893_v8 = vadd.f32 %v6892_v59, %v12817_v21  ;;  %v7054_v34 = vadd.f32 %v7053_v30, %v12819_v25  ;;  %v6894_v52 = vpop.f32.mrb[181].mxu0  ;;  %v7055_v49 = vpop.f32.mrb[181].mxu1 }
 0x5fe   : > { %7189 = vst [vmem:[%s12831_s25 + $0x128] sm:$0xff] %v7125_v42  ;;  %7191 = vst [vmem:[%s12831_s25 + $0x138] sm:$0xff] %v7127_v50  ;;  %v6895_v23 = vadd.f32 %v6894_v52, %v12821_v24  ;;  %v7056_v32 = vadd.f32 %v7055_v49, %v12823_v63 }
 0x5ff   : > { %v7128_v56 = vmax.f32 %v6893_v8, 0.0  ;;  %v7130_v40 = vmax.f32 %v7054_v34, 0.0 }
 0x600   : > { %v7129_v60 = vmax.f32 %v6895_v23, 0.0  ;;  %v7131_v33 = vmax.f32 %v7056_v32, 0.0  ;;  %v6898_v41 = vpop.f32.mrb[182].mxu0  ;;  %v7059_v1 = vpop.f32.mrb[182].mxu1 }
 0x601   : > { %7192 = vst [vmem:[%s12831_s25 + $0x140] sm:$0xff] %v7128_v56  ;;  %7194 = vst [vmem:[%s12831_s25 + $0x150] sm:$0xff] %v7130_v40  ;;  %v6899_v28 = vadd.f32 %v6898_v41, %v12817_v21  ;;  %v7060_v47 = vadd.f32 %v7059_v1, %v12819_v25  ;;  %v6900_v20 = vpop.f32.mrb[183].mxu0  ;;  %v7061_v2 = vpop.f32.mrb[183].mxu1 }
 0x602   : > { %7193 = vst [vmem:[%s12831_s25 + $0x148] sm:$0xff] %v7129_v60  ;;  %7195 = vst [vmem:[%s12831_s25 + $0x158] sm:$0xff] %v7131_v33  ;;  %v6901_v17 = vadd.f32 %v6900_v20, %v12821_v24  ;;  %v7062_v12 = vadd.f32 %v7061_v2, %v12823_v63 }
 0x603   : > { %v7132_v38 = vmax.f32 %v6899_v28, 0.0  ;;  %v7134_v46 = vmax.f32 %v7060_v47, 0.0 }
 0x604   : > { %v7133_v4 = vmax.f32 %v6901_v17, 0.0  ;;  %v7135_v29 = vmax.f32 %v7062_v12, 0.0  ;;  %v6904_v62 = vpop.f32.mrb[184].mxu0  ;;  %v7065_v58 = vpop.f32.mrb[184].mxu1 }
 0x605   : > { %7196 = vst [vmem:[%s12831_s25 + $0x160] sm:$0xff] %v7132_v38  ;;  %7198 = vst [vmem:[%s12831_s25 + $0x170] sm:$0xff] %v7134_v46  ;;  %v6905_v36 = vadd.f32 %v6904_v62, %v12817_v21  ;;  %v7066_v19 = vadd.f32 %v7065_v58, %v12819_v25  ;;  %v6906_v57 = vpop.f32.mrb[185].mxu0  ;;  %v7067_v44 = vpop.f32.mrb[185].mxu1 }
 0x606   : > { %7197 = vst [vmem:[%s12831_s25 + $0x168] sm:$0xff] %v7133_v4  ;;  %7199 = vst [vmem:[%s12831_s25 + $0x178] sm:$0xff] %v7135_v29  ;;  %v6907_v43 = vadd.f32 %v6906_v57, %v12821_v24  ;;  %v7068_v0 = vadd.f32 %v7067_v44, %v12823_v63 }
 0x607   : > { %v7136_v3 = vmax.f32 %v6905_v36, 0.0  ;;  %v7138_v10 = vmax.f32 %v7066_v19, 0.0 }
 0x608   : > { %v7137_v54 = vmax.f32 %v6907_v43, 0.0  ;;  %v7139_v55 = vmax.f32 %v7068_v0, 0.0  ;;  %v6910_v9 = vpop.f32.mrb[186].mxu0  ;;  %v7071_v13 = vpop.f32.mrb[186].mxu1 }
 0x609   : > { %7200 = vst [vmem:[%s12831_s25 + $0x180] sm:$0xff] %v7136_v3  ;;  %7202 = vst [vmem:[%s12831_s25 + $0x190] sm:$0xff] %v7138_v10  ;;  %v6911_v18 = vadd.f32 %v6910_v9, %v12817_v21  ;;  %v7072_v27 = vadd.f32 %v7071_v13, %v12819_v25  ;;  %v6912_v61 = vpop.f32.mrb[187].mxu0  ;;  %v7073_v35 = vpop.f32.mrb[187].mxu1 }
 0x60a   : > { %7201 = vst [vmem:[%s12831_s25 + $0x188] sm:$0xff] %v7137_v54  ;;  %7203 = vst [vmem:[%s12831_s25 + $0x198] sm:$0xff] %v7139_v55  ;;  %v6913_v53 = vadd.f32 %v6912_v61, %v12821_v24  ;;  %v7074_v26 = vadd.f32 %v7073_v35, %v12823_v63 }
 0x60b   : > { %v7140_v6 = vmax.f32 %v6911_v18, 0.0  ;;  %v7142_v14 = vmax.f32 %v7072_v27, 0.0 }
 0x60c   : > { %v7141_v31 = vmax.f32 %v6913_v53, 0.0  ;;  %v7143_v7 = vmax.f32 %v7074_v26, 0.0  ;;  %v6916_v22 = vpop.f32.mrb[188].mxu0  ;;  %v7077_v51 = vpop.f32.mrb[188].mxu1 }
 0x60d   : > { %7204 = vst [vmem:[%s12831_s25 + $0x1a0] sm:$0xff] %v7140_v6  ;;  %7206 = vst [vmem:[%s12831_s25 + $0x1b0] sm:$0xff] %v7142_v14  ;;  %v6917_v37 = vadd.f32 %v6916_v22, %v12817_v21  ;;  %v7078_v11 = vadd.f32 %v7077_v51, %v12819_v25  ;;  %v6918_v15 = vpop.f32.mrb[189].mxu0  ;;  %v7079_v39 = vpop.f32.mrb[189].mxu1 }
 0x60e   : > { %7205 = vst [vmem:[%s12831_s25 + $0x1a8] sm:$0xff] %v7141_v31  ;;  %7207 = vst [vmem:[%s12831_s25 + $0x1b8] sm:$0xff] %v7143_v7  ;;  %v6919_v5 = vadd.f32 %v6918_v15, %v12821_v24  ;;  %v7080_v16 = vadd.f32 %v7079_v39, %v12823_v63 }
 0x60f   : > { %v7144_v45 = vmax.f32 %v6917_v37, 0.0  ;;  %v7146_v48 = vmax.f32 %v7078_v11, 0.0 }
 0x610   : > { %v7145_v42 = vmax.f32 %v6919_v5, 0.0  ;;  %v7147_v50 = vmax.f32 %v7080_v16, 0.0  ;;  %v6922_v59 = vpop.f32.mrb[190].mxu0  ;;  %v7083_v30 = vpop.f32.mrb[190].mxu1 }
 0x611   : > { %7208 = vst [vmem:[%s12831_s25 + $0x1c0] sm:$0xff] %v7144_v45  ;;  %7210 = vst [vmem:[%s12831_s25 + $0x1d0] sm:$0xff] %v7146_v48  ;;  %v6923_v8 = vadd.f32 %v6922_v59, %v12817_v21  ;;  %v7084_v34 = vadd.f32 %v7083_v30, %v12819_v25  ;;  %v6924_v52 = vpop.f32.mrb[191].mxu0  ;;  %v7085_v49 = vpop.f32.mrb[191].mxu1 }
 0x612   : > { %7209 = vst [vmem:[%s12831_s25 + $0x1c8] sm:$0xff] %v7145_v42  ;;  %7211 = vst [vmem:[%s12831_s25 + $0x1d8] sm:$0xff] %v7147_v50  ;;  %v6925_v23 = vadd.f32 %v6924_v52, %v12821_v24  ;;  %v7086_v32 = vadd.f32 %v7085_v49, %v12823_v63 }
 0x613   : > { %v7148_v56 = vmax.f32 %v6923_v8, 0.0  ;;  %v7150_v40 = vmax.f32 %v7084_v34, 0.0 }
 0x614   : > { %v7149_v21 = vmax.f32 %v6925_v23, 0.0  ;;  %v7151_v25 = vmax.f32 %v7086_v32, 0.0 }
 0x615   : > { %7212 = vst [vmem:[%s12831_s25 + $0x1e0] sm:$0xff] %v7148_v56  ;;  %7214 = vst [vmem:[%s12831_s25 + $0x1f0] sm:$0xff] %v7150_v40 }
 0x616   : > { %7213 = vst [vmem:[%s12831_s25 + $0x1e8] sm:$0xff] %v7149_v21  ;;  %7215 = vst [vmem:[%s12831_s25 + $0x1f8] sm:$0xff] %v7151_v25 }
 0x617   : > { %9539 = shalt.err (!%p9536_p3)
}
 0x618   : > { %s9540_s16 = scalar_lea.hbm %s12958_s13, 8192  ;;  %s9544_s25 = scalar_lea.hbm %s13021_s11, 16384 }
 0x619   : > { %p9541_p4 = scmp.ne.s32.totalorder %s12958_s13, %s9540_s16  ;;  %p9545_p9 = scmp.lt.u32.totalorder %s12958_s13, %s13021_s11 }
 0x61a   : > { %p9546_p10 = scmp.lt.u32.totalorder %s9544_s25, %s9540_s16  ;;  %p9548_p12 = scmp.lt.u32.totalorder %s9540_s16, %s12958_s13 }
 0x61b   : > { %p9542_p7 = pnand %p9541_p4, %p9698_p5 }
 0x61c   : > { %p9547_p11 = por %p9546_p10, %p9545_p9 }
 0x61d   : > { %p9543_p8 = pneg %p9542_p7 }
 0x61e   : > { %p9549_p13 = por %p9548_p12, %p9547_p11 }
 0x620   : > { %p9550_p0 = pnand %p9549_p13, %p9543_p8 }
 0x622   : > { %9553 = shalt.err (!%p9550_p0)
}
 0x623   : > { %s9599_s30 = smov 512  }
 0x624   : > { %8758 = dma.vmem_to_hbm [thread:$0]  (%p9698_p5), %s12960_s2, 8192, %s12958_s13, %s12968_s14, %s9599_s30, %s9599_s30, %s13658_s3  }
 0x625 PF: > { %p8764_p1 = scmp.ge.s32.totalorder %s9588_s20, 2  ;;  %s7245_s0 = sand.u32 1, %s9576_s17  }
 0x626   : > { %s7246_s1 = scalar_lea.sflag [#allocation4], %s7245_s0 }
 0x627   : > { %p8761_p2 = pnand %p8764_p1, %p9702_p6 }
 0x629   : > { %9571 = dma.done.wait (!%p8761_p2), %s7246_s1, 8192  }
 0x62a   : > { %9573 = vsyncadd (!%p8761_p2), %s7246_s1, 4294959104  ;;  %p21_p3 = scmp.ge.s32.totalorder %s9685_s23, 4   ;;  %s13659_s17 = smov %s9580_s18 }
 0x62b   : > { %s13660_s18 = smov %s9584_s19  ;;  %s13661_s19 = smov %s9696_s26 }
 0x62c   : > { %s13662_s20 = smov %s9685_s23  ;;  %23 = sbr.rel (!%p21_p3) target bundleno = 8 (0x8), region = 114 }
 0x633   :  { %7251 = vsyncpa [#allocation4], 1 }
 0x634   :  { %7253 = vsyncpa [#allocation4 + $0x1], 1 }

</bundles_post_ra>
